<compile_context>
chip_gen: v7x
topology: tpu7x:2x2x1
jax: 0.10.0
libtpu: 0.0.40
codegen_flags: <defaults>
</compile_context>

<pallas_src>
import jax
import jax.numpy as jnp
import numpy as np
from jax.experimental import pallas as pl
from jax.experimental.pallas import tpu as pltpu

EPS = 1e-5


def resblock_kernel(x_ref, w1_ref, b1_ref, w2_ref, b2_ref, out_ref,
                    shl_ref, shc_ref, shr_ref):
    """Processes NB batch images per grid step.

    x_ref   : (NB, H, W, C)    f32 input block (NHWC, unpadded)
    w*_ref  : (9, C, C)        bf16 conv weights, tap-major [kh*3+kw, Cin, Cout],
                               with the BN scale folded in
    b*_ref  : (1, C)           f32 folded conv-bias + BN bias
    out_ref : (NB, H, W, C)    f32 output block
    sh*_ref : (NB, H+2, W, C)  bf16 scratch: H-padded activation shifted
                               left / centered / right along W (one per kw column)
    """
    NB, H, W, C = out_ref.shape
    M = NB * H * W

    # Column index along W (the sublane axis): used to zero the column that wraps
    # around in the circular roll (it corresponds to the W zero-padding).
    wcol = jax.lax.broadcasted_iota(jnp.int32, (W, C), 0)
    not_first_col = wcol > 0          # kw=0 tap: x[w-1] does not exist at w == 0
    not_last_col = wcol < W - 1       # kw=2 tap: x[w+1] does not exist at w == W-1

    # Keep the H-padding rows (0 and H+1) of the staged buffers zero. Re-zeroing
    # only the two border rows every step is cheap (6 small stores) and is correct
    # under megacore partitioning of the batch grid axis (unlike a one-time
    # program_id==0 init, since scratch is per-core). The interiors are fully
    # rewritten each conv, so this is the only padding maintenance needed.
    zrow = jnp.zeros((NB, 1, W, C), jnp.bfloat16)
    for ref in (shl_ref, shc_ref, shr_ref):
        ref[:, 0:1, :, :] = zrow
        ref[:, H + 1:H + 2, :, :] = zrow

    def stage_shifted(act):
        """Stage the W-shifted copies of a (NB, H, W, C) f32 activation into the
        interior rows [1:H+1] of the three H-padded bf16 scratches."""
        act3 = act.reshape(NB * H, W, C)          # layout-preserving (W,C) slabs
        shc_ref[:, 1:H + 1, :, :] = act.astype(jnp.bfloat16)
        # Left neighbour x[..., w-1, :] at position w  (roll by +1, wrapped column
        # w == 0 masked to the zero padding value).
        left = jnp.where(not_first_col, pltpu.roll(act3, 1, axis=1), 0.0)
        shl_ref[:, 1:H + 1, :, :] = left.reshape(NB, H, W, C).astype(jnp.bfloat16)
        # Right neighbour x[..., w+1, :] at position w (roll by W-1 == -1).
        right = jnp.where(not_last_col, pltpu.roll(act3, W - 1, axis=1), 0.0)
        shr_ref[:, 1:H + 1, :, :] = right.reshape(NB, H, W, C).astype(jnp.bfloat16)

    def conv3x3(w_ref, b_ref):
        """3x3 conv (pad=1) over the staged activation. All 9 taps are aligned
        H-slices of the staged buffers -> 9 (M, C) x (C, C) bf16 MXU matmuls with
        f32 accumulation. Returns (M, C) f32 including the folded bias."""
        taps = (shl_ref, shc_ref, shr_ref)        # indexed by kw
        acc = None
        for kh in range(3):
            for kw in range(3):
                p = taps[kw][:, kh:kh + H, :, :].reshape(M, C)
                d = jnp.dot(p, w_ref[kh * 3 + kw],
                            preferred_element_type=jnp.float32)
                acc = d if acc is None else acc + d
        return acc + b_ref[...]

    x = x_ref[...]                                        # (NB, H, W, C) f32

    # conv1 -> BN1 -> ReLU
    stage_shifted(x)
    y1 = jnp.maximum(conv3x3(w1_ref, b1_ref), 0.0)        # (M, C) f32

    # conv2 -> BN2
    stage_shifted(y1.reshape(NB, H, W, C))
    y2 = conv3x3(w2_ref, b2_ref)                          # (M, C) f32

    # residual add + final ReLU
    out_ref[...] = jnp.maximum(y2.reshape(NB, H, W, C) + x, 0.0)


def resblock_forward(x_nchw, w1_taps, b1, w2_taps, b2, *, max_block_n=4):
    """x_nchw: (N, C, H, W) float32, PyTorch layout."""
    N, C, H, W = x_nchw.shape

    # Largest NB <= max_block_n dividing N: NB=4 gives M = NB*H*W = 256 (full MXU
    # height on v6e/v7x) while keeping >= 2 grid steps for megacore on v7x.
    NB = max(nb for nb in range(1, min(max_block_n, N) + 1) if N % nb == 0)

    x_nhwc = jnp.transpose(x_nchw, (0, 2, 3, 1))

    out_nhwc = pl.pallas_call(
        resblock_kernel,
        out_shape=jax.ShapeDtypeStruct((N, H, W, C), jnp.float32),
        grid_spec=pltpu.PrefetchScalarGridSpec(
            num_scalar_prefetch=0,
            grid=(N // NB,),
            in_specs=[
                pl.BlockSpec((NB, H, W, C), lambda n: (n, 0, 0, 0)),
                pl.BlockSpec((9, C, C), lambda n: (0, 0, 0)),
                pl.BlockSpec((1, C), lambda n: (0, 0)),
                pl.BlockSpec((9, C, C), lambda n: (0, 0, 0)),
                pl.BlockSpec((1, C), lambda n: (0, 0)),
            ],
            out_specs=pl.BlockSpec((NB, H, W, C), lambda n: (n, 0, 0, 0)),
            scratch_shapes=[pltpu.VMEM((NB, H + 2, W, C), jnp.bfloat16)
                            for _ in range(3)],
        ),
        compiler_params=pltpu.CompilerParams(
            dimension_semantics=("parallel",),
            # Working set is ~8 MiB; 32 MiB gives headroom and is safe on all gens
            # (v5e physical 128 MiB, v7x physical 64 MiB).
            vmem_limit_bytes=32 * 1024 * 1024),
    )(x_nhwc, w1_taps, b1, w2_taps, b2)

    return jnp.transpose(out_nhwc, (0, 3, 1, 2))


def init_raw_params(key, C=256):
    ks = jax.random.split(key, 8)
    w1 = 0.05 * jax.random.normal(ks[0], (C, C, 3, 3), jnp.float32)   # OIHW
    b1 = 0.05 * jax.random.normal(ks[1], (C,), jnp.float32)
    g1 = 1.0 + 0.1 * jax.random.normal(ks[2], (C,), jnp.float32)
    be1 = 0.1 * jax.random.normal(ks[3], (C,), jnp.float32)
    w2 = 0.05 * jax.random.normal(ks[4], (C, C, 3, 3), jnp.float32)   # OIHW
    b2 = 0.05 * jax.random.normal(ks[5], (C,), jnp.float32)
    g2 = 1.0 + 0.1 * jax.random.normal(ks[6], (C,), jnp.float32)
    be2 = 0.1 * jax.random.normal(ks[7], (C,), jnp.float32)
    return (w1, b1, g1, be1, w2, b2, g2, be2)


def fold_params(raw, C=256):
    """Fold conv bias + inference-mode BN (mean=0, var=1) into the conv weights
    (per-output-channel scale) and a per-channel bias; rearrange the weights into
    tap-major [9, Cin, Cout] bf16 for the MXU."""
    w1, b1, g1, be1, w2, b2, g2, be2 = raw

    def fold(w_oihw, b_conv, gamma, beta):
        scale = gamma / jnp.sqrt(1.0 + EPS)               # running var = 1, mean = 0
        w_taps = jnp.transpose(w_oihw, (2, 3, 1, 0)) * scale[None, None, None, :]
        w_taps = w_taps.reshape(9, C, C).astype(jnp.bfloat16)
        bias = (b_conv * scale + beta).reshape(1, C).astype(jnp.float32)
        return w_taps, bias

    w1_t, bb1 = fold(w1, b1, g1, be1)
    w2_t, bb2 = fold(w2, b2, g2, be2)
    return w1_t, bb1, w2_t, bb2


def resblock_reference(x_nchw, raw):
    """Pure-JAX f32 NCHW reference (matches PyTorch eval-mode forward)."""
    w1, b1, g1, be1, w2, b2, g2, be2 = raw

    def conv(x, w, b):
        y = jax.lax.conv_general_dilated(
            x, w, window_strides=(1, 1), padding=((1, 1), (1, 1)),
            dimension_numbers=("NCHW", "OIHW", "NCHW"),
            precision=jax.lax.Precision.HIGHEST)
        return y + b[None, :, None, None]

    def bn(x, gamma, beta):
        scale = gamma / jnp.sqrt(1.0 + EPS)
        return x * scale[None, :, None, None] + beta[None, :, None, None]

    h = jax.nn.relu(bn(conv(x_nchw, w1, b1), g1, be1))
    h = bn(conv(h, w2, b2), g2, be2)
    return jax.nn.relu(h + x_nchw)


if __name__ == "__main__":
    key = jax.random.PRNGKey(0)
    kx, kp = jax.random.split(key)

    N, C, H, W = 8, 256, 8, 8        # chess-board spatial; channels fixed by the module
    x = jax.random.normal(kx, (N, C, H, W), jnp.float32)

    raw = init_raw_params(kp, C)
    w1_t, b1, w2_t, b2 = fold_params(raw, C)

    out = jax.block_until_ready(resblock_forward(x, w1_t, b1, w2_t, b2))
    ref = jax.block_until_ready(resblock_reference(x, raw))

    out_np, ref_np = np.asarray(out), np.asarray(ref)
    # bf16 MXU operands (f32 accumulation) across two chained 3x3x256 convs:
    # validate with a tight relative-L2 check plus bf16-scale elementwise bounds.
    rel_l2 = np.linalg.norm(out_np - ref_np) / np.linalg.norm(ref_np)
    assert rel_l2 < 1e-2, f"relative L2 error too large: {rel_l2}"
    np.testing.assert_allclose(out_np, ref_np, rtol=5e-2, atol=1e-1)

    print("KERNEL_OK")
</pallas_src>

<mosaic_0001>
module attributes {stable_mosaic.version = 11 : i64} {
  func.func @resblock_kernel(%arg0: i32, %arg1: memref<4x8x8x256xf32, #tpu.memory_space<vmem>>, %arg2: memref<9x256x256xbf16, #tpu.memory_space<vmem>>, %arg3: memref<1x256xf32, #tpu.memory_space<vmem>>, %arg4: memref<9x256x256xbf16, #tpu.memory_space<vmem>>, %arg5: memref<1x256xf32, #tpu.memory_space<vmem>>, %arg6: memref<4x8x8x256xf32, #tpu.memory_space<vmem>>, %arg7: memref<4x10x8x256xbf16, #tpu.memory_space<vmem>>, %arg8: memref<4x10x8x256xbf16, #tpu.memory_space<vmem>>, %arg9: memref<4x10x8x256xbf16, #tpu.memory_space<vmem>>) attributes {dimension_semantics = [#tpu.dimension_semantics<parallel>], iteration_bounds = array<i64: 2>, scalar_prefetch = 0 : i64, scratch_operands = 3 : i64, tpu.core_type = #tpu.core_type<tc>, window_params = [{transform_indices = @transform_0, window_bounds = array<i64: 4, 8, 8, 256>}, {pipeline_mode = #tpu.pipeline_mode<synchronous>, transform_indices = @transform_1, window_bounds = array<i64: 9, 256, 256>}, {pipeline_mode = #tpu.pipeline_mode<synchronous>, transform_indices = @transform_2, window_bounds = array<i64: 1, 256>}, {pipeline_mode = #tpu.pipeline_mode<synchronous>, transform_indices = @transform_3, window_bounds = array<i64: 9, 256, 256>}, {pipeline_mode = #tpu.pipeline_mode<synchronous>, transform_indices = @transform_4, window_bounds = array<i64: 1, 256>}, {transform_indices = @transform_5, window_bounds = array<i64: 4, 8, 8, 256>}]} {
    %0 = tpu.iota {dimensions = array<i32: 0>} : vector<8x256xi32>
    %c0_i32 = arith.constant 0 : i32
    %1 = vector.broadcast %c0_i32 : i32 to vector<8x256xi32>
    %2 = arith.cmpi sgt, %0, %1 : vector<8x256xi32>
    %c7_i32 = arith.constant 7 : i32
    %3 = vector.broadcast %c7_i32 : i32 to vector<8x256xi32>
    %4 = arith.cmpi slt, %0, %3 : vector<8x256xi32>
    %cst = arith.constant 0.000000e+00 : bf16
    %5 = vector.broadcast %cst : bf16 to vector<4x1x8x256xbf16>
    %c0 = arith.constant 0 : index
    %c0_0 = arith.constant 0 : index
    %c0_1 = arith.constant 0 : index
    %c0_2 = arith.constant 0 : index
    %6 = vector.load %arg7[%c0, %c0_0, %c0_1, %c0_2] : memref<4x10x8x256xbf16, #tpu.memory_space<vmem>>, vector<4x1x8x256xbf16>
    tpu.vector_store %arg7[%c0, %c0_0, %c0_1, %c0_2], %5 {strides = array<i32>} : memref<4x10x8x256xbf16, #tpu.memory_space<vmem>>, vector<4x1x8x256xbf16>,
    %c0_3 = arith.constant 0 : index
    %c9 = arith.constant 9 : index
    %c0_4 = arith.constant 0 : index
    %c0_5 = arith.constant 0 : index
    %7 = vector.load %arg7[%c0_3, %c9, %c0_4, %c0_5] : memref<4x10x8x256xbf16, #tpu.memory_space<vmem>>, vector<4x1x8x256xbf16>
    tpu.vector_store %arg7[%c0_3, %c9, %c0_4, %c0_5], %5 {strides = array<i32>} : memref<4x10x8x256xbf16, #tpu.memory_space<vmem>>, vector<4x1x8x256xbf16>,
    %c0_6 = arith.constant 0 : index
    %c0_7 = arith.constant 0 : index
    %c0_8 = arith.constant 0 : index
    %c0_9 = arith.constant 0 : index
    %8 = vector.load %arg8[%c0_6, %c0_7, %c0_8, %c0_9] : memref<4x10x8x256xbf16, #tpu.memory_space<vmem>>, vector<4x1x8x256xbf16>
    tpu.vector_store %arg8[%c0_6, %c0_7, %c0_8, %c0_9], %5 {strides = array<i32>} : memref<4x10x8x256xbf16, #tpu.memory_space<vmem>>, vector<4x1x8x256xbf16>,
    %c0_10 = arith.constant 0 : index
    %c9_11 = arith.constant 9 : index
    %c0_12 = arith.constant 0 : index
    %c0_13 = arith.constant 0 : index
    %9 = vector.load %arg8[%c0_10, %c9_11, %c0_12, %c0_13] : memref<4x10x8x256xbf16, #tpu.memory_space<vmem>>, vector<4x1x8x256xbf16>
    tpu.vector_store %arg8[%c0_10, %c9_11, %c0_12, %c0_13], %5 {strides = array<i32>} : memref<4x10x8x256xbf16, #tpu.memory_space<vmem>>, vector<4x1x8x256xbf16>,
    %c0_14 = arith.constant 0 : index
    %c0_15 = arith.constant 0 : index
    %c0_16 = arith.constant 0 : index
    %c0_17 = arith.constant 0 : index
    %10 = vector.load %arg9[%c0_14, %c0_15, %c0_16, %c0_17] : memref<4x10x8x256xbf16, #tpu.memory_space<vmem>>, vector<4x1x8x256xbf16>
    tpu.vector_store %arg9[%c0_14, %c0_15, %c0_16, %c0_17], %5 {strides = array<i32>} : memref<4x10x8x256xbf16, #tpu.memory_space<vmem>>, vector<4x1x8x256xbf16>,
    %c0_18 = arith.constant 0 : index
    %c9_19 = arith.constant 9 : index
    %c0_20 = arith.constant 0 : index
    %c0_21 = arith.constant 0 : index
    %11 = vector.load %arg9[%c0_18, %c9_19, %c0_20, %c0_21] : memref<4x10x8x256xbf16, #tpu.memory_space<vmem>>, vector<4x1x8x256xbf16>
    tpu.vector_store %arg9[%c0_18, %c9_19, %c0_20, %c0_21], %5 {strides = array<i32>} : memref<4x10x8x256xbf16, #tpu.memory_space<vmem>>, vector<4x1x8x256xbf16>,
    %c0_22 = arith.constant 0 : index
    %c0_23 = arith.constant 0 : index
    %c0_24 = arith.constant 0 : index
    %c0_25 = arith.constant 0 : index
    %12 = vector.load %arg1[%c0_22, %c0_23, %c0_24, %c0_25] : memref<4x8x8x256xf32, #tpu.memory_space<vmem>>, vector<4x8x8x256xf32>
    %13 = vector.shape_cast %12 : vector<4x8x8x256xf32> to vector<32x8x256xf32>
    %14 = arith.truncf %12 : vector<4x8x8x256xf32> to vector<4x8x8x256xbf16>
    %c0_26 = arith.constant 0 : index
    %c1 = arith.constant 1 : index
    %c0_27 = arith.constant 0 : index
    %c0_28 = arith.constant 0 : index
    %15 = vector.load %arg8[%c0_26, %c1, %c0_27, %c0_28] : memref<4x10x8x256xbf16, #tpu.memory_space<vmem>>, vector<4x8x8x256xbf16>
    tpu.vector_store %arg8[%c0_26, %c1, %c0_27, %c0_28], %14 {strides = array<i32>} : memref<4x10x8x256xbf16, #tpu.memory_space<vmem>>, vector<4x8x8x256xbf16>,
    %c1_i32 = arith.constant 1 : i32
    %16 = tpu.dynamic_rotate %13 by %c1_i32 dim 1 : vector<32x8x256xf32>, i32 -> vector<32x8x256xf32>
    %cst_29 = arith.constant 0.000000e+00 : f32
    %17 = vector.shape_cast %2 : vector<8x256xi1> to vector<1x8x256xi1>
    %18 = vector.broadcast %17 : vector<1x8x256xi1> to vector<32x8x256xi1>
    %19 = vector.broadcast %cst_29 : f32 to vector<32x8x256xf32>
    %20 = arith.select %18, %16, %19 : vector<32x8x256xi1>, vector<32x8x256xf32>
    %21 = vector.shape_cast %20 : vector<32x8x256xf32> to vector<4x8x8x256xf32>
    %22 = arith.truncf %21 : vector<4x8x8x256xf32> to vector<4x8x8x256xbf16>
    %c0_30 = arith.constant 0 : index
    %c1_31 = arith.constant 1 : index
    %c0_32 = arith.constant 0 : index
    %c0_33 = arith.constant 0 : index
    %23 = vector.load %arg7[%c0_30, %c1_31, %c0_32, %c0_33] : memref<4x10x8x256xbf16, #tpu.memory_space<vmem>>, vector<4x8x8x256xbf16>
    tpu.vector_store %arg7[%c0_30, %c1_31, %c0_32, %c0_33], %22 {strides = array<i32>} : memref<4x10x8x256xbf16, #tpu.memory_space<vmem>>, vector<4x8x8x256xbf16>,
    %c7_i32_34 = arith.constant 7 : i32
    %24 = tpu.dynamic_rotate %13 by %c7_i32_34 dim 1 : vector<32x8x256xf32>, i32 -> vector<32x8x256xf32>
    %cst_35 = arith.constant 0.000000e+00 : f32
    %25 = vector.shape_cast %4 : vector<8x256xi1> to vector<1x8x256xi1>
    %26 = vector.broadcast %25 : vector<1x8x256xi1> to vector<32x8x256xi1>
    %27 = vector.broadcast %cst_35 : f32 to vector<32x8x256xf32>
    %28 = arith.select %26, %24, %27 : vector<32x8x256xi1>, vector<32x8x256xf32>
    %29 = vector.shape_cast %28 : vector<32x8x256xf32> to vector<4x8x8x256xf32>
    %30 = arith.truncf %29 : vector<4x8x8x256xf32> to vector<4x8x8x256xbf16>
    %c0_36 = arith.constant 0 : index
    %c1_37 = arith.constant 1 : index
    %c0_38 = arith.constant 0 : index
    %c0_39 = arith.constant 0 : index
    %31 = vector.load %arg9[%c0_36, %c1_37, %c0_38, %c0_39] : memref<4x10x8x256xbf16, #tpu.memory_space<vmem>>, vector<4x8x8x256xbf16>
    tpu.vector_store %arg9[%c0_36, %c1_37, %c0_38, %c0_39], %30 {strides = array<i32>} : memref<4x10x8x256xbf16, #tpu.memory_space<vmem>>, vector<4x8x8x256xbf16>,
    %c0_40 = arith.constant 0 : index
    %c0_41 = arith.constant 0 : index
    %c0_42 = arith.constant 0 : index
    %c0_43 = arith.constant 0 : index
    %32 = vector.load %arg7[%c0_40, %c0_41, %c0_42, %c0_43] : memref<4x10x8x256xbf16, #tpu.memory_space<vmem>>, vector<4x8x8x256xbf16>
    %33 = vector.shape_cast %32 : vector<4x8x8x256xbf16> to vector<256x256xbf16>
    %c0_44 = arith.constant 0 : index
    %c0_45 = arith.constant 0 : index
    %c0_46 = arith.constant 0 : index
    %34 = vector.load %arg2[%c0_44, %c0_45, %c0_46] : memref<9x256x256xbf16, #tpu.memory_space<vmem>>, vector<1x256x256xbf16>
    %35 = vector.shape_cast %34 : vector<1x256x256xbf16> to vector<256x256xbf16>
    %cst_47 = arith.constant dense<0.000000e+00> : vector<256x256xf32>
    %36 = tpu.matmul %33, %35, %cst_47 {dimension_numbers = #tpu.dot_dimension_numbers<[1], [0], [0], [1], [0, 0, 1, 1], [], []>} : vector<256x256xbf16>, vector<256x256xbf16>, vector<256x256xf32> -> vector<256x256xf32>
    %c0_48 = arith.constant 0 : index
    %c0_49 = arith.constant 0 : index
    %c0_50 = arith.constant 0 : index
    %c0_51 = arith.constant 0 : index
    %37 = vector.load %arg8[%c0_48, %c0_49, %c0_50, %c0_51] : memref<4x10x8x256xbf16, #tpu.memory_space<vmem>>, vector<4x8x8x256xbf16>
    %38 = vector.shape_cast %37 : vector<4x8x8x256xbf16> to vector<256x256xbf16>
    %c1_52 = arith.constant 1 : index
    %c0_53 = arith.constant 0 : index
    %c0_54 = arith.constant 0 : index
    %39 = vector.load %arg2[%c1_52, %c0_53, %c0_54] : memref<9x256x256xbf16, #tpu.memory_space<vmem>>, vector<1x256x256xbf16>
    %40 = vector.shape_cast %39 : vector<1x256x256xbf16> to vector<256x256xbf16>
    %cst_55 = arith.constant dense<0.000000e+00> : vector<256x256xf32>
    %41 = tpu.matmul %38, %40, %cst_55 {dimension_numbers = #tpu.dot_dimension_numbers<[1], [0], [0], [1], [0, 0, 1, 1], [], []>} : vector<256x256xbf16>, vector<256x256xbf16>, vector<256x256xf32> -> vector<256x256xf32>
    %42 = arith.addf %36, %41 : vector<256x256xf32>
    %c0_56 = arith.constant 0 : index
    %c0_57 = arith.constant 0 : index
    %c0_58 = arith.constant 0 : index
    %c0_59 = arith.constant 0 : index
    %43 = vector.load %arg9[%c0_56, %c0_57, %c0_58, %c0_59] : memref<4x10x8x256xbf16, #tpu.memory_space<vmem>>, vector<4x8x8x256xbf16>
    %44 = vector.shape_cast %43 : vector<4x8x8x256xbf16> to vector<256x256xbf16>
    %c2 = arith.constant 2 : index
    %c0_60 = arith.constant 0 : index
    %c0_61 = arith.constant 0 : index
    %45 = vector.load %arg2[%c2, %c0_60, %c0_61] : memref<9x256x256xbf16, #tpu.memory_space<vmem>>, vector<1x256x256xbf16>
    %46 = vector.shape_cast %45 : vector<1x256x256xbf16> to vector<256x256xbf16>
    %cst_62 = arith.constant dense<0.000000e+00> : vector<256x256xf32>
    %47 = tpu.matmul %44, %46, %cst_62 {dimension_numbers = #tpu.dot_dimension_numbers<[1], [0], [0], [1], [0, 0, 1, 1], [], []>} : vector<256x256xbf16>, vector<256x256xbf16>, vector<256x256xf32> -> vector<256x256xf32>
    %48 = arith.addf %42, %47 : vector<256x256xf32>
    %c0_63 = arith.constant 0 : index
    %c1_64 = arith.constant 1 : index
    %c0_65 = arith.constant 0 : index
    %c0_66 = arith.constant 0 : index
    %49 = vector.load %arg7[%c0_63, %c1_64, %c0_65, %c0_66] : memref<4x10x8x256xbf16, #tpu.memory_space<vmem>>, vector<4x8x8x256xbf16>
    %50 = vector.shape_cast %49 : vector<4x8x8x256xbf16> to vector<256x256xbf16>
    %c3 = arith.constant 3 : index
    %c0_67 = arith.constant 0 : index
    %c0_68 = arith.constant 0 : index
    %51 = vector.load %arg2[%c3, %c0_67, %c0_68] : memref<9x256x256xbf16, #tpu.memory_space<vmem>>, vector<1x256x256xbf16>
    %52 = vector.shape_cast %51 : vector<1x256x256xbf16> to vector<256x256xbf16>
    %cst_69 = arith.constant dense<0.000000e+00> : vector<256x256xf32>
    %53 = tpu.matmul %50, %52, %cst_69 {dimension_numbers = #tpu.dot_dimension_numbers<[1], [0], [0], [1], [0, 0, 1, 1], [], []>} : vector<256x256xbf16>, vector<256x256xbf16>, vector<256x256xf32> -> vector<256x256xf32>
    %54 = arith.addf %48, %53 : vector<256x256xf32>
    %c0_70 = arith.constant 0 : index
    %c1_71 = arith.constant 1 : index
    %c0_72 = arith.constant 0 : index
    %c0_73 = arith.constant 0 : index
    %55 = vector.load %arg8[%c0_70, %c1_71, %c0_72, %c0_73] : memref<4x10x8x256xbf16, #tpu.memory_space<vmem>>, vector<4x8x8x256xbf16>
    %56 = vector.shape_cast %55 : vector<4x8x8x256xbf16> to vector<256x256xbf16>
    %c4 = arith.constant 4 : index
    %c0_74 = arith.constant 0 : index
    %c0_75 = arith.constant 0 : index
    %57 = vector.load %arg2[%c4, %c0_74, %c0_75] : memref<9x256x256xbf16, #tpu.memory_space<vmem>>, vector<1x256x256xbf16>
    %58 = vector.shape_cast %57 : vector<1x256x256xbf16> to vector<256x256xbf16>
    %cst_76 = arith.constant dense<0.000000e+00> : vector<256x256xf32>
    %59 = tpu.matmul %56, %58, %cst_76 {dimension_numbers = #tpu.dot_dimension_numbers<[1], [0], [0], [1], [0, 0, 1, 1], [], []>} : vector<256x256xbf16>, vector<256x256xbf16>, vector<256x256xf32> -> vector<256x256xf32>
    %60 = arith.addf %54, %59 : vector<256x256xf32>
    %c0_77 = arith.constant 0 : index
    %c1_78 = arith.constant 1 : index
    %c0_79 = arith.constant 0 : index
    %c0_80 = arith.constant 0 : index
    %61 = vector.load %arg9[%c0_77, %c1_78, %c0_79, %c0_80] : memref<4x10x8x256xbf16, #tpu.memory_space<vmem>>, vector<4x8x8x256xbf16>
    %62 = vector.shape_cast %61 : vector<4x8x8x256xbf16> to vector<256x256xbf16>
    %c5 = arith.constant 5 : index
    %c0_81 = arith.constant 0 : index
    %c0_82 = arith.constant 0 : index
    %63 = vector.load %arg2[%c5, %c0_81, %c0_82] : memref<9x256x256xbf16, #tpu.memory_space<vmem>>, vector<1x256x256xbf16>
    %64 = vector.shape_cast %63 : vector<1x256x256xbf16> to vector<256x256xbf16>
    %cst_83 = arith.constant dense<0.000000e+00> : vector<256x256xf32>
    %65 = tpu.matmul %62, %64, %cst_83 {dimension_numbers = #tpu.dot_dimension_numbers<[1], [0], [0], [1], [0, 0, 1, 1], [], []>} : vector<256x256xbf16>, vector<256x256xbf16>, vector<256x256xf32> -> vector<256x256xf32>
    %66 = arith.addf %60, %65 : vector<256x256xf32>
    %c0_84 = arith.constant 0 : index
    %c2_85 = arith.constant 2 : index
    %c0_86 = arith.constant 0 : index
    %c0_87 = arith.constant 0 : index
    %67 = vector.load %arg7[%c0_84, %c2_85, %c0_86, %c0_87] : memref<4x10x8x256xbf16, #tpu.memory_space<vmem>>, vector<4x8x8x256xbf16>
    %68 = vector.shape_cast %67 : vector<4x8x8x256xbf16> to vector<256x256xbf16>
    %c6 = arith.constant 6 : index
    %c0_88 = arith.constant 0 : index
    %c0_89 = arith.constant 0 : index
    %69 = vector.load %arg2[%c6, %c0_88, %c0_89] : memref<9x256x256xbf16, #tpu.memory_space<vmem>>, vector<1x256x256xbf16>
    %70 = vector.shape_cast %69 : vector<1x256x256xbf16> to vector<256x256xbf16>
    %cst_90 = arith.constant dense<0.000000e+00> : vector<256x256xf32>
    %71 = tpu.matmul %68, %70, %cst_90 {dimension_numbers = #tpu.dot_dimension_numbers<[1], [0], [0], [1], [0, 0, 1, 1], [], []>} : vector<256x256xbf16>, vector<256x256xbf16>, vector<256x256xf32> -> vector<256x256xf32>
    %72 = arith.addf %66, %71 : vector<256x256xf32>
    %c0_91 = arith.constant 0 : index
    %c2_92 = arith.constant 2 : index
    %c0_93 = arith.constant 0 : index
    %c0_94 = arith.constant 0 : index
    %73 = vector.load %arg8[%c0_91, %c2_92, %c0_93, %c0_94] : memref<4x10x8x256xbf16, #tpu.memory_space<vmem>>, vector<4x8x8x256xbf16>
    %74 = vector.shape_cast %73 : vector<4x8x8x256xbf16> to vector<256x256xbf16>
    %c7 = arith.constant 7 : index
    %c0_95 = arith.constant 0 : index
    %c0_96 = arith.constant 0 : index
    %75 = vector.load %arg2[%c7, %c0_95, %c0_96] : memref<9x256x256xbf16, #tpu.memory_space<vmem>>, vector<1x256x256xbf16>
    %76 = vector.shape_cast %75 : vector<1x256x256xbf16> to vector<256x256xbf16>
    %cst_97 = arith.constant dense<0.000000e+00> : vector<256x256xf32>
    %77 = tpu.matmul %74, %76, %cst_97 {dimension_numbers = #tpu.dot_dimension_numbers<[1], [0], [0], [1], [0, 0, 1, 1], [], []>} : vector<256x256xbf16>, vector<256x256xbf16>, vector<256x256xf32> -> vector<256x256xf32>
    %78 = arith.addf %72, %77 : vector<256x256xf32>
    %c0_98 = arith.constant 0 : index
    %c2_99 = arith.constant 2 : index
    %c0_100 = arith.constant 0 : index
    %c0_101 = arith.constant 0 : index
    %79 = vector.load %arg9[%c0_98, %c2_99, %c0_100, %c0_101] : memref<4x10x8x256xbf16, #tpu.memory_space<vmem>>, vector<4x8x8x256xbf16>
    %80 = vector.shape_cast %79 : vector<4x8x8x256xbf16> to vector<256x256xbf16>
    %c8 = arith.constant 8 : index
    %c0_102 = arith.constant 0 : index
    %c0_103 = arith.constant 0 : index
    %81 = vector.load %arg2[%c8, %c0_102, %c0_103] : memref<9x256x256xbf16, #tpu.memory_space<vmem>>, vector<1x256x256xbf16>
    %82 = vector.shape_cast %81 : vector<1x256x256xbf16> to vector<256x256xbf16>
    %cst_104 = arith.constant dense<0.000000e+00> : vector<256x256xf32>
    %83 = tpu.matmul %80, %82, %cst_104 {dimension_numbers = #tpu.dot_dimension_numbers<[1], [0], [0], [1], [0, 0, 1, 1], [], []>} : vector<256x256xbf16>, vector<256x256xbf16>, vector<256x256xf32> -> vector<256x256xf32>
    %84 = arith.addf %78, %83 : vector<256x256xf32>
    %c0_105 = arith.constant 0 : index
    %c0_106 = arith.constant 0 : index
    %85 = vector.load %arg3[%c0_105, %c0_106] : memref<1x256xf32, #tpu.memory_space<vmem>>, vector<1x256xf32>
    %86 = vector.broadcast %85 : vector<1x256xf32> to vector<256x256xf32>
    %87 = arith.addf %84, %86 : vector<256x256xf32>
    %cst_107 = arith.constant 0.000000e+00 : f32
    %88 = vector.broadcast %cst_107 : f32 to vector<256x256xf32>
    %89 = arith.maximumf %87, %88 : vector<256x256xf32>
    %90 = vector.shape_cast %89 : vector<256x256xf32> to vector<4x8x8x256xf32>
    %91 = vector.shape_cast %90 : vector<4x8x8x256xf32> to vector<32x8x256xf32>
    %92 = arith.truncf %90 : vector<4x8x8x256xf32> to vector<4x8x8x256xbf16>
    %c0_108 = arith.constant 0 : index
    %c1_109 = arith.constant 1 : index
    %c0_110 = arith.constant 0 : index
    %c0_111 = arith.constant 0 : index
    %93 = vector.load %arg8[%c0_108, %c1_109, %c0_110, %c0_111] : memref<4x10x8x256xbf16, #tpu.memory_space<vmem>>, vector<4x8x8x256xbf16>
    tpu.vector_store %arg8[%c0_108, %c1_109, %c0_110, %c0_111], %92 {strides = array<i32>} : memref<4x10x8x256xbf16, #tpu.memory_space<vmem>>, vector<4x8x8x256xbf16>,
    %c1_i32_112 = arith.constant 1 : i32
    %94 = tpu.dynamic_rotate %91 by %c1_i32_112 dim 1 : vector<32x8x256xf32>, i32 -> vector<32x8x256xf32>
    %cst_113 = arith.constant 0.000000e+00 : f32
    %95 = vector.shape_cast %2 : vector<8x256xi1> to vector<1x8x256xi1>
    %96 = vector.broadcast %95 : vector<1x8x256xi1> to vector<32x8x256xi1>
    %97 = vector.broadcast %cst_113 : f32 to vector<32x8x256xf32>
    %98 = arith.select %96, %94, %97 : vector<32x8x256xi1>, vector<32x8x256xf32>
    %99 = vector.shape_cast %98 : vector<32x8x256xf32> to vector<4x8x8x256xf32>
    %100 = arith.truncf %99 : vector<4x8x8x256xf32> to vector<4x8x8x256xbf16>
    %c0_114 = arith.constant 0 : index
    %c1_115 = arith.constant 1 : index
    %c0_116 = arith.constant 0 : index
    %c0_117 = arith.constant 0 : index
    %101 = vector.load %arg7[%c0_114, %c1_115, %c0_116, %c0_117] : memref<4x10x8x256xbf16, #tpu.memory_space<vmem>>, vector<4x8x8x256xbf16>
    tpu.vector_store %arg7[%c0_114, %c1_115, %c0_116, %c0_117], %100 {strides = array<i32>} : memref<4x10x8x256xbf16, #tpu.memory_space<vmem>>, vector<4x8x8x256xbf16>,
    %c7_i32_118 = arith.constant 7 : i32
    %102 = tpu.dynamic_rotate %91 by %c7_i32_118 dim 1 : vector<32x8x256xf32>, i32 -> vector<32x8x256xf32>
    %cst_119 = arith.constant 0.000000e+00 : f32
    %103 = vector.shape_cast %4 : vector<8x256xi1> to vector<1x8x256xi1>
    %104 = vector.broadcast %103 : vector<1x8x256xi1> to vector<32x8x256xi1>
    %105 = vector.broadcast %cst_119 : f32 to vector<32x8x256xf32>
    %106 = arith.select %104, %102, %105 : vector<32x8x256xi1>, vector<32x8x256xf32>
    %107 = vector.shape_cast %106 : vector<32x8x256xf32> to vector<4x8x8x256xf32>
    %108 = arith.truncf %107 : vector<4x8x8x256xf32> to vector<4x8x8x256xbf16>
    %c0_120 = arith.constant 0 : index
    %c1_121 = arith.constant 1 : index
    %c0_122 = arith.constant 0 : index
    %c0_123 = arith.constant 0 : index
    %109 = vector.load %arg9[%c0_120, %c1_121, %c0_122, %c0_123] : memref<4x10x8x256xbf16, #tpu.memory_space<vmem>>, vector<4x8x8x256xbf16>
    tpu.vector_store %arg9[%c0_120, %c1_121, %c0_122, %c0_123], %108 {strides = array<i32>} : memref<4x10x8x256xbf16, #tpu.memory_space<vmem>>, vector<4x8x8x256xbf16>,
    %c0_124 = arith.constant 0 : index
    %c0_125 = arith.constant 0 : index
    %c0_126 = arith.constant 0 : index
    %c0_127 = arith.constant 0 : index
    %110 = vector.load %arg7[%c0_124, %c0_125, %c0_126, %c0_127] : memref<4x10x8x256xbf16, #tpu.memory_space<vmem>>, vector<4x8x8x256xbf16>
    %111 = vector.shape_cast %110 : vector<4x8x8x256xbf16> to vector<256x256xbf16>
    %c0_128 = arith.constant 0 : index
    %c0_129 = arith.constant 0 : index
    %c0_130 = arith.constant 0 : index
    %112 = vector.load %arg4[%c0_128, %c0_129, %c0_130] : memref<9x256x256xbf16, #tpu.memory_space<vmem>>, vector<1x256x256xbf16>
    %113 = vector.shape_cast %112 : vector<1x256x256xbf16> to vector<256x256xbf16>
    %cst_131 = arith.constant dense<0.000000e+00> : vector<256x256xf32>
    %114 = tpu.matmul %111, %113, %cst_131 {dimension_numbers = #tpu.dot_dimension_numbers<[1], [0], [0], [1], [0, 0, 1, 1], [], []>} : vector<256x256xbf16>, vector<256x256xbf16>, vector<256x256xf32> -> vector<256x256xf32>
    %c0_132 = arith.constant 0 : index
    %c0_133 = arith.constant 0 : index
    %c0_134 = arith.constant 0 : index
    %c0_135 = arith.constant 0 : index
    %115 = vector.load %arg8[%c0_132, %c0_133, %c0_134, %c0_135] : memref<4x10x8x256xbf16, #tpu.memory_space<vmem>>, vector<4x8x8x256xbf16>
    %116 = vector.shape_cast %115 : vector<4x8x8x256xbf16> to vector<256x256xbf16>
    %c1_136 = arith.constant 1 : index
    %c0_137 = arith.constant 0 : index
    %c0_138 = arith.constant 0 : index
    %117 = vector.load %arg4[%c1_136, %c0_137, %c0_138] : memref<9x256x256xbf16, #tpu.memory_space<vmem>>, vector<1x256x256xbf16>
    %118 = vector.shape_cast %117 : vector<1x256x256xbf16> to vector<256x256xbf16>
    %cst_139 = arith.constant dense<0.000000e+00> : vector<256x256xf32>
    %119 = tpu.matmul %116, %118, %cst_139 {dimension_numbers = #tpu.dot_dimension_numbers<[1], [0], [0], [1], [0, 0, 1, 1], [], []>} : vector<256x256xbf16>, vector<256x256xbf16>, vector<256x256xf32> -> vector<256x256xf32>
    %120 = arith.addf %114, %119 : vector<256x256xf32>
    %c0_140 = arith.constant 0 : index
    %c0_141 = arith.constant 0 : index
    %c0_142 = arith.constant 0 : index
    %c0_143 = arith.constant 0 : index
    %121 = vector.load %arg9[%c0_140, %c0_141, %c0_142, %c0_143] : memref<4x10x8x256xbf16, #tpu.memory_space<vmem>>, vector<4x8x8x256xbf16>
    %122 = vector.shape_cast %121 : vector<4x8x8x256xbf16> to vector<256x256xbf16>
    %c2_144 = arith.constant 2 : index
    %c0_145 = arith.constant 0 : index
    %c0_146 = arith.constant 0 : index
    %123 = vector.load %arg4[%c2_144, %c0_145, %c0_146] : memref<9x256x256xbf16, #tpu.memory_space<vmem>>, vector<1x256x256xbf16>
    %124 = vector.shape_cast %123 : vector<1x256x256xbf16> to vector<256x256xbf16>
    %cst_147 = arith.constant dense<0.000000e+00> : vector<256x256xf32>
    %125 = tpu.matmul %122, %124, %cst_147 {dimension_numbers = #tpu.dot_dimension_numbers<[1], [0], [0], [1], [0, 0, 1, 1], [], []>} : vector<256x256xbf16>, vector<256x256xbf16>, vector<256x256xf32> -> vector<256x256xf32>
    %126 = arith.addf %120, %125 : vector<256x256xf32>
    %c0_148 = arith.constant 0 : index
    %c1_149 = arith.constant 1 : index
    %c0_150 = arith.constant 0 : index
    %c0_151 = arith.constant 0 : index
    %127 = vector.load %arg7[%c0_148, %c1_149, %c0_150, %c0_151] : memref<4x10x8x256xbf16, #tpu.memory_space<vmem>>, vector<4x8x8x256xbf16>
    %128 = vector.shape_cast %127 : vector<4x8x8x256xbf16> to vector<256x256xbf16>
    %c3_152 = arith.constant 3 : index
    %c0_153 = arith.constant 0 : index
    %c0_154 = arith.constant 0 : index
    %129 = vector.load %arg4[%c3_152, %c0_153, %c0_154] : memref<9x256x256xbf16, #tpu.memory_space<vmem>>, vector<1x256x256xbf16>
    %130 = vector.shape_cast %129 : vector<1x256x256xbf16> to vector<256x256xbf16>
    %cst_155 = arith.constant dense<0.000000e+00> : vector<256x256xf32>
    %131 = tpu.matmul %128, %130, %cst_155 {dimension_numbers = #tpu.dot_dimension_numbers<[1], [0], [0], [1], [0, 0, 1, 1], [], []>} : vector<256x256xbf16>, vector<256x256xbf16>, vector<256x256xf32> -> vector<256x256xf32>
    %132 = arith.addf %126, %131 : vector<256x256xf32>
    %c0_156 = arith.constant 0 : index
    %c1_157 = arith.constant 1 : index
    %c0_158 = arith.constant 0 : index
    %c0_159 = arith.constant 0 : index
    %133 = vector.load %arg8[%c0_156, %c1_157, %c0_158, %c0_159] : memref<4x10x8x256xbf16, #tpu.memory_space<vmem>>, vector<4x8x8x256xbf16>
    %134 = vector.shape_cast %133 : vector<4x8x8x256xbf16> to vector<256x256xbf16>
    %c4_160 = arith.constant 4 : index
    %c0_161 = arith.constant 0 : index
    %c0_162 = arith.constant 0 : index
    %135 = vector.load %arg4[%c4_160, %c0_161, %c0_162] : memref<9x256x256xbf16, #tpu.memory_space<vmem>>, vector<1x256x256xbf16>
    %136 = vector.shape_cast %135 : vector<1x256x256xbf16> to vector<256x256xbf16>
    %cst_163 = arith.constant dense<0.000000e+00> : vector<256x256xf32>
    %137 = tpu.matmul %134, %136, %cst_163 {dimension_numbers = #tpu.dot_dimension_numbers<[1], [0], [0], [1], [0, 0, 1, 1], [], []>} : vector<256x256xbf16>, vector<256x256xbf16>, vector<256x256xf32> -> vector<256x256xf32>
    %138 = arith.addf %132, %137 : vector<256x256xf32>
    %c0_164 = arith.constant 0 : index
    %c1_165 = arith.constant 1 : index
    %c0_166 = arith.constant 0 : index
    %c0_167 = arith.constant 0 : index
    %139 = vector.load %arg9[%c0_164, %c1_165, %c0_166, %c0_167] : memref<4x10x8x256xbf16, #tpu.memory_space<vmem>>, vector<4x8x8x256xbf16>
    %140 = vector.shape_cast %139 : vector<4x8x8x256xbf16> to vector<256x256xbf16>
    %c5_168 = arith.constant 5 : index
    %c0_169 = arith.constant 0 : index
    %c0_170 = arith.constant 0 : index
    %141 = vector.load %arg4[%c5_168, %c0_169, %c0_170] : memref<9x256x256xbf16, #tpu.memory_space<vmem>>, vector<1x256x256xbf16>
    %142 = vector.shape_cast %141 : vector<1x256x256xbf16> to vector<256x256xbf16>
    %cst_171 = arith.constant dense<0.000000e+00> : vector<256x256xf32>
    %143 = tpu.matmul %140, %142, %cst_171 {dimension_numbers = #tpu.dot_dimension_numbers<[1], [0], [0], [1], [0, 0, 1, 1], [], []>} : vector<256x256xbf16>, vector<256x256xbf16>, vector<256x256xf32> -> vector<256x256xf32>
    %144 = arith.addf %138, %143 : vector<256x256xf32>
    %c0_172 = arith.constant 0 : index
    %c2_173 = arith.constant 2 : index
    %c0_174 = arith.constant 0 : index
    %c0_175 = arith.constant 0 : index
    %145 = vector.load %arg7[%c0_172, %c2_173, %c0_174, %c0_175] : memref<4x10x8x256xbf16, #tpu.memory_space<vmem>>, vector<4x8x8x256xbf16>
    %146 = vector.shape_cast %145 : vector<4x8x8x256xbf16> to vector<256x256xbf16>
    %c6_176 = arith.constant 6 : index
    %c0_177 = arith.constant 0 : index
    %c0_178 = arith.constant 0 : index
    %147 = vector.load %arg4[%c6_176, %c0_177, %c0_178] : memref<9x256x256xbf16, #tpu.memory_space<vmem>>, vector<1x256x256xbf16>
    %148 = vector.shape_cast %147 : vector<1x256x256xbf16> to vector<256x256xbf16>
    %cst_179 = arith.constant dense<0.000000e+00> : vector<256x256xf32>
    %149 = tpu.matmul %146, %148, %cst_179 {dimension_numbers = #tpu.dot_dimension_numbers<[1], [0], [0], [1], [0, 0, 1, 1], [], []>} : vector<256x256xbf16>, vector<256x256xbf16>, vector<256x256xf32> -> vector<256x256xf32>
    %150 = arith.addf %144, %149 : vector<256x256xf32>
    %c0_180 = arith.constant 0 : index
    %c2_181 = arith.constant 2 : index
    %c0_182 = arith.constant 0 : index
    %c0_183 = arith.constant 0 : index
    %151 = vector.load %arg8[%c0_180, %c2_181, %c0_182, %c0_183] : memref<4x10x8x256xbf16, #tpu.memory_space<vmem>>, vector<4x8x8x256xbf16>
    %152 = vector.shape_cast %151 : vector<4x8x8x256xbf16> to vector<256x256xbf16>
    %c7_184 = arith.constant 7 : index
    %c0_185 = arith.constant 0 : index
    %c0_186 = arith.constant 0 : index
    %153 = vector.load %arg4[%c7_184, %c0_185, %c0_186] : memref<9x256x256xbf16, #tpu.memory_space<vmem>>, vector<1x256x256xbf16>
    %154 = vector.shape_cast %153 : vector<1x256x256xbf16> to vector<256x256xbf16>
    %cst_187 = arith.constant dense<0.000000e+00> : vector<256x256xf32>
    %155 = tpu.matmul %152, %154, %cst_187 {dimension_numbers = #tpu.dot_dimension_numbers<[1], [0], [0], [1], [0, 0, 1, 1], [], []>} : vector<256x256xbf16>, vector<256x256xbf16>, vector<256x256xf32> -> vector<256x256xf32>
    %156 = arith.addf %150, %155 : vector<256x256xf32>
    %c0_188 = arith.constant 0 : index
    %c2_189 = arith.constant 2 : index
    %c0_190 = arith.constant 0 : index
    %c0_191 = arith.constant 0 : index
    %157 = vector.load %arg9[%c0_188, %c2_189, %c0_190, %c0_191] : memref<4x10x8x256xbf16, #tpu.memory_space<vmem>>, vector<4x8x8x256xbf16>
    %158 = vector.shape_cast %157 : vector<4x8x8x256xbf16> to vector<256x256xbf16>
    %c8_192 = arith.constant 8 : index
    %c0_193 = arith.constant 0 : index
    %c0_194 = arith.constant 0 : index
    %159 = vector.load %arg4[%c8_192, %c0_193, %c0_194] : memref<9x256x256xbf16, #tpu.memory_space<vmem>>, vector<1x256x256xbf16>
    %160 = vector.shape_cast %159 : vector<1x256x256xbf16> to vector<256x256xbf16>
    %cst_195 = arith.constant dense<0.000000e+00> : vector<256x256xf32>
    %161 = tpu.matmul %158, %160, %cst_195 {dimension_numbers = #tpu.dot_dimension_numbers<[1], [0], [0], [1], [0, 0, 1, 1], [], []>} : vector<256x256xbf16>, vector<256x256xbf16>, vector<256x256xf32> -> vector<256x256xf32>
    %162 = arith.addf %156, %161 : vector<256x256xf32>
    %c0_196 = arith.constant 0 : index
    %c0_197 = arith.constant 0 : index
    %163 = vector.load %arg5[%c0_196, %c0_197] : memref<1x256xf32, #tpu.memory_space<vmem>>, vector<1x256xf32>
    %164 = vector.broadcast %163 : vector<1x256xf32> to vector<256x256xf32>
    %165 = arith.addf %162, %164 : vector<256x256xf32>
    %166 = vector.shape_cast %165 : vector<256x256xf32> to vector<4x8x8x256xf32>
    %167 = arith.addf %166, %12 : vector<4x8x8x256xf32>
    %cst_198 = arith.constant 0.000000e+00 : f32
    %168 = vector.broadcast %cst_198 : f32 to vector<4x8x8x256xf32>
    %169 = arith.maximumf %167, %168 : vector<4x8x8x256xf32>
    %c0_199 = arith.constant 0 : index
    %c0_200 = arith.constant 0 : index
    %c0_201 = arith.constant 0 : index
    %c0_202 = arith.constant 0 : index
    %170 = vector.load %arg6[%c0_199, %c0_200, %c0_201, %c0_202] : memref<4x8x8x256xf32, #tpu.memory_space<vmem>>, vector<4x8x8x256xf32>
    tpu.vector_store %arg6[%c0_199, %c0_200, %c0_201, %c0_202], %169 {strides = array<i32>} : memref<4x8x8x256xf32, #tpu.memory_space<vmem>>, vector<4x8x8x256xf32>,
    return
  }
  func.func @transform_0(%arg0: i32) -> (i32, i32, i32, i32) {
    %c0_i32 = arith.constant 0 : i32
    %c0_i32_0 = arith.constant 0 : i32
    %c0_i32_1 = arith.constant 0 : i32
    %c0_i32_2 = arith.constant 0 : i32
    return %arg0, %c0_i32, %c0_i32_0, %c0_i32_1 : i32, i32, i32, i32
  }
  func.func @transform_1(%arg0: i32) -> (i32, i32, i32) {
    %c0_i32 = arith.constant 0 : i32
    %c0_i32_0 = arith.constant 0 : i32
    %c0_i32_1 = arith.constant 0 : i32
    %c0_i32_2 = arith.constant 0 : i32
    return %c0_i32, %c0_i32_0, %c0_i32_1 : i32, i32, i32
  }
  func.func @transform_2(%arg0: i32) -> (i32, i32) {
    %c0_i32 = arith.constant 0 : i32
    %c0_i32_0 = arith.constant 0 : i32
    %c0_i32_1 = arith.constant 0 : i32
    return %c0_i32, %c0_i32_0 : i32, i32
  }
  func.func @transform_3(%arg0: i32) -> (i32, i32, i32) {
    %c0_i32 = arith.constant 0 : i32
    %c0_i32_0 = arith.constant 0 : i32
    %c0_i32_1 = arith.constant 0 : i32
    %c0_i32_2 = arith.constant 0 : i32
    return %c0_i32, %c0_i32_0, %c0_i32_1 : i32, i32, i32
  }
  func.func @transform_4(%arg0: i32) -> (i32, i32) {
    %c0_i32 = arith.constant 0 : i32
    %c0_i32_0 = arith.constant 0 : i32
    %c0_i32_1 = arith.constant 0 : i32
    return %c0_i32, %c0_i32_0 : i32, i32
  }
  func.func @transform_5(%arg0: i32) -> (i32, i32, i32, i32) {
    %c0_i32 = arith.constant 0 : i32
    %c0_i32_0 = arith.constant 0 : i32
    %c0_i32_1 = arith.constant 0 : i32
    %c0_i32_2 = arith.constant 0 : i32
    return %arg0, %c0_i32, %c0_i32_0, %c0_i32_1 : i32, i32, i32, i32
  }
}

</mosaic_0001>

<bundles_post_ra>
// kernel: tpu_custom_call.1
= control target key start
LH: loop header
LB: loop body
LE: loop exit
PB: predicated region body
PF: predicated region fallthrough
CT: control target
= control target key end

     0   :  { %10 = vsyncpa [#allocation6], 0  ;;  %s23573_s0 = inlined_call_operand.hbm [shape: f32[8,8,8,256], index: 0, kind: input, shape index: {}]   ;;  %s23574_s1 = inlined_call_operand.hbm [shape: bf16[9,256,256], index: 1, kind: input, shape index: {}]   ;;  %s23575_s2 = inlined_call_operand.hbm [shape: f32[1,256], index: 2, kind: input, shape index: {}]   ;;  %s23576_s3 = inlined_call_operand.hbm [shape: bf16[9,256,256], index: 3, kind: input, shape index: {}]   ;;  %s23577_s4 = inlined_call_operand.hbm [shape: f32[1,256], index: 4, kind: input, shape index: {}]   ;;  %s23578_s5 = inlined_call_operand.hbm [shape: f32[8,8,8,256], index: 5, kind: output, shape index: {}]  }
   0x1   :  { %12 = vsyncpa [#allocation6 + $0x1], 0 }
   0x2   :  { %13 = vsyncpa [#allocation9], 0 }
   0x3   :  { %14 = vsyncpa [#allocation12], 0 }
   0x4   :  { %15 = vsyncpa [#allocation7], 0 }
   0x5   :  { %17 = vsyncpa [#allocation7 + $0x1], 0  ;;  %s19734_s18 = smov 0   ;;  %s19736_s19 = smov 0  }
   0x6   :  { %s19738_s20 = smov 0   ;;  %s19740_s21 = smov 0  }
   0x7 LB: > { %s19755_s22 = sadd.s32 4294967295, %s19689_s21   ;;  %s14478_s23 = sadd.s32 4294967294, %s19689_s21   ;;  %s19689_s21 = sphi %s19740_s21, %s24737_s21   ;;  %s19685_s20 = sphi %s19738_s20, %s24736_s20   ;;  %s19681_s19 = sphi %s19736_s19, %s24735_s19   ;;  %s19677_s18 = sphi %s19734_s18, %s24734_s18  }
   0x8   : > { %p43_p0 = scmp.ne.s32.totalorder %s19681_s19, %s19677_s18  ;;  %p23579_p1 = scmp.eq.s32.totalorder %s19755_s22, 0 }
   0x9   : > { %p157_p3 = scmp.eq.s32.totalorder %s14478_s23, 1  ;;  %p14479_p5 = scmp.ge.s32.totalorder %s19689_s21, 1 }
   0xa   : > { %p19764_p4 = por %p23579_p1, %p43_p0  ;;  %p164_p7 = scmp.lt.s32.totalorder %s19689_s21, 3 }
   0xb   : > { %p19769_p6 = por %p157_p3, %p43_p0  ;;  %s19691_s27 = smov [#allocation8]  }
   0xc   : > { %s23950_s24 = scalar_select %p19764_p4, 1, 0 }
   0xd   : > { %s23951_s25 = scalar_select %p19769_p6, 1, 0 }
   0xe   : > { %p19774_p8 = pnand %p14479_p5, %p164_p7  ;;  %s176_s28 = sshll.u32 %s19691_s27, 4  ;;  %s19778_s28 = int_to_ptr.vmem [resolvable:$true] %s176_s28 }
   0xf   : > { %s19692_s30 = smov [#allocation11]   ;;  %s19693_s7 = smov [#allocation10]  }
  0x10   : > { %s23952_s26 = scalar_select %p19774_p8, 1, 0 }
  0x11   : > { %p18382_p9 = pneg %p19774_p8  ;;  %s200_s6 = sshll.u32 %s19692_s30, 4  ;;  %s19789_s6 = int_to_ptr.vmem [resolvable:$true] %s200_s6 }
  0x12   : > { %s19791_s8 = sshll.u32 %s19693_s7, 4  ;;  %s19473_s11 = scalar_lea.hbm %s23574_s1, 36864  ;;  %s191_s8 = int_to_ptr.vmem [resolvable:$true] %s19791_s8 }
  0x13   : > { %p19785_p11 = pnand %p18382_p9, %p23579_p1  ;;  %p19474_p12 = scmp.ne.s32.totalorder %s23574_s1, %s19473_s11 }
  0x14   : > { %p19480_p5 = scmp.lt.u32.totalorder %s19473_s11, %s23574_s1 }
  0x15   : > { %p19801_p13 = pneg %p19785_p11 }
  0x17   : > { %p19476_p0 = pnand %p19801_p13, %p19474_p12 }
  0x19   : > { %p19477_p3 = pneg %p19476_p0 }
  0x1b   : > { %p19482_p7 = pnand %p19480_p5, %p19477_p3 }
  0x1d   : > { %19485 = shalt.err (!%p19482_p7)
}
  0x1e   : > { %s19486_s17 = scalar_lea.vmem %s19778_s28, 36864  ;;  %p19494_p2 = scmp.lt.s32.totalorder %s19778_s28, %s19778_s28 }
  0x1f   : > { %p19487_p9 = scmp.ne.s32.totalorder %s19778_s28, %s19486_s17  ;;  %p19495_p6 = scmp.lt.s32.totalorder %s19486_s17, %s19486_s17 }
  0x21   : > { %p19489_p10 = pnand %p19487_p9, %p19801_p13  ;;  %p19496_p12 = por %p19495_p6, %p19494_p2 }
  0x23   : > { %p19490_p1 = pneg %p19489_p10 }
  0x25   : > { %p19497_p0 = pnand %p19496_p12, %p19490_p1 }
  0x27   : > { %19500 = shalt.err (!%p19497_p0)
}
  0x28   : > { %s19694_s23 = smov 128   ;;  %s19695_s27 = smov 8  }
  0x29   : > { %18385 = dma.hbm_to_vmem [thread:$0]  (!%p19785_p11), %s23574_s1, 36864, %s19778_s28, [#allocation9], %s19694_s23, %s19694_s23, %s19695_s27  }
  0x2a   : > { %s19501_s11 = scalar_lea.hbm %s23576_s3, 36864 }
  0x2b   : > { %p19502_p2 = scmp.ne.s32.totalorder %s23576_s3, %s19501_s11  ;;  %p19508_p10 = scmp.lt.u32.totalorder %s19501_s11, %s23576_s3 }
  0x2d   : > { %p19504_p1 = pnand %p19502_p2, %p19801_p13 }
  0x2f   : > { %p19505_p6 = pneg %p19504_p1 }
  0x31   : > { %p19510_p3 = pnand %p19508_p10, %p19505_p6 }
  0x33   : > { %19513 = shalt.err (!%p19510_p3)
}
  0x34   : > { %s19514_s28 = scalar_lea.vmem %s19789_s6, 36864  ;;  %p19522_p12 = scmp.lt.s32.totalorder %s19789_s6, %s19789_s6 }
  0x35   : > { %p19515_p5 = scmp.ne.s32.totalorder %s19789_s6, %s19514_s28  ;;  %p19523_p0 = scmp.lt.s32.totalorder %s19514_s28, %s19514_s28 }
  0x37   : > { %p19517_p7 = pnand %p19515_p5, %p19801_p13  ;;  %p19524_p2 = por %p19523_p0, %p19522_p12 }
  0x39   : > { %p19518_p9 = pneg %p19517_p7 }
  0x3b   : > { %p19525_p1 = pnand %p19524_p2, %p19518_p9 }
  0x3d   : > { %19528 = shalt.err (!%p19525_p1)
}
  0x3e   : > { %18391 = dma.hbm_to_vmem [thread:$0]  (!%p19785_p11), %s23576_s3, 36864, %s19789_s6, [#allocation12], %s19694_s23, %s19694_s23, %s19695_s27  }
  0x3f   : > { %s19529_s10 = scalar_lea.hbm %s23575_s2, 32 }
  0x40   : > { %p19530_p6 = scmp.ne.s32.totalorder %s23575_s2, %s19529_s10  ;;  %p19536_p5 = scmp.lt.u32.totalorder %s19529_s10, %s23575_s2 }
  0x42   : > { %p19532_p10 = pnand %p19530_p6, %p19801_p13 }
  0x44   : > { %p19533_p3 = pneg %p19532_p10 }
  0x46   : > { %p19538_p7 = pnand %p19536_p5, %p19533_p3 }
  0x48   : > { %19541 = shalt.err (!%p19538_p7)
}
  0x49   : > { %s19542_s16 = scalar_lea.vmem %s191_s8, 32  ;;  %p19550_p2 = scmp.lt.s32.totalorder %s191_s8, %s191_s8 }
  0x4a   : > { %p19543_p9 = scmp.ne.s32.totalorder %s191_s8, %s19542_s16  ;;  %p19551_p1 = scmp.lt.s32.totalorder %s19542_s16, %s19542_s16 }
  0x4c   : > { %p19545_p12 = pnand %p19543_p9, %p19801_p13  ;;  %p19552_p4 = por %p19551_p1, %p19550_p2 }
  0x4e   : > { %p19546_p0 = pneg %p19545_p12 }
  0x50   : > { %p19553_p8 = pnand %p19552_p4, %p19546_p0 }
  0x52   : > { %19556 = shalt.err (!%p19553_p8)
}
  0x53   : > { %18388 = dma.hbm_to_vmem [thread:$0]  (!%p19785_p11), %s23575_s2, 32, %s191_s8, [#allocation9]  }
  0x54   : > { %s19696_s27 = smov [#allocation13]   ;;  %s19557_s7 = scalar_lea.hbm %s23577_s4, 32 }
  0x55   : > { %s214_s28 = sshll.u32 %s19696_s27, 4  ;;  %p19558_p6 = scmp.ne.s32.totalorder %s23577_s4, %s19557_s7  ;;  %s215_s28 = int_to_ptr.vmem [resolvable:$true] %s214_s28 }
  0x56   : > { %p19564_p10 = scmp.lt.u32.totalorder %s19557_s7, %s23577_s4 }
  0x57   : > { %p19560_p4 = pnand %p19558_p6, %p19801_p13 }
  0x59   : > { %p19561_p8 = pneg %p19560_p4 }
  0x5b   : > { %p19566_p3 = pnand %p19564_p10, %p19561_p8 }
  0x5d   : > { %19569 = shalt.err (!%p19566_p3)
}
  0x5e   : > { %s19570_s8 = scalar_lea.vmem %s215_s28, 32  ;;  %p19578_p12 = scmp.lt.s32.totalorder %s215_s28, %s215_s28 }
  0x5f   : > { %p19571_p5 = scmp.ne.s32.totalorder %s215_s28, %s19570_s8  ;;  %p19579_p0 = scmp.lt.s32.totalorder %s19570_s8, %s19570_s8 }
  0x61   : > { %p19573_p7 = pnand %p19571_p5, %p19801_p13  ;;  %p19580_p2 = por %p19579_p0, %p19578_p12 }
  0x63   : > { %p19574_p9 = pneg %p19573_p7 }
  0x65   : > { %p19581_p1 = pnand %p19580_p2, %p19574_p9 }
  0x67   : > { %19584 = shalt.err (!%p19581_p1)
}
  0x68   : > { %18394 = dma.hbm_to_vmem [thread:$0]  (!%p19785_p11), %s23577_s4, 32, %s215_s28, [#allocation12]  }
  0x69   : > { %s19883_s14 = sadd.s32 1, %s19689_s21   ;;  %s30_s16 = sadd.s32 1, %s19685_s20 }
  0x6a   : > { %s27_s29 = ssub.s32 %s19689_s21, %s19883_s14  ;;  %p37_p13 = scmp.ne.s32.totalorder %s19685_s20, %s19681_s19 }
  0x6b   : > { %p28_p6 = scmp.eq.s32.totalorder %s27_s29, 0  ;;  %p38_p4 = scmp.eq.s32.totalorder %s19689_s21, 0 }
  0x6c   : > { %p23955_p8 = scmp.eq.s32.totalorder %s19755_s22, 1  ;;  %p18407_p3 = scmp.lt.s32.totalorder %s19689_s21, 2 }
  0x6d   : > { %s19899_s23 = scalar_select %p28_p6, %s19685_s20, %s30_s16  }
  0x6e   : > { %p19893_p10 = por %p23955_p8, %p37_p13  ;;  %p39_p5 = por %p38_p4, %p37_p13 }
  0x6f   : > { %s225_s27 = sand.u32 1, %s19685_s20   ;;  %s15847_s28 = sshll.u32 %s19689_s21, 13 }
  0x70   : > { %s14485_s17 = sshll.u32 %s225_s27, 9  ;;  %s19906_s9 = scalar_lea.hbm %s23573_s0, %s15847_s28 }
  0x71   : > { %s229_s10 = scalar_lea.vmem [#allocation5], %s14485_s17  ;;  %p19910_p11 = pnand %p18407_p3, %p39_p5 }
  0x72   : > { %s237_s11 = sshll.u32 %s229_s10, 4  ;;  %s19914_s8 = scalar_lea.sflag [#allocation6], %s225_s27  ;;  %s19908_s11 = int_to_ptr.vmem [resolvable:$true] %s237_s11 }
  0x73   : > { %s19585_s13 = scalar_lea.hbm %s19906_s9, 8192  ;;  %p19587_p9 = pneg %p19910_p11 }
  0x74   : > { %p19586_p7 = scmp.ne.s32.totalorder %s19906_s9, %s19585_s13  ;;  %s19590_s29 = scalar_lea.hbm %s23573_s0, 16384 }
  0x75   : > { %p19591_p2 = scmp.lt.u32.totalorder %s19906_s9, %s23573_s0  ;;  %p19592_p1 = scmp.lt.u32.totalorder %s19590_s29, %s19585_s13 }
  0x76   : > { %p19588_p12 = pnand %p19587_p9, %p19586_p7  ;;  %p19594_p6 = scmp.lt.u32.totalorder %s19585_s13, %s19906_s9 }
  0x77   : > { %p19593_p13 = por %p19592_p1, %p19591_p2 }
  0x78   : > { %p19589_p0 = pneg %p19588_p12 }
  0x79   : > { %p19595_p4 = por %p19594_p6, %p19593_p13 }
  0x7b   : > { %p19596_p8 = pnand %p19595_p4, %p19589_p0 }
  0x7d   : > { %19599 = shalt.err (!%p19596_p8)
}
  0x7e   : > { %s19600_s27 = scalar_lea.vmem %s19908_s11, 8192  ;;  %s19697_s30 = smov [#allocation5]  }
  0x7f   : > { %p19601_p3 = scmp.ne.s32.totalorder %s19908_s11, %s19600_s27  ;;  %s19605_s7 = sshll.u32 %s19697_s30, 4  ;;  %s19606_s7 = int_to_ptr.vmem [resolvable:$false] %s19605_s7 }
  0x80   : > { %s19607_s10 = scalar_lea.vmem %s19606_s7, 16384  ;;  %p19608_p12 = scmp.lt.s32.totalorder %s19908_s11, %s19606_s7 }
  0x81   : > { %p19603_p5 = pnand %p19601_p3, %p19587_p9  ;;  %p19609_p2 = scmp.lt.s32.totalorder %s19607_s10, %s19600_s27 }
  0x83   : > { %p19604_p7 = pneg %p19603_p5  ;;  %p19610_p1 = por %p19609_p2, %p19608_p12 }
  0x85   : > { %p19611_p13 = pnand %p19610_p1, %p19604_p7 }
  0x87   : > { %19614 = shalt.err (!%p19611_p13)
}
  0x88   : > { %s19698_s13 = smov 256   ;;  %s19699_s15 = smov 16  }
  0x89   : > { %18398 = dma.hbm_to_vmem [thread:$0]  (!%p19910_p11), %s19906_s9, 8192, %s19908_s11, %s19914_s8, %s19698_s13, %s19698_s13, %s19699_s15  }
  0x8a   : > { %p23958_p9 = scmp.ne.s32.totalorder %s23952_s26, 0 }
  0x8c   : > { %249 = sbr.rel (%p23958_p9) target bundleno = 2849 (0xb21), region = 40 }
  0x93   : > { %s19945_s16 = sand.u32 1, %s19681_s19   ;;  %p23959_p0 = scmp.ne.s32.totalorder %s23950_s24, 0 }
  0x94   : > { %s14490_s29 = sshll.u32 %s19945_s16, 9  ;;  %s252_s17 = scalar_lea.sflag [#allocation6], %s19945_s16 }
  0x95   : > { %s19951_s28 = scalar_lea.vmem [#allocation5], %s14490_s29 }
  0x96   : > { %19660 = dma.done.wait (%p23959_p0), %s252_s17, 8192  }
  0x97   : > { %19662 = vsyncadd (%p23959_p0), %s252_s17, 4294959104  ;;  %p23960_p11 = scmp.eq.s32.totalorder %s19755_s22, 0 }
  0x99   : > { %19664 = dma.done.wait (%p23960_p11), [#allocation9], 36896   ;;  %p23961_p6 = pmov %p23960_p11 }
  0x9b   : > { %19666 = vsyncadd (%p23961_p6), [#allocation9], 4294930400  ;;  %p23962_p4 = pmov %p23961_p6 }
  0x9d   : > { %19668 = dma.done.wait (%p23962_p4), [#allocation12], 36896   ;;  %p23963_p8 = pmov %p23962_p4 }
  0x9e   : > { %v18456_v0 = vld [vmem:[#allocation8 + $0x104] ss:$8 sps:$4 sm:$0xff]   ;;  %v18458_v1 = vld [vmem:[#allocation8 + $0x100] ss:$8 sps:$4 sm:$0xff]   ;;  %v18459_v2 = vld [vmem:[#allocation8 + $0x114] ss:$8 sps:$4 sm:$0xff]  }
  0x9f   : > { %19670 = vsyncadd (%p23963_p8), [#allocation12], 4294930400  ;;  %1972 = vmatprep.subr.bf16.mxu0 %v18456_v0  ;;  %v18461_v3 = vld [vmem:[#allocation8 + $0x110] ss:$8 sps:$4 sm:$0xff]   ;;  %v18462_v4 = vld [vmem:[#allocation8 + $0x124] ss:$8 sps:$4 sm:$0xff]  }
  0xa0   : > { %1973 = vmatpush1.bf16.msra.mxu0 %v18458_v1  ;;  %v18464_v5 = vld [vmem:[#allocation8 + $0x120] ss:$8 sps:$4 sm:$0xff]   ;;  %v18465_v6 = vld [vmem:[#allocation8 + $0x134] ss:$8 sps:$4 sm:$0xff]   ;;  %v18467_v7 = vld [vmem:[#allocation8 + $0x130] ss:$8 sps:$4 sm:$0xff]  }
  0xa1   : > { %1974 = vmatprep.subr.bf16.mxu0 %v18459_v2  ;;  %v18468_v8 = vld [vmem:[#allocation8 + $0x144] ss:$8 sps:$4 sm:$0xff]   ;;  %v18470_v9 = vld [vmem:[#allocation8 + $0x140] ss:$8 sps:$4 sm:$0xff]   ;;  %v18471_v10 = vld [vmem:[#allocation8 + $0x154] ss:$8 sps:$4 sm:$0xff]  }
  0xa2   : > { %v18473_v11 = vld [vmem:[#allocation8 + $0x150] ss:$8 sps:$4 sm:$0xff]   ;;  %v18474_v12 = vld [vmem:[#allocation8 + $0x164] ss:$8 sps:$4 sm:$0xff]   ;;  %v18476_v16 = vld [vmem:[#allocation8 + $0x160] ss:$8 sps:$4 sm:$0xff]  }
  0xa3   : > { %v19966_v13 = vld [vmem:[%s19951_s28] sm:$0xff]  ;;  %v333_v14 = vld [vmem:[%s19951_s28 + $0x8] sm:$0xff]  ;;  %v18477_v17 = vld [vmem:[#allocation8 + $0x174] ss:$8 sps:$4 sm:$0xff]   ;;  %v23585_v18 = vmov 0   ;;  %s23336_s24 = scalar_lea.vmem [#allocation14], %s14490_s29 }
  0xa4   : > { %1975 = vmatpush1.bf16.msra.mxu0 %v18461_v3  ;;  %v15848_v15 = vpack.c.bf16 %v333_v14, %v19966_v13  ;;  %v18479_v20 = vld [vmem:[#allocation8 + $0x170] ss:$8 sps:$4 sm:$0xff]   ;;  %v18480_v21 = vld [vmem:[#allocation8 + $0x184] ss:$8 sps:$4 sm:$0xff]   ;;  %v18482_v22 = vld [vmem:[#allocation8 + $0x180] ss:$8 sps:$4 sm:$0xff]  }
  0xa5   : > { %1976 = vmatprep.subr.bf16.mxu0 %v18462_v4  ;;  %v18483_v23 = vld [vmem:[#allocation8 + $0x194] ss:$8 sps:$4 sm:$0xff]   ;;  %v18485_v24 = vld [vmem:[#allocation8 + $0x190] ss:$8 sps:$4 sm:$0xff]   ;;  %v18486_v25 = vld [vmem:[#allocation8 + $0x1a4] ss:$8 sps:$4 sm:$0xff]  }
  0xa6   : > { %v14593_v19 = vcombine.high %v23585_v18, %v15848_v15  ;;  %v18488_v26 = vld [vmem:[#allocation8 + $0x1a0] ss:$8 sps:$4 sm:$0xff]   ;;  %v18489_v27 = vld [vmem:[#allocation8 + $0x1b4] ss:$8 sps:$4 sm:$0xff]   ;;  %v18491_v28 = vld [vmem:[#allocation8 + $0x1b0] ss:$8 sps:$4 sm:$0xff]   ;;  %v14592_v41 = vcombine.low %v23585_v18, %v15848_v15 }
  0xa7   : > { %v18492_v29 = vld [vmem:[#allocation8 + $0x1c4] ss:$8 sps:$4 sm:$0xff]   ;;  %v18494_v30 = vld [vmem:[#allocation8 + $0x1c0] ss:$8 sps:$4 sm:$0xff]   ;;  %v18495_v31 = vld [vmem:[#allocation8 + $0x1d4] ss:$8 sps:$4 sm:$0xff]  }
  0xa8   : > { %1977 = vmatpush1.bf16.msra.mxu0 %v18464_v5  ;;  %2004 = vmatprep.mubr.bf16.mxu0 %v14593_v19  ;;  %v18497_v32 = vld [vmem:[#allocation8 + $0x1d0] ss:$8 sps:$4 sm:$0xff]   ;;  %v18498_v33 = vld [vmem:[#allocation8 + $0x1e4] ss:$8 sps:$4 sm:$0xff]   ;;  %v18500_v34 = vld [vmem:[#allocation8 + $0x1e0] ss:$8 sps:$4 sm:$0xff]  }
  0xa9   : > { %1978 = vmatprep.subr.bf16.mxu0 %v18465_v6  ;;  %v18501_v35 = vld [vmem:[#allocation8 + $0x1f4] ss:$8 sps:$4 sm:$0xff]   ;;  %v18503_v36 = vld [vmem:[#allocation8 + $0x1f0] ss:$8 sps:$4 sm:$0xff]   ;;  %v18506_v37 = vld [vmem:[#allocation8 + $0x4] ss:$8 sps:$4 sm:$0xff]  }
  0xaa   : > { %v335_v38 = vld [vmem:[%s19951_s28 + $0x18] sm:$0xff]  ;;  %v337_v39 = vld [vmem:[%s19951_s28 + $0x28] sm:$0xff]  ;;  %v19977_v44 = vld [vmem:[%s19951_s28 + $0x10] sm:$0xff]  ;;  %v685_v54 = vrot.slane %v19966_v13, 7  ;;  %s16041_s26 = sshll.u32 %s19755_s22, 13  ;;  %s14367_s9 = sshll.u32 %s23336_s24, 4  ;;  %s23526_s9 = int_to_ptr.vmem [resolvable:$true] %s14367_s9 }
  0xab   : > { %v18504_v40 = vld [vmem:[#allocation8] ss:$8 sps:$4 sm:$0xff]   ;;  %v18509_v42 = vld [vmem:[#allocation8 + $0x14] ss:$8 sps:$4 sm:$0xff]   ;;  %v19974_v43 = vpack.c.bf16 %v337_v39, %v335_v38  ;;  %v18507_v46 = vld [vmem:[#allocation8 + $0x10] ss:$8 sps:$4 sm:$0xff]   ;;  %s23524_s8 = scalar_lea.hbm %s23578_s5, %s16041_s26 }
  0xac   : > { %1979 = vmatpush1.bf16.msra.mxu0 %v18467_v7  ;;  %v336_v45 = vld [vmem:[%s19951_s28 + $0x20] sm:$0xff]  ;;  %v339_v47 = vld [vmem:[%s19951_s28 + $0x38] sm:$0xff]  ;;  %v341_v48 = vld [vmem:[%s19951_s28 + $0x48] sm:$0xff]  ;;  %v687_v55 = vrot.slane %v19977_v44, 7  ;;  %s14353_s22 = scalar_lea.sflag [#allocation7], %s19945_s16  ;;  %s19615_s27 = scalar_lea.vmem %s23526_s9, 8192 }
  0xad   : > { %1980 = vmatprep.subr.bf16.mxu0 %v18468_v8  ;;  %23964 = vst [vmem:[#allocation19_spill] sm:$0xff] %v19974_v43  ;;  %v18512_v49 = vld [vmem:[#allocation8 + $0x24] ss:$8 sps:$4 sm:$0xff]   ;;  %v18510_v50 = vld [vmem:[#allocation8 + $0x20] ss:$8 sps:$4 sm:$0xff]   ;;  %v19984_v51 = vpack.c.bf16 %v336_v45, %v19977_v44  ;;  %v19986_v53 = vpack.c.bf16 %v341_v48, %v339_v47  ;;  %v338_v56 = vld [vmem:[%s19951_s28 + $0x30] sm:$0xff]  ;;  %p19616_p3 = scmp.ne.s32.totalorder %s23526_s9, %s19615_s27 }
  0xae   : > { %v18515_v52 = vld [vmem:[#allocation8 + $0x34] ss:$8 sps:$4 sm:$0xff]   ;;  %v340_v57 = vld [vmem:[%s19951_s28 + $0x40] sm:$0xff]  ;;  %v345_v59 = vld [vmem:[%s19951_s28 + $0x68] sm:$0xff]  ;;  %v19999_v62 = vpack.c.bf16 %v687_v55, %v685_v54  ;;  %s19701_s30 = smov [#allocation14]  }
  0xaf   : > { %23965 = vst [vmem:[#allocation20_spill] sm:$0xff] %v19984_v51  ;;  %23966 = vst [vmem:[#allocation21_spill] sm:$0xff] %v19986_v53  ;;  %v343_v58 = vld [vmem:[%s19951_s28 + $0x58] sm:$0xff]  ;;  %v18518_v61 = vld [vmem:[#allocation8 + $0x44] ss:$8 sps:$4 sm:$0xff]   ;;  %v20002_v0 = vpack.c.bf16 %v340_v57, %v338_v56  ;;  %p19617_p5 = pnand %p19616_p3, %p19893_p10  ;;  %s19619_s7 = sshll.u32 %s19701_s30, 4  ;;  %s19620_s7 = int_to_ptr.vmem [resolvable:$false] %s19619_s7 }
  0xb0   : > { %1981 = vmatpush1.bf16.msra.mxu0 %v18470_v9  ;;  %v18513_v60 = vld [vmem:[#allocation8 + $0x30] ss:$8 sps:$4 sm:$0xff]   ;;  %23967 = vst [vmem:[#allocation22_spill] sm:$0xff] %v19999_v62  ;;  %v18516_v63 = vld [vmem:[#allocation8 + $0x40] ss:$8 sps:$4 sm:$0xff]   ;;  %v20006_v4 = vpack.c.bf16 %v345_v59, %v343_v58  ;;  %s19621_s10 = scalar_lea.vmem %s19620_s7, 16384  ;;  %p19622_p12 = scmp.lt.s32.totalorder %s23526_s9, %s19620_s7 }
  0xb1   : > { %1982 = vmatprep.subr.bf16.mxu0 %v18471_v10  ;;  %23968 = vst [vmem:[#allocation23_spill] sm:$0xff] %v20002_v0  ;;  %v348_v1 = vld [vmem:[%s19951_s28 + $0x80] sm:$0xff]  ;;  %v349_v2 = vld [vmem:[%s19951_s28 + $0x88] sm:$0xff]  ;;  %v18521_v3 = vld [vmem:[#allocation8 + $0x54] ss:$8 sps:$4 sm:$0xff]   ;;  %p19618_p7 = pneg %p19617_p5  ;;  %p19623_p2 = scmp.lt.s32.totalorder %s19621_s10, %s19615_s27 }
  0xb2   : > { %23969 = vst [vmem:[#allocation24_spill] sm:$0xff] %v20006_v4  ;;  %v342_v5 = vld [vmem:[%s19951_s28 + $0x50] sm:$0xff]  ;;  %v344_v6 = vld [vmem:[%s19951_s28 + $0x60] sm:$0xff]  ;;  %v15856_v9 = vpack.c.bf16 %v349_v2, %v348_v1  ;;  %v351_v15 = vld [vmem:[%s19951_s28 + $0x98] sm:$0xff] }
  0xb3   : > { %v18519_v7 = vld [vmem:[#allocation8 + $0x50] ss:$8 sps:$4 sm:$0xff]   ;;  %v18524_v8 = vld [vmem:[#allocation8 + $0x64] ss:$8 sps:$4 sm:$0xff]   ;;  %v18522_v10 = vld [vmem:[#allocation8 + $0x60] ss:$8 sps:$4 sm:$0xff]   ;;  %p19624_p1 = por %p19623_p2, %p19622_p12 }
  0xb4   : > { %1983 = vmatpush1.bf16.msra.mxu0 %v18473_v11  ;;  %v20012_v11 = vpack.c.bf16 %v344_v6, %v342_v5  ;;  %v14601_v14 = vcombine.high %v23585_v18, %v15856_v9  ;;  %v18530_v19 = vld [vmem:[#allocation8 + $0x84] ss:$8 sps:$4 sm:$0xff]   ;;  %v18537_v38 = vld [vmem:[#allocation8 + $0xb0] ss:$8 sps:$4 sm:$0xff]   ;;  %v18546_v57 = vld [vmem:[#allocation8 + $0xe0] ss:$8 sps:$4 sm:$0xff]  }
  0xb5   : > { %1984 = vmatprep.subr.bf16.mxu0 %v18474_v12  ;;  %v18527_v12 = vld [vmem:[#allocation8 + $0x74] ss:$8 sps:$4 sm:$0xff]   ;;  %v18542_v39 = vld [vmem:[#allocation8 + $0xc4] ss:$8 sps:$4 sm:$0xff]   ;;  %v18549_v1 = vld [vmem:[#allocation8 + $0xf0] ss:$8 sps:$4 sm:$0xff]   ;;  %p19625_p13 = pnand %p19624_p1, %p19618_p7 }
  0xb6   : > { %23970 = vst [vmem:[#allocation25_spill] sm:$0xff] %v20012_v11  ;;  %v365_v45 = vld [vmem:[%s19951_s28 + $0x108] sm:$0xff]  ;;  %v358_v48 = vld [vmem:[%s19951_s28 + $0xd0] sm:$0xff] }
  0xb7   : > { %v18551_v59 = vld [vmem:[#allocation8 + $0xf4] ss:$8 sps:$4 sm:$0xff]   ;;  %v18554_v2 = vld [vmem:[#allocation8 + $0x204] ss:$8 sps:$4 sm:$0xff]  }
  0xb8   : > { %1985 = vmatpush1.bf16.msra.mxu0 %v18476_v16  ;;  %v353_v16 = vld [vmem:[%s19951_s28 + $0xa8] sm:$0xff]  ;;  %v366_v6 = vld [vmem:[%s19951_s28 + $0x110] sm:$0xff] }
  0xb9   : > { %1986 = vmatprep.subr.bf16.mxu0 %v18477_v17  ;;  %v18525_v17 = vld [vmem:[#allocation8 + $0x70] ss:$8 sps:$4 sm:$0xff]  }
  0xba   : > { %v20242_v44 = vld [vmem:[%s19951_s28 + $0x10] sm:$0xff] }
  0xbc   : > { %1987 = vmatpush1.bf16.msra.mxu0 %v18479_v20  ;;  %v18528_v20 = vld [vmem:[#allocation8 + $0x80] ss:$8 sps:$4 sm:$0xff]  }
  0xbd   : > { %1988 = vmatprep.subr.bf16.mxu0 %v18480_v21  ;;  %v14600_v21 = vcombine.low %v23585_v18, %v15856_v9  ;;  %v373_v9 = vld [vmem:[%s19951_s28 + $0x148] sm:$0xff] }
  0xc0   : > { %1989 = vmatpush1.bf16.msra.mxu0 %v18482_v22  ;;  %v18533_v22 = vld [vmem:[#allocation8 + $0x94] ss:$8 sps:$4 sm:$0xff]  }
  0xc1   : > { %1990 = vmatprep.subr.bf16.mxu0 %v18483_v23  ;;  %v20019_v23 = vpack.c.bf16 %v353_v16, %v351_v15  ;;  %v20067_v15 = vld [vmem:[%s19951_s28 + $0x140] sm:$0xff]  ;;  %v20070_v16 = vld [vmem:[%s19951_s28 + $0x158] sm:$0xff] }
  0xc3   : > { %23971 = vst [vmem:[#allocation26_spill] sm:$0xff] %v20019_v23 }
  0xc4   : > { %1991 = vmatpush1.bf16.msra.mxu0 %v18485_v24  ;;  %v350_v24 = vld [vmem:[%s19951_s28 + $0x90] sm:$0xff] }
  0xc5   : > { %1992 = vmatprep.subr.bf16.mxu0 %v18486_v25  ;;  %v352_v25 = vld [vmem:[%s19951_s28 + $0xa0] sm:$0xff] }
  0xc8   : > { %1993 = vmatpush1.bf16.msra.mxu0 %v18488_v26  ;;  %v355_v26 = vld [vmem:[%s19951_s28 + $0xb8] sm:$0xff] }
  0xc9   : > { %1994 = vmatprep.subr.bf16.mxu0 %v18489_v27  ;;  %v357_v27 = vld [vmem:[%s19951_s28 + $0xc8] sm:$0xff] }
  0xcc   : > { %1995 = vmatpush1.bf16.msra.mxu0 %v18491_v28  ;;  %v18531_v28 = vld [vmem:[#allocation8 + $0x90] ss:$8 sps:$4 sm:$0xff]  }
  0xcd   : > { %1996 = vmatprep.subr.bf16.mxu0 %v18492_v29  ;;  %v18536_v29 = vld [vmem:[#allocation8 + $0xa4] ss:$8 sps:$4 sm:$0xff]  }
  0xd0   : > { %1997 = vmatpush1.bf16.msra.mxu0 %v18494_v30  ;;  %v18534_v30 = vld [vmem:[#allocation8 + $0xa0] ss:$8 sps:$4 sm:$0xff]  }
  0xd1   : > { %1998 = vmatprep.subr.bf16.mxu0 %v18495_v31  ;;  %v20026_v31 = vpack.c.bf16 %v352_v25, %v350_v24  ;;  %v20091_v24 = vld [vmem:[%s19951_s28 + $0x150] sm:$0xff]  ;;  %v20094_v25 = vld [vmem:[%s19951_s28 + $0x160] sm:$0xff] }
  0xd3   : > { %23972 = vst [vmem:[#allocation27_spill] sm:$0xff] %v20026_v31 }
  0xd4   : > { %1999 = vmatpush1.bf16.msra.mxu0 %v18497_v32  ;;  %v18539_v32 = vld [vmem:[#allocation8 + $0xb4] ss:$8 sps:$4 sm:$0xff]  }
  0xd5   : > { %2000 = vmatprep.subr.bf16.mxu0 %v18498_v33  ;;  %v20028_v33 = vpack.c.bf16 %v357_v27, %v355_v26  ;;  %v20101_v27 = vpack.c.bf16 %v20094_v25, %v20091_v24 }
  0xd7   : > { %23973 = vst [vmem:[#allocation28_spill] sm:$0xff] %v20028_v33  ;;  %23982 = vst [vmem:[#allocation37_spill] sm:$0xff] %v20101_v27 }
  0xd8   : > { %2001 = vmatpush1.bf16.msra.mxu0 %v18500_v34  ;;  %v354_v34 = vld [vmem:[%s19951_s28 + $0xb0] sm:$0xff] }
  0xd9   : > { %2002 = vmatprep.subr.bf16.mxu0 %v18501_v35  ;;  %v356_v35 = vld [vmem:[%s19951_s28 + $0xc0] sm:$0xff] }
  0xdc   : > { %2003 = vmatpush1.bf16.msra.mxu0 %v18503_v36  ;;  %v359_v36 = vld [vmem:[%s19951_s28 + $0xd8] sm:$0xff] }
  0xdd   : > { %2485 = vmatprep.subr.bf16.mxu0 %v18506_v37  ;;  %v361_v37 = vld [vmem:[%s19951_s28 + $0xe8] sm:$0xff] }
  0xde   : > { %v20040_v47 = vpack.c.bf16 %v361_v37, %v359_v36  ;;  %v20120_v36 = vld [vmem:[%s19951_s28 + $0x1a0] sm:$0xff]  ;;  %v20123_v37 = vld [vmem:[%s19951_s28 + $0x1b8] sm:$0xff] }
  0xdf   : > { %2005 = vmatmul.mubr.bf16.vlgmr.msra.gmra.mrb[0].mxu0 %v14592_v41  ;;  %v20036_v41 = vpack.c.bf16 %v356_v35, %v354_v34  ;;  %v20117_v35 = vld [vmem:[%s19951_s28 + $0x190] sm:$0xff]  ;;  %23984 = vst [vmem:[#allocation39_spill] sm:$0xff] %v20120_v36 }
  0xe0   : > { %2486 = vmatpush1.bf16.msra.mxu0 %v18504_v40  ;;  %2014 = vmatprep.mubr.bf16.mxu0 %v19974_v43  ;;  %v18540_v40 = vld [vmem:[#allocation8 + $0xc0] ss:$8 sps:$4 sm:$0xff]   ;;  %23975 = vst [vmem:[#allocation30_spill] sm:$0xff] %v20040_v47  ;;  %v18587_v43 = vld [vmem:[#allocation8 + $0x2b4] ss:$8 sps:$4 sm:$0xff]  }
  0xe1   : > { %2487 = vmatprep.subr.bf16.mxu0 %v18509_v42  ;;  %23974 = vst [vmem:[#allocation29_spill] sm:$0xff] %v20036_v41  ;;  %v364_v42 = vld [vmem:[%s19951_s28 + $0x100] sm:$0xff] }
  0xe2   : > { %v15864_v56 = vpack.c.bf16 %v365_v45, %v364_v42  ;;  %v20138_v45 = vld [vmem:[%s19951_s28 + $0x1b0] sm:$0xff] }
  0xe3   : > { %23988 = vst [vmem:[#allocation43_spill] sm:$0xff] %v20138_v45 }
  0xe4   : > { %2488 = vmatpush1.bf16.msra.mxu0 %v18507_v46  ;;  %v18545_v46 = vld [vmem:[#allocation8 + $0xd4] ss:$8 sps:$4 sm:$0xff]  }
  0xe5   : > { %2489 = vmatprep.subr.bf16.mxu0 %v18512_v49  ;;  %v360_v49 = vld [vmem:[%s19951_s28 + $0xe0] sm:$0xff] }
  0xe6   : > { %v20046_v58 = vpack.c.bf16 %v360_v49, %v358_v48  ;;  %v20144_v48 = vld [vmem:[%s19951_s28 + $0x1c0] sm:$0xff]  ;;  %v20147_v49 = vld [vmem:[%s19951_s28 + $0x1d8] sm:$0xff] }
  0xe7   : > { %2015 = vmatmul.mubr.bf16.gmra.mrb[4].mxu0 %v19984_v51  ;;  %23990 = vst [vmem:[#allocation45_spill] sm:$0xff] %v20144_v48  ;;  %23991 = vst [vmem:[#allocation46_spill] sm:$0xff] %v20147_v49 }
  0xe8   : > { %2024 = vmatprep.mubr.bf16.mxu0 %v19986_v53  ;;  %2490 = vmatpush1.bf16.msra.mxu0 %v18510_v50  ;;  %v18543_v50 = vld [vmem:[#allocation8 + $0xd0] ss:$8 sps:$4 sm:$0xff]   ;;  %23976 = vst [vmem:[#allocation31_spill] sm:$0xff] %v20046_v58 }
  0xe9   : > { %2491 = vmatprep.subr.bf16.mxu0 %v18515_v52  ;;  %v18548_v52 = vld [vmem:[#allocation8 + $0xe4] ss:$8 sps:$4 sm:$0xff]   ;;  %v18579_v53 = vld [vmem:[#allocation8 + $0x290] ss:$8 sps:$4 sm:$0xff]  }
  0xec   : > { %2492 = vmatpush1.bf16.msra.mxu0 %v18513_v60  ;;  %v14609_v60 = vcombine.high %v23585_v18, %v15864_v56 }
  0xed   : > { %2493 = vmatprep.subr.bf16.mxu0 %v18518_v61  ;;  %v367_v61 = vld [vmem:[%s19951_s28 + $0x118] sm:$0xff] }
  0xef   : > { %2025 = vmatmul.mubr.bf16.gmra.mrb[8].mxu0 %v20002_v0  ;;  %v20345_v0 = vld [vmem:[%s19951_s28 + $0xa0] sm:$0xff] }
  0xf0   : > { %2034 = vmatprep.mubr.bf16.mxu0 %v20006_v4  ;;  %2494 = vmatpush1.bf16.msra.mxu0 %v18516_v63  ;;  %v369_v63 = vld [vmem:[%s19951_s28 + $0x128] sm:$0xff]  ;;  %v20341_v4 = vld [vmem:[%s19951_s28 + $0x90] sm:$0xff] }
  0xf1   : > { %2495 = vmatprep.subr.bf16.mxu0 %v18521_v3  ;;  %v14608_v3 = vcombine.low %v23585_v18, %v15864_v56  ;;  %v20053_v5 = vpack.c.bf16 %v369_v63, %v367_v61  ;;  %v20176_v63 = vld [vmem:[%s19951_s28 + $0x1d0] sm:$0xff] }
  0xf2   : > { %23995 = vst [vmem:[#allocation50_spill] sm:$0xff] %v20176_v63 }
  0xf3   : > { %23977 = vst [vmem:[#allocation32_spill] sm:$0xff] %v20053_v5 }
  0xf4   : > { %2496 = vmatpush1.bf16.msra.mxu0 %v18519_v7  ;;  %v368_v7 = vld [vmem:[%s19951_s28 + $0x120] sm:$0xff] }
  0xf5   : > { %2497 = vmatprep.subr.bf16.mxu0 %v18524_v8  ;;  %v371_v8 = vld [vmem:[%s19951_s28 + $0x138] sm:$0xff] }
  0xf7   : > { %2035 = vmatmul.mubr.bf16.gmra.mrb[12].mxu0 %v20012_v11  ;;  %v18573_v11 = vld [vmem:[#allocation8 + $0x270] ss:$8 sps:$4 sm:$0xff]  }
  0xf8   : > { %2044 = vmatprep.mubr.bf16.mxu0 %v14601_v14  ;;  %2498 = vmatpush1.bf16.msra.mxu0 %v18522_v10  ;;  %v20060_v10 = vpack.c.bf16 %v368_v7, %v366_v6  ;;  %v370_v14 = vld [vmem:[%s19951_s28 + $0x130] sm:$0xff]  ;;  %v20196_v6 = vld [vmem:[%s19951_s28 + $0x18] sm:$0xff] }
  0xf9   : > { %2499 = vmatprep.subr.bf16.mxu0 %v18527_v12  ;;  %v20062_v12 = vpack.c.bf16 %v373_v9, %v371_v8  ;;  %v23583_v7 = vrot.slane %v20196_v6, 7  ;;  %v20200_v8 = vld [vmem:[%s19951_s28 + $0x28] sm:$0xff] }
  0xfa   : > { %23978 = vst [vmem:[#allocation33_spill] sm:$0xff] %v20060_v10  ;;  %24001 = vst [vmem:[#allocation54_spill] sm:$0xff] %v20200_v8  ;;  %v23582_v9 = vrot.slane %v20200_v8, 7 }
  0xfb   : > { %23979 = vst [vmem:[#allocation34_spill] sm:$0xff] %v20062_v12 }
  0xfc   : > { %2500 = vmatpush1.bf16.msra.mxu0 %v18525_v17  ;;  %v20073_v17 = vld [vmem:[%s19951_s28 + $0x168] sm:$0xff] }
  0xfd   : > { %2501 = vmatprep.subr.bf16.mxu0 %v18530_v19  ;;  %v20077_v19 = vpack.c.bf16 %v20067_v15, %v370_v14  ;;  %v18552_v14 = vld [vmem:[#allocation8 + $0x200] ss:$8 sps:$4 sm:$0xff]  }
  0xff   : > { %2045 = vmatmul.mubr.bf16.gmra.mrb[16].mxu0 %v14600_v21  ;;  %23980 = vst [vmem:[#allocation35_spill] sm:$0xff] %v20077_v19  ;;  %v20083_v21 = vld [vmem:[%s19951_s28 + $0x188] sm:$0xff] }
 0x100   : > { %2054 = vmatprep.mubr.bf16.mxu0 %v20019_v23  ;;  %2502 = vmatpush1.bf16.msra.mxu0 %v18528_v20  ;;  %v20080_v20 = vld [vmem:[%s19951_s28 + $0x180] sm:$0xff] }
 0x101   : > { %2503 = vmatprep.subr.bf16.mxu0 %v18533_v22  ;;  %v20087_v22 = vpack.c.bf16 %v20073_v17, %v20070_v16  ;;  %v15872_v26 = vpack.c.bf16 %v20083_v21, %v20080_v20 }
 0x103   : > { %23981 = vst [vmem:[#allocation36_spill] sm:$0xff] %v20087_v22 }
 0x104   : > { %2504 = vmatpush1.bf16.msra.mxu0 %v18531_v28  ;;  %v14617_v28 = vcombine.high %v23585_v18, %v15872_v26 }
 0x105   : > { %2505 = vmatprep.subr.bf16.mxu0 %v18536_v29  ;;  %v20106_v29 = vld [vmem:[%s19951_s28 + $0x198] sm:$0xff] }
 0x107   : > { %2055 = vmatmul.mubr.bf16.gmra.mrb[20].mxu0 %v20026_v31  ;;  %v24019_v31 = vmov 0  }
 0x108   : > { %2064 = vmatprep.mubr.bf16.mxu0 %v20028_v33  ;;  %2506 = vmatpush1.bf16.msra.mxu0 %v18534_v30  ;;  %v20109_v30 = vld [vmem:[%s19951_s28 + $0x1a8] sm:$0xff]  ;;  %v18575_v33 = vld [vmem:[#allocation8 + $0x274] ss:$8 sps:$4 sm:$0xff]  }
 0x109   : > { %2507 = vmatprep.subr.bf16.mxu0 %v18539_v32  ;;  %v14616_v32 = vcombine.low %v23585_v18, %v15872_v26  ;;  %v20114_v34 = vpack.c.bf16 %v20109_v30, %v20106_v29 }
 0x10b   : > { %23983 = vst [vmem:[#allocation38_spill] sm:$0xff] %v20114_v34 }
 0x10c   : > { %2508 = vmatpush1.bf16.msra.mxu0 %v18537_v38  ;;  %v20126_v38 = vld [vmem:[%s19951_s28 + $0x1c8] sm:$0xff] }
 0x10d   : > { %2509 = vmatprep.subr.bf16.mxu0 %v18542_v39  ;;  %23985 = vst [vmem:[#allocation40_spill] sm:$0xff] %v20126_v38  ;;  %v301_v39 = vlaneseq  ;;  %v20135_v42 = vpack.c.bf16 %v20126_v38, %v20123_v37 }
 0x10f   : > { %2065 = vmatmul.mubr.bf16.gmra.mrb[24].mxu0 %v20036_v41  ;;  %23987 = vst [vmem:[#allocation42_spill] sm:$0xff] %v20135_v42 }
 0x110   : > { %2074 = vmatprep.mubr.bf16.mxu0 %v20040_v47  ;;  %2510 = vmatpush1.bf16.msra.mxu0 %v18540_v40  ;;  %v20131_v40 = vpack.c.bf16 %v20120_v36, %v20117_v35 }
 0x111   : > { %2511 = vmatprep.subr.bf16.mxu0 %v18545_v46  ;;  %v20140_v46 = vshrl.u32 %v301_v39, 7  ;;  %v20211_v39 = vld [vmem:[%s19951_s28 + $0x20] sm:$0xff] }
 0x112   : > { %23986 = vst [vmem:[#allocation41_spill] sm:$0xff] %v20131_v40 }
 0x113   : > { %23989 = vst [vmem:[#allocation44_spill] sm:$0xff] %v20140_v46  ;;  %vm303_vm0 = vcmp.gt.s32.totalorder %v20140_v46, 0  ;;  %vm304_vm2 = vcmp.lt.s32.totalorder %v20140_v46, 7  ;;  %v20884_v46 = vld [vmem:[%s19951_s28 + $0x198] sm:$0xff] }
 0x114   : > { %2512 = vmatpush1.bf16.msra.mxu0 %v18543_v50  ;;  %v20150_v50 = vld [vmem:[%s19951_s28 + $0x1e8] sm:$0xff]  ;;  %vm20191_vm1 = vmpackc.low %vm303_vm0, %vm303_vm0  ;;  %24082 = vst [vmem:[#allocation108_spill] sm:$0xff] %v20884_v46 }
 0x115   : > { %2513 = vmatprep.subr.bf16.mxu0 %v18548_v52  ;;  %23992 = vst [vmem:[#allocation47_spill] sm:$0xff] %v20150_v50  ;;  %v20154_v52 = vld [vmem:[%s19951_s28 + $0x8] sm:$0xff]  ;;  %vm20634_vm3 = vmpackc.low %vm304_vm2, %vm304_vm2 }
 0x116   : > { %v23584_v56 = vrot.slane %v20154_v52, 7 }
 0x117   : > { %2075 = vmatmul.mubr.bf16.gmra.mrb[28].mxu0 %v20046_v58 }
 0x118   : > { %2084 = vmatprep.mubr.bf16.mxu0 %v14609_v60  ;;  %2514 = vmatpush1.bf16.msra.mxu0 %v18546_v57  ;;  %v20160_v57 = vpack.c.bf16 %v20144_v48, %v20138_v45  ;;  %v751_v60 = vsel %vm303_vm0, %v685_v54, 0.0  ;;  %v752_v61 = vsel %vm303_vm0, %v23584_v56, 0.0  ;;  %v18558_v56 = vld [vmem:[#allocation8 + $0x220] ss:$8 sps:$4 sm:$0xff]  }
 0x119   : > { %2515 = vmatprep.subr.bf16.mxu0 %v18551_v59  ;;  %v20164_v59 = vpack.c.bf16 %v20150_v50, %v20147_v49 }
 0x11a   : > { %23993 = vst [vmem:[#allocation48_spill] sm:$0xff] %v20160_v57 }
 0x11b   : > { %23994 = vst [vmem:[#allocation49_spill] sm:$0xff] %v20164_v59 }
 0x11c   : > { %2516 = vmatpush1.bf16.msra.mxu0 %v18549_v1  ;;  %v20179_v1 = vld [vmem:[%s19951_s28 + $0x1e0] sm:$0xff] }
 0x11d   : > { %3063 = vmatprep.subr.bf16.mxu0 %v18554_v2  ;;  %23996 = vst [vmem:[#allocation51_spill] sm:$0xff] %v20179_v1  ;;  %v15880_v2 = vpack.c.bf16 %v752_v61, %v751_v60  ;;  %v20184_v13 = vpack.c.bf16 %v20179_v1, %v20176_v63  ;;  %v23590_v60 = vrot.slane %v20211_v39, 7  ;;  %v18555_v61 = vld [vmem:[#allocation8 + $0x210] ss:$8 sps:$4 sm:$0xff]  }
 0x11f   : > { %2085 = vmatmul.mubr.bf16.gmra.mrb[32].mxu0 %v14608_v3  ;;  %23997 = vst [vmem:[#allocation52_spill] sm:$0xff] %v20184_v13  ;;  %v14657_v54 = vcombine.high %v23585_v18, %v15880_v2  ;;  %v23998_v3 = vmov 0  ;;  %v14656_v26 = vcombine.low %v23585_v18, %v15880_v2  ;;  %v20218_v2 = vld [vmem:[%s19951_s28 + $0x38] sm:$0xff] }
 0x120   : > { %2094 = vmatprep.mubr.bf16.mxu0 %v20053_v5  ;;  %v23999_v3 = vsel %vm20191_vm1, 4294967295, %v23998_v3  ;;  %24003 = vst [vmem:[#allocation56_spill] sm:$0xff] %v20218_v2  ;;  %v18563_v18 = vld [vmem:[#allocation8 + $0x234] ss:$8 sps:$4 sm:$0xff]  }
 0x121   : > { %24000 = vst [vmem:[#allocation53_spill] sm:$0xff] %v23999_v3 }
 0x127   : > { %2095 = vmatmul.mubr.bf16.gmra.mrb[36].mxu0 %v20060_v10  ;;  %v18569_v10 = vld [vmem:[#allocation8 + $0x254] ss:$8 sps:$4 sm:$0xff]  }
 0x128   : > { %2104 = vmatprep.mubr.bf16.mxu0 %v20062_v12 }
 0x12f   : > { %2105 = vmatmul.mubr.bf16.gmra.mrb[40].mxu0 %v20077_v19 }
 0x130   : > { %2114 = vmatprep.mubr.bf16.mxu0 %v20087_v22 }
 0x137   : > { %2115 = vmatmul.mubr.bf16.gmra.mrb[44].mxu0 %v20101_v27  ;;  %v20274_v27 = vld [vmem:[%s19951_s28 + $0x80] sm:$0xff] }
 0x138   : > { %2124 = vmatprep.mubr.bf16.mxu0 %v14617_v28  ;;  %v18557_v28 = vld [vmem:[#allocation8 + $0x214] ss:$8 sps:$4 sm:$0xff]  }
 0x13f   : > { %2125 = vmatmul.mubr.bf16.gmra.mrb[48].mxu0 %v14616_v32  ;;  %v20208_v32 = vpack.c.bf16 %v23582_v9, %v23583_v7  ;;  %v20222_v9 = vld [vmem:[%s19951_s28 + $0x48] sm:$0xff] }
 0x140   : > { %2134 = vmatprep.mubr.bf16.mxu0 %v20114_v34  ;;  %v18560_v7 = vld [vmem:[#allocation8 + $0x224] ss:$8 sps:$4 sm:$0xff]  }
 0x141   : > { %24002 = vst [vmem:[#allocation55_spill] sm:$0xff] %v20208_v32  ;;  %v20270_v34 = vld [vmem:[%s19951_s28 + $0x68] sm:$0xff] }
 0x142   : > { %24009 = vst [vmem:[#allocation61_spill] sm:$0xff] %v20270_v34 }
 0x147   : > { %2135 = vmatmul.mubr.bf16.gmra.mrb[52].mxu0 %v20131_v40  ;;  %v20266_v40 = vld [vmem:[%s19951_s28 + $0x58] sm:$0xff] }
 0x148   : > { %2144 = vmatprep.mubr.bf16.mxu0 %v20135_v42  ;;  %24008 = vst [vmem:[#allocation60_spill] sm:$0xff] %v20266_v40 }
 0x14f   : > { %2145 = vmatmul.mubr.bf16.gmra.mrb[56].mxu0 %v20160_v57 }
 0x150   : > { %2154 = vmatprep.mubr.bf16.mxu0 %v20164_v59  ;;  %v20238_v59 = vld [vmem:[%s19951_s28] sm:$0xff] }
 0x151   : > { %v24006_v57 = vrot.slane %v20238_v59, 1 }
 0x157   : > { %2155 = vmatmul.mubr.bf16.gmra.mrb[60].mxu0 %v20184_v13 }
 0x158   : > { %2517 = vmatprep.mubr.bf16.mxu0 %v14657_v54  ;;  %v23591_v54 = vrot.slane %v20218_v2, 7 }
 0x15f   : > { %2518 = vmatmul.mubr.bf16.vlgmr.msra.gmra.mrb[0].mxu0 %v14656_v26  ;;  %v23589_v26 = vrot.slane %v20222_v9, 7 }
 0x160   : > { %3064 = vmatpush1.bf16.msra.mxu0 %v18552_v14  ;;  %16092 = vmatprep.mubr.msk.bf16.mxu0 %vm20191_vm1, %v20208_v32  ;;  %v20229_v14 = vpack.c.bf16 %v23590_v60, %v687_v55  ;;  %v23597_v55 = vrot.slane %v20242_v44, 1  ;;  %v24013_v60 = vrot.slane %v20266_v40, 7 }
 0x161   : > { %3065 = vmatprep.subr.bf16.mxu0 %v18557_v28  ;;  %v20235_v13 = vpack.c.bf16 %v23589_v26, %v23591_v54  ;;  %v18561_v54 = vld [vmem:[#allocation8 + $0x230] ss:$8 sps:$4 sm:$0xff]   ;;  %v18566_v28 = vld [vmem:[#allocation8 + $0x244] ss:$8 sps:$4 sm:$0xff]  }
 0x162   : > { %24004 = vst [vmem:[#allocation57_spill] sm:$0xff] %v20229_v14  ;;  %v20260_v42 = vpack.c.bf16 %v23597_v55, %v24006_v57  ;;  %v23605_v57 = vrot.slane %v20274_v27, 7  ;;  %v20278_v55 = vld [vmem:[%s19951_s28 + $0x88] sm:$0xff] }
 0x163   : > { %24005 = vst [vmem:[#allocation58_spill] sm:$0xff] %v20235_v13  ;;  %v24016_v58 = vrot.slane %v20278_v55, 7 }
 0x164   : > { %3066 = vmatpush1.bf16.msra.mxu0 %v18555_v61  ;;  %v20249_v61 = vld [vmem:[%s19951_s28 + $0x30] sm:$0xff]  ;;  %24007 = vst [vmem:[#allocation59_spill] sm:$0xff] %v20260_v42  ;;  %v767_v22 = vsel %vm303_vm0, %v23605_v57, 0.0  ;;  %v18572_v57 = vld [vmem:[#allocation8 + $0x264] ss:$8 sps:$4 sm:$0xff]  }
 0x165   : > { %3067 = vmatprep.subr.bf16.mxu0 %v18560_v7  ;;  %v20253_v7 = vld [vmem:[%s19951_s28 + $0x40] sm:$0xff]  ;;  %v24010_v19 = vrot.slane %v20249_v61, 7  ;;  %v768_v47 = vsel %vm303_vm0, %v24016_v58, 0.0 }
 0x166   : > { %v24011_v26 = vrot.slane %v20253_v7, 7  ;;  %v15888_v58 = vpack.c.bf16 %v768_v47, %v767_v22  ;;  %v18578_v47 = vld [vmem:[#allocation8 + $0x284] ss:$8 sps:$4 sm:$0xff]  }
 0x167   : > { %16095 = vmatmul.mubr.msk.bf16.gmra.mrb[4].mxu0 %vm20191_vm1, %v20229_v14 }
 0x168   : > { %16098 = vmatprep.mubr.msk.bf16.mxu0 %vm20191_vm1, %v20235_v13  ;;  %3068 = vmatpush1.bf16.msra.mxu0 %v18558_v56  ;;  %v18564_v56 = vld [vmem:[#allocation8 + $0x240] ss:$8 sps:$4 sm:$0xff]   ;;  %v20285_v12 = vpack.c.bf16 %v24011_v26, %v24010_v19  ;;  %v20305_v19 = vld [vmem:[%s19951_s28 + $0x50] sm:$0xff]  ;;  %v14665_v23 = vcombine.high %v24019_v31, %v15888_v58 }
 0x169   : > { %3069 = vmatprep.subr.bf16.mxu0 %v18563_v18  ;;  %v24014_v18 = vrot.slane %v20270_v34, 7  ;;  %24017 = vst [vmem:[#allocation64_spill] sm:$0xff] %v20305_v19 }
 0x16a   : > { %24012 = vst [vmem:[#allocation62_spill] sm:$0xff] %v20285_v12 }
 0x16b   : > { %v20291_v5 = vpack.c.bf16 %v24014_v18, %v24013_v60  ;;  %v23612_v60 = vrot.slane %v20305_v19, 7  ;;  %v18567_v18 = vld [vmem:[#allocation8 + $0x250] ss:$8 sps:$4 sm:$0xff]  }
 0x16c   : > { %3070 = vmatpush1.bf16.msra.mxu0 %v18561_v54  ;;  %v20309_v54 = vld [vmem:[%s19951_s28 + $0x60] sm:$0xff] }
 0x16d   : > { %24015 = vst [vmem:[#allocation63_spill] sm:$0xff] %v20291_v5  ;;  %3071 = vmatprep.subr.bf16.mxu0 %v18566_v28  ;;  %v23611_v26 = vrot.slane %v20309_v54, 7  ;;  %v18570_v28 = vld [vmem:[#allocation8 + $0x260] ss:$8 sps:$4 sm:$0xff]  }
 0x16f   : > { %16101 = vmatmul.mubr.msk.bf16.gmra.mrb[8].mxu0 %vm20191_vm1, %v20285_v12  ;;  %v20319_v41 = vpack.c.bf16 %v23611_v26, %v23612_v60  ;;  %v18581_v60 = vld [vmem:[#allocation8 + $0x294] ss:$8 sps:$4 sm:$0xff]  }
 0x170   : > { %16104 = vmatprep.mubr.msk.bf16.mxu0 %vm20191_vm1, %v20291_v5  ;;  %3072 = vmatpush1.bf16.msra.mxu0 %v18564_v56  ;;  %v20330_v56 = vld [vmem:[%s19951_s28 + $0xa8] sm:$0xff] }
 0x171   : > { %3073 = vmatprep.subr.bf16.mxu0 %v18569_v10  ;;  %24018 = vst [vmem:[#allocation65_spill] sm:$0xff] %v20319_v41  ;;  %v20326_v10 = vld [vmem:[%s19951_s28 + $0x98] sm:$0xff]  ;;  %v23616_v26 = vrot.slane %v20330_v56, 7  ;;  %v18590_v5 = vld [vmem:[#allocation8 + $0x2c4] ss:$8 sps:$4 sm:$0xff]  }
 0x172   : > { %v23617_v22 = vrot.slane %v20326_v10, 7 }
 0x174   : > { %3074 = vmatpush1.bf16.msra.mxu0 %v18567_v18  ;;  %v14664_v18 = vcombine.low %v24019_v31, %v15888_v58  ;;  %v18584_v58 = vld [vmem:[#allocation8 + $0x2a4] ss:$8 sps:$4 sm:$0xff]  }
 0x175   : > { %3075 = vmatprep.subr.bf16.mxu0 %v18572_v57  ;;  %v18576_v57 = vld [vmem:[#allocation8 + $0x280] ss:$8 sps:$4 sm:$0xff]  }
 0x177   : > { %16107 = vmatmul.mubr.msk.bf16.gmra.mrb[12].mxu0 %vm20191_vm1, %v20319_v41  ;;  %v18585_v41 = vld [vmem:[#allocation8 + $0x2b0] ss:$8 sps:$4 sm:$0xff]  }
 0x178   : > { %2557 = vmatprep.mubr.bf16.mxu0 %v14665_v23  ;;  %3076 = vmatpush1.bf16.msra.mxu0 %v18570_v28  ;;  %v20338_v23 = vpack.c.bf16 %v23616_v26, %v23617_v22  ;;  %v23622_v28 = vrot.slane %v20341_v4, 7  ;;  %v20352_v26 = vld [vmem:[%s19951_s28 + $0xb8] sm:$0xff]  ;;  %v18582_v22 = vld [vmem:[#allocation8 + $0x2a0] ss:$8 sps:$4 sm:$0xff]  }
 0x179   : > { %3077 = vmatprep.subr.bf16.mxu0 %v18575_v33  ;;  %v23621_v33 = vrot.slane %v20345_v0, 7 }
 0x17a   : > { %24020 = vst [vmem:[#allocation66_spill] sm:$0xff] %v20338_v23 }
 0x17b   : > { %v20363_v51 = vpack.c.bf16 %v23621_v33, %v23622_v28  ;;  %v20379_v33 = vld [vmem:[%s19951_s28 + $0xc0] sm:$0xff] }
 0x17c   : > { %3078 = vmatpush1.bf16.msra.mxu0 %v18573_v11  ;;  %v23626_v11 = vrot.slane %v20352_v26, 7 }
 0x17d   : > { %3079 = vmatprep.subr.bf16.mxu0 %v18578_v47  ;;  %v20356_v47 = vld [vmem:[%s19951_s28 + $0xc8] sm:$0xff]  ;;  %24021 = vst [vmem:[#allocation67_spill] sm:$0xff] %v20363_v51 }
 0x17f   : > { %2558 = vmatmul.mubr.bf16.gmra.mrb[16].mxu0 %v14664_v18  ;;  %v23625_v18 = vrot.slane %v20356_v47, 7 }
 0x180   : > { %16110 = vmatprep.mubr.msk.bf16.mxu0 %vm20191_vm1, %v20338_v23  ;;  %3080 = vmatpush1.bf16.msra.mxu0 %v18576_v57  ;;  %v20394_v57 = vld [vmem:[%s19951_s28 + $0x100] sm:$0xff] }
 0x181   : > { %3081 = vmatprep.subr.bf16.mxu0 %v18581_v60  ;;  %v20369_v23 = vpack.c.bf16 %v23625_v18, %v23626_v11  ;;  %v20375_v60 = vld [vmem:[%s19951_s28 + $0xb0] sm:$0xff]  ;;  %v20390_v18 = vld [vmem:[%s19951_s28 + $0xe8] sm:$0xff]  ;;  %24025 = vst [vmem:[#allocation71_spill] sm:$0xff] %v20394_v57  ;;  %v23633_v28 = vrot.slane %v20394_v57, 7 }
 0x182   : > { %24024 = vst [vmem:[#allocation70_spill] sm:$0xff] %v20390_v18  ;;  %v24027_v13 = vrot.slane %v20375_v60, 7  ;;  %v18593_v11 = vld [vmem:[#allocation8 + $0x2d4] ss:$8 sps:$4 sm:$0xff]   ;;  %v24031_v32 = vrot.slane %v20390_v18, 7 }
 0x183   : > { %24022 = vst [vmem:[#allocation68_spill] sm:$0xff] %v20369_v23 }
 0x184   : > { %3082 = vmatpush1.bf16.msra.mxu0 %v18579_v53  ;;  %v20386_v53 = vld [vmem:[%s19951_s28 + $0xd8] sm:$0xff] }
 0x185   : > { %3083 = vmatprep.subr.bf16.mxu0 %v18584_v58  ;;  %24023 = vst [vmem:[#allocation69_spill] sm:$0xff] %v20386_v53  ;;  %v24028_v58 = vrot.slane %v20379_v33, 7 }
 0x187   : > { %16113 = vmatmul.mubr.msk.bf16.gmra.mrb[20].mxu0 %vm20191_vm1, %v20363_v51  ;;  %v20398_v51 = vld [vmem:[%s19951_s28 + $0x108] sm:$0xff]  ;;  %v20405_v14 = vpack.c.bf16 %v24028_v58, %v24027_v13  ;;  %v20425_v13 = vld [vmem:[%s19951_s28 + $0xd0] sm:$0xff] }
 0x188   : > { %16116 = vmatprep.mubr.msk.bf16.mxu0 %vm20191_vm1, %v20369_v23  ;;  %3084 = vmatpush1.bf16.msra.mxu0 %v18582_v22  ;;  %24026 = vst [vmem:[#allocation72_spill] sm:$0xff] %v20398_v51  ;;  %v23634_v12 = vrot.slane %v20398_v51, 7  ;;  %v18588_v23 = vld [vmem:[#allocation8 + $0x2c0] ss:$8 sps:$4 sm:$0xff]   ;;  %v24030_v22 = vrot.slane %v20386_v53, 7 }
 0x189   : > { %3085 = vmatprep.subr.bf16.mxu0 %v18587_v43  ;;  %24029 = vst [vmem:[#allocation73_spill] sm:$0xff] %v20405_v14  ;;  %v783_v43 = vsel %vm303_vm0, %v23633_v28, 0.0  ;;  %v18596_v28 = vld [vmem:[#allocation8 + $0x2e4] ss:$8 sps:$4 sm:$0xff]   ;;  %v18599_v51 = vld [vmem:[#allocation8 + $0x2f4] ss:$8 sps:$4 sm:$0xff]  }
 0x18a   : > { %v20411_v42 = vpack.c.bf16 %v24031_v32, %v24030_v22  ;;  %v784_v62 = vsel %vm303_vm0, %v23634_v12, 0.0  ;;  %v23641_v32 = vrot.slane %v20425_v13, 7  ;;  %v18591_v22 = vld [vmem:[#allocation8 + $0x2d0] ss:$8 sps:$4 sm:$0xff]   ;;  %v18594_v12 = vld [vmem:[#allocation8 + $0x2e0] ss:$8 sps:$4 sm:$0xff]  }
 0x18c   : > { %24032 = vst [vmem:[#allocation74_spill] sm:$0xff] %v20411_v42  ;;  %3086 = vmatpush1.bf16.msra.mxu0 %v18585_v41  ;;  %v20429_v41 = vld [vmem:[%s19951_s28 + $0xe0] sm:$0xff] }
 0x18d   : > { %3087 = vmatprep.subr.bf16.mxu0 %v18590_v5  ;;  %v23640_v58 = vrot.slane %v20429_v41, 7  ;;  %v15896_v5 = vpack.c.bf16 %v784_v62, %v783_v43  ;;  %v18597_v62 = vld [vmem:[#allocation8 + $0x2f0] ss:$8 sps:$4 sm:$0xff]  }
 0x18f   : > { %16119 = vmatmul.mubr.msk.bf16.gmra.mrb[24].mxu0 %vm20191_vm1, %v20405_v14  ;;  %v20439_v14 = vpack.c.bf16 %v23640_v58, %v23641_v32  ;;  %v14673_v57 = vcombine.high %v24019_v31, %v15896_v5  ;;  %v20450_v58 = vld [vmem:[%s19951_s28 + $0x128] sm:$0xff] }
 0x190   : > { %16122 = vmatprep.mubr.msk.bf16.mxu0 %vm20191_vm1, %v20411_v42  ;;  %3088 = vmatpush1.bf16.msra.mxu0 %v18588_v23  ;;  %v18602_v23 = vld [vmem:[#allocation8 + $0x304] ss:$8 sps:$4 sm:$0xff]  }
 0x191   : > { %3089 = vmatprep.subr.bf16.mxu0 %v18593_v11  ;;  %24033 = vst [vmem:[#allocation75_spill] sm:$0xff] %v20439_v14  ;;  %v20446_v11 = vld [vmem:[%s19951_s28 + $0x118] sm:$0xff]  ;;  %v20465_v42 = vld [vmem:[%s19951_s28 + $0x120] sm:$0xff] }
 0x192   : > { %v23645_v43 = vrot.slane %v20446_v11, 7 }
 0x194   : > { %3090 = vmatpush1.bf16.msra.mxu0 %v18591_v22  ;;  %v23644_v22 = vrot.slane %v20450_v58, 7 }
 0x195   : > { %3091 = vmatprep.subr.bf16.mxu0 %v18596_v28  ;;  %v14672_v28 = vcombine.low %v24019_v31, %v15896_v5 }
 0x196   : > { %v20458_v32 = vpack.c.bf16 %v23644_v22, %v23645_v43  ;;  %v20476_v22 = vld [vmem:[%s19951_s28 + $0x148] sm:$0xff]  ;;  %v20495_v43 = vld [vmem:[%s19951_s28 + $0x130] sm:$0xff] }
 0x197   : > { %16125 = vmatmul.mubr.msk.bf16.gmra.mrb[28].mxu0 %vm20191_vm1, %v20439_v14  ;;  %24036 = vst [vmem:[#allocation78_spill] sm:$0xff] %v20476_v22  ;;  %24039 = vst [vmem:[#allocation81_spill] sm:$0xff] %v20495_v43 }
 0x198   : > { %2597 = vmatprep.mubr.bf16.mxu0 %v14673_v57  ;;  %3092 = vmatpush1.bf16.msra.mxu0 %v18594_v12  ;;  %24034 = vst [vmem:[#allocation76_spill] sm:$0xff] %v20458_v32  ;;  %v20461_v57 = vld [vmem:[%s19951_s28 + $0x110] sm:$0xff]  ;;  %v20472_v12 = vld [vmem:[%s19951_s28 + $0x138] sm:$0xff] }
 0x199   : > { %3093 = vmatprep.subr.bf16.mxu0 %v18599_v51  ;;  %24035 = vst [vmem:[#allocation77_spill] sm:$0xff] %v20461_v57  ;;  %v23650_v14 = vrot.slane %v20461_v57, 7  ;;  %v23649_v51 = vrot.slane %v20465_v42, 7  ;;  %v23652_v5 = vrot.slane %v20472_v12, 7  ;;  %v23659_v57 = vrot.slane %v20067_v15, 7 }
 0x19c   : > { %3094 = vmatpush1.bf16.msra.mxu0 %v18597_v62  ;;  %v23651_v62 = vrot.slane %v20476_v22, 7 }
 0x19d   : > { %3705 = vmatprep.subr.bf16.mxu0 %v18602_v23  ;;  %v20483_v23 = vpack.c.bf16 %v23649_v51, %v23650_v14  ;;  %v23664_v51 = vrot.slane %v20070_v16, 7  ;;  %v23661_v14 = vrot.slane %v20073_v17, 7 }
 0x19f   : > { %2598 = vmatmul.mubr.bf16.gmra.mrb[32].mxu0 %v14672_v28  ;;  %24037 = vst [vmem:[#allocation79_spill] sm:$0xff] %v20483_v23  ;;  %v20489_v28 = vpack.c.bf16 %v23651_v62, %v23652_v5  ;;  %v23662_v62 = vrot.slane %v20080_v20, 7  ;;  %v23663_v5 = vrot.slane %v20083_v21, 7  ;;  %v20516_v22 = vpack.c.bf16 %v23661_v14, %v23664_v51 }
 0x1a0   : > { %16128 = vmatprep.mubr.msk.bf16.mxu0 %vm20191_vm1, %v20458_v32  ;;  %v23660_v32 = vrot.slane %v20495_v43, 7  ;;  %v23670_v51 = vrot.slane %v20106_v29, 7 }
 0x1a1   : > { %24038 = vst [vmem:[#allocation80_spill] sm:$0xff] %v20489_v28  ;;  %24041 = vst [vmem:[#allocation83_spill] sm:$0xff] %v20516_v22  ;;  %v800_v43 = vsel %vm303_vm0, %v23663_v5, 0.0 }
 0x1a7   : > { %16131 = vmatmul.mubr.msk.bf16.gmra.mrb[36].mxu0 %vm20191_vm1, %v20483_v23  ;;  %v20510_v23 = vpack.c.bf16 %v23659_v57, %v23660_v32  ;;  %v23668_v57 = vrot.slane %v20091_v24, 7  ;;  %v23667_v32 = vrot.slane %v20094_v25, 7 }
 0x1a8   : > { %16134 = vmatprep.mubr.msk.bf16.mxu0 %vm20191_vm1, %v20489_v28  ;;  %v799_v28 = vsel %vm303_vm0, %v23662_v62, 0.0 }
 0x1a9   : > { %24040 = vst [vmem:[#allocation82_spill] sm:$0xff] %v20510_v23  ;;  %v15904_v14 = vpack.c.bf16 %v800_v43, %v799_v28  ;;  %v20538_v62 = vpack.c.bf16 %v23667_v32, %v23668_v57  ;;  %v23672_v28 = vrot.slane %v20117_v35, 7  ;;  %v23671_v32 = vrot.slane %v20120_v36, 7 }
 0x1aa   : > { %v23674_v57 = vrot.slane %v20126_v38, 7 }
 0x1ab   : > { %24042 = vst [vmem:[#allocation84_spill] sm:$0xff] %v20538_v62  ;;  %v14681_v5 = vcombine.high %v24019_v31, %v15904_v14 }
 0x1af   : > { %16137 = vmatmul.mubr.msk.bf16.gmra.mrb[40].mxu0 %vm20191_vm1, %v20510_v23  ;;  %v23669_v23 = vrot.slane %v20109_v30, 7 }
 0x1b0   : > { %16140 = vmatprep.mubr.msk.bf16.mxu0 %vm20191_vm1, %v20516_v22  ;;  %v14680_v22 = vcombine.low %v24019_v31, %v15904_v14  ;;  %v20564_v14 = vpack.c.bf16 %v23671_v32, %v23672_v28  ;;  %v23683_v32 = vrot.slane %v20147_v49, 7  ;;  %v23682_v28 = vrot.slane %v20150_v50, 7  ;;  %v18647_v49 = vld [vmem:[#allocation8 + $0x3f4] ss:$8 sps:$4 sm:$0xff]  }
 0x1b1   : > { %v20551_v43 = vpack.c.bf16 %v23669_v23, %v23670_v51  ;;  %v23680_v23 = vrot.slane %v20138_v45, 7  ;;  %v23679_v51 = vrot.slane %v20144_v48, 7 }
 0x1b2   : > { %24044 = vst [vmem:[#allocation86_spill] sm:$0xff] %v20564_v14 }
 0x1b3   : > { %24043 = vst [vmem:[#allocation85_spill] sm:$0xff] %v20551_v43 }
 0x1b7   : > { %16143 = vmatmul.mubr.msk.bf16.gmra.mrb[44].mxu0 %vm20191_vm1, %v20538_v62 }
 0x1b8   : > { %2637 = vmatprep.mubr.bf16.mxu0 %v14681_v5  ;;  %v23675_v5 = vrot.slane %v20123_v37, 7 }
 0x1bf   : > { %2638 = vmatmul.mubr.bf16.gmra.mrb[48].mxu0 %v14680_v22  ;;  %v20570_v22 = vpack.c.bf16 %v23674_v57, %v23675_v5  ;;  %v20588_v57 = vpack.c.bf16 %v23679_v51, %v23680_v23  ;;  %v20594_v5 = vpack.c.bf16 %v23682_v28, %v23683_v32  ;;  %v23686_v51 = vrot.slane %v20176_v63, 7  ;;  %v18623_v63 = vld [vmem:[#allocation8 + $0x374] ss:$8 sps:$4 sm:$0xff]  }
 0x1c0   : > { %16146 = vmatprep.mubr.msk.bf16.mxu0 %vm20191_vm1, %v20551_v43  ;;  %v23681_v43 = vrot.slane %v20154_v52, 1  ;;  %v23685_v23 = vrot.slane %v20179_v1, 7  ;;  %v23688_v28 = vrot.slane %v20196_v6, 1  ;;  %v23687_v32 = vrot.slane %v20200_v8, 1 }
 0x1c1   : > { %24045 = vst [vmem:[#allocation87_spill] sm:$0xff] %v20570_v22  ;;  %24046 = vst [vmem:[#allocation88_spill] sm:$0xff] %v20588_v57 }
 0x1c2   : > { %24047 = vst [vmem:[#allocation89_spill] sm:$0xff] %v20594_v5  ;;  %v1171_v62 = vsel %vm304_vm2, %v23681_v43, 0.0 }
 0x1c7   : > { %16149 = vmatmul.mubr.msk.bf16.gmra.mrb[52].mxu0 %vm20191_vm1, %v20564_v14 }
 0x1c8   : > { %16152 = vmatprep.mubr.msk.bf16.mxu0 %vm20191_vm1, %v20570_v22  ;;  %v24048_v22 = vrot.slane %v20238_v59, 1 }
 0x1ca   : > { %v1170_v14 = vsel %vm304_vm2, %v24048_v22, 0.0  ;;  %v20616_v22 = vpack.c.bf16 %v23685_v23, %v23686_v51  ;;  %v23694_v51 = vrot.slane %v20211_v39, 1 }
 0x1cb   : > { %v15912_v59 = vpack.c.bf16 %v1171_v62, %v1170_v14  ;;  %v18600_v62 = vld [vmem:[#allocation8 + $0x300] ss:$8 sps:$4 sm:$0xff]   ;;  %v20629_v14 = vpack.c.bf16 %v23687_v32, %v23688_v28  ;;  %v23695_v32 = vrot.slane %v20218_v2, 1  ;;  %v23693_v28 = vrot.slane %v20222_v9, 1 }
 0x1cc   : > { %24049 = vst [vmem:[#allocation90_spill] sm:$0xff] %v20616_v22 }
 0x1cd   : > { %v14721_v43 = vcombine.high %v24019_v31, %v15912_v59  ;;  %24050 = vst [vmem:[#allocation91_spill] sm:$0xff] %v20629_v14 }
 0x1cf   : > { %16155 = vmatmul.mubr.msk.bf16.gmra.mrb[56].mxu0 %vm20191_vm1, %v20588_v57  ;;  %v24053_v57 = vrot.slane %v20242_v44, 1  ;;  %v23703_v44 = vrot.slane %v20249_v61, 1 }
 0x1d0   : > { %16158 = vmatprep.mubr.msk.bf16.mxu0 %vm20191_vm1, %v20594_v5  ;;  %v14720_v5 = vcombine.low %v24019_v31, %v15912_v59  ;;  %v18603_v59 = vld [vmem:[#allocation8 + $0x310] ss:$8 sps:$4 sm:$0xff]  }
 0x1d1   : > { %v20648_v1 = vpack.c.bf16 %v23694_v51, %v24053_v57  ;;  %v23702_v57 = vrot.slane %v20266_v40, 1  ;;  %v23704_v51 = vrot.slane %v20278_v55, 1 }
 0x1d3   : > { %24054 = vst [vmem:[#allocation92_spill] sm:$0xff] %v20648_v1  ;;  %v1187_v50 = vsel %vm304_vm2, %v23704_v51, 0.0 }
 0x1d7   : > { %16161 = vmatmul.mubr.msk.bf16.gmra.mrb[60].mxu0 %vm20191_vm1, %v20616_v22  ;;  %v18608_v22 = vld [vmem:[#allocation8 + $0x324] ss:$8 sps:$4 sm:$0xff]  }
 0x1d8   : > { %3095 = vmatprep.mubr.bf16.mxu0 %v14721_v43  ;;  %v18605_v43 = vld [vmem:[#allocation8 + $0x314] ss:$8 sps:$4 sm:$0xff]  }
 0x1df   : > { %3096 = vmatmul.mubr.bf16.vlgmr.msra.gmra.mrb[0].mxu0 %v14720_v5  ;;  %v20654_v5 = vpack.c.bf16 %v23693_v28, %v23695_v32  ;;  %v18609_v28 = vld [vmem:[#allocation8 + $0x330] ss:$8 sps:$4 sm:$0xff]   ;;  %v18614_v32 = vld [vmem:[#allocation8 + $0x344] ss:$8 sps:$4 sm:$0xff]  }
 0x1e0   : > { %3706 = vmatpush1.bf16.msra.mxu0 %v18600_v62  ;;  %16188 = vmatprep.mubr.msk.bf16.mxu0 %vm20634_vm3, %v20629_v14  ;;  %v18606_v62 = vld [vmem:[#allocation8 + $0x320] ss:$8 sps:$4 sm:$0xff]   ;;  %v18611_v14 = vld [vmem:[#allocation8 + $0x334] ss:$8 sps:$4 sm:$0xff]  }
 0x1e1   : > { %3707 = vmatprep.subr.bf16.mxu0 %v18605_v43  ;;  %24055 = vst [vmem:[#allocation93_spill] sm:$0xff] %v20654_v5  ;;  %v23699_v43 = vrot.slane %v20253_v7, 1 }
 0x1e4   : > { %3708 = vmatpush1.bf16.msra.mxu0 %v18603_v59  ;;  %v23700_v59 = vrot.slane %v20270_v34, 1 }
 0x1e5   : > { %3709 = vmatprep.subr.bf16.mxu0 %v18608_v22  ;;  %v23701_v22 = vrot.slane %v20274_v27, 1 }
 0x1e7   : > { %16191 = vmatmul.mubr.msk.bf16.gmra.mrb[4].mxu0 %vm20634_vm3, %v20648_v1  ;;  %v20672_v1 = vpack.c.bf16 %v23699_v43, %v23703_v44  ;;  %v18617_v43 = vld [vmem:[#allocation8 + $0x354] ss:$8 sps:$4 sm:$0xff]   ;;  %v18620_v44 = vld [vmem:[#allocation8 + $0x364] ss:$8 sps:$4 sm:$0xff]  }
 0x1e8   : > { %16194 = vmatprep.mubr.msk.bf16.mxu0 %vm20634_vm3, %v20654_v5  ;;  %3710 = vmatpush1.bf16.msra.mxu0 %v18606_v62  ;;  %v20678_v62 = vpack.c.bf16 %v23700_v59, %v23702_v57  ;;  %v18612_v5 = vld [vmem:[#allocation8 + $0x340] ss:$8 sps:$4 sm:$0xff]   ;;  %v23708_v59 = vrot.slane %v20305_v19, 1  ;;  %v18615_v57 = vld [vmem:[#allocation8 + $0x350] ss:$8 sps:$4 sm:$0xff]  }
 0x1e9   : > { %3711 = vmatprep.subr.bf16.mxu0 %v18611_v14  ;;  %24056 = vst [vmem:[#allocation94_spill] sm:$0xff] %v20672_v1  ;;  %v1186_v14 = vsel %vm304_vm2, %v23701_v22, 0.0 }
 0x1ea   : > { %24057 = vst [vmem:[#allocation95_spill] sm:$0xff] %v20678_v62  ;;  %v15920_v22 = vpack.c.bf16 %v1187_v50, %v1186_v14  ;;  %v23710_v50 = vrot.slane %v20326_v10, 1  ;;  %v18626_v14 = vld [vmem:[#allocation8 + $0x384] ss:$8 sps:$4 sm:$0xff]  }
 0x1ec   : > { %3712 = vmatpush1.bf16.msra.mxu0 %v18609_v28  ;;  %v23707_v28 = vrot.slane %v20309_v54, 1  ;;  %v14729_v51 = vcombine.high %v24019_v31, %v15920_v22 }
 0x1ed   : > { %3713 = vmatprep.subr.bf16.mxu0 %v18614_v32 }
 0x1ee   : > { %v20700_v32 = vpack.c.bf16 %v23707_v28, %v23708_v59  ;;  %v14728_v28 = vcombine.low %v24019_v31, %v15920_v22  ;;  %v23715_v59 = vrot.slane %v20341_v4, 1  ;;  %v23713_v22 = vrot.slane %v20356_v47, 1 }
 0x1ef   : > { %16197 = vmatmul.mubr.msk.bf16.gmra.mrb[8].mxu0 %vm20634_vm3, %v20672_v1  ;;  %v18618_v1 = vld [vmem:[#allocation8 + $0x360] ss:$8 sps:$4 sm:$0xff]  }
 0x1f0   : > { %16200 = vmatprep.mubr.msk.bf16.mxu0 %vm20634_vm3, %v20678_v62  ;;  %3714 = vmatpush1.bf16.msra.mxu0 %v18612_v5  ;;  %24058 = vst [vmem:[#allocation96_spill] sm:$0xff] %v20700_v32  ;;  %v23709_v5 = vrot.slane %v20330_v56, 1 }
 0x1f1   : > { %3715 = vmatprep.subr.bf16.mxu0 %v18617_v43  ;;  %v18621_v43 = vld [vmem:[#allocation8 + $0x370] ss:$8 sps:$4 sm:$0xff]  }
 0x1f4   : > { %3716 = vmatpush1.bf16.msra.mxu0 %v18615_v57  ;;  %v18624_v57 = vld [vmem:[#allocation8 + $0x380] ss:$8 sps:$4 sm:$0xff]  }
 0x1f5   : > { %3717 = vmatprep.subr.bf16.mxu0 %v18620_v44  ;;  %v20713_v44 = vpack.c.bf16 %v23709_v5, %v23710_v50  ;;  %v18627_v5 = vld [vmem:[#allocation8 + $0x390] ss:$8 sps:$4 sm:$0xff]   ;;  %v18630_v50 = vld [vmem:[#allocation8 + $0x3a0] ss:$8 sps:$4 sm:$0xff]  }
 0x1f7   : > { %16203 = vmatmul.mubr.msk.bf16.gmra.mrb[12].mxu0 %vm20634_vm3, %v20700_v32  ;;  %24059 = vst [vmem:[#allocation97_spill] sm:$0xff] %v20713_v44 }
 0x1f8   : > { %3135 = vmatprep.mubr.bf16.mxu0 %v14729_v51  ;;  %3718 = vmatpush1.bf16.msra.mxu0 %v18618_v1  ;;  %v18629_v51 = vld [vmem:[#allocation8 + $0x394] ss:$8 sps:$4 sm:$0xff]   ;;  %v23712_v1 = vrot.slane %v20345_v0, 1 }
 0x1f9   : > { %3719 = vmatprep.subr.bf16.mxu0 %v18623_v63  ;;  %v23714_v63 = vrot.slane %v20352_v26, 1 }
 0x1fc   : > { %3720 = vmatpush1.bf16.msra.mxu0 %v18621_v43  ;;  %v18632_v43 = vld [vmem:[#allocation8 + $0x3a4] ss:$8 sps:$4 sm:$0xff]  }
 0x1fd   : > { %3721 = vmatprep.subr.bf16.mxu0 %v18626_v14  ;;  %v20732_v14 = vpack.c.bf16 %v23713_v22, %v23714_v63  ;;  %v23722_v22 = vrot.slane %v20390_v18, 1 }
 0x1ff   : > { %3136 = vmatmul.mubr.bf16.gmra.mrb[16].mxu0 %v14728_v28  ;;  %v20726_v28 = vpack.c.bf16 %v23712_v1, %v23715_v59  ;;  %24061 = vst [vmem:[#allocation99_spill] sm:$0xff] %v20732_v14  ;;  %v23724_v1 = vrot.slane %v20386_v53, 1  ;;  %v24063_v59 = vld [vmem:[#allocation72_spill] sm:$0xff] }
 0x200   : > { %16206 = vmatprep.mubr.msk.bf16.mxu0 %vm20634_vm3, %v20713_v44  ;;  %3722 = vmatpush1.bf16.msra.mxu0 %v18624_v57  ;;  %v18635_v44 = vld [vmem:[#allocation8 + $0x3b4] ss:$8 sps:$4 sm:$0xff]   ;;  %v23725_v57 = vrot.slane %v20375_v60, 1  ;;  %v23726_v32 = vrot.slane %v24063_v59, 1 }
 0x201   : > { %3723 = vmatprep.subr.bf16.mxu0 %v18629_v51  ;;  %24060 = vst [vmem:[#allocation98_spill] sm:$0xff] %v20726_v28  ;;  %v23721_v51 = vrot.slane %v20379_v33, 1 }
 0x202   : > { %v1203_v48 = vsel %vm304_vm2, %v23726_v32, 0.0 }
 0x203   : > { %v20750_v62 = vpack.c.bf16 %v23721_v51, %v23725_v57  ;;  %v18641_v51 = vld [vmem:[#allocation8 + $0x3d4] ss:$8 sps:$4 sm:$0xff]   ;;  %v18644_v57 = vld [vmem:[#allocation8 + $0x3e4] ss:$8 sps:$4 sm:$0xff]  }
 0x204   : > { %3724 = vmatpush1.bf16.msra.mxu0 %v18627_v5  ;;  %v18633_v5 = vld [vmem:[#allocation8 + $0x3b0] ss:$8 sps:$4 sm:$0xff]  }
 0x205   : > { %3725 = vmatprep.subr.bf16.mxu0 %v18632_v43  ;;  %v24062_v43 = vld [vmem:[#allocation71_spill] sm:$0xff] }
 0x206   : > { %v23723_v63 = vrot.slane %v24062_v43, 1  ;;  %24064 = vst [vmem:[#allocation71_spill] sm:$0xff] %v20750_v62 }
 0x207   : > { %16209 = vmatmul.mubr.msk.bf16.gmra.mrb[20].mxu0 %vm20634_vm3, %v20726_v28  ;;  %v18638_v28 = vld [vmem:[#allocation8 + $0x3c4] ss:$8 sps:$4 sm:$0xff]  }
 0x208   : > { %16212 = vmatprep.mubr.msk.bf16.mxu0 %vm20634_vm3, %v20732_v14  ;;  %3726 = vmatpush1.bf16.msra.mxu0 %v18630_v50  ;;  %v20756_v14 = vpack.c.bf16 %v23722_v22, %v23724_v1  ;;  %v18636_v50 = vld [vmem:[#allocation8 + $0x3c0] ss:$8 sps:$4 sm:$0xff]   ;;  %v23732_v22 = vrot.slane %v20425_v13, 1  ;;  %v18639_v1 = vld [vmem:[#allocation8 + $0x3d0] ss:$8 sps:$4 sm:$0xff]  }
 0x209   : > { %3727 = vmatprep.subr.bf16.mxu0 %v18635_v44  ;;  %v1202_v44 = vsel %vm304_vm2, %v23723_v63, 0.0 }
 0x20a   : > { %24065 = vst [vmem:[#allocation72_spill] sm:$0xff] %v20756_v14  ;;  %v15928_v63 = vpack.c.bf16 %v1203_v48, %v1202_v44  ;;  %v23731_v48 = vrot.slane %v20446_v11, 1  ;;  %v18650_v44 = vld [vmem:[#allocation8 + $0x404] ss:$8 sps:$4 sm:$0xff]  }
 0x20c   : > { %3728 = vmatpush1.bf16.msra.mxu0 %v18633_v5  ;;  %v23729_v5 = vrot.slane %v20429_v41, 1  ;;  %v14737_v32 = vcombine.high %v24019_v31, %v15928_v63 }
 0x20d   : > { %3729 = vmatprep.subr.bf16.mxu0 %v18638_v28 }
 0x20e   : > { %v20778_v28 = vpack.c.bf16 %v23729_v5, %v23732_v22  ;;  %v14736_v5 = vcombine.low %v24019_v31, %v15928_v63  ;;  %v24069_v63 = vld [vmem:[#allocation78_spill] sm:$0xff] }
 0x20f   : > { %16215 = vmatmul.mubr.msk.bf16.gmra.mrb[24].mxu0 %vm20634_vm3, %v20750_v62  ;;  %v18642_v62 = vld [vmem:[#allocation8 + $0x3e0] ss:$8 sps:$4 sm:$0xff]  }
 0x210   : > { %16218 = vmatprep.mubr.msk.bf16.mxu0 %vm20634_vm3, %v20756_v14  ;;  %3730 = vmatpush1.bf16.msra.mxu0 %v18636_v50  ;;  %24066 = vst [vmem:[#allocation100_spill] sm:$0xff] %v20778_v28  ;;  %v18645_v50 = vld [vmem:[#allocation8 + $0x3f0] ss:$8 sps:$4 sm:$0xff]   ;;  %v20817_v22 = vld [vmem:[%s19951_s28 + $0x140] sm:$0xff] }
 0x211   : > { %3731 = vmatprep.subr.bf16.mxu0 %v18641_v51  ;;  %v23730_v51 = vrot.slane %v20450_v58, 1 }
 0x214   : > { %3732 = vmatpush1.bf16.msra.mxu0 %v18639_v1  ;;  %v20791_v1 = vpack.c.bf16 %v23730_v51, %v23731_v48  ;;  %v23735_v51 = vrot.slane %v24069_v63, 1 }
 0x215   : > { %3733 = vmatprep.subr.bf16.mxu0 %v18644_v57 }
 0x216   : > { %24067 = vst [vmem:[#allocation101_spill] sm:$0xff] %v20791_v1 }
 0x217   : > { %16221 = vmatmul.mubr.msk.bf16.gmra.mrb[28].mxu0 %vm20634_vm3, %v20778_v28  ;;  %v20836_v28 = vld [vmem:[%s19951_s28 + $0x188] sm:$0xff] }
 0x218   : > { %3175 = vmatprep.mubr.bf16.mxu0 %v14737_v32  ;;  %3734 = vmatpush1.bf16.msra.mxu0 %v18642_v62  ;;  %v24068_v32 = vld [vmem:[#allocation77_spill] sm:$0xff]  ;;  %v23736_v62 = vrot.slane %v20472_v12, 1  ;;  %24075 = vst [vmem:[#allocation103_spill] sm:$0xff] %v20836_v28 }
 0x219   : > { %3735 = vmatprep.subr.bf16.mxu0 %v18647_v49  ;;  %v23737_v57 = vrot.slane %v24068_v32, 1  ;;  %v23734_v49 = vrot.slane %v20465_v42, 1 }
 0x21c   : > { %3736 = vmatpush1.bf16.msra.mxu0 %v18645_v50  ;;  %v20804_v50 = vpack.c.bf16 %v23734_v49, %v23737_v57  ;;  %v20824_v49 = vld [vmem:[%s19951_s28 + $0x158] sm:$0xff] }
 0x21d   : > { %4347 = vmatprep.subr.bf16.mxu0 %v18650_v44  ;;  %v24072_v44 = vld [vmem:[#allocation81_spill] sm:$0xff] }
 0x21e   : > { %24070 = vst [vmem:[#allocation77_spill] sm:$0xff] %v20804_v50  ;;  %24073 = vst [vmem:[#allocation81_spill] sm:$0xff] %v20817_v22  ;;  %v24076_v14 = vrot.slane %v24072_v44, 1 }
 0x21f   : > { %3176 = vmatmul.mubr.bf16.gmra.mrb[32].mxu0 %v14736_v5  ;;  %v20810_v5 = vpack.c.bf16 %v23735_v51, %v23736_v62  ;;  %v23748_v51 = vrot.slane %v20824_v49, 1  ;;  %v20828_v62 = vld [vmem:[%s19951_s28 + $0x168] sm:$0xff] }
 0x220   : > { %16224 = vmatprep.mubr.msk.bf16.mxu0 %vm20634_vm3, %v20791_v1  ;;  %v23747_v57 = vrot.slane %v20828_v62, 1  ;;  %v23750_v1 = vrot.slane %v20836_v28, 1 }
 0x221   : > { %24071 = vst [vmem:[#allocation78_spill] sm:$0xff] %v20810_v5 }
 0x222   : > { %v20849_v45 = vpack.c.bf16 %v23747_v57, %v23748_v51  ;;  %v20867_v57 = vld [vmem:[%s19951_s28 + $0x160] sm:$0xff] }
 0x223   : > { %24080 = vst [vmem:[#allocation106_spill] sm:$0xff] %v20867_v57  ;;  %v23755_v51 = vrot.slane %v20867_v57, 1  ;;  %v20971_v57 = vld [vmem:[%s19951_s28 + $0x1e0] sm:$0xff] }
 0x224   : > { %24079 = vst [vmem:[#allocation105_spill] sm:$0xff] %v20849_v45  ;;  %24097 = vst [vmem:[#allocation123_spill] sm:$0xff] %v20971_v57 }
 0x227   : > { %16227 = vmatmul.mubr.msk.bf16.gmra.mrb[36].mxu0 %vm20634_vm3, %v20804_v50  ;;  %v20832_v50 = vld [vmem:[%s19951_s28 + $0x180] sm:$0xff] }
 0x228   : > { %16230 = vmatprep.mubr.msk.bf16.mxu0 %vm20634_vm3, %v20810_v5  ;;  %24074 = vst [vmem:[#allocation102_spill] sm:$0xff] %v20832_v50  ;;  %v23749_v48 = vrot.slane %v20832_v50, 1  ;;  %v24077_v5 = vrot.slane %v20817_v22, 1  ;;  %v1219_v22 = vsel %vm304_vm2, %v23750_v1, 0.0  ;;  %v20903_v50 = vld [vmem:[%s19951_s28 + $0x1a0] sm:$0xff] }
 0x229   : > { %24086 = vst [vmem:[#allocation112_spill] sm:$0xff] %v20903_v50  ;;  %v23772_v28 = vrot.slane %v20903_v50, 1 }
 0x22a   : > { %v20843_v38 = vpack.c.bf16 %v24077_v5, %v24076_v14  ;;  %v1218_v36 = vsel %vm304_vm2, %v23749_v48, 0.0  ;;  %v20863_v14 = vld [vmem:[%s19951_s28 + $0x150] sm:$0xff] }
 0x22b   : > { %v23756_v5 = vrot.slane %v20863_v14, 1  ;;  %v15936_v48 = vpack.c.bf16 %v1219_v22, %v1218_v36  ;;  %v20888_v36 = vld [vmem:[%s19951_s28 + $0x1a8] sm:$0xff] }
 0x22c   : > { %24078 = vst [vmem:[#allocation104_spill] sm:$0xff] %v20843_v38  ;;  %24083 = vst [vmem:[#allocation109_spill] sm:$0xff] %v20888_v36  ;;  %v23762_v22 = vrot.slane %v20888_v36, 1  ;;  %v20933_v36 = vld [vmem:[%s19951_s28 + $0x1b0] sm:$0xff] }
 0x22d   : > { %v20877_v1 = vpack.c.bf16 %v23755_v51, %v23756_v5  ;;  %v14744_v51 = vcombine.low %v24019_v31, %v15936_v48 }
 0x22f   : > { %16233 = vmatmul.mubr.msk.bf16.gmra.mrb[40].mxu0 %vm20634_vm3, %v20843_v38  ;;  %24081 = vst [vmem:[#allocation107_spill] sm:$0xff] %v20877_v1  ;;  %v14745_v38 = vcombine.high %v24019_v31, %v15936_v48  ;;  %v20910_v48 = vld [vmem:[%s19951_s28 + $0x1b8] sm:$0xff] }
 0x230   : > { %16236 = vmatprep.mubr.msk.bf16.mxu0 %vm20634_vm3, %v20849_v45  ;;  %v23763_v45 = vrot.slane %v20884_v46, 1  ;;  %24087 = vst [vmem:[#allocation113_spill] sm:$0xff] %v20910_v48  ;;  %v20937_v46 = vld [vmem:[%s19951_s28 + $0x1c0] sm:$0xff] }
 0x231   : > { %24091 = vst [vmem:[#allocation117_spill] sm:$0xff] %v20937_v46 }
 0x232   : > { %v20896_v5 = vpack.c.bf16 %v23762_v22, %v23763_v45  ;;  %v23775_v22 = vrot.slane %v20910_v48, 1  ;;  %v20914_v45 = vld [vmem:[%s19951_s28 + $0x1c8] sm:$0xff] }
 0x233   : > { %24088 = vst [vmem:[#allocation114_spill] sm:$0xff] %v20914_v45 }
 0x234   : > { %24084 = vst [vmem:[#allocation110_spill] sm:$0xff] %v20896_v5 }
 0x237   : > { %16239 = vmatmul.mubr.msk.bf16.gmra.mrb[44].mxu0 %vm20634_vm3, %v20877_v1 }
 0x238   : > { %3215 = vmatprep.mubr.bf16.mxu0 %v14745_v38  ;;  %v20899_v38 = vld [vmem:[%s19951_s28 + $0x190] sm:$0xff] }
 0x239   : > { %24085 = vst [vmem:[#allocation111_spill] sm:$0xff] %v20899_v38  ;;  %v23773_v1 = vrot.slane %v20899_v38, 1  ;;  %v23791_v38 = vrot.slane %v20933_v36, 1 }
 0x23b   : > { %v20921_v31 = vpack.c.bf16 %v23772_v28, %v23773_v1  ;;  %v23789_v28 = vrot.slane %v20937_v46, 1  ;;  %v20944_v1 = vld [vmem:[%s19951_s28 + $0x1d8] sm:$0xff]  ;;  %v23796_v46 = vrot.slane %v20971_v57, 1  ;;  %v24102_v57 = vrot.slane %v20218_v2, 7 }
 0x23c   : > { %24092 = vst [vmem:[#allocation118_spill] sm:$0xff] %v20944_v1 }
 0x23d   : > { %24089 = vst [vmem:[#allocation115_spill] sm:$0xff] %v20921_v31 }
 0x23f   : > { %3216 = vmatmul.mubr.bf16.gmra.mrb[48].mxu0 %v14744_v51  ;;  %v23774_v51 = vrot.slane %v20914_v45, 1  ;;  %v20955_v45 = vpack.c.bf16 %v23789_v28, %v23791_v38  ;;  %v24099_v28 = vrot.slane %v20154_v52, 7 }
 0x240   : > { %16242 = vmatprep.mubr.msk.bf16.mxu0 %vm20634_vm3, %v20896_v5 }
 0x241   : > { %v20927_v5 = vpack.c.bf16 %v23774_v51, %v23775_v22  ;;  %v23790_v51 = vrot.slane %v20944_v1, 1  ;;  %v20948_v22 = vld [vmem:[%s19951_s28 + $0x1e8] sm:$0xff]  ;;  %24094 = vst [vmem:[#allocation120_spill] sm:$0xff] %v20955_v45 }
 0x242   : > { %24093 = vst [vmem:[#allocation119_spill] sm:$0xff] %v20948_v22 }
 0x243   : > { %24090 = vst [vmem:[#allocation116_spill] sm:$0xff] %v20927_v5 }
 0x247   : > { %16245 = vmatmul.mubr.msk.bf16.gmra.mrb[52].mxu0 %vm20634_vm3, %v20921_v31  ;;  %v23788_v31 = vrot.slane %v20948_v22, 1  ;;  %v24103_v22 = vld [vmem:[#allocation22_spill] sm:$0xff] }
 0x248   : > { %16248 = vmatprep.mubr.msk.bf16.mxu0 %vm20634_vm3, %v20927_v5  ;;  %v20967_v5 = vld [vmem:[%s19951_s28 + $0x1d0] sm:$0xff] }
 0x249   : > { %v20961_v50 = vpack.c.bf16 %v23788_v31, %v23790_v51  ;;  %24096 = vst [vmem:[#allocation122_spill] sm:$0xff] %v20967_v5  ;;  %v23797_v48 = vrot.slane %v20967_v5, 1  ;;  %v24100_v51 = vrot.slane %v20196_v6, 7 }
 0x24b   : > { %24095 = vst [vmem:[#allocation121_spill] sm:$0xff] %v20961_v50  ;;  %v20981_v31 = vpack.c.bf16 %v23796_v46, %v23797_v48  ;;  %v16291_v38 = vpack.c.bf16 %v24100_v51, %v24099_v28  ;;  %v18653_v48 = vld [vmem:[#allocation8 + $0x414] ss:$8 sps:$4 sm:$0xff]   ;;  %v18651_v28 = vld [vmem:[#allocation8 + $0x410] ss:$8 sps:$4 sm:$0xff]  }
 0x24c   : > { %v18656_v51 = vld [vmem:[#allocation8 + $0x424] ss:$8 sps:$4 sm:$0xff]  }
 0x24d   : > { %24098 = vst [vmem:[#allocation124_spill] sm:$0xff] %v20981_v31 }
 0x24f   : > { %16251 = vmatmul.mubr.msk.bf16.gmra.mrb[56].mxu0 %vm20634_vm3, %v20955_v45  ;;  %v24101_v45 = vrot.slane %v20200_v8, 7 }
 0x250   : > { %16254 = vmatprep.mubr.msk.bf16.mxu0 %vm20634_vm3, %v20961_v50  ;;  %v18648_v50 = vld [vmem:[#allocation8 + $0x400] ss:$8 sps:$4 sm:$0xff]  }
 0x251   : > { %v16297_v46 = vpack.c.bf16 %v24102_v57, %v24101_v45  ;;  %v24106_v45 = vrot.slane %v20222_v9, 7  ;;  %v24107_v57 = vrot.slane %v20266_v40, 7 }
 0x253   : > { %v16303_v2 = vpack.c.bf16 %v24107_v57, %v24106_v45  ;;  %v24109_v45 = vrot.slane %v20305_v19, 7  ;;  %v24110_v57 = vrot.slane %v20270_v34, 7  ;;  %v18671_v19 = vld [vmem:[#allocation8 + $0x474] ss:$8 sps:$4 sm:$0xff]  }
 0x257   : > { %16257 = vmatmul.mubr.msk.bf16.gmra.mrb[60].mxu0 %vm20634_vm3, %v20981_v31  ;;  %v24105_v31 = vrot.slane %v20249_v61, 7 }
 0x258   : > { %16292 = vmatprep.mubr.msk.bf16.mxu0 %vm20191_vm1, %v16291_v38  ;;  %v24104_v38 = vrot.slane %v20211_v39, 7 }
 0x25a   : > { %v16300_v8 = vpack.c.bf16 %v24105_v31, %v24104_v38  ;;  %v24108_v38 = vrot.slane %v20253_v7, 7 }
 0x25f   : > { %16295 = vmatmul.mubr.msk.bf16.vlgmr.msra.gmra.mrb[0].mxu0 %vm20191_vm1, %v24103_v22  ;;  %v18654_v22 = vld [vmem:[#allocation8 + $0x420] ss:$8 sps:$4 sm:$0xff]  }
 0x260   : > { %4348 = vmatpush1.bf16.msra.mxu0 %v18648_v50  ;;  %16298 = vmatprep.mubr.msk.bf16.mxu0 %vm20191_vm1, %v16297_v46  ;;  %v21010_v50 = vld [vmem:[%s19951_s28 + $0x78] sm:$0xff] }
 0x261   : > { %4349 = vmatprep.subr.bf16.mxu0 %v18653_v48  ;;  %v18659_v46 = vld [vmem:[#allocation8 + $0x434] ss:$8 sps:$4 sm:$0xff]   ;;  %v23804_v31 = vrot.slane %v21010_v50, 7  ;;  %v18657_v48 = vld [vmem:[#allocation8 + $0x430] ss:$8 sps:$4 sm:$0xff]  }
 0x263   : > { %v16309_v40 = vpack.c.bf16 %v23804_v31, %v24110_v57  ;;  %v24111_v57 = vrot.slane %v20309_v54, 7  ;;  %v24113_v31 = vrot.slane %v20326_v10, 7 }
 0x264   : > { %4350 = vmatpush1.bf16.msra.mxu0 %v18651_v28  ;;  %v18662_v28 = vld [vmem:[#allocation8 + $0x444] ss:$8 sps:$4 sm:$0xff]  }
 0x265   : > { %4351 = vmatprep.subr.bf16.mxu0 %v18656_v51  ;;  %v16306_v51 = vpack.c.bf16 %v24109_v45, %v24108_v38  ;;  %v18663_v38 = vld [vmem:[#allocation8 + $0x450] ss:$8 sps:$4 sm:$0xff]   ;;  %v18668_v45 = vld [vmem:[#allocation8 + $0x464] ss:$8 sps:$4 sm:$0xff]  }
 0x267   : > { %16301 = vmatmul.mubr.msk.bf16.gmra.mrb[4].mxu0 %vm20191_vm1, %v16300_v8  ;;  %v21026_v8 = vld [vmem:[%s19951_s28 + $0x70] sm:$0xff] }
 0x268   : > { %16304 = vmatprep.mubr.msk.bf16.mxu0 %vm20191_vm1, %v16303_v2  ;;  %4352 = vmatpush1.bf16.msra.mxu0 %v18654_v22  ;;  %v18660_v2 = vld [vmem:[#allocation8 + $0x440] ss:$8 sps:$4 sm:$0xff]   ;;  %v18665_v22 = vld [vmem:[#allocation8 + $0x454] ss:$8 sps:$4 sm:$0xff]  }
 0x269   : > { %4353 = vmatprep.subr.bf16.mxu0 %v18659_v46  ;;  %v23807_v46 = vrot.slane %v21026_v8, 7 }
 0x26c   : > { %4354 = vmatpush1.bf16.msra.mxu0 %v18657_v48  ;;  %v16312_v48 = vpack.c.bf16 %v23807_v46, %v24111_v57  ;;  %v24115_v57 = vrot.slane %v20341_v4, 7 }
 0x26d   : > { %4355 = vmatprep.subr.bf16.mxu0 %v18662_v28  ;;  %v24112_v28 = vrot.slane %v20278_v55, 7 }
 0x26f   : > { %16307 = vmatmul.mubr.msk.bf16.gmra.mrb[8].mxu0 %vm20191_vm1, %v16306_v51  ;;  %v16315_v34 = vpack.c.bf16 %v24113_v31, %v24112_v28  ;;  %v18666_v51 = vld [vmem:[#allocation8 + $0x460] ss:$8 sps:$4 sm:$0xff]   ;;  %v24116_v31 = vrot.slane %v20330_v56, 7  ;;  %v18677_v28 = vld [vmem:[#allocation8 + $0x494] ss:$8 sps:$4 sm:$0xff]  }
 0x270   : > { %16310 = vmatprep.mubr.msk.bf16.mxu0 %vm20191_vm1, %v16309_v40  ;;  %4356 = vmatpush1.bf16.msra.mxu0 %v18660_v2  ;;  %v18669_v40 = vld [vmem:[#allocation8 + $0x470] ss:$8 sps:$4 sm:$0xff]   ;;  %v18674_v2 = vld [vmem:[#allocation8 + $0x484] ss:$8 sps:$4 sm:$0xff]  }
 0x271   : > { %4357 = vmatprep.subr.bf16.mxu0 %v18665_v22  ;;  %v24114_v22 = vrot.slane %v20274_v27, 7 }
 0x273   : > { %v16318_v46 = vpack.c.bf16 %v24115_v57, %v24114_v22  ;;  %v24119_v22 = vrot.slane %v20375_v60, 7 }
 0x274   : > { %4358 = vmatpush1.bf16.msra.mxu0 %v18663_v38  ;;  %v24117_v38 = vrot.slane %v20352_v26, 7 }
 0x275   : > { %4359 = vmatprep.subr.bf16.mxu0 %v18668_v45 }
 0x276   : > { %v16321_v45 = vpack.c.bf16 %v24117_v38, %v24116_v31  ;;  %v21066_v38 = vld [vmem:[%s19951_s28 + $0xf8] sm:$0xff] }
 0x277   : > { %16313 = vmatmul.mubr.msk.bf16.gmra.mrb[12].mxu0 %vm20191_vm1, %v16312_v48  ;;  %v18672_v48 = vld [vmem:[#allocation8 + $0x480] ss:$8 sps:$4 sm:$0xff]  }
 0x278   : > { %16316 = vmatprep.mubr.msk.bf16.mxu0 %vm20191_vm1, %v16315_v34  ;;  %4360 = vmatpush1.bf16.msra.mxu0 %v18666_v51  ;;  %v18675_v34 = vld [vmem:[#allocation8 + $0x490] ss:$8 sps:$4 sm:$0xff]   ;;  %v24118_v51 = vrot.slane %v20345_v0, 7 }
 0x279   : > { %4361 = vmatprep.subr.bf16.mxu0 %v18671_v19  ;;  %v18680_v19 = vld [vmem:[#allocation8 + $0x4a4] ss:$8 sps:$4 sm:$0xff]  }
 0x27a   : > { %v16324_v57 = vpack.c.bf16 %v24119_v22, %v24118_v51  ;;  %v18686_v51 = vld [vmem:[#allocation8 + $0x4c4] ss:$8 sps:$4 sm:$0xff]   ;;  %v24122_v22 = vrot.slane %v20379_v33, 7 }
 0x27c   : > { %4362 = vmatpush1.bf16.msra.mxu0 %v18669_v40  ;;  %v24120_v40 = vrot.slane %v20356_v47, 7 }
 0x27d   : > { %4363 = vmatprep.subr.bf16.mxu0 %v18674_v2  ;;  %v24121_v2 = vrot.slane %v20386_v53, 7  ;;  %v18689_v53 = vld [vmem:[#allocation8 + $0x4d4] ss:$8 sps:$4 sm:$0xff]  }
 0x27f   : > { %16319 = vmatmul.mubr.msk.bf16.gmra.mrb[16].mxu0 %vm20191_vm1, %v16318_v46  ;;  %v16327_v31 = vpack.c.bf16 %v24121_v2, %v24120_v40  ;;  %v18678_v46 = vld [vmem:[#allocation8 + $0x4a0] ss:$8 sps:$4 sm:$0xff]  }
 0x280   : > { %16322 = vmatprep.mubr.msk.bf16.mxu0 %vm20191_vm1, %v16321_v45  ;;  %4364 = vmatpush1.bf16.msra.mxu0 %v18672_v48  ;;  %v18683_v45 = vld [vmem:[#allocation8 + $0x4b4] ss:$8 sps:$4 sm:$0xff]   ;;  %v23809_v48 = vrot.slane %v21066_v38, 7 }
 0x281   : > { %4365 = vmatprep.subr.bf16.mxu0 %v18677_v28  ;;  %v18681_v28 = vld [vmem:[#allocation8 + $0x4b0] ss:$8 sps:$4 sm:$0xff]  }
 0x284   : > { %4366 = vmatpush1.bf16.msra.mxu0 %v18675_v34  ;;  %v24123_v34 = vrot.slane %v20425_v13, 7 }
 0x285   : > { %4367 = vmatprep.subr.bf16.mxu0 %v18680_v19  ;;  %v24124_v19 = vrot.slane %v20390_v18, 7  ;;  %v18695_v18 = vld [vmem:[#allocation8 + $0x4f4] ss:$8 sps:$4 sm:$0xff]  }
 0x286   : > { %v16330_v40 = vpack.c.bf16 %v24123_v34, %v24122_v22  ;;  %v18692_v22 = vld [vmem:[#allocation8 + $0x4e4] ss:$8 sps:$4 sm:$0xff]   ;;  %v24125_v34 = vrot.slane %v20429_v41, 7 }
 0x287   : > { %16325 = vmatmul.mubr.msk.bf16.gmra.mrb[20].mxu0 %vm20191_vm1, %v16324_v57  ;;  %v16333_v2 = vpack.c.bf16 %v23809_v48, %v24124_v19  ;;  %v21082_v57 = vld [vmem:[%s19951_s28 + $0xf0] sm:$0xff]  ;;  %v24127_v19 = vrot.slane %v20446_v11, 7 }
 0x288   : > { %16328 = vmatprep.mubr.msk.bf16.mxu0 %vm20191_vm1, %v16327_v31  ;;  %4368 = vmatpush1.bf16.msra.mxu0 %v18678_v46  ;;  %v18684_v31 = vld [vmem:[#allocation8 + $0x4c0] ss:$8 sps:$4 sm:$0xff]   ;;  %v23811_v46 = vrot.slane %v21082_v57, 7 }
 0x289   : > { %4369 = vmatprep.subr.bf16.mxu0 %v18683_v45  ;;  %v18687_v45 = vld [vmem:[#allocation8 + $0x4d0] ss:$8 sps:$4 sm:$0xff]  }
 0x28c   : > { %4370 = vmatpush1.bf16.msra.mxu0 %v18681_v28  ;;  %v16336_v28 = vpack.c.bf16 %v23811_v46, %v24125_v34  ;;  %v24129_v34 = vrot.slane %v24068_v32, 7  ;;  %v21122_v46 = vld [vmem:[%s19951_s28 + $0x178] sm:$0xff] }
 0x28d   : > { %4371 = vmatprep.subr.bf16.mxu0 %v18686_v51  ;;  %v24126_v51 = vrot.slane %v24063_v59, 7 }
 0x28f   : > { %16331 = vmatmul.mubr.msk.bf16.gmra.mrb[24].mxu0 %vm20191_vm1, %v16330_v40  ;;  %v16339_v48 = vpack.c.bf16 %v24127_v19, %v24126_v51  ;;  %v18690_v40 = vld [vmem:[#allocation8 + $0x4e0] ss:$8 sps:$4 sm:$0xff]   ;;  %v24131_v51 = vrot.slane %v20472_v12, 7 }
 0x290   : > { %16334 = vmatprep.mubr.msk.bf16.mxu0 %vm20191_vm1, %v16333_v2  ;;  %4372 = vmatpush1.bf16.msra.mxu0 %v18684_v31  ;;  %v18698_v2 = vld [vmem:[#allocation8 + $0x504] ss:$8 sps:$4 sm:$0xff]   ;;  %v24128_v31 = vrot.slane %v24062_v43, 7 }
 0x291   : > { %4373 = vmatprep.subr.bf16.mxu0 %v18689_v53  ;;  %v18693_v53 = vld [vmem:[#allocation8 + $0x4f0] ss:$8 sps:$4 sm:$0xff]  }
 0x294   : > { %4374 = vmatpush1.bf16.msra.mxu0 %v18687_v45  ;;  %v16342_v45 = vpack.c.bf16 %v24129_v34, %v24128_v31  ;;  %v24135_v31 = vrot.slane %v20070_v16, 7 }
 0x295   : > { %4375 = vmatprep.subr.bf16.mxu0 %v18692_v22  ;;  %v24130_v22 = vrot.slane %v20450_v58, 7 }
 0x297   : > { %16337 = vmatmul.mubr.msk.bf16.gmra.mrb[28].mxu0 %vm20191_vm1, %v16336_v28  ;;  %v16345_v19 = vpack.c.bf16 %v24131_v51, %v24130_v22  ;;  %v24138_v51 = vrot.slane %v20073_v17, 7  ;;  %v24140_v17 = vrot.slane %v20083_v21, 7 }
 0x298   : > { %16340 = vmatprep.mubr.msk.bf16.mxu0 %vm20191_vm1, %v16339_v48  ;;  %4376 = vmatpush1.bf16.msra.mxu0 %v18690_v40  ;;  %v24133_v48 = vrot.slane %v24072_v44, 7  ;;  %v24134_v40 = vrot.slane %v24069_v63, 7 }
 0x299   : > { %4377 = vmatprep.subr.bf16.mxu0 %v18695_v18  ;;  %v24132_v18 = vrot.slane %v20465_v42, 7 }
 0x29a   : > { %v16351_v34 = vpack.c.bf16 %v24135_v31, %v24134_v40  ;;  %v24142_v40 = vrot.slane %v20080_v20, 7  ;;  %v24143_v31 = vrot.slane %v20117_v35, 7  ;;  %v24150_v35 = vld [vmem:[#allocation40_spill] sm:$0xff] }
 0x29b   : > { %v16348_v28 = vpack.c.bf16 %v24133_v48, %v24132_v18  ;;  %v24141_v48 = vrot.slane %v20106_v29, 7  ;;  %v24146_v29 = vld [vmem:[#allocation39_spill] sm:$0xff] }
 0x29c   : > { %4378 = vmatpush1.bf16.msra.mxu0 %v18693_v53  ;;  %v23814_v53 = vrot.slane %v21122_v46, 7 }
 0x29d   : > { %4989 = vmatprep.subr.bf16.mxu0 %v18698_v2  ;;  %v24136_v2 = vrot.slane %v20067_v15, 7  ;;  %v24139_v15 = vrot.slane %v20094_v25, 7  ;;  %v16366_v25 = vpack.c.bf16 %v24143_v31, %v24142_v40  ;;  %v24156_v40 = vld [vmem:[#allocation50_spill] sm:$0xff] }
 0x29e   : > { %v16357_v16 = vpack.c.bf16 %v23814_v53, %v24138_v51  ;;  %v24157_v31 = vrot.slane %v24156_v40, 7  ;;  %v19380_v40 = vld [vmem:[%s19951_s28 + $0x28] sm:$0xff] }
 0x29f   : > { %16343 = vmatmul.mubr.msk.bf16.gmra.mrb[32].mxu0 %vm20191_vm1, %v16342_v45  ;;  %v24137_v45 = vrot.slane %v20091_v24, 7  ;;  %v24174_v53 = vld [vmem:[#allocation123_spill] sm:$0xff] }
 0x2a0   : > { %16346 = vmatprep.mubr.msk.bf16.mxu0 %vm20191_vm1, %v16345_v19  ;;  %v21138_v19 = vld [vmem:[%s19951_s28 + $0x170] sm:$0xff] }
 0x2a1   : > { %v16354_v22 = vpack.c.bf16 %v24137_v45, %v24136_v2  ;;  %v23815_v18 = vrot.slane %v21138_v19, 7  ;;  %v24145_v2 = vrot.slane %v20123_v37, 7  ;;  %v24147_v45 = vrot.slane %v24146_v29, 7  ;;  %v21178_v37 = vld [vmem:[%s19951_s28 + $0x1f8] sm:$0xff]  ;;  %v21194_v29 = vld [vmem:[%s19951_s28 + $0x1f0] sm:$0xff] }
 0x2a3   : > { %v16360_v24 = vpack.c.bf16 %v23815_v18, %v24139_v15  ;;  %v24152_v15 = vld [vmem:[#allocation46_spill] sm:$0xff]  ;;  %v24176_v18 = vrot.slane %v20196_v6, 1  ;;  %v18752_v6 = vld [vmem:[#allocation8 + $0x624] ss:$8 sps:$4 sm:$0xff]  }
 0x2a7   : > { %16349 = vmatmul.mubr.msk.bf16.gmra.mrb[36].mxu0 %vm20191_vm1, %v16348_v28  ;;  %v16363_v28 = vpack.c.bf16 %v24141_v48, %v24140_v17  ;;  %v23812_v17 = vrot.slane %v21178_v37, 7  ;;  %v24154_v48 = vld [vmem:[#allocation45_spill] sm:$0xff] }
 0x2a8   : > { %16352 = vmatprep.mubr.msk.bf16.mxu0 %vm20191_vm1, %v16351_v34  ;;  %v24144_v34 = vrot.slane %v20109_v30, 7  ;;  %v24153_v30 = vrot.slane %v24152_v15, 7 }
 0x2aa   : > { %v16369_v21 = vpack.c.bf16 %v24145_v2, %v24144_v34  ;;  %v24158_v34 = vld [vmem:[#allocation47_spill] sm:$0xff] }
 0x2ab   : > { %v24159_v2 = vrot.slane %v24158_v34, 7  ;;  %v18701_v34 = vld [vmem:[#allocation8 + $0x514] ss:$8 sps:$4 sm:$0xff]  }
 0x2af   : > { %16355 = vmatmul.mubr.msk.bf16.gmra.mrb[40].mxu0 %vm20191_vm1, %v16354_v22  ;;  %v24148_v22 = vld [vmem:[#allocation43_spill] sm:$0xff] }
 0x2b0   : > { %16358 = vmatprep.mubr.msk.bf16.mxu0 %vm20191_vm1, %v16357_v16  ;;  %v24149_v20 = vrot.slane %v24148_v22, 7  ;;  %v24151_v16 = vrot.slane %v24150_v35, 7  ;;  %v24160_v22 = vld [vmem:[#allocation51_spill] sm:$0xff] }
 0x2b1   : > { %v19376_v35 = vld [vmem:[%s19951_s28 + $0x8] sm:$0xff] }
 0x2b2   : > { %v16372_v51 = vpack.c.bf16 %v24149_v20, %v24147_v45  ;;  %v23813_v45 = vrot.slane %v21194_v29, 7  ;;  %v24161_v20 = vrot.slane %v24160_v22, 7  ;;  %v19382_v22 = vld [vmem:[%s19951_s28 + $0x20] sm:$0xff] }
 0x2b7   : > { %16361 = vmatmul.mubr.msk.bf16.gmra.mrb[44].mxu0 %vm20191_vm1, %v16360_v24  ;;  %v16375_v24 = vpack.c.bf16 %v24153_v30, %v24151_v16  ;;  %v19377_v16 = vld [vmem:[%s19951_s28 + $0x18] sm:$0xff]  ;;  %v19378_v30 = vld [vmem:[%s19951_s28] sm:$0xff] }
 0x2b8   : > { %16364 = vmatprep.mubr.msk.bf16.mxu0 %vm20191_vm1, %v16363_v28  ;;  %v24155_v28 = vrot.slane %v24154_v48, 7  ;;  %v16387_v15 = vpack.c.bf16 %v19377_v16, %v19376_v35  ;;  %v19384_v35 = vld [vmem:[%s19951_s28 + $0x48] sm:$0xff]  ;;  %v19385_v16 = vld [vmem:[%s19951_s28 + $0x58] sm:$0xff] }
 0x2bf   : > { %16367 = vmatmul.mubr.msk.bf16.gmra.mrb[48].mxu0 %vm20191_vm1, %v16366_v25  ;;  %v16378_v25 = vpack.c.bf16 %v24157_v31, %v24155_v28  ;;  %v18696_v28 = vld [vmem:[#allocation8 + $0x500] ss:$8 sps:$4 sm:$0xff]   ;;  %v19381_v31 = vld [vmem:[%s19951_s28 + $0x38] sm:$0xff] }
 0x2c0   : > { %16370 = vmatprep.mubr.msk.bf16.mxu0 %vm20191_vm1, %v16369_v21  ;;  %v16381_v21 = vpack.c.bf16 %v23812_v17, %v24159_v2  ;;  %v18699_v2 = vld [vmem:[#allocation8 + $0x510] ss:$8 sps:$4 sm:$0xff]  }
 0x2c1   : > { %v24172_v17 = vld [vmem:[#allocation117_spill] sm:$0xff] }
 0x2c7   : > { %16373 = vmatmul.mubr.msk.bf16.gmra.mrb[52].mxu0 %vm20191_vm1, %v16372_v51  ;;  %v16384_v51 = vpack.c.bf16 %v23813_v45, %v24161_v20  ;;  %v19383_v20 = vld [vmem:[%s19951_s28 + $0x30] sm:$0xff] }
 0x2c8   : > { %16376 = vmatprep.mubr.msk.bf16.mxu0 %vm20191_vm1, %v16375_v24  ;;  %v19379_v24 = vld [vmem:[%s19951_s28 + $0x10] sm:$0xff] }
 0x2c9   : > { %v16386_v48 = vpack.c.bf16 %v19379_v24, %v19378_v30  ;;  %v18702_v30 = vld [vmem:[#allocation8 + $0x520] ss:$8 sps:$4 sm:$0xff]   ;;  %v18707_v24 = vld [vmem:[#allocation8 + $0x534] ss:$8 sps:$4 sm:$0xff]  }
 0x2cf   : > { %16379 = vmatmul.mubr.msk.bf16.gmra.mrb[56].mxu0 %vm20191_vm1, %v16378_v25  ;;  %v16389_v25 = vpack.c.bf16 %v19381_v31, %v19380_v40  ;;  %v19386_v40 = vld [vmem:[%s19951_s28 + $0x40] sm:$0xff]  ;;  %v19387_v31 = vld [vmem:[%s19951_s28 + $0x50] sm:$0xff] }
 0x2d0   : > { %16382 = vmatprep.mubr.msk.bf16.mxu0 %vm20191_vm1, %v16381_v21  ;;  %v18704_v21 = vld [vmem:[#allocation8 + $0x524] ss:$8 sps:$4 sm:$0xff]  }
 0x2d7   : > { %16385 = vmatmul.mubr.msk.bf16.gmra.mrb[60].mxu0 %vm20191_vm1, %v16384_v51  ;;  %v16388_v51 = vpack.c.bf16 %v19383_v20, %v19382_v22  ;;  %v18708_v22 = vld [vmem:[#allocation8 + $0x540] ss:$8 sps:$4 sm:$0xff]   ;;  %v18711_v20 = vld [vmem:[#allocation8 + $0x550] ss:$8 sps:$4 sm:$0xff]  }
 0x2d8   : > { %4379 = vmatprep.mubr.bf16.mxu0 %v16387_v15  ;;  %v16391_v15 = vpack.c.bf16 %v19385_v16, %v19384_v35  ;;  %v19389_v35 = vld [vmem:[%s19951_s28 + $0x60] sm:$0xff] }
 0x2d9   : > { %v16392_v16 = vpack.c.bf16 %v21026_v8, %v19389_v35 }
 0x2df   : > { %4380 = vmatmul.mubr.bf16.vlgmr.msra.gmra.mrb[0].mxu0 %v16386_v48  ;;  %v18705_v48 = vld [vmem:[#allocation8 + $0x530] ss:$8 sps:$4 sm:$0xff]  }
 0x2e0   : > { %4990 = vmatpush1.bf16.msra.mxu0 %v18696_v28  ;;  %4389 = vmatprep.mubr.bf16.mxu0 %v16389_v25  ;;  %v18710_v28 = vld [vmem:[#allocation8 + $0x544] ss:$8 sps:$4 sm:$0xff]   ;;  %v16390_v25 = vpack.c.bf16 %v19387_v31, %v19386_v40  ;;  %v18717_v40 = vld [vmem:[#allocation8 + $0x570] ss:$8 sps:$4 sm:$0xff]  }
 0x2e1   : > { %4991 = vmatprep.subr.bf16.mxu0 %v18701_v34  ;;  %v19388_v34 = vld [vmem:[%s19951_s28 + $0x68] sm:$0xff] }
 0x2e2   : > { %v18722_v31 = vld [vmem:[#allocation8 + $0x584] ss:$8 sps:$4 sm:$0xff]  }
 0x2e4   : > { %4992 = vmatpush1.bf16.msra.mxu0 %v18699_v2  ;;  %v16393_v2 = vpack.c.bf16 %v21010_v50, %v19388_v34  ;;  %v19393_v34 = vld [vmem:[%s19951_s28 + $0x90] sm:$0xff] }
 0x2e5   : > { %4993 = vmatprep.subr.bf16.mxu0 %v18704_v21  ;;  %v18713_v21 = vld [vmem:[#allocation8 + $0x554] ss:$8 sps:$4 sm:$0xff]  }
 0x2e7   : > { %4390 = vmatmul.mubr.bf16.gmra.mrb[4].mxu0 %v16388_v51  ;;  %v18716_v51 = vld [vmem:[#allocation8 + $0x564] ss:$8 sps:$4 sm:$0xff]  }
 0x2e8   : > { %4399 = vmatprep.mubr.bf16.mxu0 %v16391_v15  ;;  %4994 = vmatpush1.bf16.msra.mxu0 %v18702_v30  ;;  %v19390_v15 = vld [vmem:[%s19951_s28 + $0x88] sm:$0xff]  ;;  %v19391_v30 = vld [vmem:[%s19951_s28 + $0x98] sm:$0xff] }
 0x2e9   : > { %4995 = vmatprep.subr.bf16.mxu0 %v18707_v24  ;;  %v16395_v24 = vpack.c.bf16 %v19391_v30, %v19390_v15  ;;  %v18728_v15 = vld [vmem:[#allocation8 + $0x5a4] ss:$8 sps:$4 sm:$0xff]  }
 0x2ea   : > { %v19396_v30 = vld [vmem:[%s19951_s28 + $0xa0] sm:$0xff] }
 0x2ec   : > { %4996 = vmatpush1.bf16.msra.mxu0 %v18705_v48  ;;  %v18714_v48 = vld [vmem:[#allocation8 + $0x560] ss:$8 sps:$4 sm:$0xff]  }
 0x2ed   : > { %4997 = vmatprep.subr.bf16.mxu0 %v18710_v28  ;;  %v18719_v28 = vld [vmem:[#allocation8 + $0x574] ss:$8 sps:$4 sm:$0xff]  }
 0x2ef   : > { %4400 = vmatmul.mubr.bf16.gmra.mrb[8].mxu0 %v16390_v25  ;;  %v19392_v25 = vld [vmem:[%s19951_s28 + $0x80] sm:$0xff] }
 0x2f0   : > { %4409 = vmatprep.mubr.bf16.mxu0 %v16393_v2  ;;  %4998 = vmatpush1.bf16.msra.mxu0 %v18708_v22  ;;  %v16394_v2 = vpack.c.bf16 %v19393_v34, %v19392_v25  ;;  %v19394_v22 = vld [vmem:[%s19951_s28 + $0xa8] sm:$0xff]  ;;  %v19399_v25 = vld [vmem:[%s19951_s28 + $0xd8] sm:$0xff] }
 0x2f1   : > { %4999 = vmatprep.subr.bf16.mxu0 %v18713_v21  ;;  %v19395_v21 = vld [vmem:[%s19951_s28 + $0xb8] sm:$0xff] }
 0x2f2   : > { %v16397_v35 = vpack.c.bf16 %v19395_v21, %v19394_v22  ;;  %v18734_v22 = vld [vmem:[#allocation8 + $0x5c4] ss:$8 sps:$4 sm:$0xff]  }
 0x2f3   : > { %v19400_v21 = vld [vmem:[%s19951_s28 + $0xc0] sm:$0xff] }
 0x2f4   : > { %5000 = vmatpush1.bf16.msra.mxu0 %v18711_v20  ;;  %v18720_v20 = vld [vmem:[#allocation8 + $0x580] ss:$8 sps:$4 sm:$0xff]  }
 0x2f5   : > { %5001 = vmatprep.subr.bf16.mxu0 %v18716_v51  ;;  %v18725_v51 = vld [vmem:[#allocation8 + $0x594] ss:$8 sps:$4 sm:$0xff]  }
 0x2f7   : > { %4410 = vmatmul.mubr.bf16.gmra.mrb[12].mxu0 %v16392_v16  ;;  %v18723_v16 = vld [vmem:[#allocation8 + $0x590] ss:$8 sps:$4 sm:$0xff]  }
 0x2f8   : > { %4419 = vmatprep.mubr.bf16.mxu0 %v16395_v24  ;;  %5002 = vmatpush1.bf16.msra.mxu0 %v18714_v48  ;;  %v19397_v24 = vld [vmem:[%s19951_s28 + $0xb0] sm:$0xff] }
 0x2f9   : > { %5003 = vmatprep.subr.bf16.mxu0 %v18719_v28  ;;  %v16396_v48 = vpack.c.bf16 %v19397_v24, %v19396_v30  ;;  %v19398_v28 = vld [vmem:[%s19951_s28 + $0xc8] sm:$0xff] }
 0x2fa   : > { %v16399_v34 = vpack.c.bf16 %v19399_v25, %v19398_v28  ;;  %v18732_v24 = vld [vmem:[#allocation8 + $0x5c0] ss:$8 sps:$4 sm:$0xff]  }
 0x2fb   : > { %v19403_v28 = vld [vmem:[%s19951_s28 + $0xe0] sm:$0xff] }
 0x2fc   : > { %5004 = vmatpush1.bf16.msra.mxu0 %v18717_v40  ;;  %v18726_v40 = vld [vmem:[#allocation8 + $0x5a0] ss:$8 sps:$4 sm:$0xff]   ;;  %v16400_v25 = vpack.c.bf16 %v21082_v57, %v19403_v28  ;;  %v16409_v28 = vpack.c.bf16 %v21122_v46, %v20828_v62 }
 0x2fd   : > { %5005 = vmatprep.subr.bf16.mxu0 %v18722_v31  ;;  %v18731_v31 = vld [vmem:[#allocation8 + $0x5b4] ss:$8 sps:$4 sm:$0xff]  }
 0x2ff   : > { %4420 = vmatmul.mubr.bf16.gmra.mrb[16].mxu0 %v16394_v2  ;;  %v18729_v2 = vld [vmem:[#allocation8 + $0x5b0] ss:$8 sps:$4 sm:$0xff]  }
 0x300   : > { %4429 = vmatprep.mubr.bf16.mxu0 %v16397_v35  ;;  %5006 = vmatpush1.bf16.msra.mxu0 %v18720_v20  ;;  %v19401_v35 = vld [vmem:[%s19951_s28 + $0xd0] sm:$0xff] }
 0x301   : > { %5007 = vmatprep.subr.bf16.mxu0 %v18725_v51  ;;  %v16398_v20 = vpack.c.bf16 %v19401_v35, %v19400_v21  ;;  %v19402_v51 = vld [vmem:[%s19951_s28 + $0xe8] sm:$0xff]  ;;  %v19405_v35 = vld [vmem:[%s19951_s28 + $0x100] sm:$0xff] }
 0x302   : > { %v16401_v30 = vpack.c.bf16 %v21066_v38, %v19402_v51  ;;  %v18746_v21 = vld [vmem:[#allocation8 + $0x604] ss:$8 sps:$4 sm:$0xff]  }
 0x303   : > { %v19406_v51 = vld [vmem:[%s19951_s28 + $0x128] sm:$0xff] }
 0x304   : > { %5008 = vmatpush1.bf16.msra.mxu0 %v18723_v16  ;;  %v18737_v16 = vld [vmem:[#allocation8 + $0x5d4] ss:$8 sps:$4 sm:$0xff]  }
 0x305   : > { %5009 = vmatprep.subr.bf16.mxu0 %v18728_v15  ;;  %v18735_v15 = vld [vmem:[#allocation8 + $0x5d0] ss:$8 sps:$4 sm:$0xff]  }
 0x307   : > { %4430 = vmatmul.mubr.bf16.gmra.mrb[20].mxu0 %v16396_v48  ;;  %v18740_v48 = vld [vmem:[#allocation8 + $0x5e4] ss:$8 sps:$4 sm:$0xff]  }
 0x308   : > { %4439 = vmatprep.mubr.bf16.mxu0 %v16399_v34  ;;  %5010 = vmatpush1.bf16.msra.mxu0 %v18726_v40  ;;  %v19404_v34 = vld [vmem:[%s19951_s28 + $0x108] sm:$0xff] }
 0x309   : > { %5011 = vmatprep.subr.bf16.mxu0 %v18731_v31  ;;  %v16403_v40 = vpack.c.bf16 %v20446_v11, %v19404_v34  ;;  %v18738_v31 = vld [vmem:[#allocation8 + $0x5e0] ss:$8 sps:$4 sm:$0xff]  }
 0x30c   : > { %5012 = vmatpush1.bf16.msra.mxu0 %v18729_v2  ;;  %v18743_v2 = vld [vmem:[#allocation8 + $0x5f4] ss:$8 sps:$4 sm:$0xff]  }
 0x30d   : > { %5013 = vmatprep.subr.bf16.mxu0 %v18734_v22  ;;  %v18741_v22 = vld [vmem:[#allocation8 + $0x5f0] ss:$8 sps:$4 sm:$0xff]  }
 0x30f   : > { %4440 = vmatmul.mubr.bf16.gmra.mrb[24].mxu0 %v16398_v20  ;;  %v16402_v20 = vpack.c.bf16 %v24068_v32, %v19405_v35 }
 0x310   : > { %4449 = vmatprep.mubr.bf16.mxu0 %v16401_v30  ;;  %5014 = vmatpush1.bf16.msra.mxu0 %v18732_v24  ;;  %v16405_v30 = vpack.c.bf16 %v20472_v12, %v19406_v51  ;;  %v16404_v24 = vpack.c.bf16 %v24072_v44, %v20465_v42  ;;  %v24169_v51 = vld [vmem:[#allocation113_spill] sm:$0xff] }
 0x311   : > { %5015 = vmatprep.subr.bf16.mxu0 %v18737_v16  ;;  %v16407_v16 = vpack.c.bf16 %v20824_v49, %v24069_v63 }
 0x314   : > { %5016 = vmatpush1.bf16.msra.mxu0 %v18735_v15  ;;  %v24162_v15 = vld [vmem:[#allocation81_spill] sm:$0xff] }
 0x315   : > { %5017 = vmatprep.subr.bf16.mxu0 %v18740_v48  ;;  %v16406_v48 = vpack.c.bf16 %v20863_v14, %v24162_v15 }
 0x317   : > { %4450 = vmatmul.mubr.bf16.gmra.mrb[28].mxu0 %v16400_v25  ;;  %v24163_v25 = vld [vmem:[#allocation106_spill] sm:$0xff] }
 0x318   : > { %4459 = vmatprep.mubr.bf16.mxu0 %v16403_v40  ;;  %5018 = vmatpush1.bf16.msra.mxu0 %v18738_v31  ;;  %v16408_v34 = vpack.c.bf16 %v21138_v19, %v24163_v25  ;;  %v24164_v40 = vld [vmem:[#allocation103_spill] sm:$0xff]  ;;  %v24165_v31 = vld [vmem:[#allocation108_spill] sm:$0xff] }
 0x319   : > { %5019 = vmatprep.subr.bf16.mxu0 %v18743_v2  ;;  %v16411_v2 = vpack.c.bf16 %v24165_v31, %v24164_v40 }
 0x31c   : > { %5020 = vmatpush1.bf16.msra.mxu0 %v18741_v22  ;;  %v24166_v22 = vld [vmem:[#allocation102_spill] sm:$0xff] }
 0x31d   : > { %5632 = vmatprep.subr.bf16.mxu0 %v18746_v21  ;;  %v24167_v21 = vld [vmem:[#allocation111_spill] sm:$0xff] }
 0x31e   : > { %v16410_v35 = vpack.c.bf16 %v24167_v21, %v24166_v22 }
 0x31f   : > { %4460 = vmatmul.mubr.bf16.gmra.mrb[32].mxu0 %v16402_v20  ;;  %v24168_v20 = vld [vmem:[#allocation109_spill] sm:$0xff] }
 0x320   : > { %4469 = vmatprep.mubr.bf16.mxu0 %v16405_v30  ;;  %v16413_v30 = vpack.c.bf16 %v24169_v51, %v24168_v20 }
 0x327   : > { %4470 = vmatmul.mubr.bf16.gmra.mrb[36].mxu0 %v16404_v24  ;;  %v24170_v24 = vld [vmem:[#allocation112_spill] sm:$0xff] }
 0x328   : > { %4479 = vmatprep.mubr.bf16.mxu0 %v16407_v16  ;;  %v16412_v16 = vpack.c.bf16 %v20933_v36, %v24170_v24 }
 0x32f   : > { %4480 = vmatmul.mubr.bf16.gmra.mrb[40].mxu0 %v16406_v48  ;;  %v24171_v48 = vld [vmem:[#allocation114_spill] sm:$0xff] }
 0x330   : > { %4489 = vmatprep.mubr.bf16.mxu0 %v16409_v28  ;;  %v16415_v28 = vpack.c.bf16 %v20944_v1, %v24171_v48 }
 0x337   : > { %4490 = vmatmul.mubr.bf16.gmra.mrb[44].mxu0 %v16408_v34  ;;  %v16414_v34 = vpack.c.bf16 %v20967_v5, %v24172_v17  ;;  %v24179_v17 = vld [vmem:[#allocation56_spill] sm:$0xff] }
 0x338   : > { %4499 = vmatprep.mubr.bf16.mxu0 %v16411_v2  ;;  %v24173_v2 = vld [vmem:[#allocation119_spill] sm:$0xff]  ;;  %v24180_v1 = vrot.slane %v24179_v17, 1 }
 0x339   : > { %v16417_v45 = vpack.c.bf16 %v21178_v37, %v24173_v2 }
 0x33f   : > { %4500 = vmatmul.mubr.bf16.gmra.mrb[48].mxu0 %v16410_v35  ;;  %v16416_v35 = vpack.c.bf16 %v21194_v29, %v24174_v53 }
 0x340   : > { %4509 = vmatprep.mubr.bf16.mxu0 %v16413_v30  ;;  %v24175_v30 = vrot.slane %v20154_v52, 1  ;;  %v18747_v52 = vld [vmem:[#allocation8 + $0x610] ss:$8 sps:$4 sm:$0xff]  }
 0x342   : > { %v16451_v3 = vpack.c.bf16 %v24176_v18, %v24175_v30  ;;  %v24183_v18 = vrot.slane %v20249_v61, 1  ;;  %v18753_v61 = vld [vmem:[#allocation8 + $0x630] ss:$8 sps:$4 sm:$0xff]  }
 0x347   : > { %4510 = vmatmul.mubr.bf16.gmra.mrb[52].mxu0 %v16412_v16  ;;  %v18744_v16 = vld [vmem:[#allocation8 + $0x600] ss:$8 sps:$4 sm:$0xff]  }
 0x348   : > { %4519 = vmatprep.mubr.bf16.mxu0 %v16415_v28  ;;  %v24177_v28 = vld [vmem:[#allocation54_spill] sm:$0xff] }
 0x349   : > { %v24178_v5 = vrot.slane %v24177_v28, 1  ;;  %v18750_v28 = vld [vmem:[#allocation8 + $0x620] ss:$8 sps:$4 sm:$0xff]  }
 0x34b   : > { %v16457_v2 = vpack.c.bf16 %v24180_v1, %v24178_v5  ;;  %v24184_v1 = vrot.slane %v20222_v9, 1  ;;  %v24185_v5 = vld [vmem:[#allocation60_spill] sm:$0xff]  ;;  %v24187_v9 = vrot.slane %v20253_v7, 1 }
 0x34c   : > { %v24186_v17 = vrot.slane %v24185_v5, 1  ;;  %v1118_v5 = vrot.slane %v21026_v8, 1  ;;  %v18759_v7 = vld [vmem:[#allocation8 + $0x650] ss:$8 sps:$4 sm:$0xff]  }
 0x34e   : > { %v16463_v30 = vpack.c.bf16 %v24186_v17, %v24184_v1  ;;  %v18761_v1 = vld [vmem:[#allocation8 + $0x654] ss:$8 sps:$4 sm:$0xff]   ;;  %v18764_v17 = vld [vmem:[#allocation8 + $0x664] ss:$8 sps:$4 sm:$0xff]  }
 0x34f   : > { %4520 = vmatmul.mubr.bf16.gmra.mrb[56].mxu0 %v16414_v34  ;;  %v18749_v34 = vld [vmem:[#allocation8 + $0x614] ss:$8 sps:$4 sm:$0xff]  }
 0x350   : > { %4529 = vmatprep.mubr.bf16.mxu0 %v16417_v45  ;;  %v24181_v45 = vld [vmem:[#allocation59_spill] sm:$0xff] }
 0x357   : > { %4530 = vmatmul.mubr.bf16.gmra.mrb[60].mxu0 %v16416_v35 }
 0x358   : > { %16452 = vmatprep.mubr.msk.bf16.mxu0 %vm20634_vm3, %v16451_v3  ;;  %v24182_v3 = vrot.slane %v20211_v39, 1  ;;  %v1119_v39 = vrot.slane %v21010_v50, 1 }
 0x35a   : > { %v16460_v35 = vpack.c.bf16 %v24183_v18, %v24182_v3  ;;  %v24190_v3 = vld [vmem:[#allocation61_spill] sm:$0xff] }
 0x35f   : > { %16455 = vmatmul.mubr.msk.bf16.vlgmr.msra.gmra.mrb[0].mxu0 %vm20634_vm3, %v24181_v45 }
 0x360   : > { %5633 = vmatpush1.bf16.msra.mxu0 %v18744_v16  ;;  %16458 = vmatprep.mubr.msk.bf16.mxu0 %vm20634_vm3, %v16457_v2  ;;  %v18755_v16 = vld [vmem:[#allocation8 + $0x634] ss:$8 sps:$4 sm:$0xff]   ;;  %v18758_v2 = vld [vmem:[#allocation8 + $0x644] ss:$8 sps:$4 sm:$0xff]  }
 0x361   : > { %5634 = vmatprep.subr.bf16.mxu0 %v18749_v34  ;;  %v24188_v34 = vld [vmem:[#allocation64_spill] sm:$0xff] }
 0x362   : > { %v24189_v45 = vrot.slane %v24188_v34, 1  ;;  %v18767_v34 = vld [vmem:[#allocation8 + $0x674] ss:$8 sps:$4 sm:$0xff]  }
 0x364   : > { %5635 = vmatpush1.bf16.msra.mxu0 %v18747_v52  ;;  %v16466_v52 = vpack.c.bf16 %v24189_v45, %v24187_v9  ;;  %v18762_v9 = vld [vmem:[#allocation8 + $0x660] ss:$8 sps:$4 sm:$0xff]   ;;  %v18770_v45 = vld [vmem:[#allocation8 + $0x684] ss:$8 sps:$4 sm:$0xff]  }
 0x365   : > { %5636 = vmatprep.subr.bf16.mxu0 %v18752_v6  ;;  %v24191_v6 = vrot.slane %v24190_v3, 1  ;;  %v24197_v3 = vrot.slane %v20330_v56, 1  ;;  %v24200_v56 = vrot.slane %v20375_v60, 1  ;;  %v18777_v60 = vld [vmem:[#allocation8 + $0x6b0] ss:$8 sps:$4 sm:$0xff]  }
 0x367   : > { %16461 = vmatmul.mubr.msk.bf16.gmra.mrb[4].mxu0 %vm20634_vm3, %v16460_v35  ;;  %v16469_v18 = vpack.c.bf16 %v1119_v39, %v24191_v6  ;;  %v18756_v35 = vld [vmem:[#allocation8 + $0x640] ss:$8 sps:$4 sm:$0xff]   ;;  %v24198_v6 = vrot.slane %v20352_v26, 1 }
 0x368   : > { %16464 = vmatprep.mubr.msk.bf16.mxu0 %vm20634_vm3, %v16463_v30  ;;  %5637 = vmatpush1.bf16.msra.mxu0 %v18750_v28  ;;  %v24192_v30 = vrot.slane %v20309_v54, 1  ;;  %v18765_v54 = vld [vmem:[#allocation8 + $0x670] ss:$8 sps:$4 sm:$0xff]  }
 0x369   : > { %5638 = vmatprep.subr.bf16.mxu0 %v18755_v16  ;;  %v24193_v16 = vrot.slane %v20278_v55, 1  ;;  %v24196_v55 = vrot.slane %v20341_v4, 1  ;;  %v18776_v4 = vld [vmem:[#allocation8 + $0x6a4] ss:$8 sps:$4 sm:$0xff]  }
 0x36a   : > { %v16472_v28 = vpack.c.bf16 %v1118_v5, %v24192_v30  ;;  %v24202_v30 = vld [vmem:[#allocation69_spill] sm:$0xff] }
 0x36c   : > { %5639 = vmatpush1.bf16.msra.mxu0 %v18753_v61  ;;  %v24194_v61 = vrot.slane %v20326_v10, 1 }
 0x36d   : > { %5640 = vmatprep.subr.bf16.mxu0 %v18758_v2 }
 0x36e   : > { %v16475_v2 = vpack.c.bf16 %v24194_v61, %v24193_v16  ;;  %v18774_v61 = vld [vmem:[#allocation8 + $0x6a0] ss:$8 sps:$4 sm:$0xff]  }
 0x36f   : > { %16467 = vmatmul.mubr.msk.bf16.gmra.mrb[8].mxu0 %vm20634_vm3, %v16466_v52  ;;  %v24195_v52 = vrot.slane %v20274_v27, 1  ;;  %v18771_v27 = vld [vmem:[#allocation8 + $0x690] ss:$8 sps:$4 sm:$0xff]  }
 0x370   : > { %16470 = vmatprep.mubr.msk.bf16.mxu0 %vm20634_vm3, %v16469_v18  ;;  %5641 = vmatpush1.bf16.msra.mxu0 %v18756_v35  ;;  %v16481_v18 = vpack.c.bf16 %v24198_v6, %v24197_v3  ;;  %v18768_v35 = vld [vmem:[#allocation8 + $0x680] ss:$8 sps:$4 sm:$0xff]   ;;  %v18785_v3 = vld [vmem:[#allocation8 + $0x6d4] ss:$8 sps:$4 sm:$0xff]   ;;  %v1134_v6 = vrot.slane %v21082_v57, 1 }
 0x371   : > { %5642 = vmatprep.subr.bf16.mxu0 %v18761_v1  ;;  %v16478_v10 = vpack.c.bf16 %v24196_v55, %v24195_v52  ;;  %v18773_v1 = vld [vmem:[#allocation8 + $0x694] ss:$8 sps:$4 sm:$0xff]  }
 0x374   : > { %5643 = vmatpush1.bf16.msra.mxu0 %v18759_v7  ;;  %v24199_v7 = vrot.slane %v20345_v0, 1  ;;  %v1135_v0 = vrot.slane %v21066_v38, 1 }
 0x375   : > { %5644 = vmatprep.subr.bf16.mxu0 %v18764_v17  ;;  %v24201_v17 = vrot.slane %v20356_v47, 1  ;;  %v24204_v47 = vrot.slane %v20379_v33, 1  ;;  %v18783_v33 = vld [vmem:[#allocation8 + $0x6d0] ss:$8 sps:$4 sm:$0xff]  }
 0x376   : > { %v16484_v26 = vpack.c.bf16 %v24200_v56, %v24199_v7  ;;  %v18786_v7 = vld [vmem:[#allocation8 + $0x6e0] ss:$8 sps:$4 sm:$0xff]   ;;  %v18791_v56 = vld [vmem:[#allocation8 + $0x6f4] ss:$8 sps:$4 sm:$0xff]  }
 0x377   : > { %16473 = vmatmul.mubr.msk.bf16.gmra.mrb[12].mxu0 %vm20634_vm3, %v16472_v28  ;;  %v24203_v28 = vrot.slane %v24202_v30, 1  ;;  %v24213_v30 = vrot.slane %v20450_v58, 1  ;;  %v24218_v58 = vrot.slane %v20824_v49, 1  ;;  %v1150_v49 = vrot.slane %v21138_v19, 1 }
 0x378   : > { %16476 = vmatprep.mubr.msk.bf16.mxu0 %vm20634_vm3, %v16475_v2  ;;  %5645 = vmatpush1.bf16.msra.mxu0 %v18762_v9  ;;  %v18779_v2 = vld [vmem:[#allocation8 + $0x6b4] ss:$8 sps:$4 sm:$0xff]   ;;  %v18782_v9 = vld [vmem:[#allocation8 + $0x6c4] ss:$8 sps:$4 sm:$0xff]  }
 0x379   : > { %5646 = vmatprep.subr.bf16.mxu0 %v18767_v34  ;;  %v16487_v16 = vpack.c.bf16 %v24203_v28, %v24201_v17  ;;  %v24205_v34 = vrot.slane %v20425_v13, 1  ;;  %v18788_v13 = vld [vmem:[#allocation8 + $0x6e4] ss:$8 sps:$4 sm:$0xff]   ;;  %v24211_v17 = vrot.slane %v24062_v43, 1  ;;  %v24214_v28 = vrot.slane %v20472_v12, 1 }
 0x37a   : > { %v24216_v43 = vrot.slane %v24072_v44, 1  ;;  %v1151_v12 = vrot.slane %v21122_v46, 1  ;;  %v24221_v44 = vrot.slane %v20828_v62, 1  ;;  %v24224_v62 = vrot.slane %v24165_v31, 1 }
 0x37b   : > { %v24230_v31 = vrot.slane %v20933_v36, 1  ;;  %v24238_v36 = vld [vmem:[#allocation119_spill] sm:$0xff] }
 0x37c   : > { %5647 = vmatpush1.bf16.msra.mxu0 %v18765_v54  ;;  %v16490_v54 = vpack.c.bf16 %v24205_v34, %v24204_v47  ;;  %v24222_v34 = vrot.slane %v24163_v25, 1  ;;  %v24227_v25 = vrot.slane %v24168_v20, 1  ;;  %v1167_v20 = vrot.slane %v21178_v37, 1 }
 0x37d   : > { %5648 = vmatprep.subr.bf16.mxu0 %v18770_v45  ;;  %v24206_v45 = vld [vmem:[#allocation70_spill] sm:$0xff] }
 0x37e   : > { %v24207_v52 = vrot.slane %v24206_v45, 1  ;;  %v24225_v45 = vrot.slane %v24166_v22, 1  ;;  %v24231_v22 = vrot.slane %v24171_v48, 1 }
 0x37f   : > { %16479 = vmatmul.mubr.msk.bf16.gmra.mrb[16].mxu0 %vm20634_vm3, %v16478_v10  ;;  %v18780_v10 = vld [vmem:[#allocation8 + $0x6c0] ss:$8 sps:$4 sm:$0xff]  }
 0x380   : > { %16482 = vmatprep.mubr.msk.bf16.mxu0 %vm20634_vm3, %v16481_v18  ;;  %5649 = vmatpush1.bf16.msra.mxu0 %v18768_v35  ;;  %v16493_v55 = vpack.c.bf16 %v1135_v0, %v24207_v52  ;;  %v24208_v18 = vrot.slane %v20429_v41, 1  ;;  %v18789_v41 = vld [vmem:[#allocation8 + $0x6f0] ss:$8 sps:$4 sm:$0xff]   ;;  %v24226_v52 = vrot.slane %v24167_v21, 1  ;;  %v24232_v21 = vld [vmem:[#allocation118_spill] sm:$0xff] }
 0x381   : > { %5650 = vmatprep.subr.bf16.mxu0 %v18773_v1  ;;  %v24209_v1 = vrot.slane %v24063_v59, 1  ;;  %v24212_v59 = vrot.slane %v24068_v32, 1  ;;  %v24217_v32 = vrot.slane %v24069_v63, 1  ;;  %v16517_v63 = vpack.c.bf16 %v1151_v12, %v24221_v44 }
 0x382   : > { %v16496_v35 = vpack.c.bf16 %v1134_v6, %v24208_v18 }
 0x384   : > { %5651 = vmatpush1.bf16.msra.mxu0 %v18771_v27  ;;  %v24210_v27 = vrot.slane %v20446_v11, 1  ;;  %v16502_v11 = vpack.c.bf16 %v24212_v59, %v24211_v17  ;;  %v18792_v59 = vld [vmem:[#allocation8 + $0x700] ss:$8 sps:$4 sm:$0xff]  }
 0x385   : > { %5652 = vmatprep.subr.bf16.mxu0 %v18776_v4  ;;  %v19278_v17 = vld [vmem:[#allocation11 + $0x820] ss:$8 sps:$4 sm:$0xff]  }
 0x386   : > { %v16499_v4 = vpack.c.bf16 %v24210_v27, %v24209_v1  ;;  %v24236_v1 = vld [vmem:[#allocation122_spill] sm:$0xff] }
 0x387   : > { %16485 = vmatmul.mubr.msk.bf16.gmra.mrb[20].mxu0 %vm20634_vm3, %v16484_v26  ;;  %v18794_v26 = vld [vmem:[#allocation8 + $0x704] ss:$8 sps:$4 sm:$0xff]  }
 0x388   : > { %16488 = vmatprep.mubr.msk.bf16.mxu0 %vm20634_vm3, %v16487_v16  ;;  %5653 = vmatpush1.bf16.msra.mxu0 %v18774_v61  ;;  %v16505_v16 = vpack.c.bf16 %v24214_v28, %v24213_v30  ;;  %v24215_v61 = vrot.slane %v20465_v42, 1  ;;  %v24220_v42 = vrot.slane %v20863_v14, 1  ;;  %v24223_v14 = vrot.slane %v24164_v40, 1  ;;  %v24243_v30 = vld [vmem:[#allocation57_spill] sm:$0xff]  ;;  %v24244_v28 = vld [vmem:[#allocation58_spill] sm:$0xff] }
 0x389   : > { %5654 = vmatprep.subr.bf16.mxu0 %v18779_v2  ;;  %v24229_v40 = vrot.slane %v24170_v24, 1  ;;  %v24237_v24 = vrot.slane %v24236_v1, 1  ;;  %v18822_v1 = vld [vmem:[#allocation8 + $0x7a0] ss:$8 sps:$4 sm:$0xff]  }
 0x38a   : > { %v16508_v2 = vpack.c.bf16 %v24216_v43, %v24215_v61  ;;  %v18798_v61 = vld [vmem:[#allocation8 + $0x720] ss:$8 sps:$4 sm:$0xff]   ;;  %v24245_v43 = vrot.slane %v21026_v8, 7 }
 0x38c   : > { %5655 = vmatpush1.bf16.msra.mxu0 %v18777_v60  ;;  %v16511_v60 = vpack.c.bf16 %v24218_v58, %v24217_v32  ;;  %v765_v32 = vsel %vm303_vm0, %v24245_v43, 0.0  ;;  %v24247_v58 = vrot.slane %v21010_v50, 7  ;;  %v18836_v43 = vld [vmem:[#allocation8 + $0x7e4] ss:$8 sps:$4 sm:$0xff]  }
 0x38d   : > { %5656 = vmatprep.subr.bf16.mxu0 %v18782_v9  ;;  %v24219_v9 = vrot.slane %v24162_v15, 1  ;;  %v16520_v15 = vpack.c.bf16 %v1150_v49, %v24222_v34  ;;  %v18806_v34 = vld [vmem:[#allocation8 + $0x744] ss:$8 sps:$4 sm:$0xff]  }
 0x38e   : > { %v18906_v50 = vld [vmem:[#allocation11 + $0x164] ss:$8 sps:$4 sm:$0xff]  }
 0x38f   : > { %16491 = vmatmul.mubr.msk.bf16.gmra.mrb[24].mxu0 %vm20634_vm3, %v16490_v54  ;;  %v16514_v47 = vpack.c.bf16 %v24220_v42, %v24219_v9  ;;  %v16523_v54 = vpack.c.bf16 %v24224_v62, %v24223_v14  ;;  %v18803_v9 = vld [vmem:[#allocation8 + $0x734] ss:$8 sps:$4 sm:$0xff]   ;;  %v18804_v62 = vld [vmem:[#allocation8 + $0x740] ss:$8 sps:$4 sm:$0xff]  }
 0x390   : > { %16494 = vmatprep.mubr.msk.bf16.mxu0 %vm20634_vm3, %v16493_v55  ;;  %5657 = vmatpush1.bf16.msra.mxu0 %v18780_v10  ;;  %v16526_v55 = vpack.c.bf16 %v24226_v52, %v24225_v45  ;;  %v24228_v10 = vrot.slane %v24169_v51, 1  ;;  %v24234_v51 = vld [vmem:[#allocation117_spill] sm:$0xff]  ;;  %v24248_v42 = vld [vmem:[#allocation62_spill] sm:$0xff] }
 0x391   : > { %5658 = vmatprep.subr.bf16.mxu0 %v18785_v3  ;;  %v24251_v45 = vld [vmem:[#allocation65_spill] sm:$0xff] }
 0x392   : > { %v16529_v3 = vpack.c.bf16 %v24228_v10, %v24227_v25  ;;  %v18807_v52 = vld [vmem:[#allocation8 + $0x750] ss:$8 sps:$4 sm:$0xff]   ;;  %v18810_v10 = vld [vmem:[#allocation8 + $0x760] ss:$8 sps:$4 sm:$0xff]  }
 0x394   : > { %5659 = vmatpush1.bf16.msra.mxu0 %v18783_v33  ;;  %v16532_v33 = vpack.c.bf16 %v24230_v31, %v24229_v40  ;;  %v24252_v40 = vld [vmem:[#allocation66_spill] sm:$0xff]  ;;  %v18813_v31 = vld [vmem:[#allocation8 + $0x770] ss:$8 sps:$4 sm:$0xff]  }
 0x395   : > { %5660 = vmatprep.subr.bf16.mxu0 %v18788_v13  ;;  %v24233_v13 = vrot.slane %v24232_v21, 1  ;;  %v18821_v21 = vld [vmem:[#allocation8 + $0x794] ss:$8 sps:$4 sm:$0xff]  }
 0x397   : > { %16497 = vmatmul.mubr.msk.bf16.gmra.mrb[28].mxu0 %vm20634_vm3, %v16496_v35  ;;  %v16535_v18 = vpack.c.bf16 %v24233_v13, %v24231_v22  ;;  %v24235_v35 = vrot.slane %v24234_v51, 1  ;;  %v18816_v22 = vld [vmem:[#allocation8 + $0x780] ss:$8 sps:$4 sm:$0xff]   ;;  %v18819_v51 = vld [vmem:[#allocation8 + $0x790] ss:$8 sps:$4 sm:$0xff]  }
 0x398   : > { %16500 = vmatprep.mubr.msk.bf16.mxu0 %vm20634_vm3, %v16499_v4  ;;  %5661 = vmatpush1.bf16.msra.mxu0 %v18786_v7  ;;  %v24239_v4 = vrot.slane %v24238_v36, 1  ;;  %v1166_v7 = vrot.slane %v21194_v29, 1  ;;  %v24253_v13 = vld [vmem:[#allocation67_spill] sm:$0xff]  ;;  %v24256_v36 = vrot.slane %v21066_v38, 7 }
 0x399   : > { %5662 = vmatprep.subr.bf16.mxu0 %v18791_v56  ;;  %v16538_v27 = vpack.c.bf16 %v24237_v24, %v24235_v35  ;;  %v24240_v56 = vrot.slane %v24174_v53, 1  ;;  %v18795_v53 = vld [vmem:[#allocation8 + $0x710] ss:$8 sps:$4 sm:$0xff]   ;;  %v18824_v35 = vld [vmem:[#allocation8 + $0x7a4] ss:$8 sps:$4 sm:$0xff]   ;;  %v24255_v24 = vrot.slane %v21082_v57, 7 }
 0x39a   : > { %v16541_v48 = vpack.c.bf16 %v1167_v20, %v24239_v4  ;;  %v782_v4 = vsel %vm303_vm0, %v24256_v36, 0.0 }
 0x39c   : > { %5663 = vmatpush1.bf16.msra.mxu0 %v18789_v41  ;;  %v16544_v41 = vpack.c.bf16 %v1166_v7, %v24240_v56  ;;  %v24257_v56 = vld [vmem:[#allocation73_spill] sm:$0xff] }
 0x39d   : > { %6275 = vmatprep.subr.bf16.mxu0 %v18794_v26  ;;  %v24241_v26 = vld [vmem:[#allocation55_spill] sm:$0xff] }
 0x39f   : > { %16503 = vmatmul.mubr.msk.bf16.gmra.mrb[32].mxu0 %vm20634_vm3, %v16502_v11  ;;  %v18797_v11 = vld [vmem:[#allocation8 + $0x714] ss:$8 sps:$4 sm:$0xff]  }
 0x3a0   : > { %16506 = vmatprep.mubr.msk.bf16.mxu0 %vm20634_vm3, %v16505_v16  ;;  %v18800_v16 = vld [vmem:[#allocation8 + $0x724] ss:$8 sps:$4 sm:$0xff]  }
 0x3a7   : > { %16509 = vmatmul.mubr.msk.bf16.gmra.mrb[36].mxu0 %vm20634_vm3, %v16508_v2  ;;  %v24246_v2 = vld [vmem:[#allocation44_spill] sm:$0xff] }
 0x3a8   : > { %16512 = vmatprep.mubr.msk.bf16.mxu0 %vm20634_vm3, %v16511_v60  ;;  %v766_v60 = vsel %vm303_vm0, %v24247_v58, 0.0  ;;  %v18834_v58 = vld [vmem:[#allocation8 + $0x7e0] ss:$8 sps:$4 sm:$0xff]  }
 0x3a9   : > { %v15887_v44 = vpack.c.bf16 %v766_v60, %v765_v32  ;;  %v18839_v60 = vld [vmem:[#allocation8 + $0x7f4] ss:$8 sps:$4 sm:$0xff]  }
 0x3af   : > { %16515 = vmatmul.mubr.msk.bf16.gmra.mrb[40].mxu0 %vm20634_vm3, %v16514_v47  ;;  %v24249_v47 = vld [vmem:[#allocation63_spill] sm:$0xff] }
 0x3b0   : > { %16518 = vmatprep.mubr.msk.bf16.mxu0 %vm20634_vm3, %v16517_v63  ;;  %v18801_v63 = vld [vmem:[#allocation8 + $0x730] ss:$8 sps:$4 sm:$0xff]  }
 0x3b7   : > { %16521 = vmatmul.mubr.msk.bf16.gmra.mrb[44].mxu0 %vm20634_vm3, %v16520_v15  ;;  %v24250_v15 = vmov 0  }
 0x3b8   : > { %16524 = vmatprep.mubr.msk.bf16.mxu0 %vm20634_vm3, %v16523_v54  ;;  %v14983_v14 = vcombine.high %v15887_v44, %v24250_v15  ;;  %v18809_v54 = vld [vmem:[#allocation8 + $0x754] ss:$8 sps:$4 sm:$0xff]   ;;  %v14982_v25 = vcombine.low %v15887_v44, %v24250_v15  ;;  %v24261_v44 = vld [vmem:[#allocation79_spill] sm:$0xff] }
 0x3bf   : > { %16527 = vmatmul.mubr.msk.bf16.gmra.mrb[48].mxu0 %vm20634_vm3, %v16526_v55  ;;  %v18812_v55 = vld [vmem:[#allocation8 + $0x764] ss:$8 sps:$4 sm:$0xff]  }
 0x3c0   : > { %16530 = vmatprep.mubr.msk.bf16.mxu0 %vm20634_vm3, %v16529_v3  ;;  %v18815_v3 = vld [vmem:[#allocation8 + $0x774] ss:$8 sps:$4 sm:$0xff]  }
 0x3c7   : > { %16533 = vmatmul.mubr.msk.bf16.gmra.mrb[52].mxu0 %vm20634_vm3, %v16532_v33  ;;  %v18818_v33 = vld [vmem:[#allocation8 + $0x784] ss:$8 sps:$4 sm:$0xff]  }
 0x3c8   : > { %16536 = vmatprep.mubr.msk.bf16.mxu0 %vm20634_vm3, %v16535_v18  ;;  %v24254_v18 = vld [vmem:[#allocation68_spill] sm:$0xff] }
 0x3cf   : > { %16539 = vmatmul.mubr.msk.bf16.gmra.mrb[56].mxu0 %vm20634_vm3, %v16538_v27  ;;  %v781_v27 = vsel %vm303_vm0, %v24255_v24, 0.0 }
 0x3d0   : > { %16542 = vmatprep.mubr.msk.bf16.mxu0 %vm20634_vm3, %v16541_v48  ;;  %v18827_v48 = vld [vmem:[#allocation8 + $0x7b4] ss:$8 sps:$4 sm:$0xff]  }
 0x3d7   : > { %16545 = vmatmul.mubr.msk.bf16.gmra.mrb[60].mxu0 %vm20634_vm3, %v16544_v41  ;;  %v24258_v41 = vld [vmem:[#allocation74_spill] sm:$0xff] }
 0x3d8   : > { %16548 = vmatprep.mubr.msk.bf16.mxu0 %vm20191_vm1, %v24241_v26  ;;  %v15895_v26 = vpack.c.bf16 %v782_v4, %v781_v27  ;;  %v24275_v27 = vld [vmem:[#allocation90_spill] sm:$0xff]  ;;  %v24276_v4 = vld [vmem:[#allocation19_spill] sm:$0xff] }
 0x3da   : > { %v14990_v32 = vcombine.low %v15895_v26, %v24250_v15 }
 0x3df   : > { %16551 = vmatmul.mubr.msk.bf16.vlgmr.msra.gmra.mrb[0].mxu0 %vm20191_vm1, %v24243_v30  ;;  %v14991_v30 = vcombine.high %v15895_v26, %v24250_v15  ;;  %v24278_v26 = vld [vmem:[#allocation21_spill] sm:$0xff] }
 0x3e0   : > { %6276 = vmatpush1.bf16.msra.mxu0 %v18792_v59  ;;  %16554 = vmatprep.mubr.msk.bf16.mxu0 %vm20191_vm1, %v24244_v28  ;;  %v18825_v59 = vld [vmem:[#allocation8 + $0x7b0] ss:$8 sps:$4 sm:$0xff]   ;;  %v18828_v28 = vld [vmem:[#allocation8 + $0x7c0] ss:$8 sps:$4 sm:$0xff]  }
 0x3e1   : > { %6277 = vmatprep.subr.bf16.mxu0 %v18797_v11  ;;  %v18830_v11 = vld [vmem:[#allocation8 + $0x7c4] ss:$8 sps:$4 sm:$0xff]  }
 0x3e4   : > { %6278 = vmatpush1.bf16.msra.mxu0 %v18795_v53  ;;  %v18833_v53 = vld [vmem:[#allocation8 + $0x7d4] ss:$8 sps:$4 sm:$0xff]  }
 0x3e5   : > { %6279 = vmatprep.subr.bf16.mxu0 %v18800_v16  ;;  %v24259_v16 = vld [vmem:[#allocation75_spill] sm:$0xff] }
 0x3e7   : > { %16557 = vmatmul.mubr.msk.bf16.gmra.mrb[4].mxu0 %vm20191_vm1, %v24248_v42  ;;  %v18837_v42 = vld [vmem:[#allocation8 + $0x7f0] ss:$8 sps:$4 sm:$0xff]  }
 0x3e8   : > { %16560 = vmatprep.mubr.msk.bf16.mxu0 %vm20191_vm1, %v24249_v47  ;;  %6280 = vmatpush1.bf16.msra.mxu0 %v18798_v61  ;;  %v18831_v61 = vld [vmem:[#allocation8 + $0x7d0] ss:$8 sps:$4 sm:$0xff]   ;;  %v18842_v47 = vld [vmem:[#allocation8 + $0x804] ss:$8 sps:$4 sm:$0xff]  }
 0x3e9   : > { %6281 = vmatprep.subr.bf16.mxu0 %v18803_v9  ;;  %v24260_v9 = vld [vmem:[#allocation76_spill] sm:$0xff] }
 0x3ec   : > { %6282 = vmatpush1.bf16.msra.mxu0 %v18801_v63  ;;  %v24262_v63 = vld [vmem:[#allocation80_spill] sm:$0xff] }
 0x3ed   : > { %6283 = vmatprep.subr.bf16.mxu0 %v18806_v34  ;;  %v24263_v34 = vrot.slane %v21138_v19, 7 }
 0x3ef   : > { %16563 = vmatmul.mubr.msk.bf16.gmra.mrb[8].mxu0 %vm20191_vm1, %v24251_v45  ;;  %v24265_v45 = vld [vmem:[#allocation82_spill] sm:$0xff] }
 0x3f0   : > { %5694 = vmatprep.mubr.bf16.mxu0 %v14983_v14  ;;  %6284 = vmatpush1.bf16.msra.mxu0 %v18804_v62  ;;  %v797_v14 = vsel %vm303_vm0, %v24263_v34, 0.0  ;;  %v24264_v62 = vrot.slane %v21122_v46, 7 }
 0x3f1   : > { %6285 = vmatprep.subr.bf16.mxu0 %v18809_v54 }
 0x3f2   : > { %v798_v54 = vsel %vm303_vm0, %v24264_v62, 0.0  ;;  %v18863_v62 = vld [vmem:[#allocation8 + $0x874] ss:$8 sps:$4 sm:$0xff]  }
 0x3f4   : > { %6286 = vmatpush1.bf16.msra.mxu0 %v18807_v52  ;;  %v24266_v52 = vld [vmem:[#allocation83_spill] sm:$0xff] }
 0x3f5   : > { %6287 = vmatprep.subr.bf16.mxu0 %v18812_v55  ;;  %v15903_v55 = vpack.c.bf16 %v798_v54, %v797_v14  ;;  %v18858_v14 = vld [vmem:[#allocation8 + $0x860] ss:$8 sps:$4 sm:$0xff]  }
 0x3f6   : > { %v24282_v54 = vld [vmem:[#allocation26_spill] sm:$0xff] }
 0x3f7   : > { %5695 = vmatmul.mubr.bf16.gmra.mrb[12].mxu0 %v14982_v25  ;;  %v14999_v25 = vcombine.high %v15903_v55, %v24250_v15 }
 0x3f8   : > { %16566 = vmatprep.mubr.msk.bf16.mxu0 %vm20191_vm1, %v24252_v40  ;;  %6288 = vmatpush1.bf16.msra.mxu0 %v18810_v10  ;;  %v24267_v10 = vld [vmem:[#allocation84_spill] sm:$0xff]  ;;  %v24268_v40 = vld [vmem:[#allocation85_spill] sm:$0xff] }
 0x3f9   : > { %6289 = vmatprep.subr.bf16.mxu0 %v18815_v3  ;;  %v14998_v3 = vcombine.low %v15903_v55, %v24250_v15  ;;  %v18864_v55 = vld [vmem:[#allocation8 + $0x880] ss:$8 sps:$4 sm:$0xff]  }
 0x3fc   : > { %6290 = vmatpush1.bf16.msra.mxu0 %v18813_v31  ;;  %v24269_v31 = vld [vmem:[#allocation86_spill] sm:$0xff] }
 0x3fd   : > { %6291 = vmatprep.subr.bf16.mxu0 %v18818_v33  ;;  %v24270_v33 = vld [vmem:[#allocation87_spill] sm:$0xff] }
 0x3ff   : > { %16569 = vmatmul.mubr.msk.bf16.gmra.mrb[16].mxu0 %vm20191_vm1, %v24253_v13  ;;  %v24272_v13 = vrot.slane %v21178_v37, 7 }
 0x400   : > { %16572 = vmatprep.mubr.msk.bf16.mxu0 %vm20191_vm1, %v24254_v18  ;;  %6292 = vmatpush1.bf16.msra.mxu0 %v18816_v22  ;;  %v24271_v22 = vrot.slane %v21194_v29, 7 }
 0x401   : > { %6293 = vmatprep.subr.bf16.mxu0 %v18821_v21  ;;  %v814_v18 = vsel %vm303_vm0, %v24272_v13, 0.0  ;;  %v24286_v13 = vld [vmem:[#allocation30_spill] sm:$0xff] }
 0x402   : > { %v813_v21 = vsel %vm303_vm0, %v24271_v22, 0.0  ;;  %v18875_v22 = vld [vmem:[#allocation8 + $0x8b4] ss:$8 sps:$4 sm:$0xff]  }
 0x404   : > { %6294 = vmatpush1.bf16.msra.mxu0 %v18819_v51  ;;  %v24273_v51 = vld [vmem:[#allocation88_spill] sm:$0xff] }
 0x405   : > { %6295 = vmatprep.subr.bf16.mxu0 %v18824_v35  ;;  %v24274_v35 = vld [vmem:[#allocation89_spill] sm:$0xff] }
 0x407   : > { %16575 = vmatmul.mubr.msk.bf16.gmra.mrb[20].mxu0 %vm20191_vm1, %v24257_v56  ;;  %v18845_v56 = vld [vmem:[#allocation8 + $0x814] ss:$8 sps:$4 sm:$0xff]  }
 0x408   : > { %16578 = vmatprep.mubr.msk.bf16.mxu0 %vm20191_vm1, %v24258_v41  ;;  %6296 = vmatpush1.bf16.msra.mxu0 %v18822_v1  ;;  %v15911_v1 = vpack.c.bf16 %v814_v18, %v813_v21  ;;  %v24277_v41 = vld [vmem:[#allocation20_spill] sm:$0xff]  ;;  %v24285_v21 = vld [vmem:[#allocation29_spill] sm:$0xff] }
 0x409   : > { %6297 = vmatprep.subr.bf16.mxu0 %v18827_v48  ;;  %v18840_v48 = vld [vmem:[#allocation8 + $0x800] ss:$8 sps:$4 sm:$0xff]   ;;  %v19408_v18 = vld [vmem:[%s19951_s28 + $0xf8] sm:$0xff] }
 0x40a   : > { %v15007_v24 = vcombine.high %v15911_v1, %v24250_v15  ;;  %v15006_v36 = vcombine.low %v15911_v1, %v24250_v15  ;;  %v18878_v1 = vld [vmem:[#allocation8 + $0x8c4] ss:$8 sps:$4 sm:$0xff]  }
 0x40c   : > { %6298 = vmatpush1.bf16.msra.mxu0 %v18825_v59  ;;  %v18843_v59 = vld [vmem:[#allocation8 + $0x810] ss:$8 sps:$4 sm:$0xff]  }
 0x40d   : > { %6299 = vmatprep.subr.bf16.mxu0 %v18830_v11  ;;  %v18848_v11 = vld [vmem:[#allocation8 + $0x824] ss:$8 sps:$4 sm:$0xff]  }
 0x40f   : > { %16581 = vmatmul.mubr.msk.bf16.gmra.mrb[24].mxu0 %vm20191_vm1, %v24259_v16  ;;  %v24280_v16 = vld [vmem:[#allocation24_spill] sm:$0xff] }
 0x410   : > { %5734 = vmatprep.mubr.bf16.mxu0 %v14991_v30  ;;  %6300 = vmatpush1.bf16.msra.mxu0 %v18828_v28  ;;  %v18846_v30 = vld [vmem:[#allocation8 + $0x820] ss:$8 sps:$4 sm:$0xff]   ;;  %v18851_v28 = vld [vmem:[#allocation8 + $0x834] ss:$8 sps:$4 sm:$0xff]  }
 0x411   : > { %6301 = vmatprep.subr.bf16.mxu0 %v18833_v53  ;;  %v24279_v53 = vld [vmem:[#allocation23_spill] sm:$0xff] }
 0x414   : > { %6302 = vmatpush1.bf16.msra.mxu0 %v18831_v61  ;;  %v19407_v61 = vld [vmem:[%s19951_s28 + $0x78] sm:$0xff] }
 0x415   : > { %6303 = vmatprep.subr.bf16.mxu0 %v18836_v43  ;;  %v15855_v43 = vpack.c.bf16 %v19407_v61, %v21026_v8  ;;  %v24292_v61 = vld [vmem:[#allocation36_spill] sm:$0xff] }
 0x417   : > { %5735 = vmatmul.mubr.bf16.gmra.mrb[28].mxu0 %v14990_v32  ;;  %v18849_v32 = vld [vmem:[#allocation8 + $0x830] ss:$8 sps:$4 sm:$0xff]   ;;  %v15046_v34 = vcombine.low %v15855_v43, %v24250_v15 }
 0x418   : > { %16584 = vmatprep.mubr.msk.bf16.mxu0 %vm20191_vm1, %v24260_v9  ;;  %6304 = vmatpush1.bf16.msra.mxu0 %v18834_v58  ;;  %v18854_v58 = vld [vmem:[#allocation8 + $0x844] ss:$8 sps:$4 sm:$0xff]   ;;  %v18852_v9 = vld [vmem:[#allocation8 + $0x840] ss:$8 sps:$4 sm:$0xff]  }
 0x419   : > { %6305 = vmatprep.subr.bf16.mxu0 %v18839_v60  ;;  %v15047_v60 = vcombine.high %v15855_v43, %v24250_v15  ;;  %v15871_v43 = vpack.c.bf16 %v21122_v46, %v21138_v19  ;;  %v24317_v19 = vld [vmem:[#allocation107_spill] sm:$0xff]  ;;  %v18929_v46 = vld [vmem:[#allocation11 + $0x1d0] ss:$8 sps:$4 sm:$0xff]  }
 0x41c   : > { %6306 = vmatpush1.bf16.msra.mxu0 %v18837_v42  ;;  %v18857_v42 = vld [vmem:[#allocation8 + $0x854] ss:$8 sps:$4 sm:$0xff]  }
 0x41d   : > { %6918 = vmatprep.subr.bf16.mxu0 %v18842_v47  ;;  %v24281_v47 = vld [vmem:[#allocation25_spill] sm:$0xff] }
 0x41f   : > { %16587 = vmatmul.mubr.msk.bf16.gmra.mrb[32].mxu0 %vm20191_vm1, %v24261_v44  ;;  %v18855_v44 = vld [vmem:[#allocation8 + $0x850] ss:$8 sps:$4 sm:$0xff]  }
 0x420   : > { %16590 = vmatprep.mubr.msk.bf16.mxu0 %vm20191_vm1, %v24262_v63  ;;  %v18860_v63 = vld [vmem:[#allocation8 + $0x864] ss:$8 sps:$4 sm:$0xff]  }
 0x427   : > { %16593 = vmatmul.mubr.msk.bf16.gmra.mrb[36].mxu0 %vm20191_vm1, %v24265_v45  ;;  %v18861_v45 = vld [vmem:[#allocation8 + $0x870] ss:$8 sps:$4 sm:$0xff]  }
 0x428   : > { %16596 = vmatprep.mubr.msk.bf16.mxu0 %vm20191_vm1, %v24266_v52  ;;  %v18866_v52 = vld [vmem:[#allocation8 + $0x884] ss:$8 sps:$4 sm:$0xff]  }
 0x42f   : > { %16599 = vmatmul.mubr.msk.bf16.gmra.mrb[40].mxu0 %vm20191_vm1, %v24267_v10  ;;  %v24283_v10 = vld [vmem:[#allocation27_spill] sm:$0xff] }
 0x430   : > { %5774 = vmatprep.mubr.bf16.mxu0 %v14999_v25  ;;  %v18869_v25 = vld [vmem:[#allocation8 + $0x894] ss:$8 sps:$4 sm:$0xff]  }
 0x437   : > { %5775 = vmatmul.mubr.bf16.gmra.mrb[44].mxu0 %v14998_v3  ;;  %v24284_v3 = vld [vmem:[#allocation28_spill] sm:$0xff] }
 0x438   : > { %16602 = vmatprep.mubr.msk.bf16.mxu0 %vm20191_vm1, %v24268_v40  ;;  %v18867_v40 = vld [vmem:[#allocation8 + $0x890] ss:$8 sps:$4 sm:$0xff]  }
 0x43f   : > { %16605 = vmatmul.mubr.msk.bf16.gmra.mrb[48].mxu0 %vm20191_vm1, %v24269_v31  ;;  %v18872_v31 = vld [vmem:[#allocation8 + $0x8a4] ss:$8 sps:$4 sm:$0xff]  }
 0x440   : > { %16608 = vmatprep.mubr.msk.bf16.mxu0 %vm20191_vm1, %v24270_v33  ;;  %v18870_v33 = vld [vmem:[#allocation8 + $0x8a0] ss:$8 sps:$4 sm:$0xff]  }
 0x447   : > { %16611 = vmatmul.mubr.msk.bf16.gmra.mrb[52].mxu0 %vm20191_vm1, %v24273_v51  ;;  %v15863_v51 = vpack.c.bf16 %v19408_v18, %v21082_v57  ;;  %v1184_v18 = vsel %vm304_vm2, %v1118_v5, 0.0  ;;  %v18905_v5 = vld [vmem:[#allocation11 + $0x150] ss:$8 sps:$4 sm:$0xff]  }
 0x448   : > { %16614 = vmatprep.mubr.msk.bf16.mxu0 %vm20191_vm1, %v24274_v35  ;;  %v18873_v35 = vld [vmem:[#allocation8 + $0x8b0] ss:$8 sps:$4 sm:$0xff]  }
 0x44f   : > { %16617 = vmatmul.mubr.msk.bf16.gmra.mrb[56].mxu0 %vm20191_vm1, %v24275_v27  ;;  %v18876_v27 = vld [vmem:[#allocation8 + $0x8c0] ss:$8 sps:$4 sm:$0xff]  }
 0x450   : > { %5814 = vmatprep.mubr.bf16.mxu0 %v15007_v24  ;;  %v15055_v24 = vcombine.high %v15863_v51, %v24250_v15 }
 0x457   : > { %5815 = vmatmul.mubr.bf16.gmra.mrb[60].mxu0 %v15006_v36  ;;  %v18881_v36 = vld [vmem:[#allocation8 + $0x8d4] ss:$8 sps:$4 sm:$0xff]  }
 0x458   : > { %6307 = vmatprep.mubr.bf16.mxu0 %v24276_v4  ;;  %v24287_v4 = vld [vmem:[#allocation31_spill] sm:$0xff] }
 0x45f   : > { %6308 = vmatmul.mubr.bf16.vlgmr.msra.gmra.mrb[0].mxu0 %v24277_v41  ;;  %v15054_v41 = vcombine.low %v15863_v51, %v24250_v15  ;;  %v1185_v51 = vsel %vm304_vm2, %v1119_v39, 0.0  ;;  %v18908_v39 = vld [vmem:[#allocation11 + $0x160] ss:$8 sps:$4 sm:$0xff]  }
 0x460   : > { %6919 = vmatpush1.bf16.msra.mxu0 %v18840_v48  ;;  %6317 = vmatprep.mubr.bf16.mxu0 %v24278_v26  ;;  %v18879_v48 = vld [vmem:[#allocation8 + $0x8d0] ss:$8 sps:$4 sm:$0xff]   ;;  %v18882_v26 = vld [vmem:[#allocation8 + $0x8e0] ss:$8 sps:$4 sm:$0xff]   ;;  %v15919_v8 = vpack.c.bf16 %v1185_v51, %v1184_v18  ;;  %v1232_v51 = vsel %vm304_vm2, %v1166_v7, 0.0 }
 0x461   : > { %6920 = vmatprep.subr.bf16.mxu0 %v18845_v56  ;;  %v18884_v56 = vld [vmem:[#allocation8 + $0x8e4] ss:$8 sps:$4 sm:$0xff]   ;;  %v7175_v7 = vld [vmem:[#allocation10] sm:$0x3] }
 0x462   : > { %v18938_v18 = vld [vmem:[#allocation11 + $0x4] ss:$8 sps:$4 sm:$0xff]  }
 0x464   : > { %6921 = vmatpush1.bf16.msra.mxu0 %v18843_v59  ;;  %v18887_v59 = vld [vmem:[#allocation8 + $0x8f4] ss:$8 sps:$4 sm:$0xff]  }
 0x465   : > { %6922 = vmatprep.subr.bf16.mxu0 %v18848_v11  ;;  %v24288_v11 = vld [vmem:[#allocation32_spill] sm:$0xff] }
 0x467   : > { %6318 = vmatmul.mubr.bf16.gmra.mrb[4].mxu0 %v24279_v53  ;;  %v24290_v53 = vld [vmem:[#allocation34_spill] sm:$0xff] }
 0x468   : > { %6327 = vmatprep.mubr.bf16.mxu0 %v24280_v16  ;;  %6923 = vmatpush1.bf16.msra.mxu0 %v18846_v30  ;;  %v18885_v30 = vld [vmem:[#allocation8 + $0x8f0] ss:$8 sps:$4 sm:$0xff]   ;;  %v24291_v16 = vld [vmem:[#allocation35_spill] sm:$0xff] }
 0x469   : > { %6924 = vmatprep.subr.bf16.mxu0 %v18851_v28  ;;  %v24289_v28 = vld [vmem:[#allocation33_spill] sm:$0xff] }
 0x46c   : > { %6925 = vmatpush1.bf16.msra.mxu0 %v18849_v32  ;;  %v15063_v32 = vcombine.high %v15871_v43, %v24250_v15 }
 0x46d   : > { %6926 = vmatprep.subr.bf16.mxu0 %v18854_v58  ;;  %v24293_v58 = vld [vmem:[#allocation37_spill] sm:$0xff] }
 0x46f   : > { %6328 = vmatmul.mubr.bf16.gmra.mrb[8].mxu0 %v24281_v47  ;;  %v24296_v47 = vld [vmem:[#allocation42_spill] sm:$0xff] }
 0x470   : > { %6337 = vmatprep.mubr.bf16.mxu0 %v15047_v60  ;;  %6927 = vmatpush1.bf16.msra.mxu0 %v18852_v9  ;;  %v15062_v60 = vcombine.low %v15871_v43, %v24250_v15  ;;  %v24294_v9 = vld [vmem:[#allocation38_spill] sm:$0xff] }
 0x471   : > { %6928 = vmatprep.subr.bf16.mxu0 %v18857_v42  ;;  %v24295_v42 = vld [vmem:[#allocation41_spill] sm:$0xff] }
 0x472   : > { %v18921_v43 = vld [vmem:[#allocation11 + $0x1b4] ss:$8 sps:$4 sm:$0xff]  }
 0x474   : > { %6929 = vmatpush1.bf16.msra.mxu0 %v18855_v44  ;;  %v24297_v44 = vld [vmem:[#allocation48_spill] sm:$0xff] }
 0x475   : > { %6930 = vmatprep.subr.bf16.mxu0 %v18860_v63  ;;  %v24298_v63 = vld [vmem:[#allocation49_spill] sm:$0xff] }
 0x477   : > { %6338 = vmatmul.mubr.bf16.gmra.mrb[12].mxu0 %v15046_v34  ;;  %v15879_v34 = vpack.c.bf16 %v21178_v37, %v21194_v29  ;;  %v24323_v29 = vld [vmem:[#allocation124_spill] sm:$0xff] }
 0x478   : > { %6347 = vmatprep.mubr.bf16.mxu0 %v24282_v54  ;;  %6931 = vmatpush1.bf16.msra.mxu0 %v18858_v14 }
 0x479   : > { %6932 = vmatprep.subr.bf16.mxu0 %v18863_v62  ;;  %v15071_v14 = vcombine.high %v15879_v34, %v24250_v15  ;;  %v24299_v62 = vld [vmem:[#allocation52_spill] sm:$0xff]  ;;  %v15070_v54 = vcombine.low %v15879_v34, %v24250_v15 }
 0x47a   : > { %v24310_v34 = vld [vmem:[#allocation72_spill] sm:$0xff] }
 0x47c   : > { %6933 = vmatpush1.bf16.msra.mxu0 %v18861_v45  ;;  %v18888_v45 = vld [vmem:[#allocation11 + $0x104] ss:$8 sps:$4 sm:$0xff]  }
 0x47d   : > { %6934 = vmatprep.subr.bf16.mxu0 %v18866_v52  ;;  %v18890_v52 = vld [vmem:[#allocation11 + $0x100] ss:$8 sps:$4 sm:$0xff]   ;;  %8884 = vmatprep.subr.bf16.mxu1 %v18888_v45  ;;  %v1216_v45 = vsel %vm304_vm2, %v1150_v49, 0.0  ;;  %v18930_v49 = vld [vmem:[#allocation11 + $0x1e4] ss:$8 sps:$4 sm:$0xff]  }
 0x47e   : > { %8885 = vmatpush1.bf16.msra.mxu1 %v18890_v52  ;;  %v1217_v52 = vsel %vm304_vm2, %v1151_v12, 0.0 }
 0x47f   : > { %6348 = vmatmul.mubr.bf16.gmra.mrb[16].mxu0 %v24283_v10  ;;  %v18893_v10 = vld [vmem:[#allocation11 + $0x110] ss:$8 sps:$4 sm:$0xff]  }
 0x480   : > { %6357 = vmatprep.mubr.bf16.mxu0 %v24284_v3  ;;  %6935 = vmatpush1.bf16.msra.mxu0 %v18864_v55  ;;  %v18891_v55 = vld [vmem:[#allocation11 + $0x114] ss:$8 sps:$4 sm:$0xff]   ;;  %v18894_v3 = vld [vmem:[#allocation11 + $0x124] ss:$8 sps:$4 sm:$0xff]  }
 0x481   : > { %6936 = vmatprep.subr.bf16.mxu0 %v18869_v25  ;;  %v24300_v25 = vld [vmem:[#allocation91_spill] sm:$0xff]  ;;  %8886 = vmatprep.subr.bf16.mxu1 %v18891_v55  ;;  %v24315_v55 = vld [vmem:[#allocation104_spill] sm:$0xff] }
 0x482   : > { %8887 = vmatpush1.bf16.msra.mxu1 %v18893_v10  ;;  %v15935_v10 = vpack.c.bf16 %v1217_v52, %v1216_v45 }
 0x483   : > { %8888 = vmatprep.subr.bf16.mxu1 %v18894_v3 }
 0x484   : > { %6937 = vmatpush1.bf16.msra.mxu0 %v18867_v40  ;;  %v18896_v40 = vld [vmem:[#allocation11 + $0x120] ss:$8 sps:$4 sm:$0xff]   ;;  %v15127_v3 = vcombine.high %v15935_v10, %v24250_v15  ;;  %v15126_v12 = vcombine.low %v15935_v10, %v24250_v15 }
 0x485   : > { %6938 = vmatprep.subr.bf16.mxu0 %v18872_v31  ;;  %v24301_v31 = vld [vmem:[#allocation92_spill] sm:$0xff] }
 0x486   : > { %8889 = vmatpush1.bf16.msra.mxu1 %v18896_v40  ;;  %v18932_v40 = vld [vmem:[#allocation11 + $0x1e0] ss:$8 sps:$4 sm:$0xff]  }
 0x487   : > { %6358 = vmatmul.mubr.bf16.gmra.mrb[20].mxu0 %v24285_v21  ;;  %v18899_v21 = vld [vmem:[#allocation11 + $0x130] ss:$8 sps:$4 sm:$0xff]  }
 0x488   : > { %6367 = vmatprep.mubr.bf16.mxu0 %v24286_v13  ;;  %6939 = vmatpush1.bf16.msra.mxu0 %v18870_v33  ;;  %v18897_v33 = vld [vmem:[#allocation11 + $0x134] ss:$8 sps:$4 sm:$0xff]   ;;  %v18900_v13 = vld [vmem:[#allocation11 + $0x144] ss:$8 sps:$4 sm:$0xff]  }
 0x489   : > { %6940 = vmatprep.subr.bf16.mxu0 %v18875_v22  ;;  %v24302_v22 = vld [vmem:[#allocation93_spill] sm:$0xff]  ;;  %8890 = vmatprep.subr.bf16.mxu1 %v18897_v33  ;;  %v24318_v33 = vld [vmem:[#allocation110_spill] sm:$0xff] }
 0x48a   : > { %8891 = vmatpush1.bf16.msra.mxu1 %v18899_v21  ;;  %v24319_v21 = vld [vmem:[#allocation115_spill] sm:$0xff] }
 0x48b   : > { %8892 = vmatprep.subr.bf16.mxu1 %v18900_v13  ;;  %v24320_v13 = vld [vmem:[#allocation116_spill] sm:$0xff] }
 0x48c   : > { %6941 = vmatpush1.bf16.msra.mxu0 %v18873_v35  ;;  %v18902_v35 = vld [vmem:[#allocation11 + $0x140] ss:$8 sps:$4 sm:$0xff]  }
 0x48d   : > { %6942 = vmatprep.subr.bf16.mxu0 %v18878_v1  ;;  %v24303_v1 = vld [vmem:[#allocation94_spill] sm:$0xff] }
 0x48e   : > { %8893 = vmatpush1.bf16.msra.mxu1 %v18902_v35  ;;  %v1233_v35 = vsel %vm304_vm2, %v1167_v20, 0.0  ;;  %v23821_v20 = vsub.s32 0, %v24246_v2 }
 0x48f   : > { %6368 = vmatmul.mubr.bf16.gmra.mrb[24].mxu0 %v24287_v4  ;;  %v24305_v4 = vld [vmem:[#allocation96_spill] sm:$0xff] }
 0x490   : > { %6377 = vmatprep.mubr.bf16.mxu0 %v15055_v24  ;;  %6943 = vmatpush1.bf16.msra.mxu0 %v18876_v27  ;;  %v18903_v24 = vld [vmem:[#allocation11 + $0x154] ss:$8 sps:$4 sm:$0xff]   ;;  %v24304_v27 = vld [vmem:[#allocation95_spill] sm:$0xff] }
 0x491   : > { %6944 = vmatprep.subr.bf16.mxu0 %v18881_v36  ;;  %8894 = vmatprep.subr.bf16.mxu1 %v18903_v24  ;;  %v15111_v36 = vcombine.high %v15919_v8, %v24250_v15  ;;  %v24322_v24 = vld [vmem:[#allocation121_spill] sm:$0xff] }
 0x492   : > { %8895 = vmatpush1.bf16.msra.mxu1 %v18905_v5  ;;  %v23820_v5 = vsub.s32 1, %v24246_v2 }
 0x493   : > { %8896 = vmatprep.subr.bf16.mxu1 %v18906_v50  ;;  %v21736_v50 = vrot.slane %v7175_v7, %v23821_v20 }
 0x494   : > { %6945 = vmatpush1.bf16.msra.mxu0 %v18879_v48  ;;  %v18909_v48 = vld [vmem:[#allocation11 + $0x174] ss:$8 sps:$4 sm:$0xff]  }
 0x495   : > { %6946 = vmatprep.subr.bf16.mxu0 %v18884_v56  ;;  %v18911_v56 = vld [vmem:[#allocation11 + $0x170] ss:$8 sps:$4 sm:$0xff]  }
 0x496   : > { %8897 = vmatpush1.bf16.msra.mxu1 %v18908_v39 }
 0x497   : > { %6378 = vmatmul.mubr.bf16.gmra.mrb[28].mxu0 %v15054_v41  ;;  %v15110_v41 = vcombine.low %v15919_v8, %v24250_v15  ;;  %8898 = vmatprep.subr.bf16.mxu1 %v18909_v48 }
 0x498   : > { %6387 = vmatprep.mubr.bf16.mxu0 %v24288_v11  ;;  %6947 = vmatpush1.bf16.msra.mxu0 %v18882_v26  ;;  %v18912_v26 = vld [vmem:[#allocation11 + $0x184] ss:$8 sps:$4 sm:$0xff]   ;;  %v18915_v11 = vld [vmem:[#allocation11 + $0x194] ss:$8 sps:$4 sm:$0xff]  }
 0x499   : > { %6948 = vmatprep.subr.bf16.mxu0 %v18887_v59  ;;  %v18914_v59 = vld [vmem:[#allocation11 + $0x180] ss:$8 sps:$4 sm:$0xff]  }
 0x49a   : > { %8899 = vmatpush1.bf16.msra.mxu1 %v18911_v56 }
 0x49b   : > { %8900 = vmatprep.subr.bf16.mxu1 %v18912_v26 }
 0x49c   : > { %6949 = vmatpush1.bf16.msra.mxu0 %v18885_v30  ;;  %v24306_v30 = vld [vmem:[#allocation97_spill] sm:$0xff] }
 0x49e   : > { %8901 = vmatpush1.bf16.msra.mxu1 %v18914_v59 }
 0x49f   : > { %6388 = vmatmul.mubr.bf16.gmra.mrb[32].mxu0 %v24289_v28  ;;  %v18917_v28 = vld [vmem:[#allocation11 + $0x190] ss:$8 sps:$4 sm:$0xff]   ;;  %8902 = vmatprep.subr.bf16.mxu1 %v18915_v11 }
 0x4a0   : > { %6397 = vmatprep.mubr.bf16.mxu0 %v24290_v53  ;;  %v18918_v53 = vld [vmem:[#allocation11 + $0x1a4] ss:$8 sps:$4 sm:$0xff]  }
 0x4a2   : > { %8903 = vmatpush1.bf16.msra.mxu1 %v18917_v28 }
 0x4a3   : > { %8904 = vmatprep.subr.bf16.mxu1 %v18918_v53 }
 0x4a7   : > { %6398 = vmatmul.mubr.bf16.gmra.mrb[36].mxu0 %v24291_v16  ;;  %v18920_v16 = vld [vmem:[#allocation11 + $0x1a0] ss:$8 sps:$4 sm:$0xff]  }
 0x4a8   : > { %6407 = vmatprep.mubr.bf16.mxu0 %v24292_v61  ;;  %v24307_v61 = vld [vmem:[#allocation98_spill] sm:$0xff]  ;;  %8905 = vmatpush1.bf16.msra.mxu1 %v18920_v16 }
 0x4a9   : > { %8906 = vmatprep.subr.bf16.mxu1 %v18921_v43 }
 0x4af   : > { %6408 = vmatmul.mubr.bf16.gmra.mrb[40].mxu0 %v24293_v58  ;;  %v18923_v58 = vld [vmem:[#allocation11 + $0x1b0] ss:$8 sps:$4 sm:$0xff]  }
 0x4b0   : > { %6417 = vmatprep.mubr.bf16.mxu0 %v15063_v32  ;;  %v24308_v32 = vld [vmem:[#allocation99_spill] sm:$0xff]  ;;  %8907 = vmatpush1.bf16.msra.mxu1 %v18923_v58 }
 0x4b7   : > { %6418 = vmatmul.mubr.bf16.gmra.mrb[44].mxu0 %v15062_v60  ;;  %v18924_v60 = vld [vmem:[#allocation11 + $0x1c4] ss:$8 sps:$4 sm:$0xff]  }
 0x4b8   : > { %6427 = vmatprep.mubr.bf16.mxu0 %v24294_v9  ;;  %v1200_v9 = vsel %vm304_vm2, %v1134_v6, 0.0  ;;  %8908 = vmatprep.subr.bf16.mxu1 %v18924_v60  ;;  %v24311_v6 = vld [vmem:[#allocation100_spill] sm:$0xff] }
 0x4bf   : > { %6428 = vmatmul.mubr.bf16.gmra.mrb[48].mxu0 %v24295_v42  ;;  %v1201_v42 = vsel %vm304_vm2, %v1135_v0, 0.0 }
 0x4c0   : > { %6437 = vmatprep.mubr.bf16.mxu0 %v24296_v47  ;;  %v18926_v47 = vld [vmem:[#allocation11 + $0x1c0] ss:$8 sps:$4 sm:$0xff]   ;;  %v15927_v57 = vpack.c.bf16 %v1201_v42, %v1200_v9 }
 0x4c1   : > { %8909 = vmatpush1.bf16.msra.mxu1 %v18926_v47 }
 0x4c2   : > { %v15119_v38 = vcombine.high %v15927_v57, %v24250_v15  ;;  %v15118_v0 = vcombine.low %v15927_v57, %v24250_v15 }
 0x4c7   : > { %6438 = vmatmul.mubr.bf16.gmra.mrb[52].mxu0 %v24297_v44  ;;  %v24309_v44 = vld [vmem:[#allocation71_spill] sm:$0xff] }
 0x4c8   : > { %6447 = vmatprep.mubr.bf16.mxu0 %v24298_v63  ;;  %v18927_v63 = vld [vmem:[#allocation11 + $0x1d4] ss:$8 sps:$4 sm:$0xff]  }
 0x4c9   : > { %8910 = vmatprep.subr.bf16.mxu1 %v18927_v63 }
 0x4ca   : > { %8911 = vmatpush1.bf16.msra.mxu1 %v18929_v46 }
 0x4cb   : > { %8912 = vmatprep.subr.bf16.mxu1 %v18930_v49 }
 0x4ce   : > { %8913 = vmatpush1.bf16.msra.mxu1 %v18932_v40 }
 0x4cf   : > { %6448 = vmatmul.mubr.bf16.gmra.mrb[56].mxu0 %v24299_v62  ;;  %v24313_v62 = vld [vmem:[#allocation77_spill] sm:$0xff] }
 0x4d0   : > { %6457 = vmatprep.mubr.bf16.mxu0 %v15071_v14  ;;  %v24312_v14 = vld [vmem:[#allocation101_spill] sm:$0xff] }
 0x4d7   : > { %6458 = vmatmul.mubr.bf16.gmra.mrb[60].mxu0 %v15070_v54  ;;  %v24314_v54 = vld [vmem:[#allocation78_spill] sm:$0xff] }
 0x4d8   : > { %16620 = vmatprep.mubr.msk.bf16.mxu0 %vm20634_vm3, %v24300_v25  ;;  %v24316_v25 = vld [vmem:[#allocation105_spill] sm:$0xff] }
 0x4df   : > { %16623 = vmatmul.mubr.msk.bf16.vlgmr.msra.gmra.mrb[0].mxu0 %vm20634_vm3, %v24301_v31  ;;  %v18933_v31 = vld [vmem:[#allocation11 + $0x1f4] ss:$8 sps:$4 sm:$0xff]  }
 0x4e0   : > { %16626 = vmatprep.mubr.msk.bf16.mxu0 %vm20634_vm3, %v24302_v22  ;;  %v18935_v22 = vld [vmem:[#allocation11 + $0x1f0] ss:$8 sps:$4 sm:$0xff]   ;;  %8914 = vmatprep.subr.bf16.mxu1 %v18933_v31 }
 0x4e1   : > { %8915 = vmatpush1.bf16.msra.mxu1 %v18935_v22 }
 0x4e2   : > { %9397 = vmatprep.subr.bf16.mxu1 %v18938_v18 }
 0x4e7   : > { %16629 = vmatmul.mubr.msk.bf16.gmra.mrb[4].mxu0 %vm20634_vm3, %v24303_v1  ;;  %v24321_v1 = vld [vmem:[#allocation120_spill] sm:$0xff] }
 0x4e8   : > { %16632 = vmatprep.mubr.msk.bf16.mxu0 %vm20634_vm3, %v24304_v27  ;;  %v15943_v27 = vpack.c.bf16 %v1233_v35, %v1232_v51 }
 0x4ea   : > { %v15135_v8 = vcombine.high %v15943_v27, %v24250_v15  ;;  %v15134_v37 = vcombine.low %v15943_v27, %v24250_v15 }
 0x4ef   : > { %16635 = vmatmul.mubr.msk.bf16.gmra.mrb[8].mxu0 %vm20634_vm3, %v24305_v4 }
 0x4f0   : > { %6980 = vmatprep.mubr.bf16.mxu0 %v15111_v36  ;;  %v21740_v36 = vrot.slane %v7175_v7, %v23820_v5 }
 0x4f7   : > { %6981 = vmatmul.mubr.bf16.gmra.mrb[12].mxu0 %v15110_v41 }
 0x4f8   : > { %16638 = vmatprep.mubr.msk.bf16.mxu0 %vm20634_vm3, %v24306_v30 }
 0x4ff   : > { %16641 = vmatmul.mubr.msk.bf16.gmra.mrb[16].mxu0 %vm20634_vm3, %v24307_v61 }
 0x500   : > { %16644 = vmatprep.mubr.msk.bf16.mxu0 %vm20634_vm3, %v24308_v32 }
 0x507   : > { %16647 = vmatmul.mubr.msk.bf16.gmra.mrb[20].mxu0 %vm20634_vm3, %v24309_v44 }
 0x508   : > { %16650 = vmatprep.mubr.msk.bf16.mxu0 %vm20634_vm3, %v24310_v34 }
 0x50f   : > { %16653 = vmatmul.mubr.msk.bf16.gmra.mrb[24].mxu0 %vm20634_vm3, %v24311_v6  ;;  %v18936_v6 = vld [vmem:[#allocation11] ss:$8 sps:$4 sm:$0xff]  }
 0x510   : > { %7020 = vmatprep.mubr.bf16.mxu0 %v15119_v38 }
 0x517   : > { %7021 = vmatmul.mubr.bf16.gmra.mrb[28].mxu0 %v15118_v0 }
 0x518   : > { %16656 = vmatprep.mubr.msk.bf16.mxu0 %vm20634_vm3, %v24312_v14 }
 0x51f   : > { %16659 = vmatmul.mubr.msk.bf16.gmra.mrb[32].mxu0 %vm20634_vm3, %v24313_v62  ;;  %v18941_v62 = vld [vmem:[#allocation11 + $0x14] ss:$8 sps:$4 sm:$0xff]  }
 0x520   : > { %16662 = vmatprep.mubr.msk.bf16.mxu0 %vm20634_vm3, %v24314_v54 }
 0x527   : > { %16665 = vmatmul.mubr.msk.bf16.gmra.mrb[36].mxu0 %vm20634_vm3, %v24315_v55 }
 0x528   : > { %16668 = vmatprep.mubr.msk.bf16.mxu0 %vm20634_vm3, %v24316_v25 }
 0x52f   : > { %16671 = vmatmul.mubr.msk.bf16.gmra.mrb[40].mxu0 %vm20634_vm3, %v24317_v19 }
 0x530   : > { %7060 = vmatprep.mubr.bf16.mxu0 %v15127_v3 }
 0x537   : > { %7061 = vmatmul.mubr.bf16.gmra.mrb[44].mxu0 %v15126_v12 }
 0x538   : > { %16674 = vmatprep.mubr.msk.bf16.mxu0 %vm20634_vm3, %v24318_v33 }
 0x53f   : > { %16677 = vmatmul.mubr.msk.bf16.gmra.mrb[48].mxu0 %vm20634_vm3, %v24319_v21  ;;  %v18939_v21 = vld [vmem:[#allocation11 + $0x10] ss:$8 sps:$4 sm:$0xff]  }
 0x540   : > { %16680 = vmatprep.mubr.msk.bf16.mxu0 %vm20634_vm3, %v24320_v13 }
 0x547   : > { %16683 = vmatmul.mubr.msk.bf16.gmra.mrb[52].mxu0 %vm20634_vm3, %v24321_v1  ;;  %v18944_v1 = vld [vmem:[#allocation11 + $0x24] ss:$8 sps:$4 sm:$0xff]  }
 0x548   : > { %16686 = vmatprep.mubr.msk.bf16.mxu0 %vm20634_vm3, %v24322_v24 }
 0x54f   : > { %16689 = vmatmul.mubr.msk.bf16.gmra.mrb[56].mxu0 %vm20634_vm3, %v24323_v29 }
 0x550   : > { %7100 = vmatprep.mubr.bf16.mxu0 %v15135_v8 }
 0x557   : > { %7101 = vmatmul.mubr.bf16.gmra.mrb[60].mxu0 %v15134_v37 }
 0x5b2   : > { %v6952_v39 = vpop.f32.mrb[0].mxu0 }
 0x5b3   : > { %v7187_v4 = vadd.f32 %v21736_v50, %v6952_v39  ;;  %v6954_v48 = vpop.f32.mrb[1].mxu0 }
 0x5b4   : > { %v7188_v56 = vadd.f32 %v21740_v36, %v6954_v48  ;;  %v6956_v41 = vpop.f32.mrb[2].mxu0 }
 0x5b5   : > { %v21744_v26 = vmax.f32 %v7187_v4, 0.0  ;;  %v7189_v59 = vadd.f32 %v21736_v50, %v6956_v41  ;;  %v6958_v11 = vpop.f32.mrb[3].mxu0 }
 0x5b6   : > { %v21747_v30 = vmax.f32 %v7188_v56, 0.0  ;;  %v7190_v28 = vadd.f32 %v21740_v36, %v6958_v11 }
 0x5b7   : > { %24324 = vst [vmem:[#allocation22_spill] sm:$0xff] %v21744_v26  ;;  %v21750_v53 = vmax.f32 %v7189_v59, 0.0  ;;  %v7603_v16 = vrot.slane %v21744_v26, 7  ;;  %v8019_v61 = vrot.slane %v21744_v26, 1  ;;  %v18942_v59 = vld [vmem:[#allocation11 + $0x20] ss:$8 sps:$4 sm:$0xff]  }
 0x5b8   : > { %24325 = vst [vmem:[#allocation39_spill] sm:$0xff] %v21747_v30  ;;  %v21754_v43 = vmax.f32 %v7190_v28, 0.0  ;;  %v15944_v32 = vpack.c.bf16 %v21747_v30, %v21744_v26  ;;  %v7604_v58 = vrot.slane %v21747_v30, 7  ;;  %v8020_v60 = vrot.slane %v21747_v30, 1  ;;  %v18971_v26 = vld [vmem:[#allocation11 + $0xb4] ss:$8 sps:$4 sm:$0xff]  }
 0x5b9   : > { %24326 = vst [vmem:[#allocation43_spill] sm:$0xff] %v21750_v53  ;;  %v7605_v9 = vrot.slane %v21750_v53, 7  ;;  %v8021_v42 = vrot.slane %v21750_v53, 1  ;;  %v7667_v44 = vsel %vm303_vm0, %v7603_v16, 0.0  ;;  %v8083_v52 = vsel %vm304_vm2, %v8019_v61, 0.0 }
 0x5ba   : > { %24327 = vst [vmem:[#allocation40_spill] sm:$0xff] %v21754_v43  ;;  %v7606_v63 = vrot.slane %v21754_v43, 7  ;;  %v6962_v34 = vpop.f32.mrb[4].mxu0  ;;  %v15265_v57 = vcombine.high %v24250_v15, %v15944_v32  ;;  %v15264_v38 = vcombine.low %v24250_v15, %v15944_v32  ;;  %v7668_v54 = vsel %vm303_vm0, %v7604_v58, 0.0 }
 0x5bb   : > { %v7191_v0 = vadd.f32 %v21736_v50, %v6962_v34  ;;  %v6964_v14 = vpop.f32.mrb[5].mxu0  ;;  %v21772_v45 = vpack.c.bf16 %v7605_v9, %v7603_v16  ;;  %v21777_v10 = vpack.c.bf16 %v7668_v54, %v7667_v44  ;;  %v8084_v3 = vsel %vm304_vm2, %v8020_v60, 0.0 }
 0x5bc   : > { %v7192_v55 = vadd.f32 %v21740_v36, %v6964_v14  ;;  %v6966_v25 = vpop.f32.mrb[6].mxu0  ;;  %8916 = vmatprep.mubr.bf16.mxu1 %v15265_v57  ;;  %v21783_v19 = vpack.c.bf16 %v8021_v42, %v8019_v61  ;;  %v21788_v40 = vpack.c.bf16 %v8084_v3, %v8083_v52  ;;  %v21790_v31 = vpack.c.bf16 %v7606_v63, %v7604_v58  ;;  %v18947_v61 = vld [vmem:[#allocation11 + $0x34] ss:$8 sps:$4 sm:$0xff]  }
 0x5bd   : > { %24328 = vst [vmem:[#allocation46_spill] sm:$0xff] %v21772_v45  ;;  %v21785_v46 = vmax.f32 %v7191_v0, 0.0  ;;  %v7193_v12 = vadd.f32 %v21736_v50, %v6966_v25  ;;  %v6968_v49 = vpop.f32.mrb[7].mxu0  ;;  %8917 = vmatmul.mubr.bf16.vlgmr.msra.gmra.mrb[0].mxu1 %v15264_v38  ;;  %v8022_v37 = vrot.slane %v21754_v43, 1 }
 0x5be   : > { %24329 = vst [vmem:[#allocation45_spill] sm:$0xff] %v21783_v19  ;;  %24331 = vst [vmem:[#allocation47_spill] sm:$0xff] %v21790_v31  ;;  %v21792_v33 = vmax.f32 %v7192_v55, 0.0  ;;  %v7194_v22 = vadd.f32 %v21740_v36, %v6968_v49  ;;  %9398 = vmatpush1.bf16.msra.mxu1 %v18936_v6  ;;  %v18945_v55 = vld [vmem:[#allocation11 + $0x30] ss:$8 sps:$4 sm:$0xff]  }
 0x5bf   : > { %24330 = vst [vmem:[#allocation50_spill] sm:$0xff] %v21785_v46  ;;  %v7607_v13 = vrot.slane %v21785_v46, 7  ;;  %v8023_v18 = vrot.slane %v21785_v46, 1  ;;  %v21797_v51 = vmax.f32 %v7193_v12, 0.0  ;;  %v21801_v35 = vpack.c.bf16 %v21785_v46, %v21750_v53  ;;  %9399 = vmatprep.subr.bf16.mxu1 %v18941_v62  ;;  %v18960_v19 = vld [vmem:[#allocation11 + $0x80] ss:$8 sps:$4 sm:$0xff]  }
 0x5c0   : > { %24332 = vst [vmem:[#allocation51_spill] sm:$0xff] %v21792_v33  ;;  %v7608_v24 = vrot.slane %v21792_v33, 7  ;;  %v8024_v27 = vrot.slane %v21792_v33, 1  ;;  %v21805_v8 = vmax.f32 %v7194_v22, 0.0  ;;  %v21809_v29 = vpack.c.bf16 %v21792_v33, %v21754_v43  ;;  %v18966_v33 = vld [vmem:[#allocation11 + $0xa0] ss:$8 sps:$4 sm:$0xff]  }
 0x5c1   : > { %24333 = vst [vmem:[#allocation81_spill] sm:$0xff] %v21797_v51  ;;  %24334 = vst [vmem:[#allocation106_spill] sm:$0xff] %v21801_v35  ;;  %v7609_v7 = vrot.slane %v21797_v51, 7  ;;  %v21813_v39 = vpack.c.bf16 %v7607_v13, %v7605_v9  ;;  %v8025_v4 = vrot.slane %v21797_v51, 1  ;;  %v21824_v58 = vpack.c.bf16 %v8023_v18, %v8021_v42 }
 0x5c2   : > { %24335 = vst [vmem:[#allocation103_spill] sm:$0xff] %v21805_v8  ;;  %24336 = vst [vmem:[#allocation108_spill] sm:$0xff] %v21809_v29  ;;  %v7610_v48 = vrot.slane %v21805_v8, 7  ;;  %v8026_v56 = vrot.slane %v21805_v8, 1  ;;  %v6972_v41 = vpop.f32.mrb[8].mxu0  ;;  %8926 = vmatprep.mubr.bf16.mxu1 %v21809_v29  ;;  %9400 = vmatpush1.bf16.msra.mxu1 %v18939_v21  ;;  %v21819_v11 = vpack.c.bf16 %v7608_v24, %v7606_v63 }
 0x5c3   : > { %v7195_v28 = vadd.f32 %v21736_v50, %v6972_v41  ;;  %v6974_v16 = vpop.f32.mrb[9].mxu0  ;;  %9401 = vmatprep.subr.bf16.mxu1 %v18944_v1  ;;  %v21822_v32 = vpack.c.bf16 %v8024_v27, %v8022_v37  ;;  %v21826_v9 = vpack.c.bf16 %v7609_v7, %v7607_v13  ;;  %v21843_v62 = vpack.c.bf16 %v8022_v37, %v8020_v60  ;;  %v18950_v21 = vld [vmem:[#allocation11 + $0x44] ss:$8 sps:$4 sm:$0xff]  }
 0x5c4   : > { %v7196_v44 = vadd.f32 %v21740_v36, %v6974_v16  ;;  %v6976_v34 = vpop.f32.mrb[10].mxu0  ;;  %v21829_v57 = vpack.c.bf16 %v7610_v48, %v7608_v24  ;;  %v21848_v25 = vpack.c.bf16 %v8026_v56, %v8024_v27  ;;  %v21850_v3 = vpack.c.bf16 %v8025_v4, %v8023_v18 }
 0x5c5   : > { %24337 = vst [vmem:[#allocation102_spill] sm:$0xff] %v21826_v9  ;;  %v21835_v6 = vmax.f32 %v7195_v28, 0.0  ;;  %v7197_v0 = vadd.f32 %v21736_v50, %v6976_v34  ;;  %v6978_v14 = vpop.f32.mrb[11].mxu0  ;;  %8927 = vmatmul.mubr.bf16.gmra.mrb[4].mxu1 %v21801_v35  ;;  %24340 = vst [vmem:[#allocation113_spill] sm:$0xff] %v21843_v62 }
 0x5c6   : > { %24338 = vst [vmem:[#allocation111_spill] sm:$0xff] %v21829_v57  ;;  %v21845_v54 = vmax.f32 %v7196_v44, 0.0  ;;  %v7198_v52 = vadd.f32 %v21740_v36, %v6978_v14  ;;  %9402 = vmatpush1.bf16.msra.mxu1 %v18942_v59  ;;  %24342 = vst [vmem:[#allocation114_spill] sm:$0xff] %v21848_v25  ;;  %v18948_v44 = vld [vmem:[#allocation11 + $0x40] ss:$8 sps:$4 sm:$0xff]  }
 0x5c7   : > { %24339 = vst [vmem:[#allocation109_spill] sm:$0xff] %v21835_v6  ;;  %24343 = vst [vmem:[#allocation123_spill] sm:$0xff] %v21850_v3  ;;  %v7611_v12 = vrot.slane %v21835_v6, 7  ;;  %v8027_v49 = vrot.slane %v21835_v6, 1  ;;  %v21854_v22 = vmax.f32 %v7197_v0, 0.0  ;;  %v21858_v60 = vpack.c.bf16 %v21835_v6, %v21797_v51  ;;  %9403 = vmatprep.subr.bf16.mxu1 %v18947_v61 }
 0x5c8   : > { %24341 = vst [vmem:[#allocation112_spill] sm:$0xff] %v21845_v54  ;;  %v7612_v13 = vrot.slane %v21845_v54, 7  ;;  %v8028_v1 = vrot.slane %v21845_v54, 1  ;;  %v21862_v24 = vmax.f32 %v7198_v52, 0.0  ;;  %v21866_v18 = vpack.c.bf16 %v21845_v54, %v21805_v8 }
 0x5c9   : > { %24344 = vst [vmem:[#allocation54_spill] sm:$0xff] %v21854_v22  ;;  %24345 = vst [vmem:[#allocation56_spill] sm:$0xff] %v21858_v60  ;;  %v7613_v27 = vrot.slane %v21854_v22, 7  ;;  %v8029_v37 = vrot.slane %v21854_v22, 1  ;;  %v21870_v41 = vpack.c.bf16 %v7611_v12, %v7609_v7  ;;  %v21872_v59 = vpack.c.bf16 %v8027_v49, %v8025_v4  ;;  %v18953_v7 = vld [vmem:[#allocation11 + $0x54] ss:$8 sps:$4 sm:$0xff]  }
 0x5ca   : > { %24346 = vst [vmem:[#allocation59_spill] sm:$0xff] %v21862_v24  ;;  %24347 = vst [vmem:[#allocation60_spill] sm:$0xff] %v21866_v18  ;;  %v7614_v28 = vrot.slane %v21862_v24, 7  ;;  %v8030_v16 = vrot.slane %v21862_v24, 1  ;;  %v6982_v61 = vpop.f32.mrb[12].mxu0  ;;  %8936 = vmatprep.mubr.bf16.mxu1 %v21866_v18  ;;  %9404 = vmatpush1.bf16.msra.mxu1 %v18945_v55  ;;  %v21877_v34 = vpack.c.bf16 %v7612_v13, %v7610_v48 }
 0x5cb   : > { %24348 = vst [vmem:[#allocation64_spill] sm:$0xff] %v21872_v59  ;;  %v21879_v0 = vpack.c.bf16 %v8028_v1, %v8026_v56  ;;  %v7199_v14 = vadd.f32 %v21736_v50, %v6982_v61  ;;  %v6984_v52 = vpop.f32.mrb[13].mxu0  ;;  %9405 = vmatprep.subr.bf16.mxu1 %v18950_v21  ;;  %v21882_v4 = vpack.c.bf16 %v7613_v27, %v7611_v12 }
 0x5cc   : > { %v7200_v55 = vadd.f32 %v21740_v36, %v6984_v52  ;;  %v6986_v42 = vpop.f32.mrb[14].mxu0  ;;  %v21889_v48 = vpack.c.bf16 %v7614_v28, %v7612_v13  ;;  %v21891_v56 = vpack.c.bf16 %v8030_v16, %v8028_v1  ;;  %v21893_v38 = vpack.c.bf16 %v8029_v37, %v8027_v49  ;;  %v18951_v52 = vld [vmem:[#allocation11 + $0x50] ss:$8 sps:$4 sm:$0xff]  }
 0x5cd   : > { %24349 = vst [vmem:[#allocation61_spill] sm:$0xff] %v21879_v0  ;;  %24350 = vst [vmem:[#allocation69_spill] sm:$0xff] %v21882_v4  ;;  %v21895_v61 = vmax.f32 %v7199_v14, 0.0  ;;  %v7201_v12 = vadd.f32 %v21736_v50, %v6986_v42  ;;  %v6988_v21 = vpop.f32.mrb[15].mxu0  ;;  %8937 = vmatmul.mubr.bf16.gmra.mrb[8].mxu1 %v21858_v60  ;;  %v18956_v42 = vld [vmem:[#allocation11 + $0x64] ss:$8 sps:$4 sm:$0xff]  }
 0x5ce   : > { %24351 = vst [vmem:[#allocation70_spill] sm:$0xff] %v21889_v48  ;;  %24352 = vst [vmem:[#allocation118_spill] sm:$0xff] %v21891_v56  ;;  %v21899_v5 = vmax.f32 %v7200_v55, 0.0  ;;  %v7202_v20 = vadd.f32 %v21740_v36, %v6988_v21  ;;  %9406 = vmatpush1.bf16.msra.mxu1 %v18948_v44  ;;  %v18959_v56 = vld [vmem:[#allocation11 + $0x74] ss:$8 sps:$4 sm:$0xff]  }
 0x5cf   : > { %24353 = vst [vmem:[#allocation117_spill] sm:$0xff] %v21893_v38  ;;  %24354 = vst [vmem:[#allocation122_spill] sm:$0xff] %v21895_v61  ;;  %v7615_v13 = vrot.slane %v21895_v61, 7  ;;  %v23826_v1 = vrot.slane %v21895_v61, 1  ;;  %v21904_v47 = vmax.f32 %v7201_v12, 0.0  ;;  %v21908_v49 = vpack.c.bf16 %v21895_v61, %v21854_v22  ;;  %9407 = vmatprep.subr.bf16.mxu1 %v18953_v7 }
 0x5d0   : > { %24355 = vst [vmem:[#allocation119_spill] sm:$0xff] %v21899_v5  ;;  %v7616_v14 = vrot.slane %v21899_v5, 7  ;;  %v21912_v63 = vmax.f32 %v7202_v20, 0.0  ;;  %v21916_v44 = vpack.c.bf16 %v21899_v5, %v21862_v24  ;;  %v18954_v20 = vld [vmem:[#allocation11 + $0x60] ss:$8 sps:$4 sm:$0xff]   ;;  %v24361_v35 = vrot.slane %v21899_v5, 1 }
 0x5d1   : > { %24356 = vst [vmem:[#allocation55_spill] sm:$0xff] %v21904_v47  ;;  %24357 = vst [vmem:[#allocation53_spill] sm:$0xff] %v21908_v49  ;;  %v7617_v21 = vrot.slane %v21904_v47, 7  ;;  %v21919_v12 = vpack.c.bf16 %v7615_v13, %v7613_v27  ;;  %v21923_v60 = vpack.c.bf16 %v23826_v1, %v8029_v37  ;;  %v18962_v1 = vld [vmem:[#allocation11 + $0x84] ss:$8 sps:$4 sm:$0xff]  }
 0x5d2   : > { %24358 = vst [vmem:[#allocation57_spill] sm:$0xff] %v21912_v63  ;;  %24359 = vst [vmem:[#allocation58_spill] sm:$0xff] %v21916_v44  ;;  %v7618_v7 = vrot.slane %v21912_v63, 7  ;;  %v6992_v18 = vpop.f32.mrb[16].mxu0  ;;  %8946 = vmatprep.mubr.bf16.mxu1 %v21916_v44  ;;  %9408 = vmatpush1.bf16.msra.mxu1 %v18951_v52  ;;  %v21927_v55 = vpack.c.bf16 %v7616_v14, %v7614_v28  ;;  %v21931_v29 = vpack.c.bf16 %v24361_v35, %v8030_v16  ;;  %v18965_v61 = vld [vmem:[#allocation11 + $0x94] ss:$8 sps:$4 sm:$0xff]  }
 0x5d3   : > { %24360 = vst [vmem:[#allocation62_spill] sm:$0xff] %v21923_v60  ;;  %v7203_v27 = vadd.f32 %v21736_v50, %v6992_v18  ;;  %v6994_v38 = vpop.f32.mrb[17].mxu0  ;;  %9409 = vmatprep.subr.bf16.mxu1 %v18956_v42  ;;  %v21934_v37 = vpack.c.bf16 %v7617_v21, %v7615_v13  ;;  %v21949_v13 = vpack.c.bf16 %v21912_v63, %v21904_v47 }
 0x5d4   : > { %24362 = vst [vmem:[#allocation63_spill] sm:$0xff] %v21931_v29  ;;  %v7204_v28 = vadd.f32 %v21740_v36, %v6994_v38  ;;  %v6996_v44 = vpop.f32.mrb[18].mxu0  ;;  %v21941_v3 = vpack.c.bf16 %v7618_v7, %v7616_v14  ;;  %v18957_v38 = vld [vmem:[#allocation11 + $0x70] ss:$8 sps:$4 sm:$0xff]   ;;  %v7681_v14 = vsel %vm303_vm0, %v7617_v21, 0.0 }
 0x5d5   : > { %24363 = vst [vmem:[#allocation65_spill] sm:$0xff] %v21934_v37  ;;  %v21943_v35 = vmax.f32 %v7203_v27, 0.0  ;;  %v7205_v18 = vadd.f32 %v21736_v50, %v6996_v44  ;;  %v6998_v16 = vpop.f32.mrb[19].mxu0  ;;  %8947 = vmatmul.mubr.bf16.gmra.mrb[12].mxu1 %v21908_v49  ;;  %24366 = vst [vmem:[#allocation68_spill] sm:$0xff] %v21949_v13  ;;  %v7682_v27 = vsel %vm303_vm0, %v7618_v7, 0.0 }
 0x5d6   : > { %24364 = vst [vmem:[#allocation66_spill] sm:$0xff] %v21941_v3  ;;  %v21951_v42 = vmax.f32 %v7204_v28, 0.0  ;;  %v7206_v52 = vadd.f32 %v21740_v36, %v6998_v16  ;;  %9410 = vmatpush1.bf16.msra.mxu1 %v18954_v20  ;;  %v21962_v28 = vpack.c.bf16 %v7682_v27, %v7681_v14 }
 0x5d7   : > { %24365 = vst [vmem:[#allocation67_spill] sm:$0xff] %v21943_v35  ;;  %v21958_v44 = vmax.f32 %v7205_v18, 0.0  ;;  %9411 = vmatprep.subr.bf16.mxu1 %v18959_v56  ;;  %v7619_v49 = vrot.slane %v21943_v35, 7  ;;  %v23837_v13 = vrot.slane %v21943_v35, 1 }
 0x5d8   : > { %24367 = vst [vmem:[#allocation73_spill] sm:$0xff] %v21951_v42  ;;  %24369 = vst [vmem:[#allocation75_spill] sm:$0xff] %v21962_v28  ;;  %v21964_v25 = vmax.f32 %v7206_v52, 0.0  ;;  %v15952_v20 = vpack.c.bf16 %v21951_v42, %v21943_v35  ;;  %v7620_v21 = vrot.slane %v21951_v42, 7  ;;  %v24371_v5 = vrot.slane %v21951_v42, 1 }
 0x5d9   : > { %24368 = vst [vmem:[#allocation74_spill] sm:$0xff] %v21958_v44  ;;  %v7621_v7 = vrot.slane %v21958_v44, 7  ;;  %v7683_v56 = vsel %vm303_vm0, %v7619_v49, 0.0  ;;  %v8099_v18 = vsel %vm304_vm2, %v23837_v13, 0.0 }
 0x5da   : > { %24370 = vst [vmem:[#allocation76_spill] sm:$0xff] %v21964_v25  ;;  %v7622_v52 = vrot.slane %v21964_v25, 7  ;;  %v7002_v14 = vpop.f32.mrb[20].mxu0  ;;  %v15273_v27 = vcombine.high %v24250_v15, %v15952_v20  ;;  %v15272_v28 = vcombine.low %v24250_v15, %v15952_v20  ;;  %9412 = vmatpush1.bf16.msra.mxu1 %v18957_v38  ;;  %v7684_v47 = vsel %vm303_vm0, %v7620_v21, 0.0 }
 0x5db   : > { %v7207_v16 = vadd.f32 %v21736_v50, %v7002_v14  ;;  %v7004_v62 = vpop.f32.mrb[21].mxu0  ;;  %9413 = vmatprep.subr.bf16.mxu1 %v18962_v1  ;;  %v8100_v13 = vsel %vm304_vm2, %v24371_v5, 0.0  ;;  %v21987_v63 = vpack.c.bf16 %v7621_v7, %v7619_v49  ;;  %v21990_v38 = vpack.c.bf16 %v7684_v47, %v7683_v56 }
 0x5dc   : > { %v7208_v6 = vadd.f32 %v21740_v36, %v7004_v62  ;;  %v7006_v20 = vpop.f32.mrb[22].mxu0  ;;  %8956 = vmatprep.mubr.bf16.mxu1 %v15273_v27  ;;  %v21992_v14 = vpack.c.bf16 %v8100_v13, %v8099_v18  ;;  %v21994_v1 = vpack.c.bf16 %v7622_v52, %v7620_v21  ;;  %v18963_v13 = vld [vmem:[#allocation11 + $0x90] ss:$8 sps:$4 sm:$0xff]   ;;  %v18968_v18 = vld [vmem:[#allocation11 + $0xa4] ss:$8 sps:$4 sm:$0xff]  }
 0x5dd   : > { %24372 = vst [vmem:[#allocation79_spill] sm:$0xff] %v21987_v63  ;;  %v21996_v22 = vmax.f32 %v7207_v16, 0.0  ;;  %v7209_v54 = vadd.f32 %v21736_v50, %v7006_v20  ;;  %v7008_v24 = vpop.f32.mrb[23].mxu0  ;;  %8957 = vmatmul.mubr.bf16.gmra.mrb[16].mxu1 %v15272_v28 }
 0x5de   : > { %24373 = vst [vmem:[#allocation80_spill] sm:$0xff] %v21992_v14  ;;  %24374 = vst [vmem:[#allocation82_spill] sm:$0xff] %v21994_v1  ;;  %v22003_v49 = vmax.f32 %v7208_v6, 0.0  ;;  %v7210_v47 = vadd.f32 %v21740_v36, %v7008_v24  ;;  %9414 = vmatpush1.bf16.msra.mxu1 %v18960_v19  ;;  %v8037_v24 = vrot.slane %v21958_v44, 1 }
 0x5df   : > { %24375 = vst [vmem:[#allocation83_spill] sm:$0xff] %v21996_v22  ;;  %v7623_v21 = vrot.slane %v21996_v22, 7  ;;  %v8039_v16 = vrot.slane %v21996_v22, 1  ;;  %v22008_v56 = vmax.f32 %v7209_v54, 0.0  ;;  %v22012_v28 = vpack.c.bf16 %v21996_v22, %v21958_v44  ;;  %9415 = vmatprep.subr.bf16.mxu1 %v18965_v61 }
 0x5e0   : > { %24376 = vst [vmem:[#allocation84_spill] sm:$0xff] %v22003_v49  ;;  %v7624_v27 = vrot.slane %v22003_v49, 7  ;;  %v8040_v6 = vrot.slane %v22003_v49, 1  ;;  %v22016_v20 = vmax.f32 %v7210_v47, 0.0  ;;  %v22020_v19 = vpack.c.bf16 %v22003_v49, %v21964_v25 }
 0x5e1   : > { %24377 = vst [vmem:[#allocation85_spill] sm:$0xff] %v22008_v56  ;;  %24378 = vst [vmem:[#allocation86_spill] sm:$0xff] %v22012_v28  ;;  %v8038_v54 = vrot.slane %v21964_v25, 1  ;;  %v7625_v62 = vrot.slane %v22008_v56, 7  ;;  %v22025_v5 = vpack.c.bf16 %v7623_v21, %v7621_v7  ;;  %v8041_v61 = vrot.slane %v22008_v56, 1 }
 0x5e2   : > { %24379 = vst [vmem:[#allocation87_spill] sm:$0xff] %v22016_v20  ;;  %24380 = vst [vmem:[#allocation88_spill] sm:$0xff] %v22020_v19  ;;  %v7626_v46 = vrot.slane %v22016_v20, 7  ;;  %v8042_v51 = vrot.slane %v22016_v20, 1  ;;  %v7012_v47 = vpop.f32.mrb[24].mxu0  ;;  %8966 = vmatprep.mubr.bf16.mxu1 %v22020_v19  ;;  %9416 = vmatpush1.bf16.msra.mxu1 %v18963_v13  ;;  %v22031_v8 = vpack.c.bf16 %v7624_v27, %v7622_v52 }
 0x5e3   : > { %v7211_v44 = vadd.f32 %v21736_v50, %v7012_v47  ;;  %v7014_v25 = vpop.f32.mrb[25].mxu0  ;;  %9417 = vmatprep.subr.bf16.mxu1 %v18968_v18  ;;  %v22034_v7 = vpack.c.bf16 %v8040_v6, %v8038_v54  ;;  %v22036_v53 = vpack.c.bf16 %v8039_v16, %v8037_v24  ;;  %v22038_v30 = vpack.c.bf16 %v7625_v62, %v7623_v21 }
 0x5e4   : > { %v7212_v43 = vadd.f32 %v21740_v36, %v7014_v25  ;;  %v7016_v63 = vpop.f32.mrb[26].mxu0  ;;  %v22041_v1 = vpack.c.bf16 %v7626_v46, %v7624_v27  ;;  %v24386_v21 = vrot.slane %v21951_v42, 1  ;;  %v24388_v25 = vrot.slane %v21943_v35, 1 }
 0x5e5   : > { %24381 = vst [vmem:[#allocation89_spill] sm:$0xff] %v22034_v7  ;;  %24382 = vst [vmem:[#allocation90_spill] sm:$0xff] %v22036_v53  ;;  %v22047_v47 = vmax.f32 %v7211_v44, 0.0  ;;  %v7213_v18 = vadd.f32 %v21736_v50, %v7016_v63  ;;  %v7018_v19 = vpop.f32.mrb[27].mxu0  ;;  %8967 = vmatmul.mubr.bf16.gmra.mrb[20].mxu1 %v22012_v28  ;;  %v18969_v44 = vld [vmem:[#allocation11 + $0xb0] ss:$8 sps:$4 sm:$0xff]   ;;  %v22062_v13 = vpack.c.bf16 %v8042_v51, %v8040_v6 }
 0x5e6   : > { %24383 = vst [vmem:[#allocation19_spill] sm:$0xff] %v22038_v30  ;;  %24384 = vst [vmem:[#allocation20_spill] sm:$0xff] %v22041_v1  ;;  %v22053_v30 = vpack.c.bf16 %v8038_v54, %v24386_v21  ;;  %v22057_v27 = vpack.c.bf16 %v8037_v24, %v24388_v25  ;;  %v22059_v1 = vmax.f32 %v7212_v43, 0.0  ;;  %v7214_v52 = vadd.f32 %v21740_v36, %v7018_v19  ;;  %v18974_v43 = vld [vmem:[#allocation11 + $0xc4] ss:$8 sps:$4 sm:$0xff]  }
 0x5e7   : > { %24385 = vst [vmem:[#allocation21_spill] sm:$0xff] %v22047_v47  ;;  %9418 = vmatpush1.bf16.msra.mxu1 %v18966_v33  ;;  %24391 = vst [vmem:[#allocation26_spill] sm:$0xff] %v22062_v13  ;;  %v22064_v63 = vpack.c.bf16 %v8041_v61, %v8039_v16  ;;  %v7627_v28 = vrot.slane %v22047_v47, 7  ;;  %v8043_v22 = vrot.slane %v22047_v47, 1  ;;  %v22068_v54 = vmax.f32 %v7213_v18, 0.0 }
 0x5e8   : > { %24387 = vst [vmem:[#allocation23_spill] sm:$0xff] %v22053_v30  ;;  %24389 = vst [vmem:[#allocation24_spill] sm:$0xff] %v22057_v27  ;;  %v22072_v24 = vpack.c.bf16 %v22047_v47, %v22008_v56  ;;  %9419 = vmatprep.subr.bf16.mxu1 %v18971_v26  ;;  %v7628_v19 = vrot.slane %v22059_v1, 7  ;;  %v8044_v33 = vrot.slane %v22059_v1, 1  ;;  %v22076_v6 = vmax.f32 %v7214_v52, 0.0 }
 0x5e9   : > { %24390 = vst [vmem:[#allocation25_spill] sm:$0xff] %v22059_v1  ;;  %24392 = vst [vmem:[#allocation27_spill] sm:$0xff] %v22064_v63  ;;  %v22080_v16 = vpack.c.bf16 %v22059_v1, %v22016_v20  ;;  %v7629_v21 = vrot.slane %v22068_v54, 7  ;;  %v8045_v18 = vrot.slane %v22068_v54, 1  ;;  %v22084_v25 = vpack.c.bf16 %v7627_v28, %v7625_v62  ;;  %v18972_v52 = vld [vmem:[#allocation11 + $0xc0] ss:$8 sps:$4 sm:$0xff]  }
 0x5ea   : > { %24393 = vst [vmem:[#allocation28_spill] sm:$0xff] %v22068_v54  ;;  %24394 = vst [vmem:[#allocation29_spill] sm:$0xff] %v22072_v24  ;;  %v22086_v63 = vpack.c.bf16 %v8043_v22, %v8041_v61  ;;  %v7630_v26 = vrot.slane %v22076_v6, 7  ;;  %v8046_v13 = vrot.slane %v22076_v6, 1  ;;  %v7022_v27 = vpop.f32.mrb[28].mxu0  ;;  %v22091_v30 = vpack.c.bf16 %v7628_v19, %v7626_v46 }
 0x5eb   : > { %24395 = vst [vmem:[#allocation30_spill] sm:$0xff] %v22076_v6  ;;  %24396 = vst [vmem:[#allocation31_spill] sm:$0xff] %v22080_v16  ;;  %8976 = vmatprep.mubr.bf16.mxu1 %v22080_v16  ;;  %9420 = vmatpush1.bf16.msra.mxu1 %v18969_v44  ;;  %v22093_v56 = vpack.c.bf16 %v8044_v33, %v8042_v51  ;;  %v7215_v49 = vadd.f32 %v21736_v50, %v7022_v27  ;;  %v7024_v20 = vpop.f32.mrb[29].mxu0  ;;  %v18977_v62 = vld [vmem:[#allocation11 + $0xd4] ss:$8 sps:$4 sm:$0xff]  }
 0x5ec   : > { %24397 = vst [vmem:[#allocation32_spill] sm:$0xff] %v22086_v63  ;;  %9421 = vmatprep.subr.bf16.mxu1 %v18974_v43  ;;  %v22096_v61 = vpack.c.bf16 %v7629_v21, %v7627_v28  ;;  %v7216_v44 = vadd.f32 %v21740_v36, %v7024_v20  ;;  %v7026_v16 = vpop.f32.mrb[30].mxu0  ;;  %v22103_v46 = vpack.c.bf16 %v7630_v26, %v7628_v19  ;;  %v18975_v20 = vld [vmem:[#allocation11 + $0xd0] ss:$8 sps:$4 sm:$0xff]  }
 0x5ed   : > { %24398 = vst [vmem:[#allocation33_spill] sm:$0xff] %v22093_v56  ;;  %v22105_v51 = vpack.c.bf16 %v8046_v13, %v8044_v33  ;;  %v22107_v37 = vpack.c.bf16 %v8045_v18, %v8043_v22  ;;  %v22109_v27 = vmax.f32 %v7215_v49, 0.0  ;;  %v7217_v28 = vadd.f32 %v21736_v50, %v7026_v16  ;;  %v7028_v43 = vpop.f32.mrb[31].mxu0  ;;  %8977 = vmatmul.mubr.bf16.gmra.mrb[24].mxu1 %v22072_v24  ;;  %v18980_v49 = vld [vmem:[#allocation11 + $0xe4] ss:$8 sps:$4 sm:$0xff]  }
 0x5ee   : > { %24399 = vst [vmem:[#allocation34_spill] sm:$0xff] %v22096_v61  ;;  %24400 = vst [vmem:[#allocation35_spill] sm:$0xff] %v22103_v46  ;;  %v22113_v35 = vmax.f32 %v7216_v44, 0.0  ;;  %v7218_v42 = vadd.f32 %v21740_v36, %v7028_v43  ;;  %v18983_v61 = vld [vmem:[#allocation11 + $0xf4] ss:$8 sps:$4 sm:$0xff]  }
 0x5ef   : > { %24401 = vst [vmem:[#allocation36_spill] sm:$0xff] %v22105_v51  ;;  %24402 = vst [vmem:[#allocation37_spill] sm:$0xff] %v22107_v37  ;;  %9422 = vmatpush1.bf16.msra.mxu1 %v18972_v52  ;;  %v7631_v19 = vrot.slane %v22109_v27, 7  ;;  %v23868_v33 = vrot.slane %v22109_v27, 1  ;;  %v22118_v51 = vmax.f32 %v7217_v28, 0.0  ;;  %v22122_v22 = vpack.c.bf16 %v22109_v27, %v22068_v54 }
 0x5f0   : > { %24403 = vst [vmem:[#allocation38_spill] sm:$0xff] %v22109_v27  ;;  %24404 = vst [vmem:[#allocation41_spill] sm:$0xff] %v22113_v35  ;;  %9423 = vmatprep.subr.bf16.mxu1 %v18977_v62  ;;  %v7632_v16 = vrot.slane %v22113_v35, 7  ;;  %v22126_v24 = vmax.f32 %v7218_v42, 0.0  ;;  %v22130_v52 = vpack.c.bf16 %v22113_v35, %v22076_v6  ;;  %v18978_v42 = vld [vmem:[#allocation11 + $0xe0] ss:$8 sps:$4 sm:$0xff]  }
 0x5f1   : > { %24405 = vst [vmem:[#allocation42_spill] sm:$0xff] %v22118_v51  ;;  %24406 = vst [vmem:[#allocation48_spill] sm:$0xff] %v22122_v22  ;;  %v7633_v43 = vrot.slane %v22118_v51, 7  ;;  %v22133_v28 = vpack.c.bf16 %v7631_v19, %v7629_v21  ;;  %v22137_v37 = vpack.c.bf16 %v23868_v33, %v8045_v18  ;;  %v24410_v54 = vrot.slane %v22113_v35, 1  ;;  %v18986_v33 = vld [vmem:[#allocation11 + $0x204] ss:$8 sps:$4 sm:$0xff]  }
 0x5f2   : > { %24407 = vst [vmem:[#allocation49_spill] sm:$0xff] %v22126_v24  ;;  %24408 = vst [vmem:[#allocation52_spill] sm:$0xff] %v22130_v52  ;;  %v7634_v62 = vrot.slane %v22126_v24, 7  ;;  %v7032_v47 = vpop.f32.mrb[32].mxu0  ;;  %8986 = vmatprep.mubr.bf16.mxu1 %v22130_v52  ;;  %v22141_v44 = vpack.c.bf16 %v7632_v16, %v7630_v26 }
 0x5f3   : > { %24409 = vst [vmem:[#allocation91_spill] sm:$0xff] %v22137_v37  ;;  %9424 = vmatpush1.bf16.msra.mxu1 %v18975_v20  ;;  %v22145_v1 = vpack.c.bf16 %v24410_v54, %v8046_v13  ;;  %v7219_v21 = vadd.f32 %v21736_v50, %v7032_v47  ;;  %v7034_v6 = vpop.f32.mrb[33].mxu0  ;;  %v22148_v18 = vpack.c.bf16 %v7633_v43, %v7631_v19 }
 0x5f4   : > { %9425 = vmatprep.subr.bf16.mxu1 %v18980_v49  ;;  %v7220_v26 = vadd.f32 %v21740_v36, %v7034_v6  ;;  %v7036_v52 = vpop.f32.mrb[34].mxu0  ;;  %v22155_v46 = vpack.c.bf16 %v7634_v62, %v7632_v16  ;;  %v22163_v19 = vpack.c.bf16 %v22126_v24, %v22118_v51  ;;  %v18981_v6 = vld [vmem:[#allocation11 + $0xf0] ss:$8 sps:$4 sm:$0xff]   ;;  %v7697_v16 = vsel %vm303_vm0, %v7633_v43, 0.0 }
 0x5f5   : > { %24411 = vst [vmem:[#allocation92_spill] sm:$0xff] %v22145_v1  ;;  %24412 = vst [vmem:[#allocation93_spill] sm:$0xff] %v22148_v18  ;;  %v22157_v13 = vmax.f32 %v7219_v21, 0.0  ;;  %v7221_v47 = vadd.f32 %v21736_v50, %v7036_v52  ;;  %v7038_v54 = vpop.f32.mrb[35].mxu0  ;;  %8987 = vmatmul.mubr.bf16.gmra.mrb[28].mxu1 %v22122_v22  ;;  %v7698_v21 = vsel %vm303_vm0, %v7634_v62, 0.0 }
 0x5f6   : > { %24413 = vst [vmem:[#allocation94_spill] sm:$0xff] %v22155_v46  ;;  %24415 = vst [vmem:[#allocation96_spill] sm:$0xff] %v22163_v19  ;;  %v22165_v49 = vmax.f32 %v7220_v26, 0.0  ;;  %v7222_v20 = vadd.f32 %v21740_v36, %v7038_v54  ;;  %v22176_v26 = vpack.c.bf16 %v7698_v21, %v7697_v16 }
 0x5f7   : > { %24414 = vst [vmem:[#allocation95_spill] sm:$0xff] %v22157_v13  ;;  %9426 = vmatpush1.bf16.msra.mxu1 %v18978_v42  ;;  %v22172_v52 = vmax.f32 %v7221_v47, 0.0  ;;  %v7635_v22 = vrot.slane %v22157_v13, 7  ;;  %v23881_v19 = vrot.slane %v22157_v13, 1 }
 0x5f8   : > { %24416 = vst [vmem:[#allocation97_spill] sm:$0xff] %v22165_v49  ;;  %9427 = vmatprep.subr.bf16.mxu1 %v18983_v61  ;;  %24418 = vst [vmem:[#allocation99_spill] sm:$0xff] %v22176_v26  ;;  %v22178_v27 = vmax.f32 %v7222_v20, 0.0  ;;  %v15960_v42 = vpack.c.bf16 %v22165_v49, %v22157_v13  ;;  %v7636_v43 = vrot.slane %v22165_v49, 7  ;;  %v8052_v54 = vrot.slane %v22165_v49, 1 }
 0x5f9   : > { %24417 = vst [vmem:[#allocation98_spill] sm:$0xff] %v22172_v52  ;;  %v7637_v62 = vrot.slane %v22172_v52, 7  ;;  %v7699_v61 = vsel %vm303_vm0, %v7635_v22, 0.0  ;;  %v8115_v47 = vsel %vm304_vm2, %v23881_v19, 0.0 }
 0x5fa   : > { %24419 = vst [vmem:[#allocation71_spill] sm:$0xff] %v22178_v27  ;;  %v7638_v20 = vrot.slane %v22178_v27, 7  ;;  %v7042_v16 = vpop.f32.mrb[36].mxu0  ;;  %v15281_v21 = vcombine.high %v24250_v15, %v15960_v42  ;;  %v15280_v26 = vcombine.low %v24250_v15, %v15960_v42  ;;  %v7700_v24 = vsel %vm303_vm0, %v7636_v43, 0.0 }
 0x5fb   : > { %9428 = vmatpush1.bf16.msra.mxu1 %v18981_v6  ;;  %v7223_v51 = vadd.f32 %v21736_v50, %v7042_v16  ;;  %v7044_v35 = vpop.f32.mrb[37].mxu0  ;;  %v8116_v18 = vsel %vm304_vm2, %v8052_v54, 0.0  ;;  %v22199_v46 = vpack.c.bf16 %v7637_v62, %v7635_v22  ;;  %v22202_v4 = vpack.c.bf16 %v7700_v24, %v7699_v61 }
 0x5fc   : > { %9975 = vmatprep.subr.bf16.mxu1 %v18986_v33  ;;  %v7224_v19 = vadd.f32 %v21740_v36, %v7044_v35  ;;  %v7046_v3 = vpop.f32.mrb[38].mxu0  ;;  %8996 = vmatprep.mubr.bf16.mxu1 %v15281_v21  ;;  %v22204_v42 = vpack.c.bf16 %v8116_v18, %v8115_v47  ;;  %v22206_v6 = vpack.c.bf16 %v7638_v20, %v7636_v43  ;;  %v8054_v21 = vrot.slane %v22178_v27, 1 }
 0x5fd   : > { %24420 = vst [vmem:[#allocation72_spill] sm:$0xff] %v22199_v46  ;;  %v22208_v16 = vmax.f32 %v7223_v51, 0.0  ;;  %v7225_v33 = vadd.f32 %v21736_v50, %v7046_v3  ;;  %v7048_v48 = vpop.f32.mrb[39].mxu0  ;;  %8997 = vmatmul.mubr.bf16.gmra.mrb[32].mxu1 %v15280_v26 }
 0x5fe   : > { %24421 = vst [vmem:[#allocation100_spill] sm:$0xff] %v22204_v42  ;;  %24422 = vst [vmem:[#allocation101_spill] sm:$0xff] %v22206_v6  ;;  %v22215_v46 = vmax.f32 %v7224_v19, 0.0  ;;  %v7226_v24 = vadd.f32 %v21740_v36, %v7048_v48  ;;  %v8053_v48 = vrot.slane %v22172_v52, 1 }
 0x5ff   : > { %24423 = vst [vmem:[#allocation77_spill] sm:$0xff] %v22208_v16  ;;  %v7639_v18 = vrot.slane %v22208_v16, 7  ;;  %v8055_v43 = vrot.slane %v22208_v16, 1  ;;  %v22220_v51 = vmax.f32 %v7225_v33, 0.0  ;;  %v22224_v3 = vpack.c.bf16 %v22208_v16, %v22172_v52 }
 0x600   : > { %24424 = vst [vmem:[#allocation78_spill] sm:$0xff] %v22215_v46  ;;  %v7640_v26 = vrot.slane %v22215_v46, 7  ;;  %v8056_v61 = vrot.slane %v22215_v46, 1  ;;  %v22228_v47 = vmax.f32 %v7226_v24, 0.0  ;;  %v22232_v19 = vpack.c.bf16 %v22215_v46, %v22178_v27 }
 0x601   : > { %24425 = vst [vmem:[#allocation104_spill] sm:$0xff] %v22220_v51  ;;  %24426 = vst [vmem:[#allocation105_spill] sm:$0xff] %v22224_v3  ;;  %v7641_v33 = vrot.slane %v22220_v51, 7  ;;  %v22237_v35 = vpack.c.bf16 %v7639_v18, %v7637_v62  ;;  %v8057_v22 = vrot.slane %v22220_v51, 1  ;;  %v22248_v27 = vpack.c.bf16 %v8055_v43, %v8053_v48 }
 0x602   : > { %24427 = vst [vmem:[#allocation107_spill] sm:$0xff] %v22228_v47  ;;  %24428 = vst [vmem:[#allocation110_spill] sm:$0xff] %v22232_v19  ;;  %v7642_v49 = vrot.slane %v22228_v47, 7  ;;  %v8058_v6 = vrot.slane %v22228_v47, 1  ;;  %v7052_v24 = vpop.f32.mrb[40].mxu0  ;;  %9006 = vmatprep.mubr.bf16.mxu1 %v22232_v19  ;;  %v22243_v9 = vpack.c.bf16 %v7640_v26, %v7638_v20  ;;  %v22246_v45 = vpack.c.bf16 %v8056_v61, %v8054_v21 }
 0x603   : > { %v7227_v57 = vadd.f32 %v21736_v50, %v7052_v24  ;;  %v7054_v52 = vpop.f32.mrb[41].mxu0  ;;  %24430 = vst [vmem:[#allocation116_spill] sm:$0xff] %v22248_v27  ;;  %v22250_v62 = vpack.c.bf16 %v7641_v33, %v7639_v18  ;;  %v22263_v18 = vpack.c.bf16 %v8054_v21, %v8052_v54  ;;  %v22274_v20 = vpack.c.bf16 %v8057_v22, %v8055_v43 }
 0x604   : > { %24429 = vst [vmem:[#allocation115_spill] sm:$0xff] %v22246_v45  ;;  %v7228_v31 = vadd.f32 %v21740_v36, %v7054_v52  ;;  %v7056_v37 = vpop.f32.mrb[42].mxu0  ;;  %v22253_v42 = vpack.c.bf16 %v7642_v49, %v7640_v26  ;;  %v24435_v52 = vrot.slane %v22157_v13, 1  ;;  %v22272_v46 = vpack.c.bf16 %v8058_v6, %v8056_v61 }
 0x605   : > { %24431 = vst [vmem:[#allocation120_spill] sm:$0xff] %v22250_v62  ;;  %v22259_v19 = vmax.f32 %v7227_v57, 0.0  ;;  %v7229_v24 = vadd.f32 %v21736_v50, %v7056_v37  ;;  %v7058_v45 = vpop.f32.mrb[43].mxu0  ;;  %9007 = vmatmul.mubr.bf16.gmra.mrb[36].mxu1 %v22224_v3  ;;  %24434 = vst [vmem:[#allocation125_spill] sm:$0xff] %v22263_v18 }
 0x606   : > { %24432 = vst [vmem:[#allocation121_spill] sm:$0xff] %v22253_v42  ;;  %v22267_v62 = vpack.c.bf16 %v8053_v48, %v24435_v52  ;;  %v22269_v26 = vmax.f32 %v7228_v31, 0.0  ;;  %v7230_v1 = vadd.f32 %v21740_v36, %v7058_v45  ;;  %24438 = vst [vmem:[#allocation128_spill] sm:$0xff] %v22272_v46 }
 0x607   : > { %24433 = vst [vmem:[#allocation124_spill] sm:$0xff] %v22259_v19  ;;  %24439 = vst [vmem:[#allocation129_spill] sm:$0xff] %v22274_v20  ;;  %v7643_v57 = vrot.slane %v22259_v19, 7  ;;  %v8059_v37 = vrot.slane %v22259_v19, 1  ;;  %v22278_v16 = vmax.f32 %v7229_v24, 0.0  ;;  %v22282_v54 = vpack.c.bf16 %v22259_v19, %v22220_v51 }
 0x608   : > { %24436 = vst [vmem:[#allocation126_spill] sm:$0xff] %v22267_v62  ;;  %24437 = vst [vmem:[#allocation127_spill] sm:$0xff] %v22269_v26  ;;  %v7644_v48 = vrot.slane %v22269_v26, 7  ;;  %v8060_v31 = vrot.slane %v22269_v26, 1  ;;  %v22286_v21 = vmax.f32 %v7230_v1, 0.0  ;;  %v22290_v45 = vpack.c.bf16 %v22269_v26, %v22228_v47 }
 0x609   : > { %24440 = vst [vmem:[#allocation130_spill] sm:$0xff] %v22278_v16  ;;  %24441 = vst [vmem:[#allocation131_spill] sm:$0xff] %v22282_v54  ;;  %v7645_v43 = vrot.slane %v22278_v16, 7  ;;  %v8061_v61 = vrot.slane %v22278_v16, 1  ;;  %v22294_v24 = vpack.c.bf16 %v7643_v57, %v7641_v33  ;;  %v22296_v52 = vpack.c.bf16 %v8059_v37, %v8057_v22 }
 0x60a   : > { %24442 = vst [vmem:[#allocation132_spill] sm:$0xff] %v22286_v21  ;;  %24443 = vst [vmem:[#allocation133_spill] sm:$0xff] %v22290_v45  ;;  %v7646_v3 = vrot.slane %v22286_v21, 7  ;;  %v8062_v20 = vrot.slane %v22286_v21, 1  ;;  %v7062_v46 = vpop.f32.mrb[44].mxu0  ;;  %9016 = vmatprep.mubr.bf16.mxu1 %v22290_v45  ;;  %v22301_v1 = vpack.c.bf16 %v7644_v48, %v7642_v49  ;;  %v22303_v62 = vpack.c.bf16 %v8060_v31, %v8058_v6 }
 0x60b   : > { %24444 = vst [vmem:[#allocation134_spill] sm:$0xff] %v22296_v52  ;;  %v7231_v18 = vadd.f32 %v21736_v50, %v7062_v46  ;;  %v7064_v51 = vpop.f32.mrb[45].mxu0  ;;  %v22306_v47 = vpack.c.bf16 %v7645_v43, %v7643_v57  ;;  %v22317_v6 = vpack.c.bf16 %v8061_v61, %v8059_v37 }
 0x60c   : > { %24445 = vst [vmem:[#allocation135_spill] sm:$0xff] %v22303_v62  ;;  %v7232_v13 = vadd.f32 %v21740_v36, %v7064_v51  ;;  %v7066_v42 = vpop.f32.mrb[46].mxu0  ;;  %v22313_v52 = vpack.c.bf16 %v7646_v3, %v7644_v48  ;;  %v22315_v49 = vpack.c.bf16 %v8062_v20, %v8060_v31 }
 0x60d   : > { %24446 = vst [vmem:[#allocation136_spill] sm:$0xff] %v22306_v47  ;;  %24449 = vst [vmem:[#allocation139_spill] sm:$0xff] %v22317_v6  ;;  %v22319_v45 = vmax.f32 %v7231_v18, 0.0  ;;  %v7233_v46 = vadd.f32 %v21736_v50, %v7066_v42  ;;  %v7068_v57 = vpop.f32.mrb[47].mxu0  ;;  %9017 = vmatmul.mubr.bf16.gmra.mrb[40].mxu1 %v22282_v54 }
 0x60e   : > { %24447 = vst [vmem:[#allocation137_spill] sm:$0xff] %v22313_v52  ;;  %24448 = vst [vmem:[#allocation138_spill] sm:$0xff] %v22315_v49  ;;  %v22323_v22 = vmax.f32 %v7232_v13, 0.0  ;;  %v7234_v33 = vadd.f32 %v21740_v36, %v7068_v57 }
 0x60f   : > { %24450 = vst [vmem:[#allocation140_spill] sm:$0xff] %v22319_v45  ;;  %v7647_v51 = vrot.slane %v22319_v45, 7  ;;  %v8063_v48 = vrot.slane %v22319_v45, 1  ;;  %v22328_v19 = vmax.f32 %v7233_v46, 0.0  ;;  %v22332_v37 = vpack.c.bf16 %v22319_v45, %v22278_v16 }
 0x610   : > { %24451 = vst [vmem:[#allocation141_spill] sm:$0xff] %v22323_v22  ;;  %v7648_v18 = vrot.slane %v22323_v22, 7  ;;  %v8064_v42 = vrot.slane %v22323_v22, 1  ;;  %v22336_v31 = vmax.f32 %v7234_v33, 0.0  ;;  %v22340_v13 = vpack.c.bf16 %v22323_v22, %v22286_v21 }
 0x611   : > { %24452 = vst [vmem:[#allocation142_spill] sm:$0xff] %v22332_v37  ;;  %v7649_v57 = vrot.slane %v22328_v19, 7  ;;  %v22344_v46 = vpack.c.bf16 %v7647_v51, %v7645_v43  ;;  %v22346_v6 = vpack.c.bf16 %v8063_v48, %v8061_v61 }
 0x612   : > { %24453 = vst [vmem:[#allocation143_spill] sm:$0xff] %v22340_v13  ;;  %v7650_v49 = vrot.slane %v22336_v31, 7  ;;  %v7072_v26 = vpop.f32.mrb[48].mxu0  ;;  %9026 = vmatprep.mubr.bf16.mxu1 %v22340_v13  ;;  %v22351_v33 = vpack.c.bf16 %v7648_v18, %v7646_v3  ;;  %v22353_v47 = vpack.c.bf16 %v8064_v42, %v8062_v20  ;;  %v24458_v3 = vrot.slane %v22336_v31, 1 }
 0x613   : > { %24454 = vst [vmem:[#allocation144_spill] sm:$0xff] %v22346_v6  ;;  %v7235_v21 = vadd.f32 %v21736_v50, %v7072_v26  ;;  %v7074_v52 = vpop.f32.mrb[49].mxu0  ;;  %v22356_v62 = vpack.c.bf16 %v7649_v57, %v7647_v51  ;;  %v24460_v26 = vrot.slane %v22328_v19, 1 }
 0x614   : > { %24455 = vst [vmem:[#allocation145_spill] sm:$0xff] %v22353_v47  ;;  %v7236_v54 = vadd.f32 %v21740_v36, %v7074_v52  ;;  %v7076_v16 = vpop.f32.mrb[50].mxu0  ;;  %v22363_v6 = vpack.c.bf16 %v7650_v49, %v7648_v18  ;;  %v22367_v20 = vpack.c.bf16 %v24458_v3, %v8064_v42  ;;  %v22379_v52 = vpack.c.bf16 %v22336_v31, %v22328_v19 }
 0x615   : > { %24456 = vst [vmem:[#allocation146_spill] sm:$0xff] %v22356_v62  ;;  %v22371_v13 = vpack.c.bf16 %v24460_v26, %v8063_v48  ;;  %v22373_v51 = vmax.f32 %v7235_v21, 0.0  ;;  %v7237_v43 = vadd.f32 %v21736_v50, %v7076_v16  ;;  %v7078_v22 = vpop.f32.mrb[51].mxu0  ;;  %9027 = vmatmul.mubr.bf16.gmra.mrb[44].mxu1 %v22332_v37  ;;  %v7713_v3 = vsel %vm303_vm0, %v7649_v57, 0.0 }
 0x616   : > { %24457 = vst [vmem:[#allocation147_spill] sm:$0xff] %v22363_v6  ;;  %24459 = vst [vmem:[#allocation148_spill] sm:$0xff] %v22367_v20  ;;  %v22381_v18 = vmax.f32 %v7236_v54, 0.0  ;;  %v7238_v42 = vadd.f32 %v21740_v36, %v7078_v22  ;;  %v7714_v21 = vsel %vm303_vm0, %v7650_v49, 0.0 }
 0x617   : > { %24461 = vst [vmem:[#allocation149_spill] sm:$0xff] %v22371_v13  ;;  %24462 = vst [vmem:[#allocation150_spill] sm:$0xff] %v22373_v51  ;;  %v22388_v48 = vmax.f32 %v7237_v43, 0.0  ;;  %v7651_v16 = vrot.slane %v22373_v51, 7  ;;  %v23911_v26 = vrot.slane %v22373_v51, 1  ;;  %v22392_v61 = vpack.c.bf16 %v7714_v21, %v7713_v3 }
 0x618   : > { %24463 = vst [vmem:[#allocation151_spill] sm:$0xff] %v22379_v52  ;;  %24464 = vst [vmem:[#allocation152_spill] sm:$0xff] %v22381_v18  ;;  %v22394_v37 = vmax.f32 %v7238_v42, 0.0  ;;  %v15968_v54 = vpack.c.bf16 %v22381_v18, %v22373_v51  ;;  %v7652_v22 = vrot.slane %v22381_v18, 7  ;;  %v8068_v57 = vrot.slane %v22381_v18, 1 }
 0x619   : > { %24465 = vst [vmem:[#allocation153_spill] sm:$0xff] %v22388_v48  ;;  %24466 = vst [vmem:[#allocation154_spill] sm:$0xff] %v22392_v61  ;;  %v7653_v52 = vrot.slane %v22388_v48, 7  ;;  %v7715_v49 = vsel %vm303_vm0, %v7651_v16, 0.0  ;;  %v8131_v43 = vsel %vm304_vm2, %v23911_v26, 0.0 }
 0x61a   : > { %24467 = vst [vmem:[#allocation155_spill] sm:$0xff] %v22394_v37  ;;  %v7654_v42 = vrot.slane %v22394_v37, 7  ;;  %v7082_v3 = vpop.f32.mrb[52].mxu0  ;;  %v15289_v21 = vcombine.high %v24250_v15, %v15968_v54  ;;  %v15288_v61 = vcombine.low %v24250_v15, %v15968_v54  ;;  %v7716_v45 = vsel %vm303_vm0, %v7652_v22, 0.0 }
 0x61b   : > { %v7239_v13 = vadd.f32 %v21736_v50, %v7082_v3  ;;  %v7084_v20 = vpop.f32.mrb[53].mxu0  ;;  %v8132_v62 = vsel %vm304_vm2, %v8068_v57, 0.0  ;;  %v22415_v6 = vpack.c.bf16 %v7653_v52, %v7651_v16  ;;  %v22418_v27 = vpack.c.bf16 %v7716_v45, %v7715_v49 }
 0x61c   : > { %v7240_v26 = vadd.f32 %v21740_v36, %v7084_v20  ;;  %v7086_v47 = vpop.f32.mrb[54].mxu0  ;;  %9036 = vmatprep.mubr.bf16.mxu1 %v15289_v21  ;;  %v22420_v63 = vpack.c.bf16 %v8132_v62, %v8131_v43  ;;  %v22422_v54 = vpack.c.bf16 %v7654_v42, %v7652_v22  ;;  %v8070_v21 = vrot.slane %v22394_v37, 1 }
 0x61d   : > { %24468 = vst [vmem:[#allocation156_spill] sm:$0xff] %v22415_v6  ;;  %v22424_v3 = vmax.f32 %v7239_v13, 0.0  ;;  %v7241_v56 = vadd.f32 %v21736_v50, %v7086_v47  ;;  %v7088_v53 = vpop.f32.mrb[55].mxu0  ;;  %9037 = vmatmul.mubr.bf16.gmra.mrb[48].mxu1 %v15288_v61 }
 0x61e   : > { %24469 = vst [vmem:[#allocation157_spill] sm:$0xff] %v22420_v63  ;;  %24470 = vst [vmem:[#allocation158_spill] sm:$0xff] %v22422_v54  ;;  %v22431_v6 = vmax.f32 %v7240_v26, 0.0  ;;  %v7242_v45 = vadd.f32 %v21740_v36, %v7088_v53  ;;  %v8069_v53 = vrot.slane %v22388_v48, 1 }
 0x61f   : > { %24471 = vst [vmem:[#allocation159_spill] sm:$0xff] %v22424_v3  ;;  %v7655_v62 = vrot.slane %v22424_v3, 7  ;;  %v8071_v22 = vrot.slane %v22424_v3, 1  ;;  %v22436_v13 = vmax.f32 %v7241_v56, 0.0  ;;  %v22440_v47 = vpack.c.bf16 %v22424_v3, %v22388_v48 }
 0x620   : > { %24472 = vst [vmem:[#allocation160_spill] sm:$0xff] %v22431_v6  ;;  %v7656_v61 = vrot.slane %v22431_v6, 7  ;;  %v8072_v49 = vrot.slane %v22431_v6, 1  ;;  %v22444_v43 = vmax.f32 %v7242_v45, 0.0  ;;  %v22448_v26 = vpack.c.bf16 %v22431_v6, %v22394_v37 }
 0x621   : > { %24473 = vst [vmem:[#allocation161_spill] sm:$0xff] %v22436_v13  ;;  %24474 = vst [vmem:[#allocation162_spill] sm:$0xff] %v22440_v47  ;;  %v7657_v56 = vrot.slane %v22436_v13, 7  ;;  %v22453_v20 = vpack.c.bf16 %v7655_v62, %v7653_v52  ;;  %v8073_v16 = vrot.slane %v22436_v13, 1  ;;  %v22464_v37 = vpack.c.bf16 %v8071_v22, %v8069_v53 }
 0x622   : > { %24475 = vst [vmem:[#allocation163_spill] sm:$0xff] %v22444_v43  ;;  %24476 = vst [vmem:[#allocation164_spill] sm:$0xff] %v22448_v26  ;;  %v7658_v18 = vrot.slane %v22444_v43, 7  ;;  %v8074_v54 = vrot.slane %v22444_v43, 1  ;;  %v7092_v45 = vpop.f32.mrb[56].mxu0  ;;  %9046 = vmatprep.mubr.bf16.mxu1 %v22448_v26  ;;  %v22459_v63 = vpack.c.bf16 %v7656_v61, %v7654_v42  ;;  %v22462_v60 = vpack.c.bf16 %v8072_v49, %v8070_v21 }
 0x623   : > { %v7243_v7 = vadd.f32 %v21736_v50, %v7092_v45  ;;  %v7094_v48 = vpop.f32.mrb[57].mxu0  ;;  %24478 = vst [vmem:[#allocation166_spill] sm:$0xff] %v22464_v37  ;;  %v22466_v52 = vpack.c.bf16 %v7657_v56, %v7655_v62  ;;  %v22479_v62 = vpack.c.bf16 %v8070_v21, %v8068_v57  ;;  %v22490_v42 = vpack.c.bf16 %v8073_v16, %v8071_v22 }
 0x624   : > { %24477 = vst [vmem:[#allocation165_spill] sm:$0xff] %v22462_v60  ;;  %v7244_v14 = vadd.f32 %v21740_v36, %v7094_v48  ;;  %v7096_v29 = vpop.f32.mrb[58].mxu0  ;;  %v22469_v59 = vpack.c.bf16 %v7658_v18, %v7656_v61  ;;  %v24483_v48 = vrot.slane %v22373_v51, 1  ;;  %v22488_v6 = vpack.c.bf16 %v8074_v54, %v8072_v49 }
 0x625   : > { %24479 = vst [vmem:[#allocation167_spill] sm:$0xff] %v22466_v52  ;;  %v22475_v26 = vmax.f32 %v7243_v7, 0.0  ;;  %v7245_v45 = vadd.f32 %v21736_v50, %v7096_v29  ;;  %v7098_v60 = vpop.f32.mrb[59].mxu0  ;;  %9047 = vmatmul.mubr.bf16.gmra.mrb[52].mxu1 %v22440_v47  ;;  %24482 = vst [vmem:[#allocation170_spill] sm:$0xff] %v22479_v62 }
 0x626   : > { %24480 = vst [vmem:[#allocation168_spill] sm:$0xff] %v22469_v59  ;;  %v22483_v52 = vpack.c.bf16 %v8069_v53, %v24483_v48  ;;  %v22485_v61 = vmax.f32 %v7244_v14, 0.0  ;;  %v7246_v0 = vadd.f32 %v21740_v36, %v7098_v60  ;;  %24486 = vst [vmem:[#allocation173_spill] sm:$0xff] %v22488_v6 }
 0x627   : > { %24481 = vst [vmem:[#allocation169_spill] sm:$0xff] %v22475_v26  ;;  %24487 = vst [vmem:[#allocation174_spill] sm:$0xff] %v22490_v42  ;;  %v7659_v7 = vrot.slane %v22475_v26, 7  ;;  %v8075_v29 = vrot.slane %v22475_v26, 1  ;;  %v22494_v3 = vmax.f32 %v7245_v45, 0.0  ;;  %v22498_v57 = vpack.c.bf16 %v22475_v26, %v22436_v13 }
 0x628   : > { %24484 = vst [vmem:[#allocation171_spill] sm:$0xff] %v22483_v52  ;;  %24485 = vst [vmem:[#allocation172_spill] sm:$0xff] %v22485_v61  ;;  %v7660_v53 = vrot.slane %v22485_v61, 7  ;;  %v8076_v14 = vrot.slane %v22485_v61, 1  ;;  %v22502_v21 = vmax.f32 %v7246_v0, 0.0  ;;  %v22506_v60 = vpack.c.bf16 %v22485_v61, %v22444_v43 }
 0x629   : > { %24488 = vst [vmem:[#allocation175_spill] sm:$0xff] %v22494_v3  ;;  %24489 = vst [vmem:[#allocation176_spill] sm:$0xff] %v22498_v57  ;;  %v7661_v22 = vrot.slane %v22494_v3, 7  ;;  %v8077_v49 = vrot.slane %v22494_v3, 1  ;;  %v22510_v45 = vpack.c.bf16 %v7659_v7, %v7657_v56  ;;  %v22512_v48 = vpack.c.bf16 %v8075_v29, %v8073_v16 }
 0x62a   : > { %24490 = vst [vmem:[#allocation177_spill] sm:$0xff] %v22502_v21  ;;  %24491 = vst [vmem:[#allocation178_spill] sm:$0xff] %v22506_v60  ;;  %v7662_v47 = vrot.slane %v22502_v21, 7  ;;  %v8078_v42 = vrot.slane %v22502_v21, 1  ;;  %v7102_v6 = vpop.f32.mrb[60].mxu0  ;;  %9056 = vmatprep.mubr.bf16.mxu1 %v22506_v60  ;;  %v22517_v0 = vpack.c.bf16 %v7660_v53, %v7658_v18  ;;  %v22519_v52 = vpack.c.bf16 %v8076_v14, %v8074_v54 }
 0x62b   : > { %24492 = vst [vmem:[#allocation179_spill] sm:$0xff] %v22512_v48  ;;  %v7247_v62 = vadd.f32 %v21736_v50, %v7102_v6  ;;  %v7104_v13 = vpop.f32.mrb[61].mxu0  ;;  %v22522_v43 = vpack.c.bf16 %v7661_v22, %v7659_v7  ;;  %v22533_v54 = vpack.c.bf16 %v8077_v49, %v8075_v29 }
 0x62c   : > { %24493 = vst [vmem:[#allocation180_spill] sm:$0xff] %v22519_v52  ;;  %v7248_v51 = vadd.f32 %v21740_v36, %v7104_v13  ;;  %v7106_v59 = vpop.f32.mrb[62].mxu0  ;;  %v22529_v48 = vpack.c.bf16 %v7662_v47, %v7660_v53  ;;  %v22531_v18 = vpack.c.bf16 %v8078_v42, %v8076_v14  ;;  %v15329_v13 = vcombine.high %v24250_v15, %v21777_v10 }
 0x62d   : > { %24494 = vst [vmem:[#allocation181_spill] sm:$0xff] %v22522_v43  ;;  %24497 = vst [vmem:[#allocation184_spill] sm:$0xff] %v22533_v54  ;;  %v22535_v60 = vmax.f32 %v7247_v62, 0.0  ;;  %v7249_v6 = vadd.f32 %v21736_v50, %v7106_v59  ;;  %v7108_v7 = vpop.f32.mrb[63].mxu0  ;;  %9057 = vmatmul.mubr.bf16.gmra.mrb[56].mxu1 %v22498_v57 }
 0x62e   : > { %24495 = vst [vmem:[#allocation182_spill] sm:$0xff] %v22529_v48  ;;  %24496 = vst [vmem:[#allocation183_spill] sm:$0xff] %v22531_v18  ;;  %v22539_v16 = vmax.f32 %v7248_v51, 0.0  ;;  %v7250_v56 = vadd.f32 %v21740_v36, %v7108_v7 }
 0x62f   : > { %v7663_v53 = vrot.slane %v22535_v60, 7  ;;  %v8079_v14 = vrot.slane %v22535_v60, 1  ;;  %v22546_v29 = vmax.f32 %v7249_v6, 0.0  ;;  %v22550_v62 = vpack.c.bf16 %v22535_v60, %v22494_v3 }
 0x630   : > { %v7664_v50 = vrot.slane %v22539_v16, 7  ;;  %v8080_v59 = vrot.slane %v22539_v16, 1  ;;  %v22554_v51 = vmax.f32 %v7250_v56, 0.0  ;;  %v22558_v36 = vpack.c.bf16 %v22539_v16, %v22502_v21 }
 0x631   : > { %24498 = vst [vmem:[#allocation185_spill] sm:$0xff] %v22550_v62  ;;  %v7665_v7 = vrot.slane %v22546_v29, 7  ;;  %v8081_v57 = vrot.slane %v22546_v29, 1  ;;  %v22562_v6 = vpack.c.bf16 %v7663_v53, %v7661_v22  ;;  %v22564_v54 = vpack.c.bf16 %v8079_v14, %v8077_v49  ;;  %v18984_v22 = vld [vmem:[#allocation11 + $0x200] ss:$8 sps:$4 sm:$0xff]  }
 0x632   : > { %v7666_v18 = vrot.slane %v22554_v51, 7  ;;  %v8082_v26 = vrot.slane %v22554_v51, 1  ;;  %9066 = vmatprep.mubr.bf16.mxu1 %v22558_v36  ;;  %v22569_v56 = vpack.c.bf16 %v7664_v50, %v7662_v47  ;;  %v22571_v3 = vpack.c.bf16 %v8080_v59, %v8078_v42 }
 0x633   : > { %24499 = vst [vmem:[#allocation186_spill] sm:$0xff] %v22564_v54  ;;  %v22573_v61 = vpack.c.bf16 %v7665_v7, %v7663_v53  ;;  %v22579_v49 = vpack.c.bf16 %v8081_v57, %v8079_v14  ;;  %v7729_v47 = vsel %vm303_vm0, %v7665_v7, 0.0  ;;  %v22594_v21 = vpack.c.bf16 %v22554_v51, %v22546_v29 }
 0x634   : > { %24500 = vst [vmem:[#allocation187_spill] sm:$0xff] %v22571_v3  ;;  %v22581_v43 = vpack.c.bf16 %v7666_v18, %v7664_v50  ;;  %v22583_v48 = vpack.c.bf16 %v8082_v26, %v8080_v59  ;;  %v7730_v42 = vsel %vm303_vm0, %v7666_v18, 0.0  ;;  %v24501_v14 = vrot.slane %v22328_v19, 1 }
 0x635   : > { %9067 = vmatmul.mubr.bf16.gmra.mrb[60].mxu1 %v22550_v62  ;;  %v22590_v53 = vpack.c.bf16 %v7730_v42, %v7729_v47  ;;  %v24502_v59 = vrot.slane %v22336_v31, 1  ;;  %v8145_v47 = vsel %vm304_vm2, %v8081_v57, 0.0  ;;  %v8146_v42 = vsel %vm304_vm2, %v8082_v26, 0.0  ;;  %v18990_v57 = vld [vmem:[#allocation11 + $0x220] ss:$8 sps:$4 sm:$0xff]  }
 0x636   : > { %9429 = vmatprep.mubr.bf16.mxu1 %v15329_v13  ;;  %v8129_v50 = vsel %vm304_vm2, %v24501_v14, 0.0  ;;  %v22610_v13 = vpack.c.bf16 %v8146_v42, %v8145_v47  ;;  %v15328_v62 = vcombine.low %v24250_v15, %v21777_v10  ;;  %v18989_v14 = vld [vmem:[#allocation11 + $0x214] ss:$8 sps:$4 sm:$0xff]   ;;  %v18993_v10 = vld [vmem:[#allocation11 + $0x230] ss:$8 sps:$4 sm:$0xff]  }
 0x637   : > { %v8130_v7 = vsel %vm304_vm2, %v24502_v59, 0.0  ;;  %v18992_v59 = vld [vmem:[#allocation11 + $0x224] ss:$8 sps:$4 sm:$0xff]   ;;  %v18995_v26 = vld [vmem:[#allocation11 + $0x234] ss:$8 sps:$4 sm:$0xff]  }
 0x638   : > { %v22604_v18 = vpack.c.bf16 %v8130_v7, %v8129_v50  ;;  %24504 = vst [vmem:[#allocation189_spill] sm:$0xff] %v22610_v13  ;;  %v18987_v50 = vld [vmem:[#allocation11 + $0x210] ss:$8 sps:$4 sm:$0xff]   ;;  %v19001_v7 = vld [vmem:[#allocation11 + $0x254] ss:$8 sps:$4 sm:$0xff]  }
 0x639   : > { %v18999_v47 = vld [vmem:[#allocation11 + $0x250] ss:$8 sps:$4 sm:$0xff]   ;;  %v19004_v42 = vld [vmem:[#allocation11 + $0x264] ss:$8 sps:$4 sm:$0xff]  }
 0x63a   : > { %24503 = vst [vmem:[#allocation188_spill] sm:$0xff] %v22604_v18  ;;  %v19071_v13 = vld [vmem:[#allocation11 + $0x3d0] ss:$8 sps:$4 sm:$0xff]   ;;  %v19076_v18 = vld [vmem:[#allocation11 + $0x3e4] ss:$8 sps:$4 sm:$0xff]  }
 0x63d   : > { %9430 = vmatmul.mubr.bf16.vlgmr.msra.gmra.mrb[0].mxu1 %v15328_v62  ;;  %v18998_v62 = vld [vmem:[#allocation11 + $0x244] ss:$8 sps:$4 sm:$0xff]  }
 0x63e   : > { %16740 = vmatprep.mubr.msk.bf16.mxu1 %vm20191_vm1, %v21819_v11  ;;  %9976 = vmatpush1.bf16.msra.mxu1 %v18984_v22  ;;  %v18996_v22 = vld [vmem:[#allocation11 + $0x240] ss:$8 sps:$4 sm:$0xff]  }
 0x63f   : > { %9977 = vmatprep.subr.bf16.mxu1 %v18989_v14  ;;  %v19002_v14 = vld [vmem:[#allocation11 + $0x260] ss:$8 sps:$4 sm:$0xff]  }
 0x642   : > { %9978 = vmatpush1.bf16.msra.mxu1 %v18987_v50  ;;  %v19007_v50 = vld [vmem:[#allocation11 + $0x274] ss:$8 sps:$4 sm:$0xff]  }
 0x643   : > { %9979 = vmatprep.subr.bf16.mxu1 %v18992_v59  ;;  %v15337_v59 = vcombine.high %v24250_v15, %v21990_v38 }
 0x645   : > { %16743 = vmatmul.mubr.msk.bf16.gmra.mrb[4].mxu1 %vm20191_vm1, %v21813_v39 }
 0x646   : > { %16746 = vmatprep.mubr.msk.bf16.mxu1 %vm20191_vm1, %v21877_v34  ;;  %9980 = vmatpush1.bf16.msra.mxu1 %v18990_v57  ;;  %v19005_v57 = vld [vmem:[#allocation11 + $0x270] ss:$8 sps:$4 sm:$0xff]  }
 0x647   : > { %9981 = vmatprep.subr.bf16.mxu1 %v18995_v26  ;;  %v19010_v26 = vld [vmem:[#allocation11 + $0x284] ss:$8 sps:$4 sm:$0xff]  }
 0x64a   : > { %9982 = vmatpush1.bf16.msra.mxu1 %v18993_v10  ;;  %v19008_v10 = vld [vmem:[#allocation11 + $0x280] ss:$8 sps:$4 sm:$0xff]  }
 0x64b   : > { %9983 = vmatprep.subr.bf16.mxu1 %v18998_v62  ;;  %v15336_v62 = vcombine.low %v24250_v15, %v21990_v38  ;;  %v19017_v38 = vld [vmem:[#allocation11 + $0x2b0] ss:$8 sps:$4 sm:$0xff]  }
 0x64d   : > { %16749 = vmatmul.mubr.msk.bf16.gmra.mrb[8].mxu1 %vm20191_vm1, %v21870_v41 }
 0x64e   : > { %16752 = vmatprep.mubr.msk.bf16.mxu1 %vm20191_vm1, %v21927_v55  ;;  %9984 = vmatpush1.bf16.msra.mxu1 %v18996_v22  ;;  %v19013_v22 = vld [vmem:[#allocation11 + $0x294] ss:$8 sps:$4 sm:$0xff]  }
 0x64f   : > { %9985 = vmatprep.subr.bf16.mxu1 %v19001_v7  ;;  %v19011_v7 = vld [vmem:[#allocation11 + $0x290] ss:$8 sps:$4 sm:$0xff]  }
 0x652   : > { %9986 = vmatpush1.bf16.msra.mxu1 %v18999_v47  ;;  %v19016_v47 = vld [vmem:[#allocation11 + $0x2a4] ss:$8 sps:$4 sm:$0xff]  }
 0x653   : > { %9987 = vmatprep.subr.bf16.mxu1 %v19004_v42  ;;  %v19014_v42 = vld [vmem:[#allocation11 + $0x2a0] ss:$8 sps:$4 sm:$0xff]  }
 0x655   : > { %16755 = vmatmul.mubr.msk.bf16.gmra.mrb[12].mxu1 %vm20191_vm1, %v21919_v12 }
 0x656   : > { %9469 = vmatprep.mubr.bf16.mxu1 %v15337_v59  ;;  %9988 = vmatpush1.bf16.msra.mxu1 %v19002_v14  ;;  %v19019_v14 = vld [vmem:[#allocation11 + $0x2b4] ss:$8 sps:$4 sm:$0xff]   ;;  %v19020_v59 = vld [vmem:[#allocation11 + $0x2c0] ss:$8 sps:$4 sm:$0xff]  }
 0x657   : > { %9989 = vmatprep.subr.bf16.mxu1 %v19007_v50  ;;  %v19022_v50 = vld [vmem:[#allocation11 + $0x2c4] ss:$8 sps:$4 sm:$0xff]  }
 0x65a   : > { %9990 = vmatpush1.bf16.msra.mxu1 %v19005_v57  ;;  %v19025_v57 = vld [vmem:[#allocation11 + $0x2d4] ss:$8 sps:$4 sm:$0xff]  }
 0x65b   : > { %9991 = vmatprep.subr.bf16.mxu1 %v19010_v26  ;;  %v19023_v26 = vld [vmem:[#allocation11 + $0x2d0] ss:$8 sps:$4 sm:$0xff]  }
 0x65d   : > { %9470 = vmatmul.mubr.bf16.gmra.mrb[16].mxu1 %v15336_v62  ;;  %v19026_v62 = vld [vmem:[#allocation11 + $0x2e0] ss:$8 sps:$4 sm:$0xff]  }
 0x65e   : > { %16758 = vmatprep.mubr.msk.bf16.mxu1 %vm20191_vm1, %v22031_v8  ;;  %9992 = vmatpush1.bf16.msra.mxu1 %v19008_v10  ;;  %v19028_v10 = vld [vmem:[#allocation11 + $0x2e4] ss:$8 sps:$4 sm:$0xff]  }
 0x65f   : > { %9993 = vmatprep.subr.bf16.mxu1 %v19013_v22  ;;  %v19031_v22 = vld [vmem:[#allocation11 + $0x2f4] ss:$8 sps:$4 sm:$0xff]  }
 0x662   : > { %9994 = vmatpush1.bf16.msra.mxu1 %v19011_v7  ;;  %v15345_v7 = vcombine.high %v24250_v15, %v22202_v4 }
 0x663   : > { %9995 = vmatprep.subr.bf16.mxu1 %v19016_v47  ;;  %v19029_v47 = vld [vmem:[#allocation11 + $0x2f0] ss:$8 sps:$4 sm:$0xff]  }
 0x665   : > { %16761 = vmatmul.mubr.msk.bf16.gmra.mrb[20].mxu1 %vm20191_vm1, %v22025_v5 }
 0x666   : > { %16764 = vmatprep.mubr.msk.bf16.mxu1 %vm20191_vm1, %v22091_v30  ;;  %9996 = vmatpush1.bf16.msra.mxu1 %v19014_v42  ;;  %v19034_v42 = vld [vmem:[#allocation11 + $0x304] ss:$8 sps:$4 sm:$0xff]  }
 0x667   : > { %9997 = vmatprep.subr.bf16.mxu1 %v19019_v14  ;;  %v15344_v14 = vcombine.low %v24250_v15, %v22202_v4  ;;  %v15353_v4 = vcombine.high %v24250_v15, %v22418_v27 }
 0x66a   : > { %9998 = vmatpush1.bf16.msra.mxu1 %v19017_v38  ;;  %v15352_v38 = vcombine.low %v24250_v15, %v22418_v27  ;;  %v15393_v27 = vcombine.high %v24250_v15, %v21788_v40 }
 0x66b   : > { %9999 = vmatprep.subr.bf16.mxu1 %v19022_v50  ;;  %v19032_v50 = vld [vmem:[#allocation11 + $0x300] ss:$8 sps:$4 sm:$0xff]  }
 0x66d   : > { %16767 = vmatmul.mubr.msk.bf16.gmra.mrb[24].mxu1 %vm20191_vm1, %v22084_v25 }
 0x66e   : > { %16770 = vmatprep.mubr.msk.bf16.mxu1 %vm20191_vm1, %v22141_v44  ;;  %10000 = vmatpush1.bf16.msra.mxu1 %v19020_v59  ;;  %v15392_v59 = vcombine.low %v24250_v15, %v21788_v40  ;;  %v19041_v40 = vld [vmem:[#allocation11 + $0x330] ss:$8 sps:$4 sm:$0xff]  }
 0x66f   : > { %10001 = vmatprep.subr.bf16.mxu1 %v19025_v57  ;;  %v19037_v57 = vld [vmem:[#allocation11 + $0x314] ss:$8 sps:$4 sm:$0xff]  }
 0x672   : > { %10002 = vmatpush1.bf16.msra.mxu1 %v19023_v26  ;;  %v19035_v26 = vld [vmem:[#allocation11 + $0x310] ss:$8 sps:$4 sm:$0xff]  }
 0x673   : > { %10003 = vmatprep.subr.bf16.mxu1 %v19028_v10  ;;  %v19040_v10 = vld [vmem:[#allocation11 + $0x324] ss:$8 sps:$4 sm:$0xff]  }
 0x675   : > { %16773 = vmatmul.mubr.msk.bf16.gmra.mrb[28].mxu1 %vm20191_vm1, %v22133_v28 }
 0x676   : > { %9509 = vmatprep.mubr.bf16.mxu1 %v15345_v7  ;;  %10004 = vmatpush1.bf16.msra.mxu1 %v19026_v62  ;;  %v19038_v62 = vld [vmem:[#allocation11 + $0x320] ss:$8 sps:$4 sm:$0xff]   ;;  %v24505_v7 = vld [vmem:[#allocation61_spill] sm:$0xff] }
 0x677   : > { %10005 = vmatprep.subr.bf16.mxu1 %v19031_v22  ;;  %v19043_v22 = vld [vmem:[#allocation11 + $0x334] ss:$8 sps:$4 sm:$0xff]  }
 0x67a   : > { %10006 = vmatpush1.bf16.msra.mxu1 %v19029_v47  ;;  %v19046_v47 = vld [vmem:[#allocation11 + $0x344] ss:$8 sps:$4 sm:$0xff]  }
 0x67b   : > { %10617 = vmatprep.subr.bf16.mxu1 %v19034_v42  ;;  %v19044_v42 = vld [vmem:[#allocation11 + $0x340] ss:$8 sps:$4 sm:$0xff]  }
 0x67d   : > { %9510 = vmatmul.mubr.bf16.gmra.mrb[32].mxu1 %v15344_v14  ;;  %v19049_v14 = vld [vmem:[#allocation11 + $0x354] ss:$8 sps:$4 sm:$0xff]  }
 0x67e   : > { %16776 = vmatprep.mubr.msk.bf16.mxu1 %vm20191_vm1, %v22243_v9 }
 0x685   : > { %16779 = vmatmul.mubr.msk.bf16.gmra.mrb[36].mxu1 %vm20191_vm1, %v22237_v35 }
 0x686   : > { %16782 = vmatprep.mubr.msk.bf16.mxu1 %vm20191_vm1, %v22301_v1 }
 0x68d   : > { %16785 = vmatmul.mubr.msk.bf16.gmra.mrb[40].mxu1 %vm20191_vm1, %v22294_v24 }
 0x68e   : > { %16788 = vmatprep.mubr.msk.bf16.mxu1 %vm20191_vm1, %v22351_v33 }
 0x695   : > { %16791 = vmatmul.mubr.msk.bf16.gmra.mrb[44].mxu1 %vm20191_vm1, %v22344_v46 }
 0x696   : > { %9549 = vmatprep.mubr.bf16.mxu1 %v15353_v4  ;;  %v24506_v4 = vld [vmem:[#allocation64_spill] sm:$0xff] }
 0x69d   : > { %9550 = vmatmul.mubr.bf16.gmra.mrb[48].mxu1 %v15352_v38  ;;  %v24507_v38 = vld [vmem:[#allocation63_spill] sm:$0xff] }
 0x69e   : > { %16794 = vmatprep.mubr.msk.bf16.mxu1 %vm20191_vm1, %v22459_v63 }
 0x6a5   : > { %16797 = vmatmul.mubr.msk.bf16.gmra.mrb[52].mxu1 %vm20191_vm1, %v22453_v20 }
 0x6a6   : > { %16800 = vmatprep.mubr.msk.bf16.mxu1 %vm20191_vm1, %v22517_v0 }
 0x6ad   : > { %16803 = vmatmul.mubr.msk.bf16.gmra.mrb[56].mxu1 %vm20191_vm1, %v22510_v45 }
 0x6ae   : > { %16806 = vmatprep.mubr.msk.bf16.mxu1 %vm20191_vm1, %v22569_v56 }
 0x6b5   : > { %16809 = vmatmul.mubr.msk.bf16.gmra.mrb[60].mxu1 %vm20191_vm1, %v22562_v6 }
 0x6b6   : > { %10007 = vmatprep.mubr.bf16.mxu1 %v15393_v27  ;;  %v19047_v27 = vld [vmem:[#allocation11 + $0x350] ss:$8 sps:$4 sm:$0xff]  }
 0x6bd   : > { %10008 = vmatmul.mubr.bf16.vlgmr.msra.gmra.mrb[0].mxu1 %v15392_v59  ;;  %v19050_v59 = vld [vmem:[#allocation11 + $0x360] ss:$8 sps:$4 sm:$0xff]  }
 0x6be   : > { %16836 = vmatprep.mubr.msk.bf16.mxu1 %vm20634_vm3, %v21822_v32  ;;  %10618 = vmatpush1.bf16.msra.mxu1 %v19032_v50  ;;  %v19052_v50 = vld [vmem:[#allocation11 + $0x364] ss:$8 sps:$4 sm:$0xff]  }
 0x6bf   : > { %10619 = vmatprep.subr.bf16.mxu1 %v19037_v57  ;;  %v19055_v57 = vld [vmem:[#allocation11 + $0x374] ss:$8 sps:$4 sm:$0xff]  }
 0x6c2   : > { %10620 = vmatpush1.bf16.msra.mxu1 %v19035_v26  ;;  %v24508_v26 = vld [vmem:[#allocation80_spill] sm:$0xff] }
 0x6c3   : > { %10621 = vmatprep.subr.bf16.mxu1 %v19040_v10  ;;  %v15401_v10 = vcombine.high %v24250_v15, %v24508_v26 }
 0x6c5   : > { %16839 = vmatmul.mubr.msk.bf16.gmra.mrb[4].mxu1 %vm20634_vm3, %v21824_v58 }
 0x6c6   : > { %16842 = vmatprep.mubr.msk.bf16.mxu1 %vm20634_vm3, %v24505_v7  ;;  %10622 = vmatpush1.bf16.msra.mxu1 %v19038_v62  ;;  %v24509_v62 = vld [vmem:[#allocation62_spill] sm:$0xff] }
 0x6c7   : > { %10623 = vmatprep.subr.bf16.mxu1 %v19043_v22  ;;  %v19053_v22 = vld [vmem:[#allocation11 + $0x370] ss:$8 sps:$4 sm:$0xff]  }
 0x6ca   : > { %10624 = vmatpush1.bf16.msra.mxu1 %v19041_v40  ;;  %v19058_v40 = vld [vmem:[#allocation11 + $0x384] ss:$8 sps:$4 sm:$0xff]  }
 0x6cb   : > { %10625 = vmatprep.subr.bf16.mxu1 %v19046_v47  ;;  %v19056_v47 = vld [vmem:[#allocation11 + $0x380] ss:$8 sps:$4 sm:$0xff]  }
 0x6cd   : > { %16845 = vmatmul.mubr.msk.bf16.gmra.mrb[8].mxu1 %vm20634_vm3, %v24506_v4  ;;  %v24613_v4 = vld [vmem:[#allocation104_spill] sm:$0xff] }
 0x6ce   : > { %16848 = vmatprep.mubr.msk.bf16.mxu1 %vm20634_vm3, %v24507_v38  ;;  %10626 = vmatpush1.bf16.msra.mxu1 %v19044_v42  ;;  %v15400_v42 = vcombine.low %v24250_v15, %v24508_v26  ;;  %v24512_v26 = vld [vmem:[#allocation33_spill] sm:$0xff] }
 0x6cf   : > { %10627 = vmatprep.subr.bf16.mxu1 %v19049_v14  ;;  %v19061_v14 = vld [vmem:[#allocation11 + $0x394] ss:$8 sps:$4 sm:$0xff]  }
 0x6d0   : > { %v24593_v38 = vld [vmem:[#allocation25_spill] sm:$0xff] }
 0x6d2   : > { %10628 = vmatpush1.bf16.msra.mxu1 %v19047_v27  ;;  %v24510_v27 = vld [vmem:[#allocation89_spill] sm:$0xff] }
 0x6d3   : > { %10629 = vmatprep.subr.bf16.mxu1 %v19052_v50  ;;  %v19059_v50 = vld [vmem:[#allocation11 + $0x390] ss:$8 sps:$4 sm:$0xff]  }
 0x6d5   : > { %16851 = vmatmul.mubr.msk.bf16.gmra.mrb[12].mxu1 %vm20634_vm3, %v24509_v62 }
 0x6d6   : > { %10047 = vmatprep.mubr.bf16.mxu1 %v15401_v10  ;;  %10630 = vmatpush1.bf16.msra.mxu1 %v19050_v59  ;;  %v19064_v10 = vld [vmem:[#allocation11 + $0x3a4] ss:$8 sps:$4 sm:$0xff]   ;;  %v19062_v59 = vld [vmem:[#allocation11 + $0x3a0] ss:$8 sps:$4 sm:$0xff]  }
 0x6d7   : > { %10631 = vmatprep.subr.bf16.mxu1 %v19055_v57  ;;  %v19067_v57 = vld [vmem:[#allocation11 + $0x3b4] ss:$8 sps:$4 sm:$0xff]  }
 0x6da   : > { %10632 = vmatpush1.bf16.msra.mxu1 %v19053_v22  ;;  %v24511_v22 = vld [vmem:[#allocation90_spill] sm:$0xff] }
 0x6db   : > { %10633 = vmatprep.subr.bf16.mxu1 %v19058_v40  ;;  %v19065_v40 = vld [vmem:[#allocation11 + $0x3b0] ss:$8 sps:$4 sm:$0xff]  }
 0x6dd   : > { %10048 = vmatmul.mubr.bf16.gmra.mrb[16].mxu1 %v15400_v42  ;;  %v19070_v42 = vld [vmem:[#allocation11 + $0x3c4] ss:$8 sps:$4 sm:$0xff]  }
 0x6de   : > { %16854 = vmatprep.mubr.msk.bf16.mxu1 %vm20634_vm3, %v24510_v27  ;;  %10634 = vmatpush1.bf16.msra.mxu1 %v19056_v47  ;;  %v19068_v47 = vld [vmem:[#allocation11 + $0x3c0] ss:$8 sps:$4 sm:$0xff]  }
 0x6df   : > { %10635 = vmatprep.subr.bf16.mxu1 %v19061_v14  ;;  %v19073_v14 = vld [vmem:[#allocation11 + $0x3d4] ss:$8 sps:$4 sm:$0xff]   ;;  %v24587_v27 = vld [vmem:[#allocation84_spill] sm:$0xff] }
 0x6e2   : > { %10636 = vmatpush1.bf16.msra.mxu1 %v19059_v50  ;;  %v24513_v50 = vld [vmem:[#allocation32_spill] sm:$0xff] }
 0x6e3   : > { %10637 = vmatprep.subr.bf16.mxu1 %v19064_v10  ;;  %v24514_v10 = vld [vmem:[#allocation92_spill] sm:$0xff] }
 0x6e5   : > { %16857 = vmatmul.mubr.msk.bf16.gmra.mrb[20].mxu1 %vm20634_vm3, %v24511_v22  ;;  %v24586_v22 = vld [vmem:[#allocation87_spill] sm:$0xff] }
 0x6e6   : > { %16860 = vmatprep.mubr.msk.bf16.mxu1 %vm20634_vm3, %v24512_v26  ;;  %10638 = vmatpush1.bf16.msra.mxu1 %v19062_v59  ;;  %v19074_v59 = vld [vmem:[#allocation11 + $0x3e0] ss:$8 sps:$4 sm:$0xff]   ;;  %v24588_v62 = vpack.c.bf16 %v24586_v22, %v24587_v27  ;;  %v19169_v22 = vld [vmem:[#allocation11 + $0x5d4] ss:$8 sps:$4 sm:$0xff]  }
 0x6e7   : > { %10639 = vmatprep.subr.bf16.mxu1 %v19067_v57  ;;  %v19079_v57 = vld [vmem:[#allocation11 + $0x3f4] ss:$8 sps:$4 sm:$0xff]   ;;  %v24516_v26 = vld [vmem:[#allocation91_spill] sm:$0xff] }
 0x6e8   : > { %v19164_v27 = vld [vmem:[#allocation11 + $0x5c0] ss:$8 sps:$4 sm:$0xff]  }
 0x6ea   : > { %10640 = vmatpush1.bf16.msra.mxu1 %v19065_v40  ;;  %v24515_v40 = vld [vmem:[#allocation100_spill] sm:$0xff] }
 0x6eb   : > { %10641 = vmatprep.subr.bf16.mxu1 %v19070_v42  ;;  %v15409_v42 = vcombine.high %v24250_v15, %v24515_v40 }
 0x6ed   : > { %16863 = vmatmul.mubr.msk.bf16.gmra.mrb[24].mxu1 %vm20634_vm3, %v24513_v50  ;;  %v19077_v50 = vld [vmem:[#allocation11 + $0x3f0] ss:$8 sps:$4 sm:$0xff]  }
 0x6ee   : > { %16866 = vmatprep.mubr.msk.bf16.mxu1 %vm20634_vm3, %v24514_v10  ;;  %10642 = vmatpush1.bf16.msra.mxu1 %v19068_v47  ;;  %v19082_v10 = vld [vmem:[#allocation11 + $0x404] ss:$8 sps:$4 sm:$0xff]   ;;  %v15408_v47 = vcombine.low %v24250_v15, %v24515_v40 }
 0x6ef   : > { %10643 = vmatprep.subr.bf16.mxu1 %v19073_v14  ;;  %v24519_v14 = vld [vmem:[#allocation135_spill] sm:$0xff]  ;;  %v24523_v40 = vld [vmem:[#allocation144_spill] sm:$0xff] }
 0x6f2   : > { %10644 = vmatpush1.bf16.msra.mxu1 %v19071_v13  ;;  %v24518_v13 = vld [vmem:[#allocation116_spill] sm:$0xff] }
 0x6f3   : > { %10645 = vmatprep.subr.bf16.mxu1 %v19076_v18  ;;  %v24517_v18 = vld [vmem:[#allocation115_spill] sm:$0xff] }
 0x6f5   : > { %16869 = vmatmul.mubr.msk.bf16.gmra.mrb[28].mxu1 %vm20634_vm3, %v24516_v26  ;;  %v24569_v26 = vld [vmem:[#allocation112_spill] sm:$0xff] }
 0x6f6   : > { %10087 = vmatprep.mubr.bf16.mxu1 %v15409_v42  ;;  %10646 = vmatpush1.bf16.msra.mxu1 %v19074_v59  ;;  %v24520_v59 = vld [vmem:[#allocation134_spill] sm:$0xff] }
 0x6f7   : > { %10647 = vmatprep.subr.bf16.mxu1 %v19079_v57 }
 0x6fa   : > { %10648 = vmatpush1.bf16.msra.mxu1 %v19077_v50  ;;  %v24521_v50 = vld [vmem:[#allocation145_spill] sm:$0xff] }
 0x6fb   : > { %11259 = vmatprep.subr.bf16.mxu1 %v19082_v10  ;;  %v24522_v10 = vld [vmem:[#allocation157_spill] sm:$0xff] }
 0x6fc   : > { %v15417_v57 = vcombine.high %v24250_v15, %v24522_v10  ;;  %v15416_v42 = vcombine.low %v24250_v15, %v24522_v10  ;;  %v24526_v10 = vld [vmem:[#allocation47_spill] sm:$0xff] }
 0x6fd   : > { %10088 = vmatmul.mubr.bf16.gmra.mrb[32].mxu1 %v15408_v47  ;;  %v24524_v47 = vld [vmem:[#allocation165_spill] sm:$0xff] }
 0x6fe   : > { %16872 = vmatprep.mubr.msk.bf16.mxu1 %vm20634_vm3, %v24517_v18  ;;  %v24568_v18 = vld [vmem:[#allocation59_spill] sm:$0xff] }
 0x705   : > { %16875 = vmatmul.mubr.msk.bf16.gmra.mrb[36].mxu1 %vm20634_vm3, %v24518_v13  ;;  %v19139_v13 = vld [vmem:[#allocation11 + $0x534] ss:$8 sps:$4 sm:$0xff]  }
 0x706   : > { %16878 = vmatprep.mubr.msk.bf16.mxu1 %vm20634_vm3, %v24519_v14  ;;  %v19136_v14 = vld [vmem:[#allocation11 + $0x524] ss:$8 sps:$4 sm:$0xff]  }
 0x70d   : > { %16881 = vmatmul.mubr.msk.bf16.gmra.mrb[40].mxu1 %vm20634_vm3, %v24520_v59 }
 0x70e   : > { %16884 = vmatprep.mubr.msk.bf16.mxu1 %vm20634_vm3, %v24521_v50  ;;  %v24525_v50 = vld [vmem:[#allocation179_spill] sm:$0xff] }
 0x715   : > { %16887 = vmatmul.mubr.msk.bf16.gmra.mrb[44].mxu1 %vm20634_vm3, %v24523_v40  ;;  %v24529_v40 = vld [vmem:[#allocation102_spill] sm:$0xff] }
 0x716   : > { %10127 = vmatprep.mubr.bf16.mxu1 %v15417_v57  ;;  %v19080_v57 = vld [vmem:[#allocation11 + $0x400] ss:$8 sps:$4 sm:$0xff]  }
 0x71d   : > { %10128 = vmatmul.mubr.bf16.gmra.mrb[48].mxu1 %v15416_v42  ;;  %v19085_v42 = vld [vmem:[#allocation11 + $0x414] ss:$8 sps:$4 sm:$0xff]  }
 0x71e   : > { %16890 = vmatprep.mubr.msk.bf16.mxu1 %vm20634_vm3, %v24524_v47  ;;  %v19091_v47 = vld [vmem:[#allocation11 + $0x434] ss:$8 sps:$4 sm:$0xff]  }
 0x725   : > { %16893 = vmatmul.mubr.msk.bf16.gmra.mrb[52].mxu1 %vm20634_vm3, %v22464_v37  ;;  %v24527_v37 = vld [vmem:[#allocation46_spill] sm:$0xff] }
 0x726   : > { %16896 = vmatprep.mubr.msk.bf16.mxu1 %vm20634_vm3, %v22519_v52  ;;  %v24528_v52 = vld [vmem:[#allocation111_spill] sm:$0xff] }
 0x72d   : > { %16899 = vmatmul.mubr.msk.bf16.gmra.mrb[56].mxu1 %vm20634_vm3, %v24525_v50  ;;  %v19088_v50 = vld [vmem:[#allocation11 + $0x424] ss:$8 sps:$4 sm:$0xff]  }
 0x72e   : > { %16902 = vmatprep.mubr.msk.bf16.mxu1 %vm20634_vm3, %v22571_v3  ;;  %v19083_v3 = vld [vmem:[#allocation11 + $0x410] ss:$8 sps:$4 sm:$0xff]  }
 0x735   : > { %16905 = vmatmul.mubr.msk.bf16.gmra.mrb[60].mxu1 %vm20634_vm3, %v22564_v54  ;;  %v19086_v54 = vld [vmem:[#allocation11 + $0x420] ss:$8 sps:$4 sm:$0xff]  }
 0x736   : > { %16940 = vmatprep.mubr.msk.bf16.mxu1 %vm20191_vm1, %v24526_v10  ;;  %v24530_v10 = vld [vmem:[#allocation70_spill] sm:$0xff] }
 0x73d   : > { %16943 = vmatmul.mubr.msk.bf16.vlgmr.msra.gmra.mrb[0].mxu1 %vm20191_vm1, %v24527_v37  ;;  %v19089_v37 = vld [vmem:[#allocation11 + $0x430] ss:$8 sps:$4 sm:$0xff]  }
 0x73e   : > { %16946 = vmatprep.mubr.msk.bf16.mxu1 %vm20191_vm1, %v24528_v52  ;;  %11260 = vmatpush1.bf16.msra.mxu1 %v19080_v57  ;;  %v19094_v52 = vld [vmem:[#allocation11 + $0x444] ss:$8 sps:$4 sm:$0xff]   ;;  %v19092_v57 = vld [vmem:[#allocation11 + $0x440] ss:$8 sps:$4 sm:$0xff]  }
 0x73f   : > { %11261 = vmatprep.subr.bf16.mxu1 %v19085_v42  ;;  %v19097_v42 = vld [vmem:[#allocation11 + $0x454] ss:$8 sps:$4 sm:$0xff]  }
 0x742   : > { %11262 = vmatpush1.bf16.msra.mxu1 %v19083_v3  ;;  %v24531_v3 = vld [vmem:[#allocation69_spill] sm:$0xff] }
 0x743   : > { %11263 = vmatprep.subr.bf16.mxu1 %v19088_v50  ;;  %v24532_v50 = vld [vmem:[#allocation66_spill] sm:$0xff] }
 0x745   : > { %16949 = vmatmul.mubr.msk.bf16.gmra.mrb[4].mxu1 %vm20191_vm1, %v24529_v40  ;;  %v19095_v40 = vld [vmem:[#allocation11 + $0x450] ss:$8 sps:$4 sm:$0xff]  }
 0x746   : > { %16952 = vmatprep.mubr.msk.bf16.mxu1 %vm20191_vm1, %v24530_v10  ;;  %11264 = vmatpush1.bf16.msra.mxu1 %v19086_v54  ;;  %v19100_v10 = vld [vmem:[#allocation11 + $0x464] ss:$8 sps:$4 sm:$0xff]   ;;  %v19098_v54 = vld [vmem:[#allocation11 + $0x460] ss:$8 sps:$4 sm:$0xff]  }
 0x747   : > { %11265 = vmatprep.subr.bf16.mxu1 %v19091_v47  ;;  %v19103_v47 = vld [vmem:[#allocation11 + $0x474] ss:$8 sps:$4 sm:$0xff]  }
 0x74a   : > { %11266 = vmatpush1.bf16.msra.mxu1 %v19089_v37  ;;  %v24533_v37 = vld [vmem:[#allocation65_spill] sm:$0xff] }
 0x74b   : > { %11267 = vmatprep.subr.bf16.mxu1 %v19094_v52  ;;  %v24534_v52 = vld [vmem:[#allocation82_spill] sm:$0xff] }
 0x74d   : > { %16955 = vmatmul.mubr.msk.bf16.gmra.mrb[8].mxu1 %vm20191_vm1, %v24531_v3  ;;  %v19101_v3 = vld [vmem:[#allocation11 + $0x470] ss:$8 sps:$4 sm:$0xff]  }
 0x74e   : > { %16958 = vmatprep.mubr.msk.bf16.mxu1 %vm20191_vm1, %v24532_v50  ;;  %11268 = vmatpush1.bf16.msra.mxu1 %v19092_v57  ;;  %v19106_v50 = vld [vmem:[#allocation11 + $0x484] ss:$8 sps:$4 sm:$0xff]   ;;  %v19104_v57 = vld [vmem:[#allocation11 + $0x480] ss:$8 sps:$4 sm:$0xff]  }
 0x74f   : > { %11269 = vmatprep.subr.bf16.mxu1 %v19097_v42  ;;  %v19109_v42 = vld [vmem:[#allocation11 + $0x494] ss:$8 sps:$4 sm:$0xff]  }
 0x752   : > { %11270 = vmatpush1.bf16.msra.mxu1 %v19095_v40  ;;  %v24535_v40 = vld [vmem:[#allocation79_spill] sm:$0xff] }
 0x753   : > { %11271 = vmatprep.subr.bf16.mxu1 %v19100_v10  ;;  %v24536_v10 = vld [vmem:[#allocation20_spill] sm:$0xff] }
 0x755   : > { %16961 = vmatmul.mubr.msk.bf16.gmra.mrb[12].mxu1 %vm20191_vm1, %v24533_v37  ;;  %v19107_v37 = vld [vmem:[#allocation11 + $0x490] ss:$8 sps:$4 sm:$0xff]  }
 0x756   : > { %16964 = vmatprep.mubr.msk.bf16.mxu1 %vm20191_vm1, %v24534_v52  ;;  %11272 = vmatpush1.bf16.msra.mxu1 %v19098_v54  ;;  %v19112_v52 = vld [vmem:[#allocation11 + $0x4a4] ss:$8 sps:$4 sm:$0xff]   ;;  %v19110_v54 = vld [vmem:[#allocation11 + $0x4a0] ss:$8 sps:$4 sm:$0xff]  }
 0x757   : > { %11273 = vmatprep.subr.bf16.mxu1 %v19103_v47  ;;  %v19115_v47 = vld [vmem:[#allocation11 + $0x4b4] ss:$8 sps:$4 sm:$0xff]  }
 0x75a   : > { %11274 = vmatpush1.bf16.msra.mxu1 %v19101_v3  ;;  %v24537_v3 = vld [vmem:[#allocation19_spill] sm:$0xff] }
 0x75b   : > { %11275 = vmatprep.subr.bf16.mxu1 %v19106_v50  ;;  %v24538_v50 = vld [vmem:[#allocation35_spill] sm:$0xff] }
 0x75d   : > { %16967 = vmatmul.mubr.msk.bf16.gmra.mrb[16].mxu1 %vm20191_vm1, %v24535_v40  ;;  %v19113_v40 = vld [vmem:[#allocation11 + $0x4b0] ss:$8 sps:$4 sm:$0xff]  }
 0x75e   : > { %16970 = vmatprep.mubr.msk.bf16.mxu1 %vm20191_vm1, %v24536_v10  ;;  %11276 = vmatpush1.bf16.msra.mxu1 %v19104_v57  ;;  %v19118_v10 = vld [vmem:[#allocation11 + $0x4c4] ss:$8 sps:$4 sm:$0xff]   ;;  %v19116_v57 = vld [vmem:[#allocation11 + $0x4c0] ss:$8 sps:$4 sm:$0xff]  }
 0x75f   : > { %11277 = vmatprep.subr.bf16.mxu1 %v19109_v42  ;;  %v19121_v42 = vld [vmem:[#allocation11 + $0x4d4] ss:$8 sps:$4 sm:$0xff]  }
 0x762   : > { %11278 = vmatpush1.bf16.msra.mxu1 %v19107_v37  ;;  %v24539_v37 = vld [vmem:[#allocation34_spill] sm:$0xff] }
 0x763   : > { %11279 = vmatprep.subr.bf16.mxu1 %v19112_v52  ;;  %v24540_v52 = vld [vmem:[#allocation94_spill] sm:$0xff] }
 0x765   : > { %16973 = vmatmul.mubr.msk.bf16.gmra.mrb[20].mxu1 %vm20191_vm1, %v24537_v3  ;;  %v19119_v3 = vld [vmem:[#allocation11 + $0x4d0] ss:$8 sps:$4 sm:$0xff]  }
 0x766   : > { %16976 = vmatprep.mubr.msk.bf16.mxu1 %vm20191_vm1, %v24538_v50  ;;  %11280 = vmatpush1.bf16.msra.mxu1 %v19110_v54  ;;  %v19124_v50 = vld [vmem:[#allocation11 + $0x4e4] ss:$8 sps:$4 sm:$0xff]   ;;  %v19122_v54 = vld [vmem:[#allocation11 + $0x4e0] ss:$8 sps:$4 sm:$0xff]  }
 0x767   : > { %11281 = vmatprep.subr.bf16.mxu1 %v19115_v47  ;;  %v19127_v47 = vld [vmem:[#allocation11 + $0x4f4] ss:$8 sps:$4 sm:$0xff]  }
 0x76a   : > { %11282 = vmatpush1.bf16.msra.mxu1 %v19113_v40  ;;  %v24541_v40 = vld [vmem:[#allocation93_spill] sm:$0xff] }
 0x76b   : > { %11283 = vmatprep.subr.bf16.mxu1 %v19118_v10  ;;  %v24542_v10 = vld [vmem:[#allocation101_spill] sm:$0xff] }
 0x76d   : > { %16979 = vmatmul.mubr.msk.bf16.gmra.mrb[24].mxu1 %vm20191_vm1, %v24539_v37  ;;  %v19125_v37 = vld [vmem:[#allocation11 + $0x4f0] ss:$8 sps:$4 sm:$0xff]  }
 0x76e   : > { %16982 = vmatprep.mubr.msk.bf16.mxu1 %vm20191_vm1, %v24540_v52  ;;  %11284 = vmatpush1.bf16.msra.mxu1 %v19116_v57  ;;  %v19130_v52 = vld [vmem:[#allocation11 + $0x504] ss:$8 sps:$4 sm:$0xff]  }
 0x76f   : > { %11285 = vmatprep.subr.bf16.mxu1 %v19121_v42  ;;  %v24543_v57 = vld [vmem:[#allocation72_spill] sm:$0xff]  ;;  %v24544_v42 = vld [vmem:[#allocation121_spill] sm:$0xff] }
 0x772   : > { %11286 = vmatpush1.bf16.msra.mxu1 %v19119_v3  ;;  %v24545_v3 = vld [vmem:[#allocation120_spill] sm:$0xff] }
 0x773   : > { %11287 = vmatprep.subr.bf16.mxu1 %v19124_v50  ;;  %v24546_v50 = vld [vmem:[#allocation137_spill] sm:$0xff] }
 0x775   : > { %16985 = vmatmul.mubr.msk.bf16.gmra.mrb[28].mxu1 %vm20191_vm1, %v24541_v40  ;;  %v24549_v40 = vld [vmem:[#allocation146_spill] sm:$0xff] }
 0x776   : > { %16988 = vmatprep.mubr.msk.bf16.mxu1 %vm20191_vm1, %v24542_v10  ;;  %11288 = vmatpush1.bf16.msra.mxu1 %v19122_v54  ;;  %v24547_v54 = vld [vmem:[#allocation136_spill] sm:$0xff]  ;;  %v24550_v10 = vld [vmem:[#allocation158_spill] sm:$0xff] }
 0x777   : > { %11289 = vmatprep.subr.bf16.mxu1 %v19127_v47  ;;  %v24548_v47 = vld [vmem:[#allocation147_spill] sm:$0xff] }
 0x77a   : > { %11290 = vmatpush1.bf16.msra.mxu1 %v19125_v37  ;;  %v24551_v37 = vld [vmem:[#allocation156_spill] sm:$0xff] }
 0x77b   : > { %11901 = vmatprep.subr.bf16.mxu1 %v19130_v52  ;;  %v24552_v52 = vld [vmem:[#allocation168_spill] sm:$0xff] }
 0x77d   : > { %16991 = vmatmul.mubr.msk.bf16.gmra.mrb[32].mxu1 %vm20191_vm1, %v24543_v57  ;;  %v24553_v57 = vld [vmem:[#allocation167_spill] sm:$0xff] }
 0x77e   : > { %16994 = vmatprep.mubr.msk.bf16.mxu1 %vm20191_vm1, %v24544_v42  ;;  %v24554_v42 = vld [vmem:[#allocation182_spill] sm:$0xff] }
 0x785   : > { %16997 = vmatmul.mubr.msk.bf16.gmra.mrb[36].mxu1 %vm20191_vm1, %v24545_v3  ;;  %v24555_v3 = vld [vmem:[#allocation181_spill] sm:$0xff] }
 0x786   : > { %17000 = vmatprep.mubr.msk.bf16.mxu1 %vm20191_vm1, %v24546_v50  ;;  %v24556_v50 = vld [vmem:[#allocation40_spill] sm:$0xff] }
 0x78d   : > { %17003 = vmatmul.mubr.msk.bf16.gmra.mrb[40].mxu1 %vm20191_vm1, %v24547_v54  ;;  %v24557_v54 = vld [vmem:[#allocation39_spill] sm:$0xff] }
 0x78e   : > { %17006 = vmatprep.mubr.msk.bf16.mxu1 %vm20191_vm1, %v24548_v47  ;;  %v24558_v47 = vpack.c.bf16 %v24556_v50, %v24557_v54  ;;  %v24565_v50 = vld [vmem:[#allocation81_spill] sm:$0xff]  ;;  %v24566_v54 = vld [vmem:[#allocation50_spill] sm:$0xff] }
 0x795   : > { %17009 = vmatmul.mubr.msk.bf16.gmra.mrb[44].mxu1 %vm20191_vm1, %v24549_v40  ;;  %v19128_v40 = vld [vmem:[#allocation11 + $0x500] ss:$8 sps:$4 sm:$0xff]  }
 0x796   : > { %17012 = vmatprep.mubr.msk.bf16.mxu1 %vm20191_vm1, %v24550_v10  ;;  %v19133_v10 = vld [vmem:[#allocation11 + $0x514] ss:$8 sps:$4 sm:$0xff]  }
 0x79d   : > { %17015 = vmatmul.mubr.msk.bf16.gmra.mrb[48].mxu1 %vm20191_vm1, %v24551_v37  ;;  %v24559_v37 = vld [vmem:[#allocation43_spill] sm:$0xff] }
 0x79e   : > { %17018 = vmatprep.mubr.msk.bf16.mxu1 %vm20191_vm1, %v24552_v52  ;;  %v24560_v52 = vld [vmem:[#allocation22_spill] sm:$0xff] }
 0x7a5   : > { %17021 = vmatmul.mubr.msk.bf16.gmra.mrb[52].mxu1 %vm20191_vm1, %v24553_v57  ;;  %v24561_v57 = vpack.c.bf16 %v24559_v37, %v24560_v52  ;;  %v24570_v37 = vpack.c.bf16 %v24568_v18, %v24569_v26  ;;  %v19137_v52 = vld [vmem:[#allocation11 + $0x530] ss:$8 sps:$4 sm:$0xff]   ;;  %v19148_v26 = vld [vmem:[#allocation11 + $0x564] ss:$8 sps:$4 sm:$0xff]   ;;  %v19146_v18 = vld [vmem:[#allocation11 + $0x560] ss:$8 sps:$4 sm:$0xff]  }
 0x7a6   : > { %17024 = vmatprep.mubr.msk.bf16.mxu1 %vm20191_vm1, %v24554_v42  ;;  %v24562_v42 = vld [vmem:[#allocation103_spill] sm:$0xff] }
 0x7ad   : > { %17027 = vmatmul.mubr.msk.bf16.gmra.mrb[56].mxu1 %vm20191_vm1, %v24555_v3  ;;  %v24563_v3 = vld [vmem:[#allocation51_spill] sm:$0xff] }
 0x7ae   : > { %17030 = vmatprep.mubr.msk.bf16.mxu1 %vm20191_vm1, %v22581_v43  ;;  %v24564_v59 = vpack.c.bf16 %v24562_v42, %v24563_v3  ;;  %v19131_v43 = vld [vmem:[#allocation11 + $0x510] ss:$8 sps:$4 sm:$0xff]  }
 0x7af   : > { %v24572_v42 = vld [vmem:[#allocation109_spill] sm:$0xff] }
 0x7b0   : > { %v24574_v3 = vld [vmem:[#allocation57_spill] sm:$0xff] }
 0x7b5   : > { %17033 = vmatmul.mubr.msk.bf16.gmra.mrb[60].mxu1 %vm20191_vm1, %v22573_v61  ;;  %v19134_v61 = vld [vmem:[#allocation11 + $0x520] ss:$8 sps:$4 sm:$0xff]  }
 0x7b6   : > { %11291 = vmatprep.mubr.bf16.mxu1 %v24558_v47  ;;  %v24567_v47 = vpack.c.bf16 %v24565_v50, %v24566_v54  ;;  %v19143_v54 = vld [vmem:[#allocation11 + $0x550] ss:$8 sps:$4 sm:$0xff]  }
 0x7bd   : > { %11292 = vmatmul.mubr.bf16.vlgmr.msra.gmra.mrb[0].mxu1 %v24561_v57  ;;  %v24571_v57 = vld [vmem:[#allocation54_spill] sm:$0xff] }
 0x7be   : > { %11301 = vmatprep.mubr.bf16.mxu1 %v24564_v59  ;;  %11902 = vmatpush1.bf16.msra.mxu1 %v19128_v40  ;;  %v19142_v59 = vld [vmem:[#allocation11 + $0x544] ss:$8 sps:$4 sm:$0xff]   ;;  %v19140_v40 = vld [vmem:[#allocation11 + $0x540] ss:$8 sps:$4 sm:$0xff]  }
 0x7bf   : > { %11903 = vmatprep.subr.bf16.mxu1 %v19133_v10  ;;  %v19145_v10 = vld [vmem:[#allocation11 + $0x554] ss:$8 sps:$4 sm:$0xff]  }
 0x7c2   : > { %11904 = vmatpush1.bf16.msra.mxu1 %v19131_v43  ;;  %v24575_v43 = vld [vmem:[#allocation119_spill] sm:$0xff] }
 0x7c3   : > { %11905 = vmatprep.subr.bf16.mxu1 %v19136_v14  ;;  %v24573_v14 = vpack.c.bf16 %v24571_v57, %v24572_v42  ;;  %v24576_v50 = vpack.c.bf16 %v24574_v3, %v24575_v43  ;;  %v19149_v42 = vld [vmem:[#allocation11 + $0x570] ss:$8 sps:$4 sm:$0xff]  }
 0x7c5   : > { %11302 = vmatmul.mubr.bf16.gmra.mrb[4].mxu1 %v24567_v47  ;;  %v24578_v47 = vld [vmem:[#allocation122_spill] sm:$0xff] }
 0x7c6   : > { %11311 = vmatprep.mubr.bf16.mxu1 %v24570_v37  ;;  %11906 = vmatpush1.bf16.msra.mxu1 %v19134_v61  ;;  %v24577_v61 = vld [vmem:[#allocation55_spill] sm:$0xff] }
 0x7c7   : > { %11907 = vmatprep.subr.bf16.mxu1 %v19139_v13  ;;  %v19151_v13 = vld [vmem:[#allocation11 + $0x574] ss:$8 sps:$4 sm:$0xff]   ;;  %v24579_v37 = vpack.c.bf16 %v24577_v61, %v24578_v47 }
 0x7ca   : > { %11908 = vmatpush1.bf16.msra.mxu1 %v19137_v52  ;;  %v24580_v52 = vld [vmem:[#allocation76_spill] sm:$0xff] }
 0x7cb   : > { %11909 = vmatprep.subr.bf16.mxu1 %v19142_v59  ;;  %v24581_v59 = vld [vmem:[#allocation73_spill] sm:$0xff] }
 0x7cc   : > { %v24582_v57 = vpack.c.bf16 %v24580_v52, %v24581_v59  ;;  %v19160_v52 = vld [vmem:[#allocation11 + $0x5a4] ss:$8 sps:$4 sm:$0xff]   ;;  %v24589_v59 = vld [vmem:[#allocation85_spill] sm:$0xff] }
 0x7cd   : > { %11312 = vmatmul.mubr.bf16.gmra.mrb[8].mxu1 %v24573_v14  ;;  %v19154_v14 = vld [vmem:[#allocation11 + $0x584] ss:$8 sps:$4 sm:$0xff]  }
 0x7ce   : > { %11321 = vmatprep.mubr.bf16.mxu1 %v24576_v50  ;;  %11910 = vmatpush1.bf16.msra.mxu1 %v19140_v40  ;;  %v19152_v40 = vld [vmem:[#allocation11 + $0x580] ss:$8 sps:$4 sm:$0xff]  }
 0x7cf   : > { %11911 = vmatprep.subr.bf16.mxu1 %v19145_v10  ;;  %v19157_v10 = vld [vmem:[#allocation11 + $0x594] ss:$8 sps:$4 sm:$0xff]  }
 0x7d0   : > { %v24583_v50 = vld [vmem:[#allocation74_spill] sm:$0xff] }
 0x7d2   : > { %11912 = vmatpush1.bf16.msra.mxu1 %v19143_v54  ;;  %v24584_v54 = vld [vmem:[#allocation67_spill] sm:$0xff] }
 0x7d3   : > { %11913 = vmatprep.subr.bf16.mxu1 %v19148_v26  ;;  %v24585_v26 = vpack.c.bf16 %v24583_v50, %v24584_v54  ;;  %v19161_v54 = vld [vmem:[#allocation11 + $0x5b0] ss:$8 sps:$4 sm:$0xff]  }
 0x7d5   : > { %11322 = vmatmul.mubr.bf16.gmra.mrb[12].mxu1 %v24579_v37  ;;  %v19155_v37 = vld [vmem:[#allocation11 + $0x590] ss:$8 sps:$4 sm:$0xff]  }
 0x7d6   : > { %11331 = vmatprep.mubr.bf16.mxu1 %v24582_v57  ;;  %11914 = vmatpush1.bf16.msra.mxu1 %v19146_v18  ;;  %v19158_v18 = vld [vmem:[#allocation11 + $0x5a0] ss:$8 sps:$4 sm:$0xff]  }
 0x7d7   : > { %11915 = vmatprep.subr.bf16.mxu1 %v19151_v13  ;;  %v19163_v13 = vld [vmem:[#allocation11 + $0x5b4] ss:$8 sps:$4 sm:$0xff]   ;;  %v24590_v57 = vld [vmem:[#allocation83_spill] sm:$0xff] }
 0x7da   : > { %11916 = vmatpush1.bf16.msra.mxu1 %v19149_v42  ;;  %v24591_v42 = vpack.c.bf16 %v24589_v59, %v24590_v57  ;;  %v19167_v57 = vld [vmem:[#allocation11 + $0x5d0] ss:$8 sps:$4 sm:$0xff]  }
 0x7db   : > { %11917 = vmatprep.subr.bf16.mxu1 %v19154_v14  ;;  %v24592_v14 = vld [vmem:[#allocation30_spill] sm:$0xff] }
 0x7dc   : > { %v24594_v50 = vpack.c.bf16 %v24592_v14, %v24593_v38  ;;  %v19172_v38 = vld [vmem:[#allocation11 + $0x5e4] ss:$8 sps:$4 sm:$0xff]   ;;  %v24602_v14 = vld [vmem:[#allocation38_spill] sm:$0xff] }
 0x7dd   : > { %11332 = vmatmul.mubr.bf16.gmra.mrb[16].mxu1 %v24585_v26 }
 0x7de   : > { %11341 = vmatprep.mubr.bf16.mxu1 %v24588_v62  ;;  %11918 = vmatpush1.bf16.msra.mxu1 %v19152_v40  ;;  %v19166_v62 = vld [vmem:[#allocation11 + $0x5c4] ss:$8 sps:$4 sm:$0xff]  }
 0x7df   : > { %11919 = vmatprep.subr.bf16.mxu1 %v19157_v10  ;;  %v24595_v40 = vld [vmem:[#allocation28_spill] sm:$0xff]  ;;  %v24596_v10 = vld [vmem:[#allocation21_spill] sm:$0xff] }
 0x7e0   : > { %v24597_v26 = vpack.c.bf16 %v24595_v40, %v24596_v10  ;;  %v19173_v10 = vld [vmem:[#allocation11 + $0x5f0] ss:$8 sps:$4 sm:$0xff]  }
 0x7e2   : > { %11920 = vmatpush1.bf16.msra.mxu1 %v19155_v37  ;;  %v24598_v37 = vld [vmem:[#allocation49_spill] sm:$0xff] }
 0x7e3   : > { %11921 = vmatprep.subr.bf16.mxu1 %v19160_v52  ;;  %v24599_v52 = vld [vmem:[#allocation41_spill] sm:$0xff] }
 0x7e4   : > { %v24600_v59 = vpack.c.bf16 %v24598_v37, %v24599_v52 }
 0x7e5   : > { %11342 = vmatmul.mubr.bf16.gmra.mrb[20].mxu1 %v24591_v42  ;;  %v24601_v42 = vld [vmem:[#allocation42_spill] sm:$0xff] }
 0x7e6   : > { %11351 = vmatprep.mubr.bf16.mxu1 %v24594_v50  ;;  %11922 = vmatpush1.bf16.msra.mxu1 %v19158_v18  ;;  %v19170_v18 = vld [vmem:[#allocation11 + $0x5e0] ss:$8 sps:$4 sm:$0xff]   ;;  %v24603_v50 = vpack.c.bf16 %v24601_v42, %v24602_v14 }
 0x7e7   : > { %11923 = vmatprep.subr.bf16.mxu1 %v19163_v13  ;;  %v19175_v13 = vld [vmem:[#allocation11 + $0x5f4] ss:$8 sps:$4 sm:$0xff]  }
 0x7ea   : > { %11924 = vmatpush1.bf16.msra.mxu1 %v19161_v54  ;;  %v24604_v54 = vld [vmem:[#allocation71_spill] sm:$0xff] }
 0x7eb   : > { %11925 = vmatprep.subr.bf16.mxu1 %v19166_v62  ;;  %v24605_v62 = vld [vmem:[#allocation97_spill] sm:$0xff] }
 0x7ec   : > { %v24606_v40 = vpack.c.bf16 %v24604_v54, %v24605_v62  ;;  %v24616_v54 = vld [vmem:[#allocation132_spill] sm:$0xff]  ;;  %v24617_v62 = vld [vmem:[#allocation127_spill] sm:$0xff] }
 0x7ed   : > { %11352 = vmatmul.mubr.bf16.gmra.mrb[24].mxu1 %v24597_v26  ;;  %v19178_v26 = vld [vmem:[#allocation11 + $0x604] ss:$8 sps:$4 sm:$0xff]  }
 0x7ee   : > { %11361 = vmatprep.mubr.bf16.mxu1 %v24600_v59  ;;  %11926 = vmatpush1.bf16.msra.mxu1 %v19164_v27  ;;  %v24607_v27 = vld [vmem:[#allocation98_spill] sm:$0xff] }
 0x7ef   : > { %11927 = vmatprep.subr.bf16.mxu1 %v19169_v22  ;;  %v24608_v22 = vld [vmem:[#allocation95_spill] sm:$0xff] }
 0x7f0   : > { %v24609_v59 = vpack.c.bf16 %v24607_v27, %v24608_v22  ;;  %v24624_v22 = vld [vmem:[#allocation140_spill] sm:$0xff] }
 0x7f2   : > { %11928 = vmatpush1.bf16.msra.mxu1 %v19167_v57  ;;  %v24610_v57 = vld [vmem:[#allocation107_spill] sm:$0xff] }
 0x7f3   : > { %11929 = vmatprep.subr.bf16.mxu1 %v19172_v38  ;;  %v24611_v38 = vld [vmem:[#allocation78_spill] sm:$0xff] }
 0x7f4   : > { %v24612_v2 = vpack.c.bf16 %v24610_v57, %v24611_v38  ;;  %v24627_v57 = vld [vmem:[#allocation152_spill] sm:$0xff]  ;;  %v24630_v38 = vld [vmem:[#allocation150_spill] sm:$0xff] }
 0x7f5   : > { %11362 = vmatmul.mubr.bf16.gmra.mrb[28].mxu1 %v24603_v50  ;;  %v24614_v50 = vld [vmem:[#allocation77_spill] sm:$0xff] }
 0x7f6   : > { %11371 = vmatprep.mubr.bf16.mxu1 %v24606_v40  ;;  %11930 = vmatpush1.bf16.msra.mxu1 %v19170_v18  ;;  %v24615_v7 = vpack.c.bf16 %v24613_v4, %v24614_v50  ;;  %v24618_v18 = vpack.c.bf16 %v24616_v54, %v24617_v62  ;;  %v24620_v40 = vld [vmem:[#allocation124_spill] sm:$0xff]  ;;  %v24632_v54 = vld [vmem:[#allocation163_spill] sm:$0xff] }
 0x7f7   : > { %11931 = vmatprep.subr.bf16.mxu1 %v19175_v13  ;;  %v24619_v13 = vld [vmem:[#allocation130_spill] sm:$0xff]  ;;  %v24633_v62 = vld [vmem:[#allocation160_spill] sm:$0xff] }
 0x7fa   : > { %11932 = vmatpush1.bf16.msra.mxu1 %v19173_v10  ;;  %v24621_v10 = vpack.c.bf16 %v24619_v13, %v24620_v40  ;;  %v24635_v13 = vld [vmem:[#allocation161_spill] sm:$0xff]  ;;  %v24636_v40 = vld [vmem:[#allocation159_spill] sm:$0xff] }
 0x7fb   : > { %12543 = vmatprep.subr.bf16.mxu1 %v19178_v26  ;;  %v24622_v26 = vld [vmem:[#allocation141_spill] sm:$0xff] }
 0x7fc   : > { %v24623_v27 = vpack.c.bf16 %v22336_v31, %v24622_v26  ;;  %v24637_v31 = vpack.c.bf16 %v24635_v13, %v24636_v40  ;;  %v24639_v26 = vld [vmem:[#allocation172_spill] sm:$0xff] }
 0x7fd   : > { %11372 = vmatmul.mubr.bf16.gmra.mrb[32].mxu1 %v24609_v59  ;;  %v24625_v59 = vpack.c.bf16 %v22328_v19, %v24624_v22  ;;  %v24642_v22 = vld [vmem:[#allocation169_spill] sm:$0xff]  ;;  %v19190_v40 = vld [vmem:[#allocation11 + $0x644] ss:$8 sps:$4 sm:$0xff]  }
 0x7fe   : > { %11381 = vmatprep.mubr.bf16.mxu1 %v24612_v2  ;;  %v24626_v2 = vld [vmem:[#allocation155_spill] sm:$0xff]  ;;  %v19185_v13 = vld [vmem:[#allocation11 + $0x630] ss:$8 sps:$4 sm:$0xff]  }
 0x7ff   : > { %v24628_v4 = vpack.c.bf16 %v24626_v2, %v24627_v57  ;;  %v24644_v2 = vpack.c.bf16 %v22554_v51, %v22539_v16  ;;  %v24645_v57 = vpack.c.bf16 %v22546_v29, %v22535_v60  ;;  %v19179_v16 = vld [vmem:[#allocation11 + $0x610] ss:$8 sps:$4 sm:$0xff]   ;;  %v19184_v51 = vld [vmem:[#allocation11 + $0x624] ss:$8 sps:$4 sm:$0xff]   ;;  %v19182_v60 = vld [vmem:[#allocation11 + $0x620] ss:$8 sps:$4 sm:$0xff]  }
 0x800   : > { %v19187_v29 = vld [vmem:[#allocation11 + $0x634] ss:$8 sps:$4 sm:$0xff]  }
 0x805   : > { %11382 = vmatmul.mubr.bf16.gmra.mrb[36].mxu1 %v24615_v7  ;;  %v24629_v7 = vld [vmem:[#allocation153_spill] sm:$0xff] }
 0x806   : > { %11391 = vmatprep.mubr.bf16.mxu1 %v24618_v18  ;;  %v24631_v50 = vpack.c.bf16 %v24629_v7, %v24630_v38  ;;  %v24634_v18 = vpack.c.bf16 %v24632_v54, %v24633_v62  ;;  %v19176_v7 = vld [vmem:[#allocation11 + $0x600] ss:$8 sps:$4 sm:$0xff]   ;;  %v19181_v38 = vld [vmem:[#allocation11 + $0x614] ss:$8 sps:$4 sm:$0xff]  }
 0x807   : > { %v24648_v54 = vld [vmem:[#allocation114_spill] sm:$0xff]  ;;  %v24649_v62 = vld [vmem:[#allocation123_spill] sm:$0xff] }
 0x80d   : > { %11392 = vmatmul.mubr.bf16.gmra.mrb[40].mxu1 %v24621_v10  ;;  %v24638_v10 = vld [vmem:[#allocation177_spill] sm:$0xff] }
 0x80e   : > { %11401 = vmatprep.mubr.bf16.mxu1 %v24623_v27  ;;  %v24640_v19 = vpack.c.bf16 %v24638_v10, %v24639_v26  ;;  %v24641_v27 = vld [vmem:[#allocation175_spill] sm:$0xff]  ;;  %v19193_v26 = vld [vmem:[#allocation11 + $0x654] ss:$8 sps:$4 sm:$0xff]  }
 0x80f   : > { %v19188_v10 = vld [vmem:[#allocation11 + $0x640] ss:$8 sps:$4 sm:$0xff]  }
 0x815   : > { %11402 = vmatmul.mubr.bf16.gmra.mrb[44].mxu1 %v24625_v59  ;;  %v24643_v59 = vpack.c.bf16 %v24641_v27, %v24642_v22  ;;  %v24652_v22 = vld [vmem:[#allocation117_spill] sm:$0xff] }
 0x816   : > { %11411 = vmatprep.mubr.bf16.mxu1 %v24628_v4  ;;  %v24646_v4 = vld [vmem:[#allocation113_spill] sm:$0xff] }
 0x81d   : > { %11412 = vmatmul.mubr.bf16.gmra.mrb[48].mxu1 %v24631_v50  ;;  %v24647_v50 = vld [vmem:[#allocation45_spill] sm:$0xff] }
 0x81e   : > { %11421 = vmatprep.mubr.bf16.mxu1 %v24634_v18  ;;  %v24650_v18 = vld [vmem:[#allocation118_spill] sm:$0xff] }
 0x825   : > { %11422 = vmatmul.mubr.bf16.gmra.mrb[52].mxu1 %v24637_v31  ;;  %v8034_v31 = vrot.slane %v24574_v3, 1  ;;  %v24711_v3 = vld [vmem:[#allocation90_spill] sm:$0xff] }
 0x826   : > { %11431 = vmatprep.mubr.bf16.mxu1 %v24640_v19  ;;  %v24651_v19 = vrot.slane %v24575_v43, 1  ;;  %v24653_v43 = vrot.slane %v24578_v47, 1  ;;  %v19205_v47 = vld [vmem:[#allocation11 + $0x694] ss:$8 sps:$4 sm:$0xff]  }
 0x828   : > { %v17117_v27 = vpack.c.bf16 %v8034_v31, %v24651_v19  ;;  %v19209_v19 = vld [vmem:[#allocation11 + $0x6b0] ss:$8 sps:$4 sm:$0xff]  }
 0x82d   : > { %11432 = vmatmul.mubr.bf16.gmra.mrb[56].mxu1 %v24643_v59  ;;  %v19191_v59 = vld [vmem:[#allocation11 + $0x650] ss:$8 sps:$4 sm:$0xff]  }
 0x82e   : > { %11441 = vmatprep.mubr.bf16.mxu1 %v24644_v2  ;;  %v8033_v2 = vrot.slane %v24577_v61, 1 }
 0x835   : > { %11442 = vmatmul.mubr.bf16.gmra.mrb[60].mxu1 %v24645_v57  ;;  %v19196_v57 = vld [vmem:[#allocation11 + $0x664] ss:$8 sps:$4 sm:$0xff]  }
 0x836   : > { %17100 = vmatprep.mubr.msk.bf16.mxu1 %vm20634_vm3, %v24646_v4  ;;  %v19194_v4 = vld [vmem:[#allocation11 + $0x660] ss:$8 sps:$4 sm:$0xff]  }
 0x83d   : > { %17103 = vmatmul.mubr.msk.bf16.vlgmr.msra.gmra.mrb[0].mxu1 %vm20634_vm3, %v24647_v50  ;;  %v24654_v50 = vld [vmem:[#allocation23_spill] sm:$0xff] }
 0x83e   : > { %17106 = vmatprep.mubr.msk.bf16.mxu1 %vm20634_vm3, %v24648_v54  ;;  %12544 = vmatpush1.bf16.msra.mxu1 %v19176_v7  ;;  %v17120_v7 = vpack.c.bf16 %v8033_v2, %v24653_v43  ;;  %v19197_v54 = vld [vmem:[#allocation11 + $0x670] ss:$8 sps:$4 sm:$0xff]  }
 0x83f   : > { %12545 = vmatprep.subr.bf16.mxu1 %v19181_v38  ;;  %v19199_v38 = vld [vmem:[#allocation11 + $0x674] ss:$8 sps:$4 sm:$0xff]  }
 0x842   : > { %12546 = vmatpush1.bf16.msra.mxu1 %v19179_v16  ;;  %v19202_v16 = vld [vmem:[#allocation11 + $0x684] ss:$8 sps:$4 sm:$0xff]  }
 0x843   : > { %12547 = vmatprep.subr.bf16.mxu1 %v19184_v51  ;;  %v19200_v51 = vld [vmem:[#allocation11 + $0x680] ss:$8 sps:$4 sm:$0xff]  }
 0x845   : > { %17109 = vmatmul.mubr.msk.bf16.gmra.mrb[4].mxu1 %vm20634_vm3, %v24649_v62  ;;  %v19203_v62 = vld [vmem:[#allocation11 + $0x690] ss:$8 sps:$4 sm:$0xff]  }
 0x846   : > { %17112 = vmatprep.mubr.msk.bf16.mxu1 %vm20634_vm3, %v24650_v18  ;;  %12548 = vmatpush1.bf16.msra.mxu1 %v19182_v60  ;;  %v24655_v60 = vld [vmem:[#allocation24_spill] sm:$0xff] }
 0x847   : > { %12549 = vmatprep.subr.bf16.mxu1 %v19187_v29  ;;  %v24656_v29 = vld [vmem:[#allocation26_spill] sm:$0xff]  ;;  %v19208_v18 = vld [vmem:[#allocation11 + $0x6a4] ss:$8 sps:$4 sm:$0xff]  }
 0x84a   : > { %12550 = vmatpush1.bf16.msra.mxu1 %v19185_v13  ;;  %v19206_v13 = vld [vmem:[#allocation11 + $0x6a0] ss:$8 sps:$4 sm:$0xff]  }
 0x84b   : > { %12551 = vmatprep.subr.bf16.mxu1 %v19190_v40  ;;  %v19211_v40 = vld [vmem:[#allocation11 + $0x6b4] ss:$8 sps:$4 sm:$0xff]  }
 0x84d   : > { %17115 = vmatmul.mubr.msk.bf16.gmra.mrb[8].mxu1 %vm20634_vm3, %v24652_v22  ;;  %v8050_v22 = vrot.slane %v24598_v37, 1  ;;  %v24717_v37 = vld [vmem:[#allocation116_spill] sm:$0xff] }
 0x84e   : > { %17118 = vmatprep.mubr.msk.bf16.mxu1 %vm20634_vm3, %v17117_v27  ;;  %12552 = vmatpush1.bf16.msra.mxu1 %v19188_v10  ;;  %v24657_v10 = vld [vmem:[#allocation27_spill] sm:$0xff] }
 0x84f   : > { %12553 = vmatprep.subr.bf16.mxu1 %v19193_v26  ;;  %v24658_v26 = vld [vmem:[#allocation36_spill] sm:$0xff] }
 0x850   : > { %v19214_v27 = vld [vmem:[#allocation11 + $0x6c4] ss:$8 sps:$4 sm:$0xff]  }
 0x852   : > { %12554 = vmatpush1.bf16.msra.mxu1 %v19191_v59  ;;  %v19212_v59 = vld [vmem:[#allocation11 + $0x6c0] ss:$8 sps:$4 sm:$0xff]  }
 0x853   : > { %12555 = vmatprep.subr.bf16.mxu1 %v19196_v57  ;;  %v19217_v57 = vld [vmem:[#allocation11 + $0x6d4] ss:$8 sps:$4 sm:$0xff]  }
 0x855   : > { %17121 = vmatmul.mubr.msk.bf16.gmra.mrb[12].mxu1 %vm20634_vm3, %v17120_v7  ;;  %v24660_v7 = vld [vmem:[#allocation37_spill] sm:$0xff] }
 0x856   : > { %17124 = vmatprep.mubr.msk.bf16.mxu1 %vm20634_vm3, %v24654_v50  ;;  %12556 = vmatpush1.bf16.msra.mxu1 %v19194_v4  ;;  %v24659_v4 = vrot.slane %v24599_v52, 1  ;;  %v8049_v50 = vrot.slane %v24601_v42, 1  ;;  %v24661_v52 = vrot.slane %v24602_v14, 1  ;;  %v24664_v14 = vld [vmem:[#allocation128_spill] sm:$0xff] }
 0x857   : > { %12557 = vmatprep.subr.bf16.mxu1 %v19199_v38  ;;  %v19215_v38 = vld [vmem:[#allocation11 + $0x6d0] ss:$8 sps:$4 sm:$0xff]  }
 0x858   : > { %v17141_v43 = vpack.c.bf16 %v8050_v22, %v24659_v4  ;;  %v24673_v4 = vld [vmem:[#allocation174_spill] sm:$0xff] }
 0x85a   : > { %12558 = vmatpush1.bf16.msra.mxu1 %v19197_v54  ;;  %v19220_v54 = vld [vmem:[#allocation11 + $0x6e4] ss:$8 sps:$4 sm:$0xff]  }
 0x85b   : > { %12559 = vmatprep.subr.bf16.mxu1 %v19202_v16  ;;  %v19218_v16 = vld [vmem:[#allocation11 + $0x6e0] ss:$8 sps:$4 sm:$0xff]  }
 0x85d   : > { %17127 = vmatmul.mubr.msk.bf16.gmra.mrb[16].mxu1 %vm20634_vm3, %v24655_v60  ;;  %v24662_v60 = vld [vmem:[#allocation125_spill] sm:$0xff] }
 0x85e   : > { %17130 = vmatprep.mubr.msk.bf16.mxu1 %vm20634_vm3, %v24656_v29  ;;  %12560 = vmatpush1.bf16.msra.mxu1 %v19200_v51  ;;  %v17144_v51 = vpack.c.bf16 %v8049_v50, %v24661_v52  ;;  %v19221_v29 = vld [vmem:[#allocation11 + $0x6f0] ss:$8 sps:$4 sm:$0xff]   ;;  %v19235_v52 = vld [vmem:[#allocation11 + $0x734] ss:$8 sps:$4 sm:$0xff]  }
 0x85f   : > { %12561 = vmatprep.subr.bf16.mxu1 %v19205_v47  ;;  %v19223_v47 = vld [vmem:[#allocation11 + $0x6f4] ss:$8 sps:$4 sm:$0xff]  }
 0x862   : > { %12562 = vmatpush1.bf16.msra.mxu1 %v19203_v62  ;;  %v19226_v62 = vld [vmem:[#allocation11 + $0x704] ss:$8 sps:$4 sm:$0xff]  }
 0x863   : > { %12563 = vmatprep.subr.bf16.mxu1 %v19208_v18  ;;  %v24663_v18 = vld [vmem:[#allocation126_spill] sm:$0xff] }
 0x865   : > { %17133 = vmatmul.mubr.msk.bf16.gmra.mrb[20].mxu1 %vm20634_vm3, %v24657_v10  ;;  %v24667_v10 = vld [vmem:[#allocation139_spill] sm:$0xff] }
 0x866   : > { %17136 = vmatprep.mubr.msk.bf16.mxu1 %vm20634_vm3, %v24658_v26  ;;  %12564 = vmatpush1.bf16.msra.mxu1 %v19206_v13  ;;  %v24665_v13 = vld [vmem:[#allocation129_spill] sm:$0xff]  ;;  %v24668_v26 = vld [vmem:[#allocation148_spill] sm:$0xff] }
 0x867   : > { %12565 = vmatprep.subr.bf16.mxu1 %v19211_v40  ;;  %v24666_v40 = vld [vmem:[#allocation138_spill] sm:$0xff] }
 0x86a   : > { %12566 = vmatpush1.bf16.msra.mxu1 %v19209_v19  ;;  %v24669_v19 = vld [vmem:[#allocation149_spill] sm:$0xff] }
 0x86b   : > { %12567 = vmatprep.subr.bf16.mxu1 %v19214_v27  ;;  %v24670_v27 = vld [vmem:[#allocation170_spill] sm:$0xff] }
 0x86d   : > { %17139 = vmatmul.mubr.msk.bf16.gmra.mrb[24].mxu1 %vm20634_vm3, %v24660_v7  ;;  %v24675_v7 = vld [vmem:[#allocation184_spill] sm:$0xff] }
 0x86e   : > { %17142 = vmatprep.mubr.msk.bf16.mxu1 %vm20634_vm3, %v17141_v43  ;;  %12568 = vmatpush1.bf16.msra.mxu1 %v19212_v59  ;;  %v24671_v59 = vld [vmem:[#allocation171_spill] sm:$0xff] }
 0x86f   : > { %12569 = vmatprep.subr.bf16.mxu1 %v19217_v57  ;;  %v24672_v57 = vld [vmem:[#allocation173_spill] sm:$0xff]  ;;  %v24674_v43 = vld [vmem:[#allocation183_spill] sm:$0xff] }
 0x872   : > { %12570 = vmatpush1.bf16.msra.mxu1 %v19215_v38  ;;  %v19224_v38 = vld [vmem:[#allocation11 + $0x700] ss:$8 sps:$4 sm:$0xff]  }
 0x873   : > { %12571 = vmatprep.subr.bf16.mxu1 %v19220_v54  ;;  %v19229_v54 = vld [vmem:[#allocation11 + $0x714] ss:$8 sps:$4 sm:$0xff]  }
 0x875   : > { %17145 = vmatmul.mubr.msk.bf16.gmra.mrb[28].mxu1 %vm20634_vm3, %v17144_v51  ;;  %v19241_v51 = vld [vmem:[#allocation11 + $0x754] ss:$8 sps:$4 sm:$0xff]  }
 0x876   : > { %17148 = vmatprep.mubr.msk.bf16.mxu1 %vm20634_vm3, %v24662_v60  ;;  %12572 = vmatpush1.bf16.msra.mxu1 %v19218_v16  ;;  %v19232_v16 = vld [vmem:[#allocation11 + $0x724] ss:$8 sps:$4 sm:$0xff]  }
 0x877   : > { %12573 = vmatprep.subr.bf16.mxu1 %v19223_v47  ;;  %v24676_v47 = vld [vmem:[#allocation75_spill] sm:$0xff] }
 0x878   : > { %v15655_v60 = vcombine.high %v24676_v47, %v24250_v15 }
 0x87a   : > { %12574 = vmatpush1.bf16.msra.mxu1 %v19221_v29  ;;  %v19242_v29 = vld [vmem:[#allocation11 + $0x760] ss:$8 sps:$4 sm:$0xff]  }
 0x87b   : > { %13185 = vmatprep.subr.bf16.mxu1 %v19226_v62  ;;  %v15654_v62 = vcombine.low %v24676_v47, %v24250_v15  ;;  %v24685_v47 = vld [vmem:[#allocation53_spill] sm:$0xff] }
 0x87d   : > { %17151 = vmatmul.mubr.msk.bf16.gmra.mrb[32].mxu1 %vm20634_vm3, %v24663_v18  ;;  %v19247_v18 = vld [vmem:[#allocation11 + $0x774] ss:$8 sps:$4 sm:$0xff]  }
 0x87e   : > { %17154 = vmatprep.mubr.msk.bf16.mxu1 %vm20634_vm3, %v24664_v14  ;;  %v19245_v14 = vld [vmem:[#allocation11 + $0x770] ss:$8 sps:$4 sm:$0xff]  }
 0x885   : > { %17157 = vmatmul.mubr.msk.bf16.gmra.mrb[36].mxu1 %vm20634_vm3, %v24665_v13  ;;  %v19248_v13 = vld [vmem:[#allocation11 + $0x780] ss:$8 sps:$4 sm:$0xff]  }
 0x886   : > { %17160 = vmatprep.mubr.msk.bf16.mxu1 %vm20634_vm3, %v24666_v40  ;;  %v19253_v40 = vld [vmem:[#allocation11 + $0x794] ss:$8 sps:$4 sm:$0xff]  }
 0x88d   : > { %17163 = vmatmul.mubr.msk.bf16.gmra.mrb[40].mxu1 %vm20634_vm3, %v24667_v10  ;;  %v19251_v10 = vld [vmem:[#allocation11 + $0x790] ss:$8 sps:$4 sm:$0xff]  }
 0x88e   : > { %17166 = vmatprep.mubr.msk.bf16.mxu1 %vm20634_vm3, %v24668_v26  ;;  %v19254_v26 = vld [vmem:[#allocation11 + $0x7a0] ss:$8 sps:$4 sm:$0xff]  }
 0x895   : > { %17169 = vmatmul.mubr.msk.bf16.gmra.mrb[44].mxu1 %vm20634_vm3, %v24669_v19  ;;  %v19259_v19 = vld [vmem:[#allocation11 + $0x7b4] ss:$8 sps:$4 sm:$0xff]  }
 0x896   : > { %17172 = vmatprep.mubr.msk.bf16.mxu1 %vm20634_vm3, %v24670_v27  ;;  %v19260_v27 = vld [vmem:[#allocation11 + $0x7c0] ss:$8 sps:$4 sm:$0xff]  }
 0x89d   : > { %17175 = vmatmul.mubr.msk.bf16.gmra.mrb[48].mxu1 %vm20634_vm3, %v24671_v59  ;;  %v19265_v59 = vld [vmem:[#allocation11 + $0x7d4] ss:$8 sps:$4 sm:$0xff]  }
 0x89e   : > { %17178 = vmatprep.mubr.msk.bf16.mxu1 %vm20634_vm3, %v24672_v57  ;;  %v24677_v57 = vld [vmem:[#allocation99_spill] sm:$0xff] }
 0x8a5   : > { %17181 = vmatmul.mubr.msk.bf16.gmra.mrb[52].mxu1 %vm20634_vm3, %v24673_v4  ;;  %v15663_v4 = vcombine.high %v24677_v57, %v24250_v15 }
 0x8a6   : > { %17184 = vmatprep.mubr.msk.bf16.mxu1 %vm20634_vm3, %v24674_v43  ;;  %v19266_v43 = vld [vmem:[#allocation11 + $0x7e0] ss:$8 sps:$4 sm:$0xff]  }
 0x8ad   : > { %17187 = vmatmul.mubr.msk.bf16.gmra.mrb[56].mxu1 %vm20634_vm3, %v24675_v7  ;;  %v15662_v7 = vcombine.low %v24677_v57, %v24250_v15  ;;  %v19305_v57 = vld [vmem:[#allocation11 + $0x8b0] ss:$8 sps:$4 sm:$0xff]  }
 0x8ae   : > { %17190 = vmatprep.mubr.msk.bf16.mxu1 %vm20634_vm3, %v22583_v48  ;;  %v19227_v48 = vld [vmem:[#allocation11 + $0x710] ss:$8 sps:$4 sm:$0xff]  }
 0x8b5   : > { %17193 = vmatmul.mubr.msk.bf16.gmra.mrb[60].mxu1 %vm20634_vm3, %v22579_v49  ;;  %v19230_v49 = vld [vmem:[#allocation11 + $0x720] ss:$8 sps:$4 sm:$0xff]  }
 0x8b6   : > { %17196 = vmatprep.mubr.msk.bf16.mxu1 %vm20191_vm1, %v21819_v11  ;;  %v19238_v11 = vld [vmem:[#allocation11 + $0x744] ss:$8 sps:$4 sm:$0xff]  }
 0x8bd   : > { %17199 = vmatmul.mubr.msk.bf16.vlgmr.msra.gmra.mrb[0].mxu1 %vm20191_vm1, %v21813_v39  ;;  %v19233_v39 = vld [vmem:[#allocation11 + $0x730] ss:$8 sps:$4 sm:$0xff]  }
 0x8be   : > { %17202 = vmatprep.mubr.msk.bf16.mxu1 %vm20191_vm1, %v21877_v34  ;;  %13186 = vmatpush1.bf16.msra.mxu1 %v19224_v38  ;;  %v19236_v34 = vld [vmem:[#allocation11 + $0x740] ss:$8 sps:$4 sm:$0xff]   ;;  %v19271_v38 = vld [vmem:[#allocation11 + $0x7f4] ss:$8 sps:$4 sm:$0xff]  }
 0x8bf   : > { %13187 = vmatprep.subr.bf16.mxu1 %v19229_v54  ;;  %v19269_v54 = vld [vmem:[#allocation11 + $0x7f0] ss:$8 sps:$4 sm:$0xff]  }
 0x8c2   : > { %13188 = vmatpush1.bf16.msra.mxu1 %v19227_v48 }
 0x8c3   : > { %13189 = vmatprep.subr.bf16.mxu1 %v19232_v16  ;;  %v24682_v16 = vld [vmem:[#allocation56_spill] sm:$0xff] }
 0x8c5   : > { %17205 = vmatmul.mubr.msk.bf16.gmra.mrb[4].mxu1 %vm20191_vm1, %v21870_v41  ;;  %v19239_v41 = vld [vmem:[#allocation11 + $0x750] ss:$8 sps:$4 sm:$0xff]  }
 0x8c6   : > { %17208 = vmatprep.mubr.msk.bf16.mxu1 %vm20191_vm1, %v21927_v55  ;;  %13190 = vmatpush1.bf16.msra.mxu1 %v19230_v49  ;;  %v19244_v55 = vld [vmem:[#allocation11 + $0x764] ss:$8 sps:$4 sm:$0xff]   ;;  %v19281_v49 = vld [vmem:[#allocation11 + $0x830] ss:$8 sps:$4 sm:$0xff]  }
 0x8c7   : > { %13191 = vmatprep.subr.bf16.mxu1 %v19235_v52  ;;  %v19286_v52 = vld [vmem:[#allocation11 + $0x844] ss:$8 sps:$4 sm:$0xff]  }
 0x8ca   : > { %13192 = vmatpush1.bf16.msra.mxu1 %v19233_v39  ;;  %v19284_v39 = vld [vmem:[#allocation11 + $0x840] ss:$8 sps:$4 sm:$0xff]  }
 0x8cb   : > { %13193 = vmatprep.subr.bf16.mxu1 %v19238_v11  ;;  %v19289_v11 = vld [vmem:[#allocation11 + $0x854] ss:$8 sps:$4 sm:$0xff]  }
 0x8cd   : > { %17211 = vmatmul.mubr.msk.bf16.gmra.mrb[8].mxu1 %vm20191_vm1, %v21919_v12  ;;  %v19250_v12 = vld [vmem:[#allocation11 + $0x784] ss:$8 sps:$4 sm:$0xff]  }
 0x8ce   : > { %12605 = vmatprep.mubr.bf16.mxu1 %v15655_v60  ;;  %13194 = vmatpush1.bf16.msra.mxu1 %v19236_v34  ;;  %v24684_v34 = vld [vmem:[#allocation68_spill] sm:$0xff] }
 0x8cf   : > { %13195 = vmatprep.subr.bf16.mxu1 %v19241_v51  ;;  %v15719_v51 = vcombine.high %v24684_v34, %v24250_v15  ;;  %v19287_v60 = vld [vmem:[#allocation11 + $0x850] ss:$8 sps:$4 sm:$0xff]  }
 0x8d2   : > { %13196 = vmatpush1.bf16.msra.mxu1 %v19239_v41  ;;  %v19292_v41 = vld [vmem:[#allocation11 + $0x864] ss:$8 sps:$4 sm:$0xff]  }
 0x8d3   : > { %13197 = vmatprep.subr.bf16.mxu1 %v19244_v55  ;;  %v19290_v55 = vld [vmem:[#allocation11 + $0x860] ss:$8 sps:$4 sm:$0xff]  }
 0x8d5   : > { %12606 = vmatmul.mubr.bf16.gmra.mrb[12].mxu1 %v15654_v62  ;;  %v19295_v62 = vld [vmem:[#allocation11 + $0x874] ss:$8 sps:$4 sm:$0xff]  }
 0x8d6   : > { %17214 = vmatprep.mubr.msk.bf16.mxu1 %vm20191_vm1, %v22031_v8  ;;  %13198 = vmatpush1.bf16.msra.mxu1 %v19242_v29  ;;  %v19256_v8 = vld [vmem:[#allocation11 + $0x7a4] ss:$8 sps:$4 sm:$0xff]   ;;  %v15718_v29 = vcombine.low %v24684_v34, %v24250_v15  ;;  %v24705_v34 = vld [vmem:[#allocation61_spill] sm:$0xff] }
 0x8d7   : > { %13199 = vmatprep.subr.bf16.mxu1 %v19247_v18  ;;  %v24686_v18 = vld [vmem:[#allocation88_spill] sm:$0xff] }
 0x8da   : > { %13200 = vmatpush1.bf16.msra.mxu1 %v19245_v14  ;;  %v19293_v14 = vld [vmem:[#allocation11 + $0x870] ss:$8 sps:$4 sm:$0xff]  }
 0x8db   : > { %13201 = vmatprep.subr.bf16.mxu1 %v19250_v12  ;;  %v19298_v12 = vld [vmem:[#allocation11 + $0x884] ss:$8 sps:$4 sm:$0xff]  }
 0x8dd   : > { %17217 = vmatmul.mubr.msk.bf16.gmra.mrb[16].mxu1 %vm20191_vm1, %v22025_v5  ;;  %v19257_v5 = vld [vmem:[#allocation11 + $0x7b0] ss:$8 sps:$4 sm:$0xff]  }
 0x8de   : > { %17220 = vmatprep.mubr.msk.bf16.mxu1 %vm20191_vm1, %v22091_v30  ;;  %13202 = vmatpush1.bf16.msra.mxu1 %v19248_v13  ;;  %v19262_v30 = vld [vmem:[#allocation11 + $0x7c4] ss:$8 sps:$4 sm:$0xff]   ;;  %v19296_v13 = vld [vmem:[#allocation11 + $0x880] ss:$8 sps:$4 sm:$0xff]  }
 0x8df   : > { %13203 = vmatprep.subr.bf16.mxu1 %v19253_v40  ;;  %v19301_v40 = vld [vmem:[#allocation11 + $0x894] ss:$8 sps:$4 sm:$0xff]  }
 0x8e2   : > { %13204 = vmatpush1.bf16.msra.mxu1 %v19251_v10  ;;  %v24687_v10 = vld [vmem:[#allocation86_spill] sm:$0xff] }
 0x8e3   : > { %13205 = vmatprep.subr.bf16.mxu1 %v19256_v8  ;;  %v24688_v8 = vld [vmem:[#allocation31_spill] sm:$0xff] }
 0x8e5   : > { %17223 = vmatmul.mubr.msk.bf16.gmra.mrb[20].mxu1 %vm20191_vm1, %v22084_v25  ;;  %v19263_v25 = vld [vmem:[#allocation11 + $0x7d0] ss:$8 sps:$4 sm:$0xff]  }
 0x8e6   : > { %17226 = vmatprep.mubr.msk.bf16.mxu1 %vm20191_vm1, %v22141_v44  ;;  %13206 = vmatpush1.bf16.msra.mxu1 %v19254_v26  ;;  %v19268_v44 = vld [vmem:[#allocation11 + $0x7e4] ss:$8 sps:$4 sm:$0xff]   ;;  %v19299_v26 = vld [vmem:[#allocation11 + $0x890] ss:$8 sps:$4 sm:$0xff]  }
 0x8e7   : > { %13207 = vmatprep.subr.bf16.mxu1 %v19259_v19  ;;  %v19304_v19 = vld [vmem:[#allocation11 + $0x8a4] ss:$8 sps:$4 sm:$0xff]  }
 0x8ea   : > { %13208 = vmatpush1.bf16.msra.mxu1 %v19257_v5  ;;  %v19302_v5 = vld [vmem:[#allocation11 + $0x8a0] ss:$8 sps:$4 sm:$0xff]  }
 0x8eb   : > { %13209 = vmatprep.subr.bf16.mxu1 %v19262_v30  ;;  %v19307_v30 = vld [vmem:[#allocation11 + $0x8b4] ss:$8 sps:$4 sm:$0xff]  }
 0x8ed   : > { %17229 = vmatmul.mubr.msk.bf16.gmra.mrb[24].mxu1 %vm20191_vm1, %v22133_v28  ;;  %v19274_v28 = vld [vmem:[#allocation11 + $0x804] ss:$8 sps:$4 sm:$0xff]  }
 0x8ee   : > { %12645 = vmatprep.mubr.bf16.mxu1 %v15663_v4  ;;  %13210 = vmatpush1.bf16.msra.mxu1 %v19260_v27  ;;  %v24689_v27 = vld [vmem:[#allocation29_spill] sm:$0xff]  ;;  %v19310_v4 = vld [vmem:[#allocation11 + $0x8c4] ss:$8 sps:$4 sm:$0xff]  }
 0x8ef   : > { %13211 = vmatprep.subr.bf16.mxu1 %v19265_v59  ;;  %v24690_v59 = vld [vmem:[#allocation52_spill] sm:$0xff] }
 0x8f2   : > { %13212 = vmatpush1.bf16.msra.mxu1 %v19263_v25  ;;  %v19308_v25 = vld [vmem:[#allocation11 + $0x8c0] ss:$8 sps:$4 sm:$0xff]  }
 0x8f3   : > { %13213 = vmatprep.subr.bf16.mxu1 %v19268_v44  ;;  %v19313_v44 = vld [vmem:[#allocation11 + $0x8d4] ss:$8 sps:$4 sm:$0xff]  }
 0x8f5   : > { %12646 = vmatmul.mubr.bf16.gmra.mrb[28].mxu1 %v15662_v7 }
 0x8f6   : > { %17232 = vmatprep.mubr.msk.bf16.mxu1 %vm20191_vm1, %v22243_v9  ;;  %13214 = vmatpush1.bf16.msra.mxu1 %v19266_v43  ;;  %v24678_v9 = vld [vmem:[#allocation154_spill] sm:$0xff]  ;;  %v24691_v43 = vld [vmem:[#allocation96_spill] sm:$0xff] }
 0x8f7   : > { %13215 = vmatprep.subr.bf16.mxu1 %v19271_v38  ;;  %v15671_v48 = vcombine.high %v24678_v9, %v24250_v15  ;;  %v15727_v7 = vcombine.high %v24691_v43, %v24250_v15  ;;  %v24692_v38 = vld [vmem:[#allocation48_spill] sm:$0xff] }
 0x8fa   : > { %13216 = vmatpush1.bf16.msra.mxu1 %v19269_v54  ;;  %v19311_v54 = vld [vmem:[#allocation11 + $0x8d0] ss:$8 sps:$4 sm:$0xff]  }
 0x8fb   : > { %13827 = vmatprep.subr.bf16.mxu1 %v19274_v28  ;;  %v19316_v28 = vld [vmem:[#allocation11 + $0x8e4] ss:$8 sps:$4 sm:$0xff]  }
 0x8fd   : > { %17235 = vmatmul.mubr.msk.bf16.gmra.mrb[32].mxu1 %vm20191_vm1, %v22237_v35  ;;  %v15670_v35 = vcombine.low %v24678_v9, %v24250_v15  ;;  %v19314_v9 = vld [vmem:[#allocation11 + $0x8e0] ss:$8 sps:$4 sm:$0xff]  }
 0x8fe   : > { %17238 = vmatprep.mubr.msk.bf16.mxu1 %vm20191_vm1, %v22301_v1  ;;  %v24679_v1 = vld [vmem:[#allocation108_spill] sm:$0xff] }
 0x905   : > { %17241 = vmatmul.mubr.msk.bf16.gmra.mrb[36].mxu1 %vm20191_vm1, %v22294_v24  ;;  %v15679_v24 = vcombine.high %v22590_v53, %v24250_v15 }
 0x906   : > { %17244 = vmatprep.mubr.msk.bf16.mxu1 %vm20191_vm1, %v22351_v33  ;;  %v19277_v33 = vld [vmem:[#allocation11 + $0x814] ss:$8 sps:$4 sm:$0xff]  }
 0x90d   : > { %17247 = vmatmul.mubr.msk.bf16.gmra.mrb[40].mxu1 %vm20191_vm1, %v22344_v46  ;;  %v19272_v46 = vld [vmem:[#allocation11 + $0x800] ss:$8 sps:$4 sm:$0xff]  }
 0x90e   : > { %12685 = vmatprep.mubr.bf16.mxu1 %v15671_v48  ;;  %v15726_v48 = vcombine.low %v24691_v43, %v24250_v15  ;;  %v24729_v43 = vld [vmem:[#allocation186_spill] sm:$0xff] }
 0x915   : > { %12686 = vmatmul.mubr.bf16.gmra.mrb[44].mxu1 %v15670_v35  ;;  %v19319_v35 = vld [vmem:[#allocation11 + $0x8f4] ss:$8 sps:$4 sm:$0xff]  }
 0x916   : > { %17250 = vmatprep.mubr.msk.bf16.mxu1 %vm20191_vm1, %v22459_v63  ;;  %v15678_v63 = vcombine.low %v22590_v53, %v24250_v15  ;;  %v24683_v53 = vld [vmem:[#allocation58_spill] sm:$0xff] }
 0x91d   : > { %17253 = vmatmul.mubr.msk.bf16.gmra.mrb[48].mxu1 %vm20191_vm1, %v22453_v20  ;;  %v24680_v20 = vld [vmem:[#allocation106_spill] sm:$0xff] }
 0x91e   : > { %17256 = vmatprep.mubr.msk.bf16.mxu1 %vm20191_vm1, %v22517_v0  ;;  %v19275_v0 = vld [vmem:[#allocation11 + $0x810] ss:$8 sps:$4 sm:$0xff]  }
 0x925   : > { %17259 = vmatmul.mubr.msk.bf16.gmra.mrb[52].mxu1 %vm20191_vm1, %v22510_v45  ;;  %v24681_v45 = vld [vmem:[#allocation60_spill] sm:$0xff] }
 0x926   : > { %17262 = vmatprep.mubr.msk.bf16.mxu1 %vm20191_vm1, %v22569_v56  ;;  %v19280_v56 = vld [vmem:[#allocation11 + $0x824] ss:$8 sps:$4 sm:$0xff]  }
 0x92d   : > { %17265 = vmatmul.mubr.msk.bf16.gmra.mrb[56].mxu1 %vm20191_vm1, %v22562_v6  ;;  %v19283_v6 = vld [vmem:[#allocation11 + $0x834] ss:$8 sps:$4 sm:$0xff]  }
 0x92e   : > { %12725 = vmatprep.mubr.bf16.mxu1 %v15679_v24  ;;  %v24693_v24 = vld [vmem:[#allocation110_spill] sm:$0xff] }
 0x935   : > { %12726 = vmatmul.mubr.bf16.gmra.mrb[60].mxu1 %v15678_v63  ;;  %v19317_v63 = vld [vmem:[#allocation11 + $0x8f0] ss:$8 sps:$4 sm:$0xff]  }
 0x936   : > { %13217 = vmatprep.mubr.bf16.mxu1 %v24679_v1  ;;  %v24694_v1 = vld [vmem:[#allocation105_spill] sm:$0xff] }
 0x93d   : > { %13218 = vmatmul.mubr.bf16.vlgmr.msra.gmra.mrb[0].mxu1 %v24680_v20  ;;  %v24697_v20 = vld [vmem:[#allocation143_spill] sm:$0xff] }
 0x93e   : > { %13227 = vmatprep.mubr.bf16.mxu1 %v24681_v45  ;;  %13828 = vmatpush1.bf16.msra.mxu1 %v19272_v46  ;;  %v24695_v46 = vld [vmem:[#allocation133_spill] sm:$0xff]  ;;  %v24698_v45 = vld [vmem:[#allocation151_spill] sm:$0xff] }
 0x93f   : > { %13829 = vmatprep.subr.bf16.mxu1 %v19277_v33  ;;  %v24696_v33 = vld [vmem:[#allocation131_spill] sm:$0xff] }
 0x942   : > { %13830 = vmatpush1.bf16.msra.mxu1 %v19275_v0  ;;  %v15735_v0 = vcombine.high %v24698_v45, %v24250_v15 }
 0x943   : > { %13831 = vmatprep.subr.bf16.mxu1 %v19280_v56  ;;  %v24699_v56 = vld [vmem:[#allocation142_spill] sm:$0xff] }
 0x945   : > { %13228 = vmatmul.mubr.bf16.gmra.mrb[4].mxu1 %v24682_v16  ;;  %v24701_v16 = vld [vmem:[#allocation162_spill] sm:$0xff] }
 0x946   : > { %13237 = vmatprep.mubr.bf16.mxu1 %v24683_v53  ;;  %13832 = vmatpush1.bf16.msra.mxu1 %v19278_v17  ;;  %v15734_v17 = vcombine.low %v24698_v45, %v24250_v15  ;;  %v24702_v53 = vld [vmem:[#allocation178_spill] sm:$0xff]  ;;  %v19410_v45 = vld [vmem:[%s19951_s28 + $0x8] sm:$0xff] }
 0x947   : > { %13833 = vmatprep.subr.bf16.mxu1 %v19283_v6  ;;  %v24700_v6 = vld [vmem:[#allocation164_spill] sm:$0xff] }
 0x94a   : > { %13834 = vmatpush1.bf16.msra.mxu1 %v19281_v49  ;;  %v24703_v49 = vld [vmem:[#allocation176_spill] sm:$0xff] }
 0x94b   : > { %13835 = vmatprep.subr.bf16.mxu1 %v19286_v52  ;;  %v15743_v52 = vcombine.high %v22594_v21, %v24250_v15 }
 0x94d   : > { %13238 = vmatmul.mubr.bf16.gmra.mrb[8].mxu1 %v24685_v47  ;;  %v24708_v47 = vld [vmem:[#allocation63_spill] sm:$0xff] }
 0x94e   : > { %13247 = vmatprep.mubr.bf16.mxu1 %v15719_v51  ;;  %13836 = vmatpush1.bf16.msra.mxu1 %v19284_v39  ;;  %v24704_v39 = vld [vmem:[#allocation185_spill] sm:$0xff]  ;;  %v8097_v51 = vsel %vm304_vm2, %v8033_v2, 0.0 }
 0x94f   : > { %13837 = vmatprep.subr.bf16.mxu1 %v19289_v11  ;;  %v15742_v11 = vcombine.low %v22594_v21, %v24250_v15  ;;  %v24707_v21 = vld [vmem:[#allocation44_spill] sm:$0xff]  ;;  %v24710_v2 = vld [vmem:[#allocation89_spill] sm:$0xff] }
 0x952   : > { %13838 = vmatpush1.bf16.msra.mxu1 %v19287_v60 }
 0x953   : > { %13839 = vmatprep.subr.bf16.mxu1 %v19292_v41  ;;  %v24709_v41 = vld [vmem:[#allocation62_spill] sm:$0xff] }
 0x955   : > { %13248 = vmatmul.mubr.bf16.gmra.mrb[12].mxu1 %v15718_v29  ;;  %v8113_v29 = vsel %vm304_vm2, %v8049_v50, 0.0  ;;  %v24716_v50 = vld [vmem:[#allocation115_spill] sm:$0xff] }
 0x956   : > { %13257 = vmatprep.mubr.bf16.mxu1 %v24686_v18  ;;  %13840 = vmatpush1.bf16.msra.mxu1 %v19290_v55  ;;  %v24713_v55 = vld [vmem:[#allocation32_spill] sm:$0xff] }
 0x957   : > { %13841 = vmatprep.subr.bf16.mxu1 %v19295_v62  ;;  %v8114_v62 = vsel %vm304_vm2, %v8050_v22, 0.0  ;;  %v24714_v18 = vld [vmem:[#allocation92_spill] sm:$0xff]  ;;  %v24718_v22 = vld [vmem:[#allocation135_spill] sm:$0xff] }
 0x95a   : > { %13842 = vmatpush1.bf16.msra.mxu1 %v19293_v14  ;;  %v16023_v14 = vpack.c.bf16 %v8114_v62, %v8113_v29 }
 0x95b   : > { %13843 = vmatprep.subr.bf16.mxu1 %v19298_v12 }
 0x95c   : > { %v15791_v12 = vcombine.high %v16023_v14, %v24250_v15  ;;  %v15790_v42 = vcombine.low %v16023_v14, %v24250_v15 }
 0x95d   : > { %13258 = vmatmul.mubr.bf16.gmra.mrb[16].mxu1 %v24687_v10  ;;  %v24720_v10 = vld [vmem:[#allocation145_spill] sm:$0xff] }
 0x95e   : > { %13267 = vmatprep.mubr.bf16.mxu1 %v24688_v8  ;;  %13844 = vmatpush1.bf16.msra.mxu1 %v19296_v13  ;;  %v24715_v13 = vld [vmem:[#allocation91_spill] sm:$0xff]  ;;  %v24721_v8 = vld [vmem:[#allocation188_spill] sm:$0xff] }
 0x95f   : > { %13845 = vmatprep.subr.bf16.mxu1 %v19301_v40  ;;  %v24719_v40 = vld [vmem:[#allocation134_spill] sm:$0xff] }
 0x962   : > { %13846 = vmatpush1.bf16.msra.mxu1 %v19299_v26  ;;  %v15799_v26 = vcombine.high %v24721_v8, %v24250_v15 }
 0x963   : > { %13847 = vmatprep.subr.bf16.mxu1 %v19304_v19  ;;  %v24722_v19 = vld [vmem:[#allocation144_spill] sm:$0xff] }
 0x965   : > { %13268 = vmatmul.mubr.bf16.gmra.mrb[20].mxu1 %v24689_v27  ;;  %v24724_v27 = vld [vmem:[#allocation166_spill] sm:$0xff] }
 0x966   : > { %13277 = vmatprep.mubr.bf16.mxu1 %v24690_v59  ;;  %13848 = vmatpush1.bf16.msra.mxu1 %v19302_v5  ;;  %v15798_v5 = vcombine.low %v24721_v8, %v24250_v15  ;;  %v24725_v59 = vld [vmem:[#allocation180_spill] sm:$0xff] }
 0x967   : > { %13849 = vmatprep.subr.bf16.mxu1 %v19307_v30  ;;  %v24723_v30 = vld [vmem:[#allocation165_spill] sm:$0xff] }
 0x96a   : > { %13850 = vmatpush1.bf16.msra.mxu1 %v19305_v57  ;;  %v24726_v57 = vld [vmem:[#allocation179_spill] sm:$0xff] }
 0x96b   : > { %13851 = vmatprep.subr.bf16.mxu1 %v19310_v4  ;;  %v24727_v4 = vld [vmem:[#allocation187_spill] sm:$0xff] }
 0x96d   : > { %13278 = vmatmul.mubr.bf16.gmra.mrb[24].mxu1 %v24692_v38  ;;  %v14084_v38 = vld [vmem:[#allocation13] sm:$0x3] }
 0x96e   : > { %13287 = vmatprep.mubr.bf16.mxu1 %v15727_v7  ;;  %13852 = vmatpush1.bf16.msra.mxu1 %v19308_v25  ;;  %v24728_v25 = vld [vmem:[#allocation189_spill] sm:$0xff] }
 0x96f   : > { %13853 = vmatprep.subr.bf16.mxu1 %v19313_v44  ;;  %v15807_v44 = vcombine.high %v24728_v25, %v24250_v15  ;;  %v15806_v7 = vcombine.low %v24728_v25, %v24250_v15 }
 0x972   : > { %13854 = vmatpush1.bf16.msra.mxu1 %v19311_v54  ;;  %v24730_v54 = vsub.s32 0, %v24707_v21 }
 0x973   : > { %13855 = vmatprep.subr.bf16.mxu1 %v19316_v28 }
 0x974   : > { %v23320_v28 = vrot.slane %v14084_v38, %v24730_v54 }
 0x975   : > { %13288 = vmatmul.mubr.bf16.gmra.mrb[28].mxu1 %v15726_v48 }
 0x976   : > { %13297 = vmatprep.mubr.bf16.mxu1 %v24693_v24  ;;  %13856 = vmatpush1.bf16.msra.mxu1 %v19314_v9  ;;  %v24731_v9 = vsub.s32 1, %v24707_v21 }
 0x977   : > { %13857 = vmatprep.subr.bf16.mxu1 %v19319_v35 }
 0x978   : > { %v23324_v48 = vrot.slane %v14084_v38, %v24731_v9 }
 0x97a   : > { %13858 = vmatpush1.bf16.msra.mxu1 %v19317_v63 }
 0x97d   : > { %13298 = vmatmul.mubr.bf16.gmra.mrb[32].mxu1 %v24694_v1  ;;  %v19409_v1 = vld [vmem:[%s19951_s28] sm:$0xff] }
 0x97e   : > { %13307 = vmatprep.mubr.bf16.mxu1 %v24695_v46 }
 0x985   : > { %13308 = vmatmul.mubr.bf16.gmra.mrb[36].mxu1 %v24696_v33 }
 0x986   : > { %13317 = vmatprep.mubr.bf16.mxu1 %v24697_v20 }
 0x98d   : > { %13318 = vmatmul.mubr.bf16.gmra.mrb[40].mxu1 %v24699_v56 }
 0x98e   : > { %13327 = vmatprep.mubr.bf16.mxu1 %v15735_v0 }
 0x995   : > { %13328 = vmatmul.mubr.bf16.gmra.mrb[44].mxu1 %v15734_v17 }
 0x996   : > { %13337 = vmatprep.mubr.bf16.mxu1 %v24700_v6  ;;  %v19411_v6 = vld [vmem:[%s19951_s28 + $0x10] sm:$0xff] }
 0x99d   : > { %13338 = vmatmul.mubr.bf16.gmra.mrb[48].mxu1 %v24701_v16 }
 0x99e   : > { %13347 = vmatprep.mubr.bf16.mxu1 %v24702_v53 }
 0x9a5   : > { %13348 = vmatmul.mubr.bf16.gmra.mrb[52].mxu1 %v24703_v49  ;;  %v19412_v49 = vld [vmem:[%s19951_s28 + $0x18] sm:$0xff] }
 0x9a6   : > { %13357 = vmatprep.mubr.bf16.mxu1 %v22558_v36  ;;  %v24706_v36 = vld [vmem:[#allocation64_spill] sm:$0xff] }
 0x9ad   : > { %13358 = vmatmul.mubr.bf16.gmra.mrb[56].mxu1 %v24704_v39 }
 0x9ae   : > { %13367 = vmatprep.mubr.bf16.mxu1 %v15743_v52 }
 0x9b5   : > { %13368 = vmatmul.mubr.bf16.gmra.mrb[60].mxu1 %v15742_v11 }
 0x9b6   : > { %17268 = vmatprep.mubr.msk.bf16.mxu1 %vm20634_vm3, %v21822_v32  ;;  %v8098_v32 = vsel %vm304_vm2, %v8034_v31, 0.0  ;;  %v24712_v31 = vld [vmem:[#allocation33_spill] sm:$0xff] }
 0x9bd   : > { %17271 = vmatmul.mubr.msk.bf16.vlgmr.msra.gmra.mrb[0].mxu1 %vm20634_vm3, %v21824_v58  ;;  %v16015_v58 = vpack.c.bf16 %v8098_v32, %v8097_v51 }
 0x9be   : > { %17274 = vmatprep.mubr.msk.bf16.mxu1 %vm20634_vm3, %v24705_v34 }
 0x9bf   : > { %v15783_v60 = vcombine.high %v16015_v58, %v24250_v15  ;;  %v15782_v61 = vcombine.low %v16015_v58, %v24250_v15 }
 0x9c5   : > { %17277 = vmatmul.mubr.msk.bf16.gmra.mrb[4].mxu1 %vm20634_vm3, %v24706_v36 }
 0x9c6   : > { %17280 = vmatprep.mubr.msk.bf16.mxu1 %vm20634_vm3, %v24708_v47  ;;  %v19413_v47 = vld [vmem:[%s19951_s28 + $0x20] sm:$0xff] }
 0x9cd   : > { %17283 = vmatmul.mubr.msk.bf16.gmra.mrb[8].mxu1 %vm20634_vm3, %v24709_v41 }
 0x9ce   : > { %13889 = vmatprep.mubr.bf16.mxu1 %v15783_v60 }
 0x9d5   : > { %13890 = vmatmul.mubr.bf16.gmra.mrb[12].mxu1 %v15782_v61  ;;  %v19414_v61 = vld [vmem:[%s19951_s28 + $0x28] sm:$0xff] }
 0x9d6   : > { %17286 = vmatprep.mubr.msk.bf16.mxu1 %vm20634_vm3, %v24710_v2 }
 0x9dd   : > { %17289 = vmatmul.mubr.msk.bf16.gmra.mrb[16].mxu1 %vm20634_vm3, %v24711_v3 }
 0x9de   : > { %17292 = vmatprep.mubr.msk.bf16.mxu1 %vm20634_vm3, %v24712_v31 }
 0x9e5   : > { %17295 = vmatmul.mubr.msk.bf16.gmra.mrb[20].mxu1 %vm20634_vm3, %v24713_v55  ;;  %v19415_v55 = vld [vmem:[%s19951_s28 + $0x30] sm:$0xff] }
 0x9e6   : > { %17298 = vmatprep.mubr.msk.bf16.mxu1 %vm20634_vm3, %v24714_v18  ;;  %v19416_v18 = vld [vmem:[%s19951_s28 + $0x38] sm:$0xff] }
 0x9ed   : > { %17301 = vmatmul.mubr.msk.bf16.gmra.mrb[24].mxu1 %vm20634_vm3, %v24715_v13 }
 0x9ee   : > { %13929 = vmatprep.mubr.bf16.mxu1 %v15791_v12 }
 0x9f5   : > { %13930 = vmatmul.mubr.bf16.gmra.mrb[28].mxu1 %v15790_v42 }
 0x9f6   : > { %17304 = vmatprep.mubr.msk.bf16.mxu1 %vm20634_vm3, %v24716_v50 }
 0x9fd   : > { %17307 = vmatmul.mubr.msk.bf16.gmra.mrb[32].mxu1 %vm20634_vm3, %v24717_v37 }
 0x9fe   : > { %17310 = vmatprep.mubr.msk.bf16.mxu1 %vm20634_vm3, %v24718_v22 }
 0xa05   : > { %17313 = vmatmul.mubr.msk.bf16.gmra.mrb[36].mxu1 %vm20634_vm3, %v24719_v40 }
 0xa06   : > { %17316 = vmatprep.mubr.msk.bf16.mxu1 %vm20634_vm3, %v24720_v10  ;;  %v19417_v10 = vld [vmem:[%s19951_s28 + $0x40] sm:$0xff] }
 0xa0d   : > { %17319 = vmatmul.mubr.msk.bf16.gmra.mrb[40].mxu1 %vm20634_vm3, %v24722_v19 }
 0xa0e   : > { %13969 = vmatprep.mubr.bf16.mxu1 %v15799_v26 }
 0xa15   : > { %13970 = vmatmul.mubr.bf16.gmra.mrb[44].mxu1 %v15798_v5  ;;  %v19418_v5 = vld [vmem:[%s19951_s28 + $0x48] sm:$0xff] }
 0xa16   : > { %17322 = vmatprep.mubr.msk.bf16.mxu1 %vm20634_vm3, %v24723_v30 }
 0xa1d   : > { %17325 = vmatmul.mubr.msk.bf16.gmra.mrb[48].mxu1 %vm20634_vm3, %v24724_v27 }
 0xa1e   : > { %17328 = vmatprep.mubr.msk.bf16.mxu1 %vm20634_vm3, %v24725_v59 }
 0xa25   : > { %17331 = vmatmul.mubr.msk.bf16.gmra.mrb[52].mxu1 %vm20634_vm3, %v24726_v57  ;;  %v19419_v57 = vld [vmem:[%s19951_s28 + $0x50] sm:$0xff] }
 0xa26   : > { %17334 = vmatprep.mubr.msk.bf16.mxu1 %vm20634_vm3, %v24727_v4 }
 0xa2d   : > { %17337 = vmatmul.mubr.msk.bf16.gmra.mrb[56].mxu1 %vm20634_vm3, %v24729_v43 }
 0xa2e   : > { %14009 = vmatprep.mubr.bf16.mxu1 %v15807_v44  ;;  %v19420_v44 = vld [vmem:[%s19951_s28 + $0x58] sm:$0xff] }
 0xa35   : > { %14010 = vmatmul.mubr.bf16.gmra.mrb[60].mxu1 %v15806_v7 }
 0xa90   : > { %v13861_v35 = vpop.f32.mrb[0].mxu1 }
 0xa91   : > { %v14096_v23 = vadd.f32 %v23320_v28, %v13861_v35  ;;  %v13863_v24 = vpop.f32.mrb[1].mxu1 }
 0xa92   : > { %v14097_v63 = vadd.f32 %v23324_v48, %v13863_v24  ;;  %v13865_v15 = vpop.f32.mrb[2].mxu1 }
 0xa93   : > { %v14160_v46 = vadd.f32 %v19409_v1, %v14096_v23  ;;  %v14098_v33 = vadd.f32 %v23320_v28, %v13865_v15  ;;  %v13867_v20 = vpop.f32.mrb[3].mxu1 }
 0xa94   : > { %v14161_v0 = vadd.f32 %v19410_v45, %v14097_v63  ;;  %v14099_v56 = vadd.f32 %v23324_v48, %v13867_v20  ;;  %v19421_v63 = vld [vmem:[%s19951_s28 + $0x60] sm:$0xff] }
 0xa95   : > { %v14224_v17 = vmax.f32 %v14160_v46, 0.0  ;;  %v14162_v16 = vadd.f32 %v19411_v6, %v14098_v33  ;;  %v19422_v33 = vld [vmem:[%s19951_s28 + $0x68] sm:$0xff] }
 0xa96   : > { %v14225_v53 = vmax.f32 %v14161_v0, 0.0  ;;  %v14163_v52 = vadd.f32 %v19412_v49, %v14099_v56  ;;  %v19423_v56 = vld [vmem:[%s19951_s28 + $0x70] sm:$0xff] }
 0xa97   : > { %14288 = vst [vmem:[%s23336_s24] sm:$0xff] %v14224_v17  ;;  %v14226_v39 = vmax.f32 %v14162_v16, 0.0  ;;  %v19424_v16 = vld [vmem:[%s19951_s28 + $0x78] sm:$0xff] }
 0xa98   : > { %14289 = vst [vmem:[%s23336_s24 + $0x8] sm:$0xff] %v14225_v53  ;;  %v14227_v11 = vmax.f32 %v14163_v52, 0.0  ;;  %v13871_v34 = vpop.f32.mrb[4].mxu1 }
 0xa99   : > { %14290 = vst [vmem:[%s23336_s24 + $0x10] sm:$0xff] %v14226_v39  ;;  %v14100_v36 = vadd.f32 %v23320_v28, %v13871_v34  ;;  %v13873_v21 = vpop.f32.mrb[5].mxu1 }
 0xa9a   : > { %14291 = vst [vmem:[%s23336_s24 + $0x18] sm:$0xff] %v14227_v11  ;;  %v14101_v51 = vadd.f32 %v23324_v48, %v13873_v21  ;;  %v13875_v32 = vpop.f32.mrb[6].mxu1 }
 0xa9b   : > { %v14164_v58 = vadd.f32 %v19413_v47, %v14100_v36  ;;  %v14102_v60 = vadd.f32 %v23320_v28, %v13875_v32  ;;  %v13877_v41 = vpop.f32.mrb[7].mxu1 }
 0xa9c   : > { %v14165_v2 = vadd.f32 %v19414_v61, %v14101_v51  ;;  %v14103_v3 = vadd.f32 %v23324_v48, %v13877_v41  ;;  %v19425_v51 = vld [vmem:[%s19951_s28 + $0x80] sm:$0xff] }
 0xa9d   : > { %v14228_v31 = vmax.f32 %v14164_v58, 0.0  ;;  %v14166_v29 = vadd.f32 %v19415_v55, %v14102_v60  ;;  %v19426_v60 = vld [vmem:[%s19951_s28 + $0x88] sm:$0xff] }
 0xa9e   : > { %v14229_v62 = vmax.f32 %v14165_v2, 0.0  ;;  %v14167_v14 = vadd.f32 %v19416_v18, %v14103_v3  ;;  %v19427_v3 = vld [vmem:[%s19951_s28 + $0x90] sm:$0xff] }
 0xa9f   : > { %14292 = vst [vmem:[%s23336_s24 + $0x20] sm:$0xff] %v14228_v31  ;;  %v14230_v12 = vmax.f32 %v14166_v29, 0.0  ;;  %v19428_v29 = vld [vmem:[%s19951_s28 + $0x98] sm:$0xff] }
 0xaa0   : > { %14293 = vst [vmem:[%s23336_s24 + $0x28] sm:$0xff] %v14229_v62  ;;  %v14231_v13 = vmax.f32 %v14167_v14, 0.0  ;;  %v13881_v42 = vpop.f32.mrb[8].mxu1 }
 0xaa1   : > { %14294 = vst [vmem:[%s23336_s24 + $0x30] sm:$0xff] %v14230_v12  ;;  %v14104_v50 = vadd.f32 %v23320_v28, %v13881_v42  ;;  %v13883_v37 = vpop.f32.mrb[9].mxu1 }
 0xaa2   : > { %14295 = vst [vmem:[%s23336_s24 + $0x38] sm:$0xff] %v14231_v13  ;;  %v14105_v22 = vadd.f32 %v23324_v48, %v13883_v37  ;;  %v13885_v40 = vpop.f32.mrb[10].mxu1 }
 0xaa3   : > { %v14168_v8 = vadd.f32 %v19417_v10, %v14104_v50  ;;  %v14106_v26 = vadd.f32 %v23320_v28, %v13885_v40  ;;  %v13887_v19 = vpop.f32.mrb[11].mxu1 }
 0xaa4   : > { %v14169_v30 = vadd.f32 %v19418_v5, %v14105_v22  ;;  %v14107_v27 = vadd.f32 %v23324_v48, %v13887_v19  ;;  %v19429_v22 = vld [vmem:[%s19951_s28 + $0xa0] sm:$0xff] }
 0xaa5   : > { %v14232_v59 = vmax.f32 %v14168_v8, 0.0  ;;  %v14170_v4 = vadd.f32 %v19419_v57, %v14106_v26  ;;  %v19430_v26 = vld [vmem:[%s19951_s28 + $0xa8] sm:$0xff] }
 0xaa6   : > { %v14233_v25 = vmax.f32 %v14169_v30, 0.0  ;;  %v14171_v43 = vadd.f32 %v19420_v44, %v14107_v27  ;;  %v19431_v27 = vld [vmem:[%s19951_s28 + $0xb0] sm:$0xff] }
 0xaa7   : > { %14296 = vst [vmem:[%s23336_s24 + $0x40] sm:$0xff] %v14232_v59  ;;  %v14234_v7 = vmax.f32 %v14170_v4, 0.0  ;;  %v19432_v4 = vld [vmem:[%s19951_s28 + $0xb8] sm:$0xff] }
 0xaa8   : > { %14297 = vst [vmem:[%s23336_s24 + $0x48] sm:$0xff] %v14233_v25  ;;  %v14235_v38 = vmax.f32 %v14171_v43, 0.0  ;;  %v13891_v54 = vpop.f32.mrb[12].mxu1 }
 0xaa9   : > { %14298 = vst [vmem:[%s23336_s24 + $0x50] sm:$0xff] %v14234_v7  ;;  %v14108_v9 = vadd.f32 %v23320_v28, %v13891_v54  ;;  %v13893_v35 = vpop.f32.mrb[13].mxu1 }
 0xaaa   : > { %14299 = vst [vmem:[%s23336_s24 + $0x58] sm:$0xff] %v14235_v38  ;;  %v14109_v23 = vadd.f32 %v23324_v48, %v13893_v35  ;;  %v13895_v24 = vpop.f32.mrb[14].mxu1 }
 0xaab   : > { %v14172_v15 = vadd.f32 %v19421_v63, %v14108_v9  ;;  %v14110_v1 = vadd.f32 %v23320_v28, %v13895_v24  ;;  %v13897_v46 = vpop.f32.mrb[15].mxu1 }
 0xaac   : > { %v14173_v20 = vadd.f32 %v19422_v33, %v14109_v23  ;;  %v14111_v45 = vadd.f32 %v23324_v48, %v13897_v46  ;;  %v19433_v23 = vld [vmem:[%s19951_s28 + $0xc0] sm:$0xff] }
 0xaad   : > { %v14236_v0 = vmax.f32 %v14172_v15, 0.0  ;;  %v14174_v17 = vadd.f32 %v19423_v56, %v14110_v1  ;;  %v19434_v1 = vld [vmem:[%s19951_s28 + $0xc8] sm:$0xff] }
 0xaae   : > { %v14237_v6 = vmax.f32 %v14173_v20, 0.0  ;;  %v14175_v53 = vadd.f32 %v19424_v16, %v14111_v45  ;;  %v19435_v45 = vld [vmem:[%s19951_s28 + $0xd0] sm:$0xff] }
 0xaaf   : > { %14300 = vst [vmem:[%s23336_s24 + $0x60] sm:$0xff] %v14236_v0  ;;  %v14238_v49 = vmax.f32 %v14174_v17, 0.0  ;;  %v19436_v17 = vld [vmem:[%s19951_s28 + $0xd8] sm:$0xff] }
 0xab0   : > { %14301 = vst [vmem:[%s23336_s24 + $0x68] sm:$0xff] %v14237_v6  ;;  %v14239_v52 = vmax.f32 %v14175_v53, 0.0  ;;  %v13901_v39 = vpop.f32.mrb[16].mxu1 }
 0xab1   : > { %14302 = vst [vmem:[%s23336_s24 + $0x70] sm:$0xff] %v14238_v49  ;;  %v14112_v11 = vadd.f32 %v23320_v28, %v13901_v39  ;;  %v13903_v34 = vpop.f32.mrb[17].mxu1 }
 0xab2   : > { %14303 = vst [vmem:[%s23336_s24 + $0x78] sm:$0xff] %v14239_v52  ;;  %v14113_v36 = vadd.f32 %v23324_v48, %v13903_v34  ;;  %v13905_v21 = vpop.f32.mrb[18].mxu1 }
 0xab3   : > { %v14176_v32 = vadd.f32 %v19425_v51, %v14112_v11  ;;  %v14114_v47 = vadd.f32 %v23320_v28, %v13905_v21  ;;  %v13907_v58 = vpop.f32.mrb[19].mxu1 }
 0xab4   : > { %v14177_v41 = vadd.f32 %v19426_v60, %v14113_v36  ;;  %v14115_v61 = vadd.f32 %v23324_v48, %v13907_v58  ;;  %v19437_v36 = vld [vmem:[%s19951_s28 + $0xe0] sm:$0xff] }
 0xab5   : > { %v14240_v2 = vmax.f32 %v14176_v32, 0.0  ;;  %v14178_v31 = vadd.f32 %v19427_v3, %v14114_v47  ;;  %v19438_v47 = vld [vmem:[%s19951_s28 + $0xe8] sm:$0xff] }
 0xab6   : > { %v14241_v55 = vmax.f32 %v14177_v41, 0.0  ;;  %v14179_v62 = vadd.f32 %v19428_v29, %v14115_v61  ;;  %v19439_v61 = vld [vmem:[%s19951_s28 + $0xf0] sm:$0xff] }
 0xab7   : > { %14304 = vst [vmem:[%s23336_s24 + $0x80] sm:$0xff] %v14240_v2  ;;  %v14242_v18 = vmax.f32 %v14178_v31, 0.0  ;;  %v19440_v31 = vld [vmem:[%s19951_s28 + $0xf8] sm:$0xff] }
 0xab8   : > { %14305 = vst [vmem:[%s23336_s24 + $0x88] sm:$0xff] %v14241_v55  ;;  %v14243_v14 = vmax.f32 %v14179_v62, 0.0  ;;  %v13911_v12 = vpop.f32.mrb[20].mxu1 }
 0xab9   : > { %14306 = vst [vmem:[%s23336_s24 + $0x90] sm:$0xff] %v14242_v18  ;;  %v14116_v13 = vadd.f32 %v23320_v28, %v13911_v12  ;;  %v13913_v42 = vpop.f32.mrb[21].mxu1 }
 0xaba   : > { %14307 = vst [vmem:[%s23336_s24 + $0x98] sm:$0xff] %v14243_v14  ;;  %v14117_v50 = vadd.f32 %v23324_v48, %v13913_v42  ;;  %v13915_v37 = vpop.f32.mrb[22].mxu1 }
 0xabb   : > { %v14180_v40 = vadd.f32 %v19429_v22, %v14116_v13  ;;  %v14118_v10 = vadd.f32 %v23320_v28, %v13915_v37  ;;  %v13917_v8 = vpop.f32.mrb[23].mxu1 }
 0xabc   : > { %v14181_v19 = vadd.f32 %v19430_v26, %v14117_v50  ;;  %v14119_v5 = vadd.f32 %v23324_v48, %v13917_v8  ;;  %v19441_v50 = vld [vmem:[%s19951_s28 + $0x100] sm:$0xff] }
 0xabd   : > { %v14244_v30 = vmax.f32 %v14180_v40, 0.0  ;;  %v14182_v59 = vadd.f32 %v19431_v27, %v14118_v10  ;;  %v19442_v10 = vld [vmem:[%s19951_s28 + $0x108] sm:$0xff] }
 0xabe   : > { %v14245_v57 = vmax.f32 %v14181_v19, 0.0  ;;  %v14183_v25 = vadd.f32 %v19432_v4, %v14119_v5  ;;  %v19443_v5 = vld [vmem:[%s19951_s28 + $0x110] sm:$0xff] }
 0xabf   : > { %14308 = vst [vmem:[%s23336_s24 + $0xa0] sm:$0xff] %v14244_v30  ;;  %v14246_v44 = vmax.f32 %v14182_v59, 0.0  ;;  %v19444_v59 = vld [vmem:[%s19951_s28 + $0x118] sm:$0xff] }
 0xac0   : > { %14309 = vst [vmem:[%s23336_s24 + $0xa8] sm:$0xff] %v14245_v57  ;;  %v14247_v43 = vmax.f32 %v14183_v25, 0.0  ;;  %v13921_v7 = vpop.f32.mrb[24].mxu1 }
 0xac1   : > { %14310 = vst [vmem:[%s23336_s24 + $0xb0] sm:$0xff] %v14246_v44  ;;  %v14120_v38 = vadd.f32 %v23320_v28, %v13921_v7  ;;  %v13923_v54 = vpop.f32.mrb[25].mxu1 }
 0xac2   : > { %14311 = vst [vmem:[%s23336_s24 + $0xb8] sm:$0xff] %v14247_v43  ;;  %v14121_v9 = vadd.f32 %v23324_v48, %v13923_v54  ;;  %v13925_v35 = vpop.f32.mrb[26].mxu1 }
 0xac3   : > { %v14184_v24 = vadd.f32 %v19433_v23, %v14120_v38  ;;  %v14122_v63 = vadd.f32 %v23320_v28, %v13925_v35  ;;  %v13927_v15 = vpop.f32.mrb[27].mxu1 }
 0xac4   : > { %v14185_v46 = vadd.f32 %v19434_v1, %v14121_v9  ;;  %v14123_v33 = vadd.f32 %v23324_v48, %v13927_v15  ;;  %v19445_v9 = vld [vmem:[%s19951_s28 + $0x120] sm:$0xff] }
 0xac5   : > { %v14248_v20 = vmax.f32 %v14184_v24, 0.0  ;;  %v14186_v0 = vadd.f32 %v19435_v45, %v14122_v63  ;;  %v19446_v63 = vld [vmem:[%s19951_s28 + $0x128] sm:$0xff] }
 0xac6   : > { %v14249_v56 = vmax.f32 %v14185_v46, 0.0  ;;  %v14187_v6 = vadd.f32 %v19436_v17, %v14123_v33  ;;  %v19447_v33 = vld [vmem:[%s19951_s28 + $0x130] sm:$0xff] }
 0xac7   : > { %14312 = vst [vmem:[%s23336_s24 + $0xc0] sm:$0xff] %v14248_v20  ;;  %v14250_v16 = vmax.f32 %v14186_v0, 0.0  ;;  %v19448_v0 = vld [vmem:[%s19951_s28 + $0x138] sm:$0xff] }
 0xac8   : > { %14313 = vst [vmem:[%s23336_s24 + $0xc8] sm:$0xff] %v14249_v56  ;;  %v14251_v53 = vmax.f32 %v14187_v6, 0.0  ;;  %v13931_v49 = vpop.f32.mrb[28].mxu1 }
 0xac9   : > { %14314 = vst [vmem:[%s23336_s24 + $0xd0] sm:$0xff] %v14250_v16  ;;  %v14124_v52 = vadd.f32 %v23320_v28, %v13931_v49  ;;  %v13933_v39 = vpop.f32.mrb[29].mxu1 }
 0xaca   : > { %14315 = vst [vmem:[%s23336_s24 + $0xd8] sm:$0xff] %v14251_v53  ;;  %v14125_v11 = vadd.f32 %v23324_v48, %v13933_v39  ;;  %v13935_v34 = vpop.f32.mrb[30].mxu1 }
 0xacb   : > { %v14188_v21 = vadd.f32 %v19437_v36, %v14124_v52  ;;  %v14126_v51 = vadd.f32 %v23320_v28, %v13935_v34  ;;  %v13937_v32 = vpop.f32.mrb[31].mxu1 }
 0xacc   : > { %v14189_v58 = vadd.f32 %v19438_v47, %v14125_v11  ;;  %v14127_v60 = vadd.f32 %v23324_v48, %v13937_v32  ;;  %v19449_v11 = vld [vmem:[%s19951_s28 + $0x140] sm:$0xff] }
 0xacd   : > { %v14252_v41 = vmax.f32 %v14188_v21, 0.0  ;;  %v14190_v2 = vadd.f32 %v19439_v61, %v14126_v51  ;;  %v19450_v51 = vld [vmem:[%s19951_s28 + $0x148] sm:$0xff] }
 0xace   : > { %v14253_v3 = vmax.f32 %v14189_v58, 0.0  ;;  %v14191_v55 = vadd.f32 %v19440_v31, %v14127_v60  ;;  %v19451_v60 = vld [vmem:[%s19951_s28 + $0x150] sm:$0xff] }
 0xacf   : > { %14316 = vst [vmem:[%s23336_s24 + $0xe0] sm:$0xff] %v14252_v41  ;;  %v14254_v29 = vmax.f32 %v14190_v2, 0.0  ;;  %v19452_v2 = vld [vmem:[%s19951_s28 + $0x158] sm:$0xff] }
 0xad0   : > { %14317 = vst [vmem:[%s23336_s24 + $0xe8] sm:$0xff] %v14253_v3  ;;  %v14255_v62 = vmax.f32 %v14191_v55, 0.0  ;;  %v13941_v18 = vpop.f32.mrb[32].mxu1 }
 0xad1   : > { %14318 = vst [vmem:[%s23336_s24 + $0xf0] sm:$0xff] %v14254_v29  ;;  %v14128_v14 = vadd.f32 %v23320_v28, %v13941_v18  ;;  %v13943_v12 = vpop.f32.mrb[33].mxu1 }
 0xad2   : > { %14319 = vst [vmem:[%s23336_s24 + $0xf8] sm:$0xff] %v14255_v62  ;;  %v14129_v13 = vadd.f32 %v23324_v48, %v13943_v12  ;;  %v13945_v42 = vpop.f32.mrb[34].mxu1 }
 0xad3   : > { %v14192_v37 = vadd.f32 %v19441_v50, %v14128_v14  ;;  %v14130_v22 = vadd.f32 %v23320_v28, %v13945_v42  ;;  %v13947_v40 = vpop.f32.mrb[35].mxu1 }
 0xad4   : > { %v14193_v8 = vadd.f32 %v19442_v10, %v14129_v13  ;;  %v14131_v26 = vadd.f32 %v23324_v48, %v13947_v40  ;;  %v19453_v13 = vld [vmem:[%s19951_s28 + $0x160] sm:$0xff] }
 0xad5   : > { %v14256_v19 = vmax.f32 %v14192_v37, 0.0  ;;  %v14194_v30 = vadd.f32 %v19443_v5, %v14130_v22  ;;  %v19454_v22 = vld [vmem:[%s19951_s28 + $0x168] sm:$0xff] }
 0xad6   : > { %v14257_v27 = vmax.f32 %v14193_v8, 0.0  ;;  %v14195_v57 = vadd.f32 %v19444_v59, %v14131_v26  ;;  %v19455_v26 = vld [vmem:[%s19951_s28 + $0x170] sm:$0xff] }
 0xad7   : > { %14320 = vst [vmem:[%s23336_s24 + $0x100] sm:$0xff] %v14256_v19  ;;  %v14258_v4 = vmax.f32 %v14194_v30, 0.0  ;;  %v19456_v30 = vld [vmem:[%s19951_s28 + $0x178] sm:$0xff] }
 0xad8   : > { %14321 = vst [vmem:[%s23336_s24 + $0x108] sm:$0xff] %v14257_v27  ;;  %v14259_v25 = vmax.f32 %v14195_v57, 0.0  ;;  %v13951_v44 = vpop.f32.mrb[36].mxu1 }
 0xad9   : > { %14322 = vst [vmem:[%s23336_s24 + $0x110] sm:$0xff] %v14258_v4  ;;  %v14132_v43 = vadd.f32 %v23320_v28, %v13951_v44  ;;  %v13953_v7 = vpop.f32.mrb[37].mxu1 }
 0xada   : > { %14323 = vst [vmem:[%s23336_s24 + $0x118] sm:$0xff] %v14259_v25  ;;  %v14133_v38 = vadd.f32 %v23324_v48, %v13953_v7  ;;  %v13955_v54 = vpop.f32.mrb[38].mxu1 }
 0xadb   : > { %v14196_v35 = vadd.f32 %v19445_v9, %v14132_v43  ;;  %v14134_v23 = vadd.f32 %v23320_v28, %v13955_v54  ;;  %v13957_v24 = vpop.f32.mrb[39].mxu1 }
 0xadc   : > { %v14197_v15 = vadd.f32 %v19446_v63, %v14133_v38  ;;  %v14135_v1 = vadd.f32 %v23324_v48, %v13957_v24  ;;  %v19457_v38 = vld [vmem:[%s19951_s28 + $0x180] sm:$0xff] }
 0xadd   : > { %v14260_v46 = vmax.f32 %v14196_v35, 0.0  ;;  %v14198_v20 = vadd.f32 %v19447_v33, %v14134_v23  ;;  %v19458_v23 = vld [vmem:[%s19951_s28 + $0x188] sm:$0xff] }
 0xade   : > { %v14261_v45 = vmax.f32 %v14197_v15, 0.0  ;;  %v14199_v56 = vadd.f32 %v19448_v0, %v14135_v1  ;;  %v19459_v1 = vld [vmem:[%s19951_s28 + $0x190] sm:$0xff] }
 0xadf   : > { %14324 = vst [vmem:[%s23336_s24 + $0x120] sm:$0xff] %v14260_v46  ;;  %v14262_v17 = vmax.f32 %v14198_v20, 0.0  ;;  %v19460_v20 = vld [vmem:[%s19951_s28 + $0x198] sm:$0xff] }
 0xae0   : > { %14325 = vst [vmem:[%s23336_s24 + $0x128] sm:$0xff] %v14261_v45  ;;  %v14263_v6 = vmax.f32 %v14199_v56, 0.0  ;;  %v13961_v16 = vpop.f32.mrb[40].mxu1 }
 0xae1   : > { %14326 = vst [vmem:[%s23336_s24 + $0x130] sm:$0xff] %v14262_v17  ;;  %v14136_v53 = vadd.f32 %v23320_v28, %v13961_v16  ;;  %v13963_v49 = vpop.f32.mrb[41].mxu1 }
 0xae2   : > { %14327 = vst [vmem:[%s23336_s24 + $0x138] sm:$0xff] %v14263_v6  ;;  %v14137_v52 = vadd.f32 %v23324_v48, %v13963_v49  ;;  %v13965_v39 = vpop.f32.mrb[42].mxu1 }
 0xae3   : > { %v14200_v34 = vadd.f32 %v19449_v11, %v14136_v53  ;;  %v14138_v36 = vadd.f32 %v23320_v28, %v13965_v39  ;;  %v13967_v21 = vpop.f32.mrb[43].mxu1 }
 0xae4   : > { %v14201_v32 = vadd.f32 %v19450_v51, %v14137_v52  ;;  %v14139_v47 = vadd.f32 %v23324_v48, %v13967_v21  ;;  %v19461_v52 = vld [vmem:[%s19951_s28 + $0x1a0] sm:$0xff] }
 0xae5   : > { %v14264_v58 = vmax.f32 %v14200_v34, 0.0  ;;  %v14202_v41 = vadd.f32 %v19451_v60, %v14138_v36  ;;  %v19462_v36 = vld [vmem:[%s19951_s28 + $0x1a8] sm:$0xff] }
 0xae6   : > { %v14265_v61 = vmax.f32 %v14201_v32, 0.0  ;;  %v14203_v3 = vadd.f32 %v19452_v2, %v14139_v47  ;;  %v19463_v47 = vld [vmem:[%s19951_s28 + $0x1b0] sm:$0xff] }
 0xae7   : > { %14328 = vst [vmem:[%s23336_s24 + $0x140] sm:$0xff] %v14264_v58  ;;  %v14266_v31 = vmax.f32 %v14202_v41, 0.0  ;;  %v19464_v41 = vld [vmem:[%s19951_s28 + $0x1b8] sm:$0xff] }
 0xae8   : > { %14329 = vst [vmem:[%s23336_s24 + $0x148] sm:$0xff] %v14265_v61  ;;  %v14267_v55 = vmax.f32 %v14203_v3, 0.0  ;;  %v13971_v29 = vpop.f32.mrb[44].mxu1 }
 0xae9   : > { %14330 = vst [vmem:[%s23336_s24 + $0x150] sm:$0xff] %v14266_v31  ;;  %v14140_v62 = vadd.f32 %v23320_v28, %v13971_v29  ;;  %v13973_v18 = vpop.f32.mrb[45].mxu1 }
 0xaea   : > { %14331 = vst [vmem:[%s23336_s24 + $0x158] sm:$0xff] %v14267_v55  ;;  %v14141_v14 = vadd.f32 %v23324_v48, %v13973_v18  ;;  %v13975_v12 = vpop.f32.mrb[46].mxu1 }
 0xaeb   : > { %v14204_v42 = vadd.f32 %v19453_v13, %v14140_v62  ;;  %v14142_v50 = vadd.f32 %v23320_v28, %v13975_v12  ;;  %v13977_v37 = vpop.f32.mrb[47].mxu1 }
 0xaec   : > { %v14205_v40 = vadd.f32 %v19454_v22, %v14141_v14  ;;  %v14143_v10 = vadd.f32 %v23324_v48, %v13977_v37  ;;  %v19465_v14 = vld [vmem:[%s19951_s28 + $0x1c0] sm:$0xff] }
 0xaed   : > { %v14268_v8 = vmax.f32 %v14204_v42, 0.0  ;;  %v14206_v19 = vadd.f32 %v19455_v26, %v14142_v50  ;;  %v19466_v50 = vld [vmem:[%s19951_s28 + $0x1c8] sm:$0xff] }
 0xaee   : > { %v14269_v5 = vmax.f32 %v14205_v40, 0.0  ;;  %v14207_v27 = vadd.f32 %v19456_v30, %v14143_v10  ;;  %v19467_v10 = vld [vmem:[%s19951_s28 + $0x1d0] sm:$0xff] }
 0xaef   : > { %14332 = vst [vmem:[%s23336_s24 + $0x160] sm:$0xff] %v14268_v8  ;;  %v14270_v59 = vmax.f32 %v14206_v19, 0.0  ;;  %v19468_v19 = vld [vmem:[%s19951_s28 + $0x1d8] sm:$0xff] }
 0xaf0   : > { %14333 = vst [vmem:[%s23336_s24 + $0x168] sm:$0xff] %v14269_v5  ;;  %v14271_v57 = vmax.f32 %v14207_v27, 0.0  ;;  %v13981_v4 = vpop.f32.mrb[48].mxu1 }
 0xaf1   : > { %14334 = vst [vmem:[%s23336_s24 + $0x170] sm:$0xff] %v14270_v59  ;;  %v14144_v25 = vadd.f32 %v23320_v28, %v13981_v4  ;;  %v13983_v44 = vpop.f32.mrb[49].mxu1 }
 0xaf2   : > { %14335 = vst [vmem:[%s23336_s24 + $0x178] sm:$0xff] %v14271_v57  ;;  %v14145_v43 = vadd.f32 %v23324_v48, %v13983_v44  ;;  %v13985_v7 = vpop.f32.mrb[50].mxu1 }
 0xaf3   : > { %v14208_v54 = vadd.f32 %v19457_v38, %v14144_v25  ;;  %v14146_v9 = vadd.f32 %v23320_v28, %v13985_v7  ;;  %v13987_v35 = vpop.f32.mrb[51].mxu1 }
 0xaf4   : > { %v14209_v24 = vadd.f32 %v19458_v23, %v14145_v43  ;;  %v14147_v63 = vadd.f32 %v23324_v48, %v13987_v35  ;;  %v19469_v43 = vld [vmem:[%s19951_s28 + $0x1e0] sm:$0xff] }
 0xaf5   : > { %v14272_v15 = vmax.f32 %v14208_v54, 0.0  ;;  %v14210_v46 = vadd.f32 %v19459_v1, %v14146_v9  ;;  %v19470_v9 = vld [vmem:[%s19951_s28 + $0x1e8] sm:$0xff] }
 0xaf6   : > { %v14273_v33 = vmax.f32 %v14209_v24, 0.0  ;;  %v14211_v45 = vadd.f32 %v19460_v20, %v14147_v63  ;;  %v19471_v63 = vld [vmem:[%s19951_s28 + $0x1f0] sm:$0xff] }
 0xaf7   : > { %14336 = vst [vmem:[%s23336_s24 + $0x180] sm:$0xff] %v14272_v15  ;;  %v14274_v0 = vmax.f32 %v14210_v46, 0.0  ;;  %v19472_v46 = vld [vmem:[%s19951_s28 + $0x1f8] sm:$0xff] }
 0xaf8   : > { %14337 = vst [vmem:[%s23336_s24 + $0x188] sm:$0xff] %v14273_v33  ;;  %v14275_v56 = vmax.f32 %v14211_v45, 0.0  ;;  %v13991_v17 = vpop.f32.mrb[52].mxu1 }
 0xaf9   : > { %14338 = vst [vmem:[%s23336_s24 + $0x190] sm:$0xff] %v14274_v0  ;;  %v14148_v6 = vadd.f32 %v23320_v28, %v13991_v17  ;;  %v13993_v16 = vpop.f32.mrb[53].mxu1 }
 0xafa   : > { %14339 = vst [vmem:[%s23336_s24 + $0x198] sm:$0xff] %v14275_v56  ;;  %v14149_v53 = vadd.f32 %v23324_v48, %v13993_v16  ;;  %v13995_v49 = vpop.f32.mrb[54].mxu1 }
 0xafb   : > { %v14212_v39 = vadd.f32 %v19461_v52, %v14148_v6  ;;  %v14150_v11 = vadd.f32 %v23320_v28, %v13995_v49  ;;  %v13997_v34 = vpop.f32.mrb[55].mxu1 }
 0xafc   : > { %v14213_v21 = vadd.f32 %v19462_v36, %v14149_v53  ;;  %v14151_v51 = vadd.f32 %v23324_v48, %v13997_v34 }
 0xafd   : > { %v14276_v32 = vmax.f32 %v14212_v39, 0.0  ;;  %v14214_v58 = vadd.f32 %v19463_v47, %v14150_v11 }
 0xafe   : > { %v14277_v60 = vmax.f32 %v14213_v21, 0.0  ;;  %v14215_v61 = vadd.f32 %v19464_v41, %v14151_v51 }
 0xaff   : > { %14340 = vst [vmem:[%s23336_s24 + $0x1a0] sm:$0xff] %v14276_v32  ;;  %v14278_v2 = vmax.f32 %v14214_v58, 0.0 }
 0xb00   : > { %14341 = vst [vmem:[%s23336_s24 + $0x1a8] sm:$0xff] %v14277_v60  ;;  %v14279_v3 = vmax.f32 %v14215_v61, 0.0  ;;  %v14001_v31 = vpop.f32.mrb[56].mxu1 }
 0xb01   : > { %14342 = vst [vmem:[%s23336_s24 + $0x1b0] sm:$0xff] %v14278_v2  ;;  %v14152_v55 = vadd.f32 %v23320_v28, %v14001_v31  ;;  %v14003_v29 = vpop.f32.mrb[57].mxu1 }
 0xb02   : > { %14343 = vst [vmem:[%s23336_s24 + $0x1b8] sm:$0xff] %v14279_v3  ;;  %v14153_v62 = vadd.f32 %v23324_v48, %v14003_v29  ;;  %v14005_v18 = vpop.f32.mrb[58].mxu1 }
 0xb03   : > { %v14216_v12 = vadd.f32 %v19465_v14, %v14152_v55  ;;  %v14154_v13 = vadd.f32 %v23320_v28, %v14005_v18  ;;  %v14007_v42 = vpop.f32.mrb[59].mxu1 }
 0xb04   : > { %v14217_v37 = vadd.f32 %v19466_v50, %v14153_v62  ;;  %v14155_v22 = vadd.f32 %v23324_v48, %v14007_v42 }
 0xb05   : > { %v14280_v40 = vmax.f32 %v14216_v12, 0.0  ;;  %v14218_v8 = vadd.f32 %v19467_v10, %v14154_v13 }
 0xb06   : > { %v14281_v26 = vmax.f32 %v14217_v37, 0.0  ;;  %v14219_v5 = vadd.f32 %v19468_v19, %v14155_v22 }
 0xb07   : > { %14344 = vst [vmem:[%s23336_s24 + $0x1c0] sm:$0xff] %v14280_v40  ;;  %v14282_v30 = vmax.f32 %v14218_v8, 0.0 }
 0xb08   : > { %14345 = vst [vmem:[%s23336_s24 + $0x1c8] sm:$0xff] %v14281_v26  ;;  %v14283_v27 = vmax.f32 %v14219_v5, 0.0  ;;  %v14011_v59 = vpop.f32.mrb[60].mxu1 }
 0xb09   : > { %14346 = vst [vmem:[%s23336_s24 + $0x1d0] sm:$0xff] %v14282_v30  ;;  %v14156_v57 = vadd.f32 %v23320_v28, %v14011_v59  ;;  %v14013_v4 = vpop.f32.mrb[61].mxu1 }
 0xb0a   : > { %14347 = vst [vmem:[%s23336_s24 + $0x1d8] sm:$0xff] %v14283_v27  ;;  %v14157_v25 = vadd.f32 %v23324_v48, %v14013_v4  ;;  %v14015_v44 = vpop.f32.mrb[62].mxu1 }
 0xb0b   : > { %v14220_v7 = vadd.f32 %v19469_v43, %v14156_v57  ;;  %v14158_v38 = vadd.f32 %v23320_v28, %v14015_v44  ;;  %v14017_v54 = vpop.f32.mrb[63].mxu1 }
 0xb0c   : > { %v14221_v35 = vadd.f32 %v19470_v9, %v14157_v25  ;;  %v14159_v23 = vadd.f32 %v23324_v48, %v14017_v54 }
 0xb0d   : > { %v14284_v24 = vmax.f32 %v14220_v7, 0.0  ;;  %v14222_v15 = vadd.f32 %v19471_v63, %v14158_v38 }
 0xb0e   : > { %v14285_v1 = vmax.f32 %v14221_v35, 0.0  ;;  %v14223_v33 = vadd.f32 %v19472_v46, %v14159_v23 }
 0xb0f   : > { %14348 = vst [vmem:[%s23336_s24 + $0x1e0] sm:$0xff] %v14284_v24  ;;  %v14286_v28 = vmax.f32 %v14222_v15, 0.0 }
 0xb10   : > { %14349 = vst [vmem:[%s23336_s24 + $0x1e8] sm:$0xff] %v14285_v1  ;;  %v14287_v48 = vmax.f32 %v14223_v33, 0.0 }
 0xb11   : > { %14350 = vst [vmem:[%s23336_s24 + $0x1f0] sm:$0xff] %v14286_v28 }
 0xb12   : > { %14351 = vst [vmem:[%s23336_s24 + $0x1f8] sm:$0xff] %v14287_v48 }
 0xb13   : > { %19628 = shalt.err (!%p19625_p13)
}
 0xb14   : > { %s19629_s13 = scalar_lea.hbm %s23524_s8, 8192  ;;  %s19633_s17 = scalar_lea.hbm %s23578_s5, 16384 }
 0xb15   : > { %p19630_p9 = scmp.ne.s32.totalorder %s23524_s8, %s19629_s13  ;;  %p19634_p6 = scmp.lt.u32.totalorder %s23524_s8, %s23578_s5 }
 0xb16   : > { %p19635_p4 = scmp.lt.u32.totalorder %s19633_s17, %s19629_s13  ;;  %p19637_p3 = scmp.lt.u32.totalorder %s19629_s13, %s23524_s8 }
 0xb17   : > { %p19631_p0 = pnand %p19630_p9, %p19893_p10 }
 0xb18   : > { %p19636_p8 = por %p19635_p4, %p19634_p6 }
 0xb19   : > { %p19632_p11 = pneg %p19631_p0 }
 0xb1a   : > { %p19638_p5 = por %p19637_p3, %p19636_p8 }
 0xb1c   : > { %p19639_p7 = pnand %p19638_p5, %p19632_p11 }
 0xb1e   : > { %19642 = shalt.err (!%p19639_p7)
}
 0xb1f   : > { %s19702_s26 = smov 256   ;;  %s19703_s11 = smov 16  }
 0xb20   : > { %18380 = dma.vmem_to_hbm [thread:$0]  (%p19893_p10), %s23526_s9, 8192, %s23524_s8, %s14353_s22, %s19702_s26, %s19702_s26, %s19703_s11  }
 0xb21 PF: > { %s14382_s12 = sand.u32 1, %s19677_s18   ;;  %p24732_p12 = scmp.ne.s32.totalorder %s23951_s25, 0 }
 0xb22   : > { %p24733_p2 = scmp.ge.s32.totalorder %s19689_s21, 2  ;;  %s14383_s27 = scalar_lea.sflag [#allocation7], %s14382_s12 }
 0xb24   : > { %p18400_p1 = pnand %p24733_p2, %p24732_p12 }
 0xb26   : > { %19672 = dma.done.wait (!%p18400_p1), %s14383_s27, 8192  }
 0xb27   : > { %19674 = vsyncadd (!%p18400_p1), %s14383_s27, 4294959104  ;;  %p20_p13 = scmp.ge.s32.totalorder %s19883_s14, 4   ;;  %s24734_s18 = smov %s19681_s19 }
 0xb28   : > { %s24735_s19 = smov %s19685_s20  ;;  %s24736_s20 = smov %s19899_s23 }
 0xb29   : > { %s24737_s21 = smov %s19883_s14  ;;  %22 = sbr.rel (!%p20_p13) target bundleno = 7 (0x7), region = 126 }
 0xb30   :  { %14388 = vsyncpa [#allocation6], 1 }
 0xb31   :  { %14390 = vsyncpa [#allocation6 + $0x1], 1 }
 0xb32   :  { %14391 = vsyncpa [#allocation9], 1 }
 0xb33   :  { %14392 = vsyncpa [#allocation12], 1 }
 0xb34   :  { %14393 = vsyncpa [#allocation7], 1 }
 0xb35   :  { %14395 = vsyncpa [#allocation7 + $0x1], 1 }

</bundles_post_ra>
